<compile_context>
chip_gen: v5e
topology: v5e:2x2
jax: 0.10.0
libtpu: 0.0.40
codegen_flags: <defaults>
</compile_context>

<pallas_src>
import functools

import jax
import jax.numpy as jnp
from jax.experimental import pallas as pl
from jax.experimental.pallas import tpu as pltpu

# ----------------------- model hyper-parameters (small) -----------------------
BATCH = 2
IMG_SIZE = 16
PATCH = 8
IN_CHANS = 3
VISION_WIDTH = 32          # visual_cfg['embed_dim']
TEXT_WIDTH = 32            # text_cfg.hidden_size
NUM_HEADS = 4
VIT_DEPTH = 2
GPT_DEPTH = 2
MLP_RATIO = 4
NUM_LEARNABLE_TOKEN = 8    # config['num_learnable_token'] (scaled down from 256)
VOCAB = 128
SEQ_LEN = 8
MAX_POS = 64
PAD_TOKEN_ID = 0
VIT_EPS = 1e-6             # LayerNormWithForceFP32(eps=1e-6)
GPT_EPS = 1e-5             # GPT3 layer_norm_epsilon


# --------------------------- in-kernel math helpers ----------------------------
def _mm(a, w):
    """MXU matmul: bf16 operands, f32 accumulation."""
    return jnp.dot(a.astype(jnp.bfloat16), w.astype(jnp.bfloat16),
                   preferred_element_type=jnp.float32)


def _ln(x, g, b, eps):
    """LayerNorm with force-FP32 math. g/b broadcast as (1, D)."""
    x = x.astype(jnp.float32)
    mu = jnp.mean(x, axis=-1, keepdims=True)
    var = jnp.mean((x - mu) ** 2, axis=-1, keepdims=True)
    return (x - mu) * jax.lax.rsqrt(var + eps) * g + b


def _gelu(x):
    # TODO(synk): tanh-approx GELU; reference TimeSformer uses exact erf GELU.
    return 0.5 * x * (1.0 + jnp.tanh(0.7978845608028654 * (x + 0.044715 * x * x * x)))


def _attn_core(q, k, v, mask, num_heads, scale):
    """Multi-head scaled-dot-product attention on already-projected q/k/v.

    q: (Tq, D), k/v: (Tk, D); heads are static lane slices of width hd.
    Returns the lane-dense (Tq, D) context (output projection done by caller
    as ONE (Tq,D)@(D,D) matmul).
    """
    D = q.shape[-1]
    hd = D // num_heads
    outs = []
    for h in range(num_heads):                      # unrolled, H static & small
        lo, hi = h * hd, (h + 1) * hd
        qh, kh, vh = q[:, lo:hi], k[:, lo:hi], v[:, lo:hi]
        s = jax.lax.dot_general(                    # q @ k^T without explicit transpose
            qh.astype(jnp.bfloat16), kh.astype(jnp.bfloat16),
            dimension_numbers=(((1,), (1,)), ((), ())),
            preferred_element_type=jnp.float32) * scale
        if mask is not None:
            s = s + mask
        s = s - jnp.max(s, axis=-1, keepdims=True)
        p = jnp.exp(s)
        p = p * pl.reciprocal(jnp.sum(p, axis=-1, keepdims=True), approx=True)
        outs.append(_mm(p, vh))                     # (Tq, hd)
    return jnp.concatenate(outs, axis=-1)           # (Tq, D) lane-dense


def _block_body(x, mask, ln1g, ln1b, qkvw, qkvb, projw, projb,
                ln2g, ln2b, fc1w, fc1b, fc2w, fc2b, *, num_heads, eps):
    """Pre-norm transformer block (self-attn + MLP) for one batch element."""
    D = x.shape[-1]
    hd = D // num_heads
    scale = 1.0 / float(hd) ** 0.5

    h1 = _ln(x, ln1g, ln1b, eps)
    qkv = _mm(h1, qkvw) + qkvb                       # ONE fused (T,D)@(D,3D)
    q, k, v = qkv[:, :D], qkv[:, D:2 * D], qkv[:, 2 * D:]
    ctx = _attn_core(q, k, v, mask, num_heads, scale)
    x = x + _mm(ctx, projw) + projb                  # ONE (T,D)@(D,D) output proj

    h2 = _ln(x, ln2g, ln2b, eps)
    h2 = _gelu(_mm(h2, fc1w) + fc1b)
    x = x + _mm(h2, fc2w) + fc2b
    return x


# ------------------------------ Pallas kernels --------------------------------
def _block_kernel(*refs, num_heads, eps, use_keymask):
    """One full transformer block for a single batch element.

    use_keymask=True: second input is a (1,1,T) f32 key-mask row; the causal +
    padding additive mask is built in-kernel with broadcasted_iota (no (B,T,T)
    mask in HBM)."""
    if use_keymask:
        (x_ref, km_ref, ln1g, ln1b, qkvw, qkvb, projw, projb,
         ln2g, ln2b, fc1w, fc1b, fc2w, fc2b, o_ref) = refs
    else:
        (x_ref, ln1g, ln1b, qkvw, qkvb, projw, projb,
         ln2g, ln2b, fc1w, fc1b, fc2w, fc2b, o_ref) = refs
        km_ref = None

    x = x_ref[0].astype(jnp.float32)                 # (T, D)
    T = x.shape[0]

    mask = None
    if use_keymask:
        row = jax.lax.broadcasted_iota(jnp.int32, (T, T), 0)
        col = jax.lax.broadcasted_iota(jnp.int32, (T, T), 1)
        allowed = (col <= row) & (km_ref[0] > 0.5)   # causal & key-padding
        mask = jnp.where(allowed, 0.0, -1e9).astype(jnp.float32)

    out = _block_body(x, mask, ln1g[...], ln1b[...], qkvw[...], qkvb[...],
                      projw[...], projb[...], ln2g[...], ln2b[...],
                      fc1w[...], fc1b[...], fc2w[...], fc2b[...],
                      num_heads=num_heads, eps=eps)
    o_ref[0] = out.astype(o_ref.dtype)


def _vit_embed_block_kernel(p_ref, pw, ebias,
                            ln1g, ln1b, qkvw, qkvb, projw, projb,
                            ln2g, ln2b, fc1w, fc1b, fc2w, fc2b, o_ref,
                            *, num_heads, eps):
    """Patch-embed + cls/pos (folded into precomputed embed-bias) fused with the
    FIRST ViT transformer block, for one batch element.

    p_ref: (1, T, C*P*P) patches with a zero leading row for the cls slot.
    ebias: (1, T, D) = [cls+pos0 ; patch_b+pos_i] precomputed at init."""
    patches = p_ref[0].astype(jnp.float32)           # (T, Cpp)
    x = _mm(patches, pw[...]) + ebias[0]             # (T, D) embedded tokens
    out = _block_body(x, None, ln1g[...], ln1b[...], qkvw[...], qkvb[...],
                      projw[...], projb[...], ln2g[...], ln2b[...],
                      fc1w[...], fc1b[...], fc2w[...], fc2b[...],
                      num_heads=num_heads, eps=eps)
    o_ref[0] = out.astype(o_ref.dtype)


def _attn_pool_kernel(q_ref, x_ref, vlng, vlnb, lnqg, lnqb, lnkg, lnkb,
                      qw, qb, kw, kb, vw, vb, ow, ob, ln2g, ln2b,
                      fc1w, fc1b, fc2w, fc2b, fcw, fcb, o_ref,
                      *, num_heads, eps):
    """AttentionPool (cross-attn of learnable queries over image tokens), with the
    TimeSformer final LayerNorm fused on the key/value path and the visual_fc
    projection fused on the output, for one batch element."""
    queries = q_ref[0].astype(jnp.float32)           # (Q, D) shared across batch
    x = x_ref[0].astype(jnp.float32)                 # (N, D)
    D = queries.shape[-1]
    hd = D // num_heads
    scale = 1.0 / float(hd) ** 0.5

    x = _ln(x, vlng[...], vlnb[...], eps)            # visual encoder final norm (fused)
    qn = _ln(queries, lnqg[...], lnqb[...], eps)
    kn = _ln(x, lnkg[...], lnkb[...], eps)

    q = _mm(qn, qw[...]) + qb[...]                   # full-width projections
    k = _mm(kn, kw[...]) + kb[...]
    v = _mm(kn, vw[...]) + vb[...]
    ctx = _attn_core(q, k, v, None, num_heads, scale)
    out = queries + _mm(ctx, ow[...]) + ob[...]

    h = _ln(out, ln2g[...], ln2b[...], eps)
    h = _gelu(_mm(h, fc1w[...]) + fc1b[...])
    out = out + _mm(h, fc2w[...]) + fc2b[...]

    out = _mm(out, fcw[...]) + fcb[...]              # fused visual_fc (visual_norm = Identity)
    o_ref[0] = out.astype(o_ref.dtype)


def _lmhead_ce_kernel(x_ref, lnfg, lnfb, lmw, lmb, lbl_ref, loss_ref, *, eps):
    """Final LN -> LM head -> masked token-mean cross-entropy, fully fused.
    Logits never leave VMEM; single (1,1) loss output.
    TODO(synk): at real vocab sizes tile V with an online logsumexp (flash-CE)."""
    x = x_ref[...].astype(jnp.float32)               # (M, D)
    h = _ln(x, lnfg[...], lnfb[...], eps)
    logits = _mm(h, lmw[...]) + lmb[...]             # (M, V)

    lbl = lbl_ref[...]                               # (M, 1) int32, -100 = ignore
    mx = jnp.max(logits, axis=-1, keepdims=True)
    lse = jnp.log(jnp.sum(jnp.exp(logits - mx), axis=-1, keepdims=True)) + mx
    ids = jax.lax.broadcasted_iota(jnp.int32, logits.shape, 1)
    tgt = jnp.sum(jnp.where(ids == lbl, logits, 0.0), axis=-1, keepdims=True)
    valid = (lbl != -100).astype(jnp.float32)
    loss_vec = (lse - tgt) * valid                   # (M, 1)

    tot_loss = jnp.sum(loss_vec, axis=0, keepdims=True)    # (1, 1)
    tot_valid = jnp.sum(valid, axis=0, keepdims=True)      # (1, 1)
    loss_ref[...] = tot_loss / jnp.maximum(tot_valid, 1.0)


# ------------------------------- Pallas wrappers -------------------------------
def _const_spec(a):
    """BlockSpec for a weight identical at every grid step (no re-DMA)."""
    n = a.ndim

    def idx(b):
        return (0,) * n

    return pl.BlockSpec(a.shape, idx)


def _block_weights(p):
    return [p["ln1_g"], p["ln1_b"], p["qkv_w"], p["qkv_b"], p["proj_w"], p["proj_b"],
            p["ln2_g"], p["ln2_b"], p["fc1_w"], p["fc1_b"], p["fc2_w"], p["fc2_b"]]


def transformer_block(x, p, num_heads, key_mask=None, eps=VIT_EPS,
                      out_dtype=jnp.bfloat16):
    """x: (B, T, D); key_mask: optional (B, 1, T) f32 (1=attend, 0=pad)."""
    B, T, D = x.shape
    use_keymask = key_mask is not None
    weights = _block_weights(p)

    in_specs = [pl.BlockSpec((1, T, D), lambda b: (b, 0, 0))]
    args = [x]
    if use_keymask:
        in_specs.append(pl.BlockSpec((1, 1, T), lambda b: (b, 0, 0)))
        args.append(key_mask)
    in_specs += [_const_spec(w) for w in weights]
    args += weights

    return pl.pallas_call(
        functools.partial(_block_kernel, num_heads=num_heads, eps=eps,
                          use_keymask=use_keymask),
        out_shape=jax.ShapeDtypeStruct((B, T, D), out_dtype),
        grid=(B,),
        in_specs=in_specs,
        out_specs=pl.BlockSpec((1, T, D), lambda b: (b, 0, 0)),
        compiler_params=pltpu.CompilerParams(dimension_semantics=("parallel",)),
    )(*args)


def vit_embed_block(patches, vis_p, blk_p, num_heads, eps=VIT_EPS,
                    out_dtype=jnp.bfloat16):
    """patches: (B, T, C*P*P) with zero leading row (cls slot). Fuses patch-embed
    + cls/pos add + the first ViT block into one pallas_call."""
    B, T, Cpp = patches.shape
    D = vis_p["patch_w"].shape[1]
    weights = [vis_p["patch_w"], vis_p["embed_bias"]] + _block_weights(blk_p)

    in_specs = ([pl.BlockSpec((1, T, Cpp), lambda b: (b, 0, 0))]
                + [_const_spec(w) for w in weights])

    return pl.pallas_call(
        functools.partial(_vit_embed_block_kernel, num_heads=num_heads, eps=eps),
        out_shape=jax.ShapeDtypeStruct((B, T, D), out_dtype),
        grid=(B,),
        in_specs=in_specs,
        out_specs=pl.BlockSpec((1, T, D), lambda b: (b, 0, 0)),
        compiler_params=pltpu.CompilerParams(dimension_semantics=("parallel",)),
    )(patches, *weights)


def attn_pool(queries, x, vln_g, vln_b, p, fc_w, fc_b, num_heads, eps=VIT_EPS):
    """queries: (1, Q, D) learnable (shared); x: (B, N, D) pre-final-LN image tokens.
    Returns (B, Q, Dt): visual final LN + AttentionPool + visual_fc, all fused."""
    B, N, D = x.shape
    Q = queries.shape[1]
    Dt = fc_w.shape[1]

    weights = [vln_g, vln_b, p["lnq_g"], p["lnq_b"], p["lnk_g"], p["lnk_b"],
               p["q_w"], p["q_b"], p["k_w"], p["k_b"], p["v_w"], p["v_b"],
               p["o_w"], p["o_b"], p["ln2_g"], p["ln2_b"],
               p["fc1_w"], p["fc1_b"], p["fc2_w"], p["fc2_b"], fc_w, fc_b]

    in_specs = ([pl.BlockSpec((1, Q, D), lambda b: (0, 0, 0)),      # shared queries
                 pl.BlockSpec((1, N, D), lambda b: (b, 0, 0))]
                + [_const_spec(w) for w in weights])

    return pl.pallas_call(
        functools.partial(_attn_pool_kernel, num_heads=num_heads, eps=eps),
        out_shape=jax.ShapeDtypeStruct((B, Q, Dt), jnp.float32),
        grid=(B,),
        in_specs=in_specs,
        out_specs=pl.BlockSpec((1, Q, Dt), lambda b: (b, 0, 0)),
        compiler_params=pltpu.CompilerParams(dimension_semantics=("parallel",)),
    )(queries, x, *weights)


def lm_head_cross_entropy(x, labels, lnf_g, lnf_b, lm_w, lm_b, eps=GPT_EPS):
    """x: (B, L, D) decoder output, labels: (B, L) int32 (-100 ignore); mean loss."""
    B, L, D = x.shape
    V = lm_w.shape[1]
    M = B * L
    x2 = x.reshape(M, D)
    lbl = labels.reshape(M, 1).astype(jnp.int32)
    loss = pl.pallas_call(
        functools.partial(_lmhead_ce_kernel, eps=eps),
        out_shape=jax.ShapeDtypeStruct((1, 1), jnp.float32),
        grid=(1,),
        in_specs=[
            pl.BlockSpec((M, D), lambda i: (0, 0)),
            pl.BlockSpec((1, D), lambda i: (0, 0)),
            pl.BlockSpec((1, D), lambda i: (0, 0)),
            pl.BlockSpec((D, V), lambda i: (0, 0)),
            pl.BlockSpec((1, V), lambda i: (0, 0)),
            pl.BlockSpec((M, 1), lambda i: (0, 0)),
        ],
        out_specs=pl.BlockSpec((1, 1), lambda i: (0, 0)),
    )(x2, lnf_g, lnf_b, lm_w, lm_b, lbl)
    return loss[0, 0]


# --------------------------- model building blocks ----------------------------
def visual_encoder(image, p, num_heads):
    # Simplified TimeSformer with num_frames=1 (spatial-only ViT).
    # TODO(synk): temporal / divided space-time attention not modelled (num_frames=1).
    B, C, H, W = image.shape
    nph, npw = H // PATCH, W // PATCH
    # unfold NCHW -> (B, num_patches, C*P*P); conv patch-embed as matmul
    patches = image.reshape(B, C, nph, PATCH, npw, PATCH)
    patches = patches.transpose(0, 2, 4, 1, 3, 5).reshape(B, nph * npw, C * PATCH * PATCH)
    # zero leading row = cls-token slot (cls/pos folded into precomputed embed_bias)
    patches = jnp.pad(patches, ((0, 0), (1, 0), (0, 0)))
    x = vit_embed_block(patches, p, p["blocks"][0], num_heads, eps=VIT_EPS)
    for blk in p["blocks"][1:]:
        x = transformer_block(x, blk, num_heads, key_mask=None, eps=VIT_EPS)
    # final LayerNorm is fused into the attn_pool kernel
    return x


def gpt3_decoder(input_embeds, attention_mask, labels, p, num_heads):
    B, L, D = input_embeds.shape
    x = input_embeds + p["pos"][:, :L, :]
    key_mask = attention_mask.astype(jnp.float32).reshape(B, 1, L)   # (B,1,L), built in-kernel into causal mask
    for blk in p["blocks"]:
        x = transformer_block(x, blk, num_heads, key_mask=key_mask, eps=GPT_EPS)
    # shift: position t predicts label t+1; last position ignored (-100)
    shifted = jnp.concatenate(
        [labels[:, 1:], jnp.full((B, 1), -100, labels.dtype)], axis=1)
    loss = lm_head_cross_entropy(x, shifted, p["lnf_g"], p["lnf_b"],
                                 p["lm_w"], p["lm_b"], eps=GPT_EPS)
    return loss, x


def gpt3_pretrain_forward(params, image, text_input_ids, text_attention_mask):
    # _, image_embeds = self.visual_encoder(image)
    image_feats = visual_encoder(image, params["visual"], NUM_HEADS)
    B = image.shape[0]
    # image_query = attn_pool(learnable_queries.repeat(B,1,1), image_embeds)
    # query_features = visual_norm(visual_fc(image_query)); visual_norm = Identity
    # (visual final LN + attn_pool + visual_fc fused into one kernel)
    query_features = attn_pool(params["learnable_queries"], image_feats,
                               params["visual"]["ln_g"], params["visual"]["ln_b"],
                               params["attn_pool"],
                               params["visual_fc_w"], params["visual_fc_b"],
                               NUM_HEADS, eps=VIT_EPS)
    query_atts = jnp.ones((B, NUM_LEARNABLE_TOKEN), jnp.int32)
    # targets / empty_targets (prompt == '' so no prompt masking)
    targets = jnp.where(text_input_ids == PAD_TOKEN_ID, -100, text_input_ids).astype(jnp.int32)
    empty_targets = jnp.full((B, NUM_LEARNABLE_TOKEN), -100, jnp.int32)
    targets = jnp.concatenate([empty_targets, targets], axis=1)
    # input_embeds = word_embeddings(input_ids) ; concat with query_features
    input_embeds = jnp.take(params["text"]["wte"], text_input_ids, axis=0)
    input_embeds = jnp.concatenate([query_features, input_embeds], axis=1)
    attention_mask = jnp.concatenate([query_atts, text_attention_mask.astype(jnp.int32)], axis=1)
    loss_caption, _ = gpt3_decoder(input_embeds, attention_mask, targets,
                                   params["text"], NUM_HEADS)
    # use_contrastive = False branch
    # TODO(synk): contrastive branch (all_gather + distributed rank) not implemented (disabled by config).
    loss_contrastive = jnp.float32(0.0)
    return loss_caption, loss_contrastive


# ------------------------------ parameter init --------------------------------
class KeyGen:
    def __init__(self, key):
        self.key = key

    def __call__(self):
        self.key, sub = jax.random.split(self.key)
        return sub


def trunc_normal(key, shape, std=0.015):
    return std * jax.random.truncated_normal(key, -2.0, 2.0, shape, jnp.float32)


def init_block(kg, D):
    # Weights stored directly in kernel layout (fused QKV, (1,N) biases): no
    # per-forward reshape/transpose work.
    return dict(
        ln1_g=jnp.ones((1, D), jnp.float32), ln1_b=jnp.zeros((1, D), jnp.float32),
        qkv_w=trunc_normal(kg(), (D, 3 * D)), qkv_b=jnp.zeros((1, 3 * D), jnp.float32),
        proj_w=trunc_normal(kg(), (D, D)), proj_b=jnp.zeros((1, D), jnp.float32),
        ln2_g=jnp.ones((1, D), jnp.float32), ln2_b=jnp.zeros((1, D), jnp.float32),
        fc1_w=trunc_normal(kg(), (D, MLP_RATIO * D)),
        fc1_b=jnp.zeros((1, MLP_RATIO * D), jnp.float32),
        fc2_w=trunc_normal(kg(), (MLP_RATIO * D, D)),
        fc2_b=jnp.zeros((1, D), jnp.float32),
    )


def init_params(seed=0):
    kg = KeyGen(jax.random.PRNGKey(seed))
    n_patches = (IMG_SIZE // PATCH) ** 2
    T_vis = n_patches + 1

    patch_w = trunc_normal(kg(), (IN_CHANS * PATCH * PATCH, VISION_WIDTH))
    patch_b = jnp.zeros((1, VISION_WIDTH), jnp.float32)
    cls = trunc_normal(kg(), (1, 1, VISION_WIDTH))
    pos = trunc_normal(kg(), (1, T_vis, VISION_WIDTH))
    # Precomputed (once) embed bias: row 0 = cls + pos0 (patch row is zero),
    # rows i>=1 = patch_b + pos_i.  Lets the first-block kernel skip the concat.
    embed_bias = jnp.concatenate(
        [cls + pos[:, :1, :], pos[:, 1:, :] + patch_b[None, :, :]], axis=1)

    visual = dict(
        patch_w=patch_w,
        embed_bias=embed_bias,
        blocks=[init_block(kg, VISION_WIDTH) for _ in range(VIT_DEPTH)],
        ln_g=jnp.ones((1, VISION_WIDTH), jnp.float32),
        ln_b=jnp.zeros((1, VISION_WIDTH), jnp.float32),
    )
    attn_pool_p = dict(
        lnq_g=jnp.ones((1, VISION_WIDTH), jnp.float32), lnq_b=jnp.zeros((1, VISION_WIDTH), jnp.float32),
        lnk_g=jnp.ones((1, VISION_WIDTH), jnp.float32), lnk_b=jnp.zeros((1, VISION_WIDTH), jnp.float32),
        q_w=trunc_normal(kg(), (VISION_WIDTH, VISION_WIDTH)), q_b=jnp.zeros((1, VISION_WIDTH), jnp.float32),
        k_w=trunc_normal(kg(), (VISION_WIDTH, VISION_WIDTH)), k_b=jnp.zeros((1, VISION_WIDTH), jnp.float32),
        v_w=trunc_normal(kg(), (VISION_WIDTH, VISION_WIDTH)), v_b=jnp.zeros((1, VISION_WIDTH), jnp.float32),
        o_w=trunc_normal(kg(), (VISION_WIDTH, VISION_WIDTH)), o_b=jnp.zeros((1, VISION_WIDTH), jnp.float32),
        ln2_g=jnp.ones((1, VISION_WIDTH), jnp.float32), ln2_b=jnp.zeros((1, VISION_WIDTH), jnp.float32),
        fc1_w=trunc_normal(kg(), (VISION_WIDTH, MLP_RATIO * VISION_WIDTH)),
        fc1_b=jnp.zeros((1, MLP_RATIO * VISION_WIDTH), jnp.float32),
        fc2_w=trunc_normal(kg(), (MLP_RATIO * VISION_WIDTH, VISION_WIDTH)),
        fc2_b=jnp.zeros((1, VISION_WIDTH), jnp.float32),
    )
    wte = trunc_normal(kg(), (VOCAB, TEXT_WIDTH), std=0.02)
    text = dict(
        wte=wte,
        pos=trunc_normal(kg(), (1, MAX_POS, TEXT_WIDTH), std=0.02),
        blocks=[init_block(kg, TEXT_WIDTH) for _ in range(GPT_DEPTH)],
        lnf_g=jnp.ones((1, TEXT_WIDTH), jnp.float32),
        lnf_b=jnp.zeros((1, TEXT_WIDTH), jnp.float32),
        lm_w=wte.T,                                          # tied LM head (forward-only)
        lm_b=jnp.zeros((1, VOCAB), jnp.float32),
    )
    return dict(
        visual=visual,
        attn_pool=attn_pool_p,
        learnable_queries=trunc_normal(kg(), (1, NUM_LEARNABLE_TOKEN, VISION_WIDTH)),
        visual_fc_w=trunc_normal(kg(), (VISION_WIDTH, TEXT_WIDTH)),
        visual_fc_b=jnp.zeros((1, TEXT_WIDTH), jnp.float32),
        text=text,
    )


# ------------------------------------ main -------------------------------------
if __name__ == "__main__":
    params = init_params(seed=0)
    key = jax.random.PRNGKey(0)
    k_img, k_txt = jax.random.split(key)

    image = jax.random.normal(k_img, (BATCH, IN_CHANS, IMG_SIZE, IMG_SIZE), jnp.float32)
    text_input_ids = jax.random.randint(k_txt, (BATCH, SEQ_LEN), 1, VOCAB, jnp.int32)
    # simple padding pattern: second sample padded for last 3 tokens
    text_attention_mask = jnp.array(
        [[1] * SEQ_LEN, [1] * (SEQ_LEN - 3) + [0] * 3], jnp.int32)
    text_input_ids = jnp.where(text_attention_mask == 0, PAD_TOKEN_ID, text_input_ids)

    fwd = jax.jit(gpt3_pretrain_forward)
    loss_caption, loss_contrastive = fwd(params, image, text_input_ids, text_attention_mask)
    jax.block_until_ready((loss_caption, loss_contrastive))
    assert jnp.isfinite(loss_caption)
    print("KERNEL_OK")
</pallas_src>

<mosaic_0001>
module attributes {stable_mosaic.version = 11 : i64} {
  func.func @_vit_embed_block_kernel(%arg0: i32, %arg1: memref<1x5x192xf32, #tpu.memory_space<vmem>>, %arg2: memref<192x32xf32, #tpu.memory_space<vmem>>, %arg3: memref<1x5x32xf32, #tpu.memory_space<vmem>>, %arg4: memref<1x32xf32, #tpu.memory_space<vmem>>, %arg5: memref<1x32xf32, #tpu.memory_space<vmem>>, %arg6: memref<32x96xf32, #tpu.memory_space<vmem>>, %arg7: memref<1x96xf32, #tpu.memory_space<vmem>>, %arg8: memref<32x32xf32, #tpu.memory_space<vmem>>, %arg9: memref<1x32xf32, #tpu.memory_space<vmem>>, %arg10: memref<1x32xf32, #tpu.memory_space<vmem>>, %arg11: memref<1x32xf32, #tpu.memory_space<vmem>>, %arg12: memref<32x128xf32, #tpu.memory_space<vmem>>, %arg13: memref<1x128xf32, #tpu.memory_space<vmem>>, %arg14: memref<128x32xf32, #tpu.memory_space<vmem>>, %arg15: memref<1x32xf32, #tpu.memory_space<vmem>>, %arg16: memref<1x5x32xbf16, #tpu.memory_space<vmem>>) attributes {dimension_semantics = [#tpu.dimension_semantics<parallel>], iteration_bounds = array<i64: 2>, scalar_prefetch = 0 : i64, scratch_operands = 0 : i64, tpu.core_type = #tpu.core_type<tc>, window_params = [{transform_indices = @transform_0, window_bounds = array<i64: 1, 5, 192>}, {pipeline_mode = #tpu.pipeline_mode<synchronous>, transform_indices = @transform_1, window_bounds = array<i64: 192, 32>}, {pipeline_mode = #tpu.pipeline_mode<synchronous>, transform_indices = @transform_2, window_bounds = array<i64: 1, 5, 32>}, {pipeline_mode = #tpu.pipeline_mode<synchronous>, transform_indices = @transform_3, window_bounds = array<i64: 1, 32>}, {pipeline_mode = #tpu.pipeline_mode<synchronous>, transform_indices = @transform_4, window_bounds = array<i64: 1, 32>}, {pipeline_mode = #tpu.pipeline_mode<synchronous>, transform_indices = @transform_5, window_bounds = array<i64: 32, 96>}, {pipeline_mode = #tpu.pipeline_mode<synchronous>, transform_indices = @transform_6, window_bounds = array<i64: 1, 96>}, {pipeline_mode = #tpu.pipeline_mode<synchronous>, transform_indices = @transform_7, window_bounds = array<i64: 32, 32>}, {pipeline_mode = #tpu.pipeline_mode<synchronous>, transform_indices = @transform_8, window_bounds = array<i64: 1, 32>}, {pipeline_mode = #tpu.pipeline_mode<synchronous>, transform_indices = @transform_9, window_bounds = array<i64: 1, 32>}, {pipeline_mode = #tpu.pipeline_mode<synchronous>, transform_indices = @transform_10, window_bounds = array<i64: 1, 32>}, {pipeline_mode = #tpu.pipeline_mode<synchronous>, transform_indices = @transform_11, window_bounds = array<i64: 32, 128>}, {pipeline_mode = #tpu.pipeline_mode<synchronous>, transform_indices = @transform_12, window_bounds = array<i64: 1, 128>}, {pipeline_mode = #tpu.pipeline_mode<synchronous>, transform_indices = @transform_13, window_bounds = array<i64: 128, 32>}, {pipeline_mode = #tpu.pipeline_mode<synchronous>, transform_indices = @transform_14, window_bounds = array<i64: 1, 32>}, {transform_indices = @transform_15, window_bounds = array<i64: 1, 5, 32>}]} {
    %c0 = arith.constant 0 : index
    %c0_0 = arith.constant 0 : index
    %c0_1 = arith.constant 0 : index
    %0 = vector.load %arg1[%c0, %c0_0, %c0_1] : memref<1x5x192xf32, #tpu.memory_space<vmem>>, vector<1x5x192xf32>
    %1 = vector.shape_cast %0 : vector<1x5x192xf32> to vector<5x192xf32>
    %c0_2 = arith.constant 0 : index
    %c0_3 = arith.constant 0 : index
    %2 = vector.load %arg2[%c0_2, %c0_3] : memref<192x32xf32, #tpu.memory_space<vmem>>, vector<192x32xf32>
    %3 = arith.truncf %1 : vector<5x192xf32> to vector<5x192xbf16>
    %4 = arith.truncf %2 : vector<192x32xf32> to vector<192x32xbf16>
    %cst = arith.constant dense<0.000000e+00> : vector<5x32xf32>
    %5 = tpu.matmul %3, %4, %cst {dimension_numbers = #tpu.dot_dimension_numbers<[1], [0], [0], [1], [0, 0, 1, 1], [], []>} : vector<5x192xbf16>, vector<192x32xbf16>, vector<5x32xf32> -> vector<5x32xf32>
    %c0_4 = arith.constant 0 : index
    %c0_5 = arith.constant 0 : index
    %c0_6 = arith.constant 0 : index
    %6 = vector.load %arg3[%c0_4, %c0_5, %c0_6] : memref<1x5x32xf32, #tpu.memory_space<vmem>>, vector<1x5x32xf32>
    %7 = vector.shape_cast %6 : vector<1x5x32xf32> to vector<5x32xf32>
    %8 = arith.addf %5, %7 : vector<5x32xf32>
    %c0_7 = arith.constant 0 : index
    %c0_8 = arith.constant 0 : index
    %9 = vector.load %arg4[%c0_7, %c0_8] : memref<1x32xf32, #tpu.memory_space<vmem>>, vector<1x32xf32>
    %c0_9 = arith.constant 0 : index
    %c0_10 = arith.constant 0 : index
    %10 = vector.load %arg5[%c0_9, %c0_10] : memref<1x32xf32, #tpu.memory_space<vmem>>, vector<1x32xf32>
    %c0_11 = arith.constant 0 : index
    %c0_12 = arith.constant 0 : index
    %11 = vector.load %arg6[%c0_11, %c0_12] : memref<32x96xf32, #tpu.memory_space<vmem>>, vector<32x96xf32>
    %c0_13 = arith.constant 0 : index
    %c0_14 = arith.constant 0 : index
    %12 = vector.load %arg7[%c0_13, %c0_14] : memref<1x96xf32, #tpu.memory_space<vmem>>, vector<1x96xf32>
    %c0_15 = arith.constant 0 : index
    %c0_16 = arith.constant 0 : index
    %13 = vector.load %arg8[%c0_15, %c0_16] : memref<32x32xf32, #tpu.memory_space<vmem>>, vector<32x32xf32>
    %c0_17 = arith.constant 0 : index
    %c0_18 = arith.constant 0 : index
    %14 = vector.load %arg9[%c0_17, %c0_18] : memref<1x32xf32, #tpu.memory_space<vmem>>, vector<1x32xf32>
    %c0_19 = arith.constant 0 : index
    %c0_20 = arith.constant 0 : index
    %15 = vector.load %arg10[%c0_19, %c0_20] : memref<1x32xf32, #tpu.memory_space<vmem>>, vector<1x32xf32>
    %c0_21 = arith.constant 0 : index
    %c0_22 = arith.constant 0 : index
    %16 = vector.load %arg11[%c0_21, %c0_22] : memref<1x32xf32, #tpu.memory_space<vmem>>, vector<1x32xf32>
    %c0_23 = arith.constant 0 : index
    %c0_24 = arith.constant 0 : index
    %17 = vector.load %arg12[%c0_23, %c0_24] : memref<32x128xf32, #tpu.memory_space<vmem>>, vector<32x128xf32>
    %c0_25 = arith.constant 0 : index
    %c0_26 = arith.constant 0 : index
    %18 = vector.load %arg13[%c0_25, %c0_26] : memref<1x128xf32, #tpu.memory_space<vmem>>, vector<1x128xf32>
    %c0_27 = arith.constant 0 : index
    %c0_28 = arith.constant 0 : index
    %19 = vector.load %arg14[%c0_27, %c0_28] : memref<128x32xf32, #tpu.memory_space<vmem>>, vector<128x32xf32>
    %c0_29 = arith.constant 0 : index
    %c0_30 = arith.constant 0 : index
    %20 = vector.load %arg15[%c0_29, %c0_30] : memref<1x32xf32, #tpu.memory_space<vmem>>, vector<1x32xf32>
    %cst_31 = arith.constant dense<0.000000e+00> : vector<5xf32>
    %21 = vector.multi_reduction <add>, %8, %cst_31 [1] : vector<5x32xf32> to vector<5xf32>
    %22 = vector.shape_cast %21 : vector<5xf32> to vector<5x1xf32>
    %cst_32 = arith.constant 3.200000e+01 : f32
    %23 = vector.broadcast %cst_32 : f32 to vector<5x1xf32>
    %24 = arith.divf %22, %23 : vector<5x1xf32>
    %25 = vector.broadcast %24 : vector<5x1xf32> to vector<5x32xf32>
    %26 = arith.subf %8, %25 : vector<5x32xf32>
    %27 = arith.mulf %26, %26 : vector<5x32xf32>
    %cst_33 = arith.constant dense<0.000000e+00> : vector<5xf32>
    %28 = vector.multi_reduction <add>, %27, %cst_33 [1] : vector<5x32xf32> to vector<5xf32>
    %29 = vector.shape_cast %28 : vector<5xf32> to vector<5x1xf32>
    %cst_34 = arith.constant 3.200000e+01 : f32
    %30 = vector.broadcast %cst_34 : f32 to vector<5x1xf32>
    %31 = arith.divf %29, %30 : vector<5x1xf32>
    %32 = vector.broadcast %24 : vector<5x1xf32> to vector<5x32xf32>
    %33 = arith.subf %8, %32 : vector<5x32xf32>
    %cst_35 = arith.constant 9.99999997E-7 : f32
    %34 = vector.broadcast %cst_35 : f32 to vector<5x1xf32>
    %35 = arith.addf %31, %34 : vector<5x1xf32>
    %36 = math.rsqrt %35 : vector<5x1xf32>
    %37 = vector.broadcast %36 : vector<5x1xf32> to vector<5x32xf32>
    %38 = arith.mulf %33, %37 : vector<5x32xf32>
    %39 = vector.broadcast %9 : vector<1x32xf32> to vector<5x32xf32>
    %40 = arith.mulf %38, %39 : vector<5x32xf32>
    %41 = vector.broadcast %10 : vector<1x32xf32> to vector<5x32xf32>
    %42 = arith.addf %40, %41 : vector<5x32xf32>
    %43 = arith.truncf %42 : vector<5x32xf32> to vector<5x32xbf16>
    %44 = arith.truncf %11 : vector<32x96xf32> to vector<32x96xbf16>
    %cst_36 = arith.constant dense<0.000000e+00> : vector<5x96xf32>
    %45 = tpu.matmul %43, %44, %cst_36 {dimension_numbers = #tpu.dot_dimension_numbers<[1], [0], [0], [1], [0, 0, 1, 1], [], []>} : vector<5x32xbf16>, vector<32x96xbf16>, vector<5x96xf32> -> vector<5x96xf32>
    %46 = vector.broadcast %12 : vector<1x96xf32> to vector<5x96xf32>
    %47 = arith.addf %45, %46 : vector<5x96xf32>
    %48 = vector.extract_strided_slice %47 {offsets = [0, 0], sizes = [5, 32], strides = [1, 1]} : vector<5x96xf32> to vector<5x32xf32>
    %49 = vector.extract_strided_slice %47 {offsets = [0, 32], sizes = [5, 32], strides = [1, 1]} : vector<5x96xf32> to vector<5x32xf32>
    %50 = vector.extract_strided_slice %47 {offsets = [0, 64], sizes = [5, 32], strides = [1, 1]} : vector<5x96xf32> to vector<5x32xf32>
    %51 = vector.extract_strided_slice %48 {offsets = [0, 0], sizes = [5, 8], strides = [1, 1]} : vector<5x32xf32> to vector<5x8xf32>
    %52 = vector.extract_strided_slice %49 {offsets = [0, 0], sizes = [5, 8], strides = [1, 1]} : vector<5x32xf32> to vector<5x8xf32>
    %53 = vector.extract_strided_slice %50 {offsets = [0, 0], sizes = [5, 8], strides = [1, 1]} : vector<5x32xf32> to vector<5x8xf32>
    %54 = arith.truncf %51 : vector<5x8xf32> to vector<5x8xbf16>
    %55 = arith.truncf %52 : vector<5x8xf32> to vector<5x8xbf16>
    %cst_37 = arith.constant dense<0.000000e+00> : vector<5x5xf32>
    %56 = tpu.matmul %54, %55, %cst_37 {dimension_numbers = #tpu.dot_dimension_numbers<[1], [1], [0], [0], [0, 0, 1, 0], [], []>} : vector<5x8xbf16>, vector<5x8xbf16>, vector<5x5xf32> -> vector<5x5xf32>
    %cst_38 = arith.constant 0.353553385 : f32
    %57 = vector.broadcast %cst_38 : f32 to vector<5x5xf32>
    %58 = arith.mulf %56, %57 : vector<5x5xf32>
    %cst_39 = arith.constant dense<0xFF800000> : vector<5xf32>
    %59 = vector.multi_reduction <maximumf>, %58, %cst_39 [1] : vector<5x5xf32> to vector<5xf32>
    %60 = vector.shape_cast %59 : vector<5xf32> to vector<5x1xf32>
    %61 = vector.broadcast %60 : vector<5x1xf32> to vector<5x5xf32>
    %62 = arith.subf %58, %61 : vector<5x5xf32>
    %63 = math.exp %62 : vector<5x5xf32>
    %cst_40 = arith.constant dense<0.000000e+00> : vector<5xf32>
    %64 = vector.multi_reduction <add>, %63, %cst_40 [1] : vector<5x5xf32> to vector<5xf32>
    %65 = vector.shape_cast %64 : vector<5xf32> to vector<5x1xf32>
    %66 = tpu.reciprocal %65 {approx = true} : vector<5x1xf32> -> vector<5x1xf32>
    %67 = vector.broadcast %66 : vector<5x1xf32> to vector<5x5xf32>
    %68 = arith.mulf %63, %67 : vector<5x5xf32>
    %69 = arith.truncf %68 : vector<5x5xf32> to vector<5x5xbf16>
    %70 = arith.truncf %53 : vector<5x8xf32> to vector<5x8xbf16>
    %cst_41 = arith.constant dense<0.000000e+00> : vector<5x8xf32>
    %71 = tpu.matmul %69, %70, %cst_41 {dimension_numbers = #tpu.dot_dimension_numbers<[1], [0], [0], [1], [0, 0, 1, 1], [], []>} : vector<5x5xbf16>, vector<5x8xbf16>, vector<5x8xf32> -> vector<5x8xf32>
    %72 = vector.extract_strided_slice %48 {offsets = [0, 8], sizes = [5, 8], strides = [1, 1]} : vector<5x32xf32> to vector<5x8xf32>
    %73 = vector.extract_strided_slice %49 {offsets = [0, 8], sizes = [5, 8], strides = [1, 1]} : vector<5x32xf32> to vector<5x8xf32>
    %74 = vector.extract_strided_slice %50 {offsets = [0, 8], sizes = [5, 8], strides = [1, 1]} : vector<5x32xf32> to vector<5x8xf32>
    %75 = arith.truncf %72 : vector<5x8xf32> to vector<5x8xbf16>
    %76 = arith.truncf %73 : vector<5x8xf32> to vector<5x8xbf16>
    %cst_42 = arith.constant dense<0.000000e+00> : vector<5x5xf32>
    %77 = tpu.matmul %75, %76, %cst_42 {dimension_numbers = #tpu.dot_dimension_numbers<[1], [1], [0], [0], [0, 0, 1, 0], [], []>} : vector<5x8xbf16>, vector<5x8xbf16>, vector<5x5xf32> -> vector<5x5xf32>
    %cst_43 = arith.constant 0.353553385 : f32
    %78 = vector.broadcast %cst_43 : f32 to vector<5x5xf32>
    %79 = arith.mulf %77, %78 : vector<5x5xf32>
    %cst_44 = arith.constant dense<0xFF800000> : vector<5xf32>
    %80 = vector.multi_reduction <maximumf>, %79, %cst_44 [1] : vector<5x5xf32> to vector<5xf32>
    %81 = vector.shape_cast %80 : vector<5xf32> to vector<5x1xf32>
    %82 = vector.broadcast %81 : vector<5x1xf32> to vector<5x5xf32>
    %83 = arith.subf %79, %82 : vector<5x5xf32>
    %84 = math.exp %83 : vector<5x5xf32>
    %cst_45 = arith.constant dense<0.000000e+00> : vector<5xf32>
    %85 = vector.multi_reduction <add>, %84, %cst_45 [1] : vector<5x5xf32> to vector<5xf32>
    %86 = vector.shape_cast %85 : vector<5xf32> to vector<5x1xf32>
    %87 = tpu.reciprocal %86 {approx = true} : vector<5x1xf32> -> vector<5x1xf32>
    %88 = vector.broadcast %87 : vector<5x1xf32> to vector<5x5xf32>
    %89 = arith.mulf %84, %88 : vector<5x5xf32>
    %90 = arith.truncf %89 : vector<5x5xf32> to vector<5x5xbf16>
    %91 = arith.truncf %74 : vector<5x8xf32> to vector<5x8xbf16>
    %cst_46 = arith.constant dense<0.000000e+00> : vector<5x8xf32>
    %92 = tpu.matmul %90, %91, %cst_46 {dimension_numbers = #tpu.dot_dimension_numbers<[1], [0], [0], [1], [0, 0, 1, 1], [], []>} : vector<5x5xbf16>, vector<5x8xbf16>, vector<5x8xf32> -> vector<5x8xf32>
    %93 = vector.extract_strided_slice %48 {offsets = [0, 16], sizes = [5, 8], strides = [1, 1]} : vector<5x32xf32> to vector<5x8xf32>
    %94 = vector.extract_strided_slice %49 {offsets = [0, 16], sizes = [5, 8], strides = [1, 1]} : vector<5x32xf32> to vector<5x8xf32>
    %95 = vector.extract_strided_slice %50 {offsets = [0, 16], sizes = [5, 8], strides = [1, 1]} : vector<5x32xf32> to vector<5x8xf32>
    %96 = arith.truncf %93 : vector<5x8xf32> to vector<5x8xbf16>
    %97 = arith.truncf %94 : vector<5x8xf32> to vector<5x8xbf16>
    %cst_47 = arith.constant dense<0.000000e+00> : vector<5x5xf32>
    %98 = tpu.matmul %96, %97, %cst_47 {dimension_numbers = #tpu.dot_dimension_numbers<[1], [1], [0], [0], [0, 0, 1, 0], [], []>} : vector<5x8xbf16>, vector<5x8xbf16>, vector<5x5xf32> -> vector<5x5xf32>
    %cst_48 = arith.constant 0.353553385 : f32
    %99 = vector.broadcast %cst_48 : f32 to vector<5x5xf32>
    %100 = arith.mulf %98, %99 : vector<5x5xf32>
    %cst_49 = arith.constant dense<0xFF800000> : vector<5xf32>
    %101 = vector.multi_reduction <maximumf>, %100, %cst_49 [1] : vector<5x5xf32> to vector<5xf32>
    %102 = vector.shape_cast %101 : vector<5xf32> to vector<5x1xf32>
    %103 = vector.broadcast %102 : vector<5x1xf32> to vector<5x5xf32>
    %104 = arith.subf %100, %103 : vector<5x5xf32>
    %105 = math.exp %104 : vector<5x5xf32>
    %cst_50 = arith.constant dense<0.000000e+00> : vector<5xf32>
    %106 = vector.multi_reduction <add>, %105, %cst_50 [1] : vector<5x5xf32> to vector<5xf32>
    %107 = vector.shape_cast %106 : vector<5xf32> to vector<5x1xf32>
    %108 = tpu.reciprocal %107 {approx = true} : vector<5x1xf32> -> vector<5x1xf32>
    %109 = vector.broadcast %108 : vector<5x1xf32> to vector<5x5xf32>
    %110 = arith.mulf %105, %109 : vector<5x5xf32>
    %111 = arith.truncf %110 : vector<5x5xf32> to vector<5x5xbf16>
    %112 = arith.truncf %95 : vector<5x8xf32> to vector<5x8xbf16>
    %cst_51 = arith.constant dense<0.000000e+00> : vector<5x8xf32>
    %113 = tpu.matmul %111, %112, %cst_51 {dimension_numbers = #tpu.dot_dimension_numbers<[1], [0], [0], [1], [0, 0, 1, 1], [], []>} : vector<5x5xbf16>, vector<5x8xbf16>, vector<5x8xf32> -> vector<5x8xf32>
    %114 = vector.extract_strided_slice %48 {offsets = [0, 24], sizes = [5, 8], strides = [1, 1]} : vector<5x32xf32> to vector<5x8xf32>
    %115 = vector.extract_strided_slice %49 {offsets = [0, 24], sizes = [5, 8], strides = [1, 1]} : vector<5x32xf32> to vector<5x8xf32>
    %116 = vector.extract_strided_slice %50 {offsets = [0, 24], sizes = [5, 8], strides = [1, 1]} : vector<5x32xf32> to vector<5x8xf32>
    %117 = arith.truncf %114 : vector<5x8xf32> to vector<5x8xbf16>
    %118 = arith.truncf %115 : vector<5x8xf32> to vector<5x8xbf16>
    %cst_52 = arith.constant dense<0.000000e+00> : vector<5x5xf32>
    %119 = tpu.matmul %117, %118, %cst_52 {dimension_numbers = #tpu.dot_dimension_numbers<[1], [1], [0], [0], [0, 0, 1, 0], [], []>} : vector<5x8xbf16>, vector<5x8xbf16>, vector<5x5xf32> -> vector<5x5xf32>
    %cst_53 = arith.constant 0.353553385 : f32
    %120 = vector.broadcast %cst_53 : f32 to vector<5x5xf32>
    %121 = arith.mulf %119, %120 : vector<5x5xf32>
    %cst_54 = arith.constant dense<0xFF800000> : vector<5xf32>
    %122 = vector.multi_reduction <maximumf>, %121, %cst_54 [1] : vector<5x5xf32> to vector<5xf32>
    %123 = vector.shape_cast %122 : vector<5xf32> to vector<5x1xf32>
    %124 = vector.broadcast %123 : vector<5x1xf32> to vector<5x5xf32>
    %125 = arith.subf %121, %124 : vector<5x5xf32>
    %126 = math.exp %125 : vector<5x5xf32>
    %cst_55 = arith.constant dense<0.000000e+00> : vector<5xf32>
    %127 = vector.multi_reduction <add>, %126, %cst_55 [1] : vector<5x5xf32> to vector<5xf32>
    %128 = vector.shape_cast %127 : vector<5xf32> to vector<5x1xf32>
    %129 = tpu.reciprocal %128 {approx = true} : vector<5x1xf32> -> vector<5x1xf32>
    %130 = vector.broadcast %129 : vector<5x1xf32> to vector<5x5xf32>
    %131 = arith.mulf %126, %130 : vector<5x5xf32>
    %132 = arith.truncf %131 : vector<5x5xf32> to vector<5x5xbf16>
    %133 = arith.truncf %116 : vector<5x8xf32> to vector<5x8xbf16>
    %cst_56 = arith.constant dense<0.000000e+00> : vector<5x8xf32>
    %134 = tpu.matmul %132, %133, %cst_56 {dimension_numbers = #tpu.dot_dimension_numbers<[1], [0], [0], [1], [0, 0, 1, 1], [], []>} : vector<5x5xbf16>, vector<5x8xbf16>, vector<5x8xf32> -> vector<5x8xf32>
    %135 = tpu.concatenate %71, %92, %113, %134 in 1 : vector<5x8xf32>, vector<5x8xf32>, vector<5x8xf32>, vector<5x8xf32> -> vector<5x32xf32>
    %136 = arith.truncf %135 : vector<5x32xf32> to vector<5x32xbf16>
    %137 = arith.truncf %13 : vector<32x32xf32> to vector<32x32xbf16>
    %cst_57 = arith.constant dense<0.000000e+00> : vector<5x32xf32>
    %138 = tpu.matmul %136, %137, %cst_57 {dimension_numbers = #tpu.dot_dimension_numbers<[1], [0], [0], [1], [0, 0, 1, 1], [], []>} : vector<5x32xbf16>, vector<32x32xbf16>, vector<5x32xf32> -> vector<5x32xf32>
    %139 = arith.addf %8, %138 : vector<5x32xf32>
    %140 = vector.broadcast %14 : vector<1x32xf32> to vector<5x32xf32>
    %141 = arith.addf %139, %140 : vector<5x32xf32>
    %cst_58 = arith.constant dense<0.000000e+00> : vector<5xf32>
    %142 = vector.multi_reduction <add>, %141, %cst_58 [1] : vector<5x32xf32> to vector<5xf32>
    %143 = vector.shape_cast %142 : vector<5xf32> to vector<5x1xf32>
    %cst_59 = arith.constant 3.200000e+01 : f32
    %144 = vector.broadcast %cst_59 : f32 to vector<5x1xf32>
    %145 = arith.divf %143, %144 : vector<5x1xf32>
    %146 = vector.broadcast %145 : vector<5x1xf32> to vector<5x32xf32>
    %147 = arith.subf %141, %146 : vector<5x32xf32>
    %148 = arith.mulf %147, %147 : vector<5x32xf32>
    %cst_60 = arith.constant dense<0.000000e+00> : vector<5xf32>
    %149 = vector.multi_reduction <add>, %148, %cst_60 [1] : vector<5x32xf32> to vector<5xf32>
    %150 = vector.shape_cast %149 : vector<5xf32> to vector<5x1xf32>
    %cst_61 = arith.constant 3.200000e+01 : f32
    %151 = vector.broadcast %cst_61 : f32 to vector<5x1xf32>
    %152 = arith.divf %150, %151 : vector<5x1xf32>
    %153 = vector.broadcast %145 : vector<5x1xf32> to vector<5x32xf32>
    %154 = arith.subf %141, %153 : vector<5x32xf32>
    %cst_62 = arith.constant 9.99999997E-7 : f32
    %155 = vector.broadcast %cst_62 : f32 to vector<5x1xf32>
    %156 = arith.addf %152, %155 : vector<5x1xf32>
    %157 = math.rsqrt %156 : vector<5x1xf32>
    %158 = vector.broadcast %157 : vector<5x1xf32> to vector<5x32xf32>
    %159 = arith.mulf %154, %158 : vector<5x32xf32>
    %160 = vector.broadcast %15 : vector<1x32xf32> to vector<5x32xf32>
    %161 = arith.mulf %159, %160 : vector<5x32xf32>
    %162 = vector.broadcast %16 : vector<1x32xf32> to vector<5x32xf32>
    %163 = arith.addf %161, %162 : vector<5x32xf32>
    %164 = arith.truncf %163 : vector<5x32xf32> to vector<5x32xbf16>
    %165 = arith.truncf %17 : vector<32x128xf32> to vector<32x128xbf16>
    %cst_63 = arith.constant dense<0.000000e+00> : vector<5x128xf32>
    %166 = tpu.matmul %164, %165, %cst_63 {dimension_numbers = #tpu.dot_dimension_numbers<[1], [0], [0], [1], [0, 0, 1, 1], [], []>} : vector<5x32xbf16>, vector<32x128xbf16>, vector<5x128xf32> -> vector<5x128xf32>
    %167 = vector.broadcast %18 : vector<1x128xf32> to vector<5x128xf32>
    %168 = arith.addf %166, %167 : vector<5x128xf32>
    %cst_64 = arith.constant 5.000000e-01 : f32
    %169 = vector.broadcast %cst_64 : f32 to vector<5x128xf32>
    %170 = arith.mulf %169, %168 : vector<5x128xf32>
    %cst_65 = arith.constant 4.471500e-02 : f32
    %171 = vector.broadcast %cst_65 : f32 to vector<5x128xf32>
    %172 = arith.mulf %171, %168 : vector<5x128xf32>
    %173 = arith.mulf %172, %168 : vector<5x128xf32>
    %174 = arith.mulf %173, %168 : vector<5x128xf32>
    %175 = arith.addf %168, %174 : vector<5x128xf32>
    %cst_66 = arith.constant 0.797884583 : f32
    %176 = vector.broadcast %cst_66 : f32 to vector<5x128xf32>
    %177 = arith.mulf %176, %175 : vector<5x128xf32>
    %178 = math.tanh %177 : vector<5x128xf32>
    %cst_67 = arith.constant 1.000000e+00 : f32
    %179 = vector.broadcast %cst_67 : f32 to vector<5x128xf32>
    %180 = arith.addf %179, %178 : vector<5x128xf32>
    %181 = arith.mulf %170, %180 : vector<5x128xf32>
    %182 = arith.truncf %181 : vector<5x128xf32> to vector<5x128xbf16>
    %183 = arith.truncf %19 : vector<128x32xf32> to vector<128x32xbf16>
    %cst_68 = arith.constant dense<0.000000e+00> : vector<5x32xf32>
    %184 = tpu.matmul %182, %183, %cst_68 {dimension_numbers = #tpu.dot_dimension_numbers<[1], [0], [0], [1], [0, 0, 1, 1], [], []>} : vector<5x128xbf16>, vector<128x32xbf16>, vector<5x32xf32> -> vector<5x32xf32>
    %185 = arith.addf %141, %184 : vector<5x32xf32>
    %186 = vector.broadcast %20 : vector<1x32xf32> to vector<5x32xf32>
    %187 = arith.addf %185, %186 : vector<5x32xf32>
    %188 = arith.truncf %187 : vector<5x32xf32> to vector<5x32xbf16>
    %c0_69 = arith.constant 0 : index
    %c0_70 = arith.constant 0 : index
    %c0_71 = arith.constant 0 : index
    %189 = vector.load %arg16[%c0_69, %c0_70, %c0_71] : memref<1x5x32xbf16, #tpu.memory_space<vmem>>, vector<1x5x32xbf16>
    %190 = vector.shape_cast %189 : vector<1x5x32xbf16> to vector<5x32xbf16>
    %191 = vector.shape_cast %188 : vector<5x32xbf16> to vector<1x5x32xbf16>
    tpu.vector_store %arg16[%c0_69, %c0_70, %c0_71], %191 {strides = array<i32>} : memref<1x5x32xbf16, #tpu.memory_space<vmem>>, vector<1x5x32xbf16>,
    return
  }
  func.func @transform_0(%arg0: i32) -> (i32, i32, i32) {
    %c0_i32 = arith.constant 0 : i32
    %c0_i32_0 = arith.constant 0 : i32
    %c0_i32_1 = arith.constant 0 : i32
    return %arg0, %c0_i32, %c0_i32_0 : i32, i32, i32
  }
  func.func @transform_1(%arg0: i32) -> (i32, i32) {
    %c0_i32 = arith.constant 0 : i32
    %c0_i32_0 = arith.constant 0 : i32
    %c0_i32_1 = arith.constant 0 : i32
    return %c0_i32, %c0_i32_0 : i32, i32
  }
  func.func @transform_2(%arg0: i32) -> (i32, i32, i32) {
    %c0_i32 = arith.constant 0 : i32
    %c0_i32_0 = arith.constant 0 : i32
    %c0_i32_1 = arith.constant 0 : i32
    %c0_i32_2 = arith.constant 0 : i32
    return %c0_i32, %c0_i32_0, %c0_i32_1 : i32, i32, i32
  }
  func.func @transform_3(%arg0: i32) -> (i32, i32) {
    %c0_i32 = arith.constant 0 : i32
    %c0_i32_0 = arith.constant 0 : i32
    %c0_i32_1 = arith.constant 0 : i32
    return %c0_i32, %c0_i32_0 : i32, i32
  }
  func.func @transform_4(%arg0: i32) -> (i32, i32) {
    %c0_i32 = arith.constant 0 : i32
    %c0_i32_0 = arith.constant 0 : i32
    %c0_i32_1 = arith.constant 0 : i32
    return %c0_i32, %c0_i32_0 : i32, i32
  }
  func.func @transform_5(%arg0: i32) -> (i32, i32) {
    %c0_i32 = arith.constant 0 : i32
    %c0_i32_0 = arith.constant 0 : i32
    %c0_i32_1 = arith.constant 0 : i32
    return %c0_i32, %c0_i32_0 : i32, i32
  }
  func.func @transform_6(%arg0: i32) -> (i32, i32) {
    %c0_i32 = arith.constant 0 : i32
    %c0_i32_0 = arith.constant 0 : i32
    %c0_i32_1 = arith.constant 0 : i32
    return %c0_i32, %c0_i32_0 : i32, i32
  }
  func.func @transform_7(%arg0: i32) -> (i32, i32) {
    %c0_i32 = arith.constant 0 : i32
    %c0_i32_0 = arith.constant 0 : i32
    %c0_i32_1 = arith.constant 0 : i32
    return %c0_i32, %c0_i32_0 : i32, i32
  }
  func.func @transform_8(%arg0: i32) -> (i32, i32) {
    %c0_i32 = arith.constant 0 : i32
    %c0_i32_0 = arith.constant 0 : i32
    %c0_i32_1 = arith.constant 0 : i32
    return %c0_i32, %c0_i32_0 : i32, i32
  }
  func.func @transform_9(%arg0: i32) -> (i32, i32) {
    %c0_i32 = arith.constant 0 : i32
    %c0_i32_0 = arith.constant 0 : i32
    %c0_i32_1 = arith.constant 0 : i32
    return %c0_i32, %c0_i32_0 : i32, i32
  }
  func.func @transform_10(%arg0: i32) -> (i32, i32) {
    %c0_i32 = arith.constant 0 : i32
    %c0_i32_0 = arith.constant 0 : i32
    %c0_i32_1 = arith.constant 0 : i32
    return %c0_i32, %c0_i32_0 : i32, i32
  }
  func.func @transform_11(%arg0: i32) -> (i32, i32) {
    %c0_i32 = arith.constant 0 : i32
    %c0_i32_0 = arith.constant 0 : i32
    %c0_i32_1 = arith.constant 0 : i32
    return %c0_i32, %c0_i32_0 : i32, i32
  }
  func.func @transform_12(%arg0: i32) -> (i32, i32) {
    %c0_i32 = arith.constant 0 : i32
    %c0_i32_0 = arith.constant 0 : i32
    %c0_i32_1 = arith.constant 0 : i32
    return %c0_i32, %c0_i32_0 : i32, i32
  }
  func.func @transform_13(%arg0: i32) -> (i32, i32) {
    %c0_i32 = arith.constant 0 : i32
    %c0_i32_0 = arith.constant 0 : i32
    %c0_i32_1 = arith.constant 0 : i32
    return %c0_i32, %c0_i32_0 : i32, i32
  }
  func.func @transform_14(%arg0: i32) -> (i32, i32) {
    %c0_i32 = arith.constant 0 : i32
    %c0_i32_0 = arith.constant 0 : i32
    %c0_i32_1 = arith.constant 0 : i32
    return %c0_i32, %c0_i32_0 : i32, i32
  }
  func.func @transform_15(%arg0: i32) -> (i32, i32, i32) {
    %c0_i32 = arith.constant 0 : i32
    %c0_i32_0 = arith.constant 0 : i32
    %c0_i32_1 = arith.constant 0 : i32
    return %arg0, %c0_i32, %c0_i32_0 : i32, i32, i32
  }
}

module attributes {stable_mosaic.version = 11 : i64} {
  func.func @_attn_pool_kernel(%arg0: i32, %arg1: memref<1x8x32xf32, #tpu.memory_space<vmem>>, %arg2: memref<1x5x32xbf16, #tpu.memory_space<vmem>>, %arg3: memref<1x32xf32, #tpu.memory_space<vmem>>, %arg4: memref<1x32xf32, #tpu.memory_space<vmem>>, %arg5: memref<1x32xf32, #tpu.memory_space<vmem>>, %arg6: memref<1x32xf32, #tpu.memory_space<vmem>>, %arg7: memref<1x32xf32, #tpu.memory_space<vmem>>, %arg8: memref<1x32xf32, #tpu.memory_space<vmem>>, %arg9: memref<32x32xf32, #tpu.memory_space<vmem>>, %arg10: memref<1x32xf32, #tpu.memory_space<vmem>>, %arg11: memref<32x32xf32, #tpu.memory_space<vmem>>, %arg12: memref<1x32xf32, #tpu.memory_space<vmem>>, %arg13: memref<32x32xf32, #tpu.memory_space<vmem>>, %arg14: memref<1x32xf32, #tpu.memory_space<vmem>>, %arg15: memref<32x32xf32, #tpu.memory_space<vmem>>, %arg16: memref<1x32xf32, #tpu.memory_space<vmem>>, %arg17: memref<1x32xf32, #tpu.memory_space<vmem>>, %arg18: memref<1x32xf32, #tpu.memory_space<vmem>>, %arg19: memref<32x128xf32, #tpu.memory_space<vmem>>, %arg20: memref<1x128xf32, #tpu.memory_space<vmem>>, %arg21: memref<128x32xf32, #tpu.memory_space<vmem>>, %arg22: memref<1x32xf32, #tpu.memory_space<vmem>>, %arg23: memref<32x32xf32, #tpu.memory_space<vmem>>, %arg24: memref<1x32xf32, #tpu.memory_space<vmem>>, %arg25: memref<1x8x32xf32, #tpu.memory_space<vmem>>) attributes {dimension_semantics = [#tpu.dimension_semantics<parallel>], iteration_bounds = array<i64: 2>, scalar_prefetch = 0 : i64, scratch_operands = 0 : i64, tpu.core_type = #tpu.core_type<tc>, window_params = [{pipeline_mode = #tpu.pipeline_mode<synchronous>, transform_indices = @transform_0, window_bounds = array<i64: 1, 8, 32>}, {transform_indices = @transform_1, window_bounds = array<i64: 1, 5, 32>}, {pipeline_mode = #tpu.pipeline_mode<synchronous>, transform_indices = @transform_2, window_bounds = array<i64: 1, 32>}, {pipeline_mode = #tpu.pipeline_mode<synchronous>, transform_indices = @transform_3, window_bounds = array<i64: 1, 32>}, {pipeline_mode = #tpu.pipeline_mode<synchronous>, transform_indices = @transform_4, window_bounds = array<i64: 1, 32>}, {pipeline_mode = #tpu.pipeline_mode<synchronous>, transform_indices = @transform_5, window_bounds = array<i64: 1, 32>}, {pipeline_mode = #tpu.pipeline_mode<synchronous>, transform_indices = @transform_6, window_bounds = array<i64: 1, 32>}, {pipeline_mode = #tpu.pipeline_mode<synchronous>, transform_indices = @transform_7, window_bounds = array<i64: 1, 32>}, {pipeline_mode = #tpu.pipeline_mode<synchronous>, transform_indices = @transform_8, window_bounds = array<i64: 32, 32>}, {pipeline_mode = #tpu.pipeline_mode<synchronous>, transform_indices = @transform_9, window_bounds = array<i64: 1, 32>}, {pipeline_mode = #tpu.pipeline_mode<synchronous>, transform_indices = @transform_10, window_bounds = array<i64: 32, 32>}, {pipeline_mode = #tpu.pipeline_mode<synchronous>, transform_indices = @transform_11, window_bounds = array<i64: 1, 32>}, {pipeline_mode = #tpu.pipeline_mode<synchronous>, transform_indices = @transform_12, window_bounds = array<i64: 32, 32>}, {pipeline_mode = #tpu.pipeline_mode<synchronous>, transform_indices = @transform_13, window_bounds = array<i64: 1, 32>}, {pipeline_mode = #tpu.pipeline_mode<synchronous>, transform_indices = @transform_14, window_bounds = array<i64: 32, 32>}, {pipeline_mode = #tpu.pipeline_mode<synchronous>, transform_indices = @transform_15, window_bounds = array<i64: 1, 32>}, {pipeline_mode = #tpu.pipeline_mode<synchronous>, transform_indices = @transform_16, window_bounds = array<i64: 1, 32>}, {pipeline_mode = #tpu.pipeline_mode<synchronous>, transform_indices = @transform_17, window_bounds = array<i64: 1, 32>}, {pipeline_mode = #tpu.pipeline_mode<synchronous>, transform_indices = @transform_18, window_bounds = array<i64: 32, 128>}, {pipeline_mode = #tpu.pipeline_mode<synchronous>, transform_indices = @transform_19, window_bounds = array<i64: 1, 128>}, {pipeline_mode = #tpu.pipeline_mode<synchronous>, transform_indices = @transform_20, window_bounds = array<i64: 128, 32>}, {pipeline_mode = #tpu.pipeline_mode<synchronous>, transform_indices = @transform_21, window_bounds = array<i64: 1, 32>}, {pipeline_mode = #tpu.pipeline_mode<synchronous>, transform_indices = @transform_22, window_bounds = array<i64: 32, 32>}, {pipeline_mode = #tpu.pipeline_mode<synchronous>, transform_indices = @transform_23, window_bounds = array<i64: 1, 32>}, {transform_indices = @transform_24, window_bounds = array<i64: 1, 8, 32>}]} {
    %c0 = arith.constant 0 : index
    %c0_0 = arith.constant 0 : index
    %c0_1 = arith.constant 0 : index
    %0 = vector.load %arg1[%c0, %c0_0, %c0_1] : memref<1x8x32xf32, #tpu.memory_space<vmem>>, vector<1x8x32xf32>
    %1 = vector.shape_cast %0 : vector<1x8x32xf32> to vector<8x32xf32>
    %c0_2 = arith.constant 0 : index
    %c0_3 = arith.constant 0 : index
    %c0_4 = arith.constant 0 : index
    %2 = vector.load %arg2[%c0_2, %c0_3, %c0_4] : memref<1x5x32xbf16, #tpu.memory_space<vmem>>, vector<1x5x32xbf16>
    %3 = vector.shape_cast %2 : vector<1x5x32xbf16> to vector<5x32xbf16>
    %4 = arith.extf %3 : vector<5x32xbf16> to vector<5x32xf32>
    %c0_5 = arith.constant 0 : index
    %c0_6 = arith.constant 0 : index
    %5 = vector.load %arg3[%c0_5, %c0_6] : memref<1x32xf32, #tpu.memory_space<vmem>>, vector<1x32xf32>
    %c0_7 = arith.constant 0 : index
    %c0_8 = arith.constant 0 : index
    %6 = vector.load %arg4[%c0_7, %c0_8] : memref<1x32xf32, #tpu.memory_space<vmem>>, vector<1x32xf32>
    %cst = arith.constant dense<0.000000e+00> : vector<5xf32>
    %7 = vector.multi_reduction <add>, %4, %cst [1] : vector<5x32xf32> to vector<5xf32>
    %8 = vector.shape_cast %7 : vector<5xf32> to vector<5x1xf32>
    %cst_9 = arith.constant 3.200000e+01 : f32
    %9 = vector.broadcast %cst_9 : f32 to vector<5x1xf32>
    %10 = arith.divf %8, %9 : vector<5x1xf32>
    %11 = vector.broadcast %10 : vector<5x1xf32> to vector<5x32xf32>
    %12 = arith.subf %4, %11 : vector<5x32xf32>
    %13 = arith.mulf %12, %12 : vector<5x32xf32>
    %cst_10 = arith.constant dense<0.000000e+00> : vector<5xf32>
    %14 = vector.multi_reduction <add>, %13, %cst_10 [1] : vector<5x32xf32> to vector<5xf32>
    %15 = vector.shape_cast %14 : vector<5xf32> to vector<5x1xf32>
    %cst_11 = arith.constant 3.200000e+01 : f32
    %16 = vector.broadcast %cst_11 : f32 to vector<5x1xf32>
    %17 = arith.divf %15, %16 : vector<5x1xf32>
    %18 = vector.broadcast %10 : vector<5x1xf32> to vector<5x32xf32>
    %19 = arith.subf %4, %18 : vector<5x32xf32>
    %cst_12 = arith.constant 9.99999997E-7 : f32
    %20 = vector.broadcast %cst_12 : f32 to vector<5x1xf32>
    %21 = arith.addf %17, %20 : vector<5x1xf32>
    %22 = math.rsqrt %21 : vector<5x1xf32>
    %23 = vector.broadcast %22 : vector<5x1xf32> to vector<5x32xf32>
    %24 = arith.mulf %19, %23 : vector<5x32xf32>
    %25 = vector.broadcast %5 : vector<1x32xf32> to vector<5x32xf32>
    %26 = arith.mulf %24, %25 : vector<5x32xf32>
    %27 = vector.broadcast %6 : vector<1x32xf32> to vector<5x32xf32>
    %28 = arith.addf %26, %27 : vector<5x32xf32>
    %c0_13 = arith.constant 0 : index
    %c0_14 = arith.constant 0 : index
    %29 = vector.load %arg5[%c0_13, %c0_14] : memref<1x32xf32, #tpu.memory_space<vmem>>, vector<1x32xf32>
    %c0_15 = arith.constant 0 : index
    %c0_16 = arith.constant 0 : index
    %30 = vector.load %arg6[%c0_15, %c0_16] : memref<1x32xf32, #tpu.memory_space<vmem>>, vector<1x32xf32>
    %cst_17 = arith.constant dense<0.000000e+00> : vector<8xf32>
    %31 = vector.multi_reduction <add>, %1, %cst_17 [1] : vector<8x32xf32> to vector<8xf32>
    %32 = vector.shape_cast %31 : vector<8xf32> to vector<8x1xf32>
    %cst_18 = arith.constant 3.200000e+01 : f32
    %33 = vector.broadcast %cst_18 : f32 to vector<8x1xf32>
    %34 = arith.divf %32, %33 : vector<8x1xf32>
    %35 = vector.broadcast %34 : vector<8x1xf32> to vector<8x32xf32>
    %36 = arith.subf %1, %35 : vector<8x32xf32>
    %37 = arith.mulf %36, %36 : vector<8x32xf32>
    %cst_19 = arith.constant dense<0.000000e+00> : vector<8xf32>
    %38 = vector.multi_reduction <add>, %37, %cst_19 [1] : vector<8x32xf32> to vector<8xf32>
    %39 = vector.shape_cast %38 : vector<8xf32> to vector<8x1xf32>
    %cst_20 = arith.constant 3.200000e+01 : f32
    %40 = vector.broadcast %cst_20 : f32 to vector<8x1xf32>
    %41 = arith.divf %39, %40 : vector<8x1xf32>
    %42 = vector.broadcast %34 : vector<8x1xf32> to vector<8x32xf32>
    %43 = arith.subf %1, %42 : vector<8x32xf32>
    %cst_21 = arith.constant 9.99999997E-7 : f32
    %44 = vector.broadcast %cst_21 : f32 to vector<8x1xf32>
    %45 = arith.addf %41, %44 : vector<8x1xf32>
    %46 = math.rsqrt %45 : vector<8x1xf32>
    %47 = vector.broadcast %46 : vector<8x1xf32> to vector<8x32xf32>
    %48 = arith.mulf %43, %47 : vector<8x32xf32>
    %49 = vector.broadcast %29 : vector<1x32xf32> to vector<8x32xf32>
    %50 = arith.mulf %48, %49 : vector<8x32xf32>
    %51 = vector.broadcast %30 : vector<1x32xf32> to vector<8x32xf32>
    %52 = arith.addf %50, %51 : vector<8x32xf32>
    %c0_22 = arith.constant 0 : index
    %c0_23 = arith.constant 0 : index
    %53 = vector.load %arg7[%c0_22, %c0_23] : memref<1x32xf32, #tpu.memory_space<vmem>>, vector<1x32xf32>
    %c0_24 = arith.constant 0 : index
    %c0_25 = arith.constant 0 : index
    %54 = vector.load %arg8[%c0_24, %c0_25] : memref<1x32xf32, #tpu.memory_space<vmem>>, vector<1x32xf32>
    %cst_26 = arith.constant dense<0.000000e+00> : vector<5xf32>
    %55 = vector.multi_reduction <add>, %28, %cst_26 [1] : vector<5x32xf32> to vector<5xf32>
    %56 = vector.shape_cast %55 : vector<5xf32> to vector<5x1xf32>
    %cst_27 = arith.constant 3.200000e+01 : f32
    %57 = vector.broadcast %cst_27 : f32 to vector<5x1xf32>
    %58 = arith.divf %56, %57 : vector<5x1xf32>
    %59 = vector.broadcast %58 : vector<5x1xf32> to vector<5x32xf32>
    %60 = arith.subf %28, %59 : vector<5x32xf32>
    %61 = arith.mulf %60, %60 : vector<5x32xf32>
    %cst_28 = arith.constant dense<0.000000e+00> : vector<5xf32>
    %62 = vector.multi_reduction <add>, %61, %cst_28 [1] : vector<5x32xf32> to vector<5xf32>
    %63 = vector.shape_cast %62 : vector<5xf32> to vector<5x1xf32>
    %cst_29 = arith.constant 3.200000e+01 : f32
    %64 = vector.broadcast %cst_29 : f32 to vector<5x1xf32>
    %65 = arith.divf %63, %64 : vector<5x1xf32>
    %66 = vector.broadcast %58 : vector<5x1xf32> to vector<5x32xf32>
    %67 = arith.subf %28, %66 : vector<5x32xf32>
    %cst_30 = arith.constant 9.99999997E-7 : f32
    %68 = vector.broadcast %cst_30 : f32 to vector<5x1xf32>
    %69 = arith.addf %65, %68 : vector<5x1xf32>
    %70 = math.rsqrt %69 : vector<5x1xf32>
    %71 = vector.broadcast %70 : vector<5x1xf32> to vector<5x32xf32>
    %72 = arith.mulf %67, %71 : vector<5x32xf32>
    %73 = vector.broadcast %53 : vector<1x32xf32> to vector<5x32xf32>
    %74 = arith.mulf %72, %73 : vector<5x32xf32>
    %75 = vector.broadcast %54 : vector<1x32xf32> to vector<5x32xf32>
    %76 = arith.addf %74, %75 : vector<5x32xf32>
    %c0_31 = arith.constant 0 : index
    %c0_32 = arith.constant 0 : index
    %77 = vector.load %arg9[%c0_31, %c0_32] : memref<32x32xf32, #tpu.memory_space<vmem>>, vector<32x32xf32>
    %78 = arith.truncf %52 : vector<8x32xf32> to vector<8x32xbf16>
    %79 = arith.truncf %77 : vector<32x32xf32> to vector<32x32xbf16>
    %cst_33 = arith.constant dense<0.000000e+00> : vector<8x32xf32>
    %80 = tpu.matmul %78, %79, %cst_33 {dimension_numbers = #tpu.dot_dimension_numbers<[1], [0], [0], [1], [0, 0, 1, 1], [], []>} : vector<8x32xbf16>, vector<32x32xbf16>, vector<8x32xf32> -> vector<8x32xf32>
    %c0_34 = arith.constant 0 : index
    %c0_35 = arith.constant 0 : index
    %81 = vector.load %arg10[%c0_34, %c0_35] : memref<1x32xf32, #tpu.memory_space<vmem>>, vector<1x32xf32>
    %82 = vector.broadcast %81 : vector<1x32xf32> to vector<8x32xf32>
    %83 = arith.addf %80, %82 : vector<8x32xf32>
    %c0_36 = arith.constant 0 : index
    %c0_37 = arith.constant 0 : index
    %84 = vector.load %arg11[%c0_36, %c0_37] : memref<32x32xf32, #tpu.memory_space<vmem>>, vector<32x32xf32>
    %85 = arith.truncf %76 : vector<5x32xf32> to vector<5x32xbf16>
    %86 = arith.truncf %84 : vector<32x32xf32> to vector<32x32xbf16>
    %cst_38 = arith.constant dense<0.000000e+00> : vector<5x32xf32>
    %87 = tpu.matmul %85, %86, %cst_38 {dimension_numbers = #tpu.dot_dimension_numbers<[1], [0], [0], [1], [0, 0, 1, 1], [], []>} : vector<5x32xbf16>, vector<32x32xbf16>, vector<5x32xf32> -> vector<5x32xf32>
    %c0_39 = arith.constant 0 : index
    %c0_40 = arith.constant 0 : index
    %88 = vector.load %arg12[%c0_39, %c0_40] : memref<1x32xf32, #tpu.memory_space<vmem>>, vector<1x32xf32>
    %89 = vector.broadcast %88 : vector<1x32xf32> to vector<5x32xf32>
    %90 = arith.addf %87, %89 : vector<5x32xf32>
    %c0_41 = arith.constant 0 : index
    %c0_42 = arith.constant 0 : index
    %91 = vector.load %arg13[%c0_41, %c0_42] : memref<32x32xf32, #tpu.memory_space<vmem>>, vector<32x32xf32>
    %92 = arith.truncf %76 : vector<5x32xf32> to vector<5x32xbf16>
    %93 = arith.truncf %91 : vector<32x32xf32> to vector<32x32xbf16>
    %cst_43 = arith.constant dense<0.000000e+00> : vector<5x32xf32>
    %94 = tpu.matmul %92, %93, %cst_43 {dimension_numbers = #tpu.dot_dimension_numbers<[1], [0], [0], [1], [0, 0, 1, 1], [], []>} : vector<5x32xbf16>, vector<32x32xbf16>, vector<5x32xf32> -> vector<5x32xf32>
    %c0_44 = arith.constant 0 : index
    %c0_45 = arith.constant 0 : index
    %95 = vector.load %arg14[%c0_44, %c0_45] : memref<1x32xf32, #tpu.memory_space<vmem>>, vector<1x32xf32>
    %96 = vector.broadcast %95 : vector<1x32xf32> to vector<5x32xf32>
    %97 = arith.addf %94, %96 : vector<5x32xf32>
    %98 = vector.extract_strided_slice %83 {offsets = [0, 0], sizes = [8, 8], strides = [1, 1]} : vector<8x32xf32> to vector<8x8xf32>
    %99 = vector.extract_strided_slice %90 {offsets = [0, 0], sizes = [5, 8], strides = [1, 1]} : vector<5x32xf32> to vector<5x8xf32>
    %100 = vector.extract_strided_slice %97 {offsets = [0, 0], sizes = [5, 8], strides = [1, 1]} : vector<5x32xf32> to vector<5x8xf32>
    %101 = arith.truncf %98 : vector<8x8xf32> to vector<8x8xbf16>
    %102 = arith.truncf %99 : vector<5x8xf32> to vector<5x8xbf16>
    %cst_46 = arith.constant dense<0.000000e+00> : vector<8x5xf32>
    %103 = tpu.matmul %101, %102, %cst_46 {dimension_numbers = #tpu.dot_dimension_numbers<[1], [1], [0], [0], [0, 0, 1, 0], [], []>} : vector<8x8xbf16>, vector<5x8xbf16>, vector<8x5xf32> -> vector<8x5xf32>
    %cst_47 = arith.constant 0.353553385 : f32
    %104 = vector.broadcast %cst_47 : f32 to vector<8x5xf32>
    %105 = arith.mulf %103, %104 : vector<8x5xf32>
    %cst_48 = arith.constant dense<0xFF800000> : vector<8xf32>
    %106 = vector.multi_reduction <maximumf>, %105, %cst_48 [1] : vector<8x5xf32> to vector<8xf32>
    %107 = vector.shape_cast %106 : vector<8xf32> to vector<8x1xf32>
    %108 = vector.broadcast %107 : vector<8x1xf32> to vector<8x5xf32>
    %109 = arith.subf %105, %108 : vector<8x5xf32>
    %110 = math.exp %109 : vector<8x5xf32>
    %cst_49 = arith.constant dense<0.000000e+00> : vector<8xf32>
    %111 = vector.multi_reduction <add>, %110, %cst_49 [1] : vector<8x5xf32> to vector<8xf32>
    %112 = vector.shape_cast %111 : vector<8xf32> to vector<8x1xf32>
    %113 = tpu.reciprocal %112 {approx = true} : vector<8x1xf32> -> vector<8x1xf32>
    %114 = vector.broadcast %113 : vector<8x1xf32> to vector<8x5xf32>
    %115 = arith.mulf %110, %114 : vector<8x5xf32>
    %116 = arith.truncf %115 : vector<8x5xf32> to vector<8x5xbf16>
    %117 = arith.truncf %100 : vector<5x8xf32> to vector<5x8xbf16>
    %cst_50 = arith.constant dense<0.000000e+00> : vector<8x8xf32>
    %118 = tpu.matmul %116, %117, %cst_50 {dimension_numbers = #tpu.dot_dimension_numbers<[1], [0], [0], [1], [0, 0, 1, 1], [], []>} : vector<8x5xbf16>, vector<5x8xbf16>, vector<8x8xf32> -> vector<8x8xf32>
    %119 = vector.extract_strided_slice %83 {offsets = [0, 8], sizes = [8, 8], strides = [1, 1]} : vector<8x32xf32> to vector<8x8xf32>
    %120 = vector.extract_strided_slice %90 {offsets = [0, 8], sizes = [5, 8], strides = [1, 1]} : vector<5x32xf32> to vector<5x8xf32>
    %121 = vector.extract_strided_slice %97 {offsets = [0, 8], sizes = [5, 8], strides = [1, 1]} : vector<5x32xf32> to vector<5x8xf32>
    %122 = arith.truncf %119 : vector<8x8xf32> to vector<8x8xbf16>
    %123 = arith.truncf %120 : vector<5x8xf32> to vector<5x8xbf16>
    %cst_51 = arith.constant dense<0.000000e+00> : vector<8x5xf32>
    %124 = tpu.matmul %122, %123, %cst_51 {dimension_numbers = #tpu.dot_dimension_numbers<[1], [1], [0], [0], [0, 0, 1, 0], [], []>} : vector<8x8xbf16>, vector<5x8xbf16>, vector<8x5xf32> -> vector<8x5xf32>
    %cst_52 = arith.constant 0.353553385 : f32
    %125 = vector.broadcast %cst_52 : f32 to vector<8x5xf32>
    %126 = arith.mulf %124, %125 : vector<8x5xf32>
    %cst_53 = arith.constant dense<0xFF800000> : vector<8xf32>
    %127 = vector.multi_reduction <maximumf>, %126, %cst_53 [1] : vector<8x5xf32> to vector<8xf32>
    %128 = vector.shape_cast %127 : vector<8xf32> to vector<8x1xf32>
    %129 = vector.broadcast %128 : vector<8x1xf32> to vector<8x5xf32>
    %130 = arith.subf %126, %129 : vector<8x5xf32>
    %131 = math.exp %130 : vector<8x5xf32>
    %cst_54 = arith.constant dense<0.000000e+00> : vector<8xf32>
    %132 = vector.multi_reduction <add>, %131, %cst_54 [1] : vector<8x5xf32> to vector<8xf32>
    %133 = vector.shape_cast %132 : vector<8xf32> to vector<8x1xf32>
    %134 = tpu.reciprocal %133 {approx = true} : vector<8x1xf32> -> vector<8x1xf32>
    %135 = vector.broadcast %134 : vector<8x1xf32> to vector<8x5xf32>
    %136 = arith.mulf %131, %135 : vector<8x5xf32>
    %137 = arith.truncf %136 : vector<8x5xf32> to vector<8x5xbf16>
    %138 = arith.truncf %121 : vector<5x8xf32> to vector<5x8xbf16>
    %cst_55 = arith.constant dense<0.000000e+00> : vector<8x8xf32>
    %139 = tpu.matmul %137, %138, %cst_55 {dimension_numbers = #tpu.dot_dimension_numbers<[1], [0], [0], [1], [0, 0, 1, 1], [], []>} : vector<8x5xbf16>, vector<5x8xbf16>, vector<8x8xf32> -> vector<8x8xf32>
    %140 = vector.extract_strided_slice %83 {offsets = [0, 16], sizes = [8, 8], strides = [1, 1]} : vector<8x32xf32> to vector<8x8xf32>
    %141 = vector.extract_strided_slice %90 {offsets = [0, 16], sizes = [5, 8], strides = [1, 1]} : vector<5x32xf32> to vector<5x8xf32>
    %142 = vector.extract_strided_slice %97 {offsets = [0, 16], sizes = [5, 8], strides = [1, 1]} : vector<5x32xf32> to vector<5x8xf32>
    %143 = arith.truncf %140 : vector<8x8xf32> to vector<8x8xbf16>
    %144 = arith.truncf %141 : vector<5x8xf32> to vector<5x8xbf16>
    %cst_56 = arith.constant dense<0.000000e+00> : vector<8x5xf32>
    %145 = tpu.matmul %143, %144, %cst_56 {dimension_numbers = #tpu.dot_dimension_numbers<[1], [1], [0], [0], [0, 0, 1, 0], [], []>} : vector<8x8xbf16>, vector<5x8xbf16>, vector<8x5xf32> -> vector<8x5xf32>
    %cst_57 = arith.constant 0.353553385 : f32
    %146 = vector.broadcast %cst_57 : f32 to vector<8x5xf32>
    %147 = arith.mulf %145, %146 : vector<8x5xf32>
    %cst_58 = arith.constant dense<0xFF800000> : vector<8xf32>
    %148 = vector.multi_reduction <maximumf>, %147, %cst_58 [1] : vector<8x5xf32> to vector<8xf32>
    %149 = vector.shape_cast %148 : vector<8xf32> to vector<8x1xf32>
    %150 = vector.broadcast %149 : vector<8x1xf32> to vector<8x5xf32>
    %151 = arith.subf %147, %150 : vector<8x5xf32>
    %152 = math.exp %151 : vector<8x5xf32>
    %cst_59 = arith.constant dense<0.000000e+00> : vector<8xf32>
    %153 = vector.multi_reduction <add>, %152, %cst_59 [1] : vector<8x5xf32> to vector<8xf32>
    %154 = vector.shape_cast %153 : vector<8xf32> to vector<8x1xf32>
    %155 = tpu.reciprocal %154 {approx = true} : vector<8x1xf32> -> vector<8x1xf32>
    %156 = vector.broadcast %155 : vector<8x1xf32> to vector<8x5xf32>
    %157 = arith.mulf %152, %156 : vector<8x5xf32>
    %158 = arith.truncf %157 : vector<8x5xf32> to vector<8x5xbf16>
    %159 = arith.truncf %142 : vector<5x8xf32> to vector<5x8xbf16>
    %cst_60 = arith.constant dense<0.000000e+00> : vector<8x8xf32>
    %160 = tpu.matmul %158, %159, %cst_60 {dimension_numbers = #tpu.dot_dimension_numbers<[1], [0], [0], [1], [0, 0, 1, 1], [], []>} : vector<8x5xbf16>, vector<5x8xbf16>, vector<8x8xf32> -> vector<8x8xf32>
    %161 = vector.extract_strided_slice %83 {offsets = [0, 24], sizes = [8, 8], strides = [1, 1]} : vector<8x32xf32> to vector<8x8xf32>
    %162 = vector.extract_strided_slice %90 {offsets = [0, 24], sizes = [5, 8], strides = [1, 1]} : vector<5x32xf32> to vector<5x8xf32>
    %163 = vector.extract_strided_slice %97 {offsets = [0, 24], sizes = [5, 8], strides = [1, 1]} : vector<5x32xf32> to vector<5x8xf32>
    %164 = arith.truncf %161 : vector<8x8xf32> to vector<8x8xbf16>
    %165 = arith.truncf %162 : vector<5x8xf32> to vector<5x8xbf16>
    %cst_61 = arith.constant dense<0.000000e+00> : vector<8x5xf32>
    %166 = tpu.matmul %164, %165, %cst_61 {dimension_numbers = #tpu.dot_dimension_numbers<[1], [1], [0], [0], [0, 0, 1, 0], [], []>} : vector<8x8xbf16>, vector<5x8xbf16>, vector<8x5xf32> -> vector<8x5xf32>
    %cst_62 = arith.constant 0.353553385 : f32
    %167 = vector.broadcast %cst_62 : f32 to vector<8x5xf32>
    %168 = arith.mulf %166, %167 : vector<8x5xf32>
    %cst_63 = arith.constant dense<0xFF800000> : vector<8xf32>
    %169 = vector.multi_reduction <maximumf>, %168, %cst_63 [1] : vector<8x5xf32> to vector<8xf32>
    %170 = vector.shape_cast %169 : vector<8xf32> to vector<8x1xf32>
    %171 = vector.broadcast %170 : vector<8x1xf32> to vector<8x5xf32>
    %172 = arith.subf %168, %171 : vector<8x5xf32>
    %173 = math.exp %172 : vector<8x5xf32>
    %cst_64 = arith.constant dense<0.000000e+00> : vector<8xf32>
    %174 = vector.multi_reduction <add>, %173, %cst_64 [1] : vector<8x5xf32> to vector<8xf32>
    %175 = vector.shape_cast %174 : vector<8xf32> to vector<8x1xf32>
    %176 = tpu.reciprocal %175 {approx = true} : vector<8x1xf32> -> vector<8x1xf32>
    %177 = vector.broadcast %176 : vector<8x1xf32> to vector<8x5xf32>
    %178 = arith.mulf %173, %177 : vector<8x5xf32>
    %179 = arith.truncf %178 : vector<8x5xf32> to vector<8x5xbf16>
    %180 = arith.truncf %163 : vector<5x8xf32> to vector<5x8xbf16>
    %cst_65 = arith.constant dense<0.000000e+00> : vector<8x8xf32>
    %181 = tpu.matmul %179, %180, %cst_65 {dimension_numbers = #tpu.dot_dimension_numbers<[1], [0], [0], [1], [0, 0, 1, 1], [], []>} : vector<8x5xbf16>, vector<5x8xbf16>, vector<8x8xf32> -> vector<8x8xf32>
    %182 = tpu.concatenate %118, %139, %160, %181 in 1 : vector<8x8xf32>, vector<8x8xf32>, vector<8x8xf32>, vector<8x8xf32> -> vector<8x32xf32>
    %c0_66 = arith.constant 0 : index
    %c0_67 = arith.constant 0 : index
    %183 = vector.load %arg15[%c0_66, %c0_67] : memref<32x32xf32, #tpu.memory_space<vmem>>, vector<32x32xf32>
    %184 = arith.truncf %182 : vector<8x32xf32> to vector<8x32xbf16>
    %185 = arith.truncf %183 : vector<32x32xf32> to vector<32x32xbf16>
    %cst_68 = arith.constant dense<0.000000e+00> : vector<8x32xf32>
    %186 = tpu.matmul %184, %185, %cst_68 {dimension_numbers = #tpu.dot_dimension_numbers<[1], [0], [0], [1], [0, 0, 1, 1], [], []>} : vector<8x32xbf16>, vector<32x32xbf16>, vector<8x32xf32> -> vector<8x32xf32>
    %187 = arith.addf %1, %186 : vector<8x32xf32>
    %c0_69 = arith.constant 0 : index
    %c0_70 = arith.constant 0 : index
    %188 = vector.load %arg16[%c0_69, %c0_70] : memref<1x32xf32, #tpu.memory_space<vmem>>, vector<1x32xf32>
    %189 = vector.broadcast %188 : vector<1x32xf32> to vector<8x32xf32>
    %190 = arith.addf %187, %189 : vector<8x32xf32>
    %c0_71 = arith.constant 0 : index
    %c0_72 = arith.constant 0 : index
    %191 = vector.load %arg17[%c0_71, %c0_72] : memref<1x32xf32, #tpu.memory_space<vmem>>, vector<1x32xf32>
    %c0_73 = arith.constant 0 : index
    %c0_74 = arith.constant 0 : index
    %192 = vector.load %arg18[%c0_73, %c0_74] : memref<1x32xf32, #tpu.memory_space<vmem>>, vector<1x32xf32>
    %cst_75 = arith.constant dense<0.000000e+00> : vector<8xf32>
    %193 = vector.multi_reduction <add>, %190, %cst_75 [1] : vector<8x32xf32> to vector<8xf32>
    %194 = vector.shape_cast %193 : vector<8xf32> to vector<8x1xf32>
    %cst_76 = arith.constant 3.200000e+01 : f32
    %195 = vector.broadcast %cst_76 : f32 to vector<8x1xf32>
    %196 = arith.divf %194, %195 : vector<8x1xf32>
    %197 = vector.broadcast %196 : vector<8x1xf32> to vector<8x32xf32>
    %198 = arith.subf %190, %197 : vector<8x32xf32>
    %199 = arith.mulf %198, %198 : vector<8x32xf32>
    %cst_77 = arith.constant dense<0.000000e+00> : vector<8xf32>
    %200 = vector.multi_reduction <add>, %199, %cst_77 [1] : vector<8x32xf32> to vector<8xf32>
    %201 = vector.shape_cast %200 : vector<8xf32> to vector<8x1xf32>
    %cst_78 = arith.constant 3.200000e+01 : f32
    %202 = vector.broadcast %cst_78 : f32 to vector<8x1xf32>
    %203 = arith.divf %201, %202 : vector<8x1xf32>
    %204 = vector.broadcast %196 : vector<8x1xf32> to vector<8x32xf32>
    %205 = arith.subf %190, %204 : vector<8x32xf32>
    %cst_79 = arith.constant 9.99999997E-7 : f32
    %206 = vector.broadcast %cst_79 : f32 to vector<8x1xf32>
    %207 = arith.addf %203, %206 : vector<8x1xf32>
    %208 = math.rsqrt %207 : vector<8x1xf32>
    %209 = vector.broadcast %208 : vector<8x1xf32> to vector<8x32xf32>
    %210 = arith.mulf %205, %209 : vector<8x32xf32>
    %211 = vector.broadcast %191 : vector<1x32xf32> to vector<8x32xf32>
    %212 = arith.mulf %210, %211 : vector<8x32xf32>
    %213 = vector.broadcast %192 : vector<1x32xf32> to vector<8x32xf32>
    %214 = arith.addf %212, %213 : vector<8x32xf32>
    %c0_80 = arith.constant 0 : index
    %c0_81 = arith.constant 0 : index
    %215 = vector.load %arg19[%c0_80, %c0_81] : memref<32x128xf32, #tpu.memory_space<vmem>>, vector<32x128xf32>
    %216 = arith.truncf %214 : vector<8x32xf32> to vector<8x32xbf16>
    %217 = arith.truncf %215 : vector<32x128xf32> to vector<32x128xbf16>
    %cst_82 = arith.constant dense<0.000000e+00> : vector<8x128xf32>
    %218 = tpu.matmul %216, %217, %cst_82 {dimension_numbers = #tpu.dot_dimension_numbers<[1], [0], [0], [1], [0, 0, 1, 1], [], []>} : vector<8x32xbf16>, vector<32x128xbf16>, vector<8x128xf32> -> vector<8x128xf32>
    %c0_83 = arith.constant 0 : index
    %c0_84 = arith.constant 0 : index
    %219 = vector.load %arg20[%c0_83, %c0_84] : memref<1x128xf32, #tpu.memory_space<vmem>>, vector<1x128xf32>
    %220 = vector.broadcast %219 : vector<1x128xf32> to vector<8x128xf32>
    %221 = arith.addf %218, %220 : vector<8x128xf32>
    %cst_85 = arith.constant 5.000000e-01 : f32
    %222 = vector.broadcast %cst_85 : f32 to vector<8x128xf32>
    %223 = arith.mulf %222, %221 : vector<8x128xf32>
    %cst_86 = arith.constant 4.471500e-02 : f32
    %224 = vector.broadcast %cst_86 : f32 to vector<8x128xf32>
    %225 = arith.mulf %224, %221 : vector<8x128xf32>
    %226 = arith.mulf %225, %221 : vector<8x128xf32>
    %227 = arith.mulf %226, %221 : vector<8x128xf32>
    %228 = arith.addf %221, %227 : vector<8x128xf32>
    %cst_87 = arith.constant 0.797884583 : f32
    %229 = vector.broadcast %cst_87 : f32 to vector<8x128xf32>
    %230 = arith.mulf %229, %228 : vector<8x128xf32>
    %231 = math.tanh %230 : vector<8x128xf32>
    %cst_88 = arith.constant 1.000000e+00 : f32
    %232 = vector.broadcast %cst_88 : f32 to vector<8x128xf32>
    %233 = arith.addf %232, %231 : vector<8x128xf32>
    %234 = arith.mulf %223, %233 : vector<8x128xf32>
    %c0_89 = arith.constant 0 : index
    %c0_90 = arith.constant 0 : index
    %235 = vector.load %arg21[%c0_89, %c0_90] : memref<128x32xf32, #tpu.memory_space<vmem>>, vector<128x32xf32>
    %236 = arith.truncf %234 : vector<8x128xf32> to vector<8x128xbf16>
    %237 = arith.truncf %235 : vector<128x32xf32> to vector<128x32xbf16>
    %cst_91 = arith.constant dense<0.000000e+00> : vector<8x32xf32>
    %238 = tpu.matmul %236, %237, %cst_91 {dimension_numbers = #tpu.dot_dimension_numbers<[1], [0], [0], [1], [0, 0, 1, 1], [], []>} : vector<8x128xbf16>, vector<128x32xbf16>, vector<8x32xf32> -> vector<8x32xf32>
    %239 = arith.addf %190, %238 : vector<8x32xf32>
    %c0_92 = arith.constant 0 : index
    %c0_93 = arith.constant 0 : index
    %240 = vector.load %arg22[%c0_92, %c0_93] : memref<1x32xf32, #tpu.memory_space<vmem>>, vector<1x32xf32>
    %241 = vector.broadcast %240 : vector<1x32xf32> to vector<8x32xf32>
    %242 = arith.addf %239, %241 : vector<8x32xf32>
    %c0_94 = arith.constant 0 : index
    %c0_95 = arith.constant 0 : index
    %243 = vector.load %arg23[%c0_94, %c0_95] : memref<32x32xf32, #tpu.memory_space<vmem>>, vector<32x32xf32>
    %244 = arith.truncf %242 : vector<8x32xf32> to vector<8x32xbf16>
    %245 = arith.truncf %243 : vector<32x32xf32> to vector<32x32xbf16>
    %cst_96 = arith.constant dense<0.000000e+00> : vector<8x32xf32>
    %246 = tpu.matmul %244, %245, %cst_96 {dimension_numbers = #tpu.dot_dimension_numbers<[1], [0], [0], [1], [0, 0, 1, 1], [], []>} : vector<8x32xbf16>, vector<32x32xbf16>, vector<8x32xf32> -> vector<8x32xf32>
    %c0_97 = arith.constant 0 : index
    %c0_98 = arith.constant 0 : index
    %247 = vector.load %arg24[%c0_97, %c0_98] : memref<1x32xf32, #tpu.memory_space<vmem>>, vector<1x32xf32>
    %248 = vector.broadcast %247 : vector<1x32xf32> to vector<8x32xf32>
    %249 = arith.addf %246, %248 : vector<8x32xf32>
    %c0_99 = arith.constant 0 : index
    %c0_100 = arith.constant 0 : index
    %c0_101 = arith.constant 0 : index
    %250 = vector.load %arg25[%c0_99, %c0_100, %c0_101] : memref<1x8x32xf32, #tpu.memory_space<vmem>>, vector<1x8x32xf32>
    %251 = vector.shape_cast %250 : vector<1x8x32xf32> to vector<8x32xf32>
    %252 = vector.shape_cast %249 : vector<8x32xf32> to vector<1x8x32xf32>
    tpu.vector_store %arg25[%c0_99, %c0_100, %c0_101], %252 {strides = array<i32>} : memref<1x8x32xf32, #tpu.memory_space<vmem>>, vector<1x8x32xf32>,
    return
  }
  func.func @transform_0(%arg0: i32) -> (i32, i32, i32) {
    %c0_i32 = arith.constant 0 : i32
    %c0_i32_0 = arith.constant 0 : i32
    %c0_i32_1 = arith.constant 0 : i32
    %c0_i32_2 = arith.constant 0 : i32
    return %c0_i32, %c0_i32_0, %c0_i32_1 : i32, i32, i32
  }
  func.func @transform_1(%arg0: i32) -> (i32, i32, i32) {
    %c0_i32 = arith.constant 0 : i32
    %c0_i32_0 = arith.constant 0 : i32
    %c0_i32_1 = arith.constant 0 : i32
    return %arg0, %c0_i32, %c0_i32_0 : i32, i32, i32
  }
  func.func @transform_2(%arg0: i32) -> (i32, i32) {
    %c0_i32 = arith.constant 0 : i32
    %c0_i32_0 = arith.constant 0 : i32
    %c0_i32_1 = arith.constant 0 : i32
    return %c0_i32, %c0_i32_0 : i32, i32
  }
  func.func @transform_3(%arg0: i32) -> (i32, i32) {
    %c0_i32 = arith.constant 0 : i32
    %c0_i32_0 = arith.constant 0 : i32
    %c0_i32_1 = arith.constant 0 : i32
    return %c0_i32, %c0_i32_0 : i32, i32
  }
  func.func @transform_4(%arg0: i32) -> (i32, i32) {
    %c0_i32 = arith.constant 0 : i32
    %c0_i32_0 = arith.constant 0 : i32
    %c0_i32_1 = arith.constant 0 : i32
    return %c0_i32, %c0_i32_0 : i32, i32
  }
  func.func @transform_5(%arg0: i32) -> (i32, i32) {
    %c0_i32 = arith.constant 0 : i32
    %c0_i32_0 = arith.constant 0 : i32
    %c0_i32_1 = arith.constant 0 : i32
    return %c0_i32, %c0_i32_0 : i32, i32
  }
  func.func @transform_6(%arg0: i32) -> (i32, i32) {
    %c0_i32 = arith.constant 0 : i32
    %c0_i32_0 = arith.constant 0 : i32
    %c0_i32_1 = arith.constant 0 : i32
    return %c0_i32, %c0_i32_0 : i32, i32
  }
  func.func @transform_7(%arg0: i32) -> (i32, i32) {
    %c0_i32 = arith.constant 0 : i32
    %c0_i32_0 = arith.constant 0 : i32
    %c0_i32_1 = arith.constant 0 : i32
    return %c0_i32, %c0_i32_0 : i32, i32
  }
  func.func @transform_8(%arg0: i32) -> (i32, i32) {
    %c0_i32 = arith.constant 0 : i32
    %c0_i32_0 = arith.constant 0 : i32
    %c0_i32_1 = arith.constant 0 : i32
    return %c0_i32, %c0_i32_0 : i32, i32
  }
  func.func @transform_9(%arg0: i32) -> (i32, i32) {
    %c0_i32 = arith.constant 0 : i32
    %c0_i32_0 = arith.constant 0 : i32
    %c0_i32_1 = arith.constant 0 : i32
    return %c0_i32, %c0_i32_0 : i32, i32
  }
  func.func @transform_10(%arg0: i32) -> (i32, i32) {
    %c0_i32 = arith.constant 0 : i32
    %c0_i32_0 = arith.constant 0 : i32
    %c0_i32_1 = arith.constant 0 : i32
    return %c0_i32, %c0_i32_0 : i32, i32
  }
  func.func @transform_11(%arg0: i32) -> (i32, i32) {
    %c0_i32 = arith.constant 0 : i32
    %c0_i32_0 = arith.constant 0 : i32
    %c0_i32_1 = arith.constant 0 : i32
    return %c0_i32, %c0_i32_0 : i32, i32
  }
  func.func @transform_12(%arg0: i32) -> (i32, i32) {
    %c0_i32 = arith.constant 0 : i32
    %c0_i32_0 = arith.constant 0 : i32
    %c0_i32_1 = arith.constant 0 : i32
    return %c0_i32, %c0_i32_0 : i32, i32
  }
  func.func @transform_13(%arg0: i32) -> (i32, i32) {
    %c0_i32 = arith.constant 0 : i32
    %c0_i32_0 = arith.constant 0 : i32
    %c0_i32_1 = arith.constant 0 : i32
    return %c0_i32, %c0_i32_0 : i32, i32
  }
  func.func @transform_14(%arg0: i32) -> (i32, i32) {
    %c0_i32 = arith.constant 0 : i32
    %c0_i32_0 = arith.constant 0 : i32
    %c0_i32_1 = arith.constant 0 : i32
    return %c0_i32, %c0_i32_0 : i32, i32
  }
  func.func @transform_15(%arg0: i32) -> (i32, i32) {
    %c0_i32 = arith.constant 0 : i32
    %c0_i32_0 = arith.constant 0 : i32
    %c0_i32_1 = arith.constant 0 : i32
    return %c0_i32, %c0_i32_0 : i32, i32
  }
  func.func @transform_16(%arg0: i32) -> (i32, i32) {
    %c0_i32 = arith.constant 0 : i32
    %c0_i32_0 = arith.constant 0 : i32
    %c0_i32_1 = arith.constant 0 : i32
    return %c0_i32, %c0_i32_0 : i32, i32
  }
  func.func @transform_17(%arg0: i32) -> (i32, i32) {
    %c0_i32 = arith.constant 0 : i32
    %c0_i32_0 = arith.constant 0 : i32
    %c0_i32_1 = arith.constant 0 : i32
    return %c0_i32, %c0_i32_0 : i32, i32
  }
  func.func @transform_18(%arg0: i32) -> (i32, i32) {
    %c0_i32 = arith.constant 0 : i32
    %c0_i32_0 = arith.constant 0 : i32
    %c0_i32_1 = arith.constant 0 : i32
    return %c0_i32, %c0_i32_0 : i32, i32
  }
  func.func @transform_19(%arg0: i32) -> (i32, i32) {
    %c0_i32 = arith.constant 0 : i32
    %c0_i32_0 = arith.constant 0 : i32
    %c0_i32_1 = arith.constant 0 : i32
    return %c0_i32, %c0_i32_0 : i32, i32
  }
  func.func @transform_20(%arg0: i32) -> (i32, i32) {
    %c0_i32 = arith.constant 0 : i32
    %c0_i32_0 = arith.constant 0 : i32
    %c0_i32_1 = arith.constant 0 : i32
    return %c0_i32, %c0_i32_0 : i32, i32
  }
  func.func @transform_21(%arg0: i32) -> (i32, i32) {
    %c0_i32 = arith.constant 0 : i32
    %c0_i32_0 = arith.constant 0 : i32
    %c0_i32_1 = arith.constant 0 : i32
    return %c0_i32, %c0_i32_0 : i32, i32
  }
  func.func @transform_22(%arg0: i32) -> (i32, i32) {
    %c0_i32 = arith.constant 0 : i32
    %c0_i32_0 = arith.constant 0 : i32
    %c0_i32_1 = arith.constant 0 : i32
    return %c0_i32, %c0_i32_0 : i32, i32
  }
  func.func @transform_23(%arg0: i32) -> (i32, i32) {
    %c0_i32 = arith.constant 0 : i32
    %c0_i32_0 = arith.constant 0 : i32
    %c0_i32_1 = arith.constant 0 : i32
    return %c0_i32, %c0_i32_0 : i32, i32
  }
  func.func @transform_24(%arg0: i32) -> (i32, i32, i32) {
    %c0_i32 = arith.constant 0 : i32
    %c0_i32_0 = arith.constant 0 : i32
    %c0_i32_1 = arith.constant 0 : i32
    return %arg0, %c0_i32, %c0_i32_0 : i32, i32, i32
  }
}

module attributes {stable_mosaic.version = 11 : i64} {
  func.func @_block_kernel(%arg0: i32, %arg1: memref<1x5x32xbf16, #tpu.memory_space<vmem>>, %arg2: memref<1x32xf32, #tpu.memory_space<vmem>>, %arg3: memref<1x32xf32, #tpu.memory_space<vmem>>, %arg4: memref<32x96xf32, #tpu.memory_space<vmem>>, %arg5: memref<1x96xf32, #tpu.memory_space<vmem>>, %arg6: memref<32x32xf32, #tpu.memory_space<vmem>>, %arg7: memref<1x32xf32, #tpu.memory_space<vmem>>, %arg8: memref<1x32xf32, #tpu.memory_space<vmem>>, %arg9: memref<1x32xf32, #tpu.memory_space<vmem>>, %arg10: memref<32x128xf32, #tpu.memory_space<vmem>>, %arg11: memref<1x128xf32, #tpu.memory_space<vmem>>, %arg12: memref<128x32xf32, #tpu.memory_space<vmem>>, %arg13: memref<1x32xf32, #tpu.memory_space<vmem>>, %arg14: memref<1x5x32xbf16, #tpu.memory_space<vmem>>) attributes {dimension_semantics = [#tpu.dimension_semantics<parallel>], iteration_bounds = array<i64: 2>, scalar_prefetch = 0 : i64, scratch_operands = 0 : i64, tpu.core_type = #tpu.core_type<tc>, window_params = [{transform_indices = @transform_0, window_bounds = array<i64: 1, 5, 32>}, {pipeline_mode = #tpu.pipeline_mode<synchronous>, transform_indices = @transform_1, window_bounds = array<i64: 1, 32>}, {pipeline_mode = #tpu.pipeline_mode<synchronous>, transform_indices = @transform_2, window_bounds = array<i64: 1, 32>}, {pipeline_mode = #tpu.pipeline_mode<synchronous>, transform_indices = @transform_3, window_bounds = array<i64: 32, 96>}, {pipeline_mode = #tpu.pipeline_mode<synchronous>, transform_indices = @transform_4, window_bounds = array<i64: 1, 96>}, {pipeline_mode = #tpu.pipeline_mode<synchronous>, transform_indices = @transform_5, window_bounds = array<i64: 32, 32>}, {pipeline_mode = #tpu.pipeline_mode<synchronous>, transform_indices = @transform_6, window_bounds = array<i64: 1, 32>}, {pipeline_mode = #tpu.pipeline_mode<synchronous>, transform_indices = @transform_7, window_bounds = array<i64: 1, 32>}, {pipeline_mode = #tpu.pipeline_mode<synchronous>, transform_indices = @transform_8, window_bounds = array<i64: 1, 32>}, {pipeline_mode = #tpu.pipeline_mode<synchronous>, transform_indices = @transform_9, window_bounds = array<i64: 32, 128>}, {pipeline_mode = #tpu.pipeline_mode<synchronous>, transform_indices = @transform_10, window_bounds = array<i64: 1, 128>}, {pipeline_mode = #tpu.pipeline_mode<synchronous>, transform_indices = @transform_11, window_bounds = array<i64: 128, 32>}, {pipeline_mode = #tpu.pipeline_mode<synchronous>, transform_indices = @transform_12, window_bounds = array<i64: 1, 32>}, {transform_indices = @transform_13, window_bounds = array<i64: 1, 5, 32>}]} {
    %c0 = arith.constant 0 : index
    %c0_0 = arith.constant 0 : index
    %c0_1 = arith.constant 0 : index
    %0 = vector.load %arg1[%c0, %c0_0, %c0_1] : memref<1x5x32xbf16, #tpu.memory_space<vmem>>, vector<1x5x32xbf16>
    %1 = vector.shape_cast %0 : vector<1x5x32xbf16> to vector<5x32xbf16>
    %2 = arith.extf %1 : vector<5x32xbf16> to vector<5x32xf32>
    %c0_2 = arith.constant 0 : index
    %c0_3 = arith.constant 0 : index
    %3 = vector.load %arg2[%c0_2, %c0_3] : memref<1x32xf32, #tpu.memory_space<vmem>>, vector<1x32xf32>
    %c0_4 = arith.constant 0 : index
    %c0_5 = arith.constant 0 : index
    %4 = vector.load %arg3[%c0_4, %c0_5] : memref<1x32xf32, #tpu.memory_space<vmem>>, vector<1x32xf32>
    %c0_6 = arith.constant 0 : index
    %c0_7 = arith.constant 0 : index
    %5 = vector.load %arg4[%c0_6, %c0_7] : memref<32x96xf32, #tpu.memory_space<vmem>>, vector<32x96xf32>
    %c0_8 = arith.constant 0 : index
    %c0_9 = arith.constant 0 : index
    %6 = vector.load %arg5[%c0_8, %c0_9] : memref<1x96xf32, #tpu.memory_space<vmem>>, vector<1x96xf32>
    %c0_10 = arith.constant 0 : index
    %c0_11 = arith.constant 0 : index
    %7 = vector.load %arg6[%c0_10, %c0_11] : memref<32x32xf32, #tpu.memory_space<vmem>>, vector<32x32xf32>
    %c0_12 = arith.constant 0 : index
    %c0_13 = arith.constant 0 : index
    %8 = vector.load %arg7[%c0_12, %c0_13] : memref<1x32xf32, #tpu.memory_space<vmem>>, vector<1x32xf32>
    %c0_14 = arith.constant 0 : index
    %c0_15 = arith.constant 0 : index
    %9 = vector.load %arg8[%c0_14, %c0_15] : memref<1x32xf32, #tpu.memory_space<vmem>>, vector<1x32xf32>
    %c0_16 = arith.constant 0 : index
    %c0_17 = arith.constant 0 : index
    %10 = vector.load %arg9[%c0_16, %c0_17] : memref<1x32xf32, #tpu.memory_space<vmem>>, vector<1x32xf32>
    %c0_18 = arith.constant 0 : index
    %c0_19 = arith.constant 0 : index
    %11 = vector.load %arg10[%c0_18, %c0_19] : memref<32x128xf32, #tpu.memory_space<vmem>>, vector<32x128xf32>
    %c0_20 = arith.constant 0 : index
    %c0_21 = arith.constant 0 : index
    %12 = vector.load %arg11[%c0_20, %c0_21] : memref<1x128xf32, #tpu.memory_space<vmem>>, vector<1x128xf32>
    %c0_22 = arith.constant 0 : index
    %c0_23 = arith.constant 0 : index
    %13 = vector.load %arg12[%c0_22, %c0_23] : memref<128x32xf32, #tpu.memory_space<vmem>>, vector<128x32xf32>
    %c0_24 = arith.constant 0 : index
    %c0_25 = arith.constant 0 : index
    %14 = vector.load %arg13[%c0_24, %c0_25] : memref<1x32xf32, #tpu.memory_space<vmem>>, vector<1x32xf32>
    %cst = arith.constant dense<0.000000e+00> : vector<5xf32>
    %15 = vector.multi_reduction <add>, %2, %cst [1] : vector<5x32xf32> to vector<5xf32>
    %16 = vector.shape_cast %15 : vector<5xf32> to vector<5x1xf32>
    %cst_26 = arith.constant 3.200000e+01 : f32
    %17 = vector.broadcast %cst_26 : f32 to vector<5x1xf32>
    %18 = arith.divf %16, %17 : vector<5x1xf32>
    %19 = vector.broadcast %18 : vector<5x1xf32> to vector<5x32xf32>
    %20 = arith.subf %2, %19 : vector<5x32xf32>
    %21 = arith.mulf %20, %20 : vector<5x32xf32>
    %cst_27 = arith.constant dense<0.000000e+00> : vector<5xf32>
    %22 = vector.multi_reduction <add>, %21, %cst_27 [1] : vector<5x32xf32> to vector<5xf32>
    %23 = vector.shape_cast %22 : vector<5xf32> to vector<5x1xf32>
    %cst_28 = arith.constant 3.200000e+01 : f32
    %24 = vector.broadcast %cst_28 : f32 to vector<5x1xf32>
    %25 = arith.divf %23, %24 : vector<5x1xf32>
    %26 = vector.broadcast %18 : vector<5x1xf32> to vector<5x32xf32>
    %27 = arith.subf %2, %26 : vector<5x32xf32>
    %cst_29 = arith.constant 9.99999997E-7 : f32
    %28 = vector.broadcast %cst_29 : f32 to vector<5x1xf32>
    %29 = arith.addf %25, %28 : vector<5x1xf32>
    %30 = math.rsqrt %29 : vector<5x1xf32>
    %31 = vector.broadcast %30 : vector<5x1xf32> to vector<5x32xf32>
    %32 = arith.mulf %27, %31 : vector<5x32xf32>
    %33 = vector.broadcast %3 : vector<1x32xf32> to vector<5x32xf32>
    %34 = arith.mulf %32, %33 : vector<5x32xf32>
    %35 = vector.broadcast %4 : vector<1x32xf32> to vector<5x32xf32>
    %36 = arith.addf %34, %35 : vector<5x32xf32>
    %37 = arith.truncf %36 : vector<5x32xf32> to vector<5x32xbf16>
    %38 = arith.truncf %5 : vector<32x96xf32> to vector<32x96xbf16>
    %cst_30 = arith.constant dense<0.000000e+00> : vector<5x96xf32>
    %39 = tpu.matmul %37, %38, %cst_30 {dimension_numbers = #tpu.dot_dimension_numbers<[1], [0], [0], [1], [0, 0, 1, 1], [], []>} : vector<5x32xbf16>, vector<32x96xbf16>, vector<5x96xf32> -> vector<5x96xf32>
    %40 = vector.broadcast %6 : vector<1x96xf32> to vector<5x96xf32>
    %41 = arith.addf %39, %40 : vector<5x96xf32>
    %42 = vector.extract_strided_slice %41 {offsets = [0, 0], sizes = [5, 32], strides = [1, 1]} : vector<5x96xf32> to vector<5x32xf32>
    %43 = vector.extract_strided_slice %41 {offsets = [0, 32], sizes = [5, 32], strides = [1, 1]} : vector<5x96xf32> to vector<5x32xf32>
    %44 = vector.extract_strided_slice %41 {offsets = [0, 64], sizes = [5, 32], strides = [1, 1]} : vector<5x96xf32> to vector<5x32xf32>
    %45 = vector.extract_strided_slice %42 {offsets = [0, 0], sizes = [5, 8], strides = [1, 1]} : vector<5x32xf32> to vector<5x8xf32>
    %46 = vector.extract_strided_slice %43 {offsets = [0, 0], sizes = [5, 8], strides = [1, 1]} : vector<5x32xf32> to vector<5x8xf32>
    %47 = vector.extract_strided_slice %44 {offsets = [0, 0], sizes = [5, 8], strides = [1, 1]} : vector<5x32xf32> to vector<5x8xf32>
    %48 = arith.truncf %45 : vector<5x8xf32> to vector<5x8xbf16>
    %49 = arith.truncf %46 : vector<5x8xf32> to vector<5x8xbf16>
    %cst_31 = arith.constant dense<0.000000e+00> : vector<5x5xf32>
    %50 = tpu.matmul %48, %49, %cst_31 {dimension_numbers = #tpu.dot_dimension_numbers<[1], [1], [0], [0], [0, 0, 1, 0], [], []>} : vector<5x8xbf16>, vector<5x8xbf16>, vector<5x5xf32> -> vector<5x5xf32>
    %cst_32 = arith.constant 0.353553385 : f32
    %51 = vector.broadcast %cst_32 : f32 to vector<5x5xf32>
    %52 = arith.mulf %50, %51 : vector<5x5xf32>
    %cst_33 = arith.constant dense<0xFF800000> : vector<5xf32>
    %53 = vector.multi_reduction <maximumf>, %52, %cst_33 [1] : vector<5x5xf32> to vector<5xf32>
    %54 = vector.shape_cast %53 : vector<5xf32> to vector<5x1xf32>
    %55 = vector.broadcast %54 : vector<5x1xf32> to vector<5x5xf32>
    %56 = arith.subf %52, %55 : vector<5x5xf32>
    %57 = math.exp %56 : vector<5x5xf32>
    %cst_34 = arith.constant dense<0.000000e+00> : vector<5xf32>
    %58 = vector.multi_reduction <add>, %57, %cst_34 [1] : vector<5x5xf32> to vector<5xf32>
    %59 = vector.shape_cast %58 : vector<5xf32> to vector<5x1xf32>
    %60 = tpu.reciprocal %59 {approx = true} : vector<5x1xf32> -> vector<5x1xf32>
    %61 = vector.broadcast %60 : vector<5x1xf32> to vector<5x5xf32>
    %62 = arith.mulf %57, %61 : vector<5x5xf32>
    %63 = arith.truncf %62 : vector<5x5xf32> to vector<5x5xbf16>
    %64 = arith.truncf %47 : vector<5x8xf32> to vector<5x8xbf16>
    %cst_35 = arith.constant dense<0.000000e+00> : vector<5x8xf32>
    %65 = tpu.matmul %63, %64, %cst_35 {dimension_numbers = #tpu.dot_dimension_numbers<[1], [0], [0], [1], [0, 0, 1, 1], [], []>} : vector<5x5xbf16>, vector<5x8xbf16>, vector<5x8xf32> -> vector<5x8xf32>
    %66 = vector.extract_strided_slice %42 {offsets = [0, 8], sizes = [5, 8], strides = [1, 1]} : vector<5x32xf32> to vector<5x8xf32>
    %67 = vector.extract_strided_slice %43 {offsets = [0, 8], sizes = [5, 8], strides = [1, 1]} : vector<5x32xf32> to vector<5x8xf32>
    %68 = vector.extract_strided_slice %44 {offsets = [0, 8], sizes = [5, 8], strides = [1, 1]} : vector<5x32xf32> to vector<5x8xf32>
    %69 = arith.truncf %66 : vector<5x8xf32> to vector<5x8xbf16>
    %70 = arith.truncf %67 : vector<5x8xf32> to vector<5x8xbf16>
    %cst_36 = arith.constant dense<0.000000e+00> : vector<5x5xf32>
    %71 = tpu.matmul %69, %70, %cst_36 {dimension_numbers = #tpu.dot_dimension_numbers<[1], [1], [0], [0], [0, 0, 1, 0], [], []>} : vector<5x8xbf16>, vector<5x8xbf16>, vector<5x5xf32> -> vector<5x5xf32>
    %cst_37 = arith.constant 0.353553385 : f32
    %72 = vector.broadcast %cst_37 : f32 to vector<5x5xf32>
    %73 = arith.mulf %71, %72 : vector<5x5xf32>
    %cst_38 = arith.constant dense<0xFF800000> : vector<5xf32>
    %74 = vector.multi_reduction <maximumf>, %73, %cst_38 [1] : vector<5x5xf32> to vector<5xf32>
    %75 = vector.shape_cast %74 : vector<5xf32> to vector<5x1xf32>
    %76 = vector.broadcast %75 : vector<5x1xf32> to vector<5x5xf32>
    %77 = arith.subf %73, %76 : vector<5x5xf32>
    %78 = math.exp %77 : vector<5x5xf32>
    %cst_39 = arith.constant dense<0.000000e+00> : vector<5xf32>
    %79 = vector.multi_reduction <add>, %78, %cst_39 [1] : vector<5x5xf32> to vector<5xf32>
    %80 = vector.shape_cast %79 : vector<5xf32> to vector<5x1xf32>
    %81 = tpu.reciprocal %80 {approx = true} : vector<5x1xf32> -> vector<5x1xf32>
    %82 = vector.broadcast %81 : vector<5x1xf32> to vector<5x5xf32>
    %83 = arith.mulf %78, %82 : vector<5x5xf32>
    %84 = arith.truncf %83 : vector<5x5xf32> to vector<5x5xbf16>
    %85 = arith.truncf %68 : vector<5x8xf32> to vector<5x8xbf16>
    %cst_40 = arith.constant dense<0.000000e+00> : vector<5x8xf32>
    %86 = tpu.matmul %84, %85, %cst_40 {dimension_numbers = #tpu.dot_dimension_numbers<[1], [0], [0], [1], [0, 0, 1, 1], [], []>} : vector<5x5xbf16>, vector<5x8xbf16>, vector<5x8xf32> -> vector<5x8xf32>
    %87 = vector.extract_strided_slice %42 {offsets = [0, 16], sizes = [5, 8], strides = [1, 1]} : vector<5x32xf32> to vector<5x8xf32>
    %88 = vector.extract_strided_slice %43 {offsets = [0, 16], sizes = [5, 8], strides = [1, 1]} : vector<5x32xf32> to vector<5x8xf32>
    %89 = vector.extract_strided_slice %44 {offsets = [0, 16], sizes = [5, 8], strides = [1, 1]} : vector<5x32xf32> to vector<5x8xf32>
    %90 = arith.truncf %87 : vector<5x8xf32> to vector<5x8xbf16>
    %91 = arith.truncf %88 : vector<5x8xf32> to vector<5x8xbf16>
    %cst_41 = arith.constant dense<0.000000e+00> : vector<5x5xf32>
    %92 = tpu.matmul %90, %91, %cst_41 {dimension_numbers = #tpu.dot_dimension_numbers<[1], [1], [0], [0], [0, 0, 1, 0], [], []>} : vector<5x8xbf16>, vector<5x8xbf16>, vector<5x5xf32> -> vector<5x5xf32>
    %cst_42 = arith.constant 0.353553385 : f32
    %93 = vector.broadcast %cst_42 : f32 to vector<5x5xf32>
    %94 = arith.mulf %92, %93 : vector<5x5xf32>
    %cst_43 = arith.constant dense<0xFF800000> : vector<5xf32>
    %95 = vector.multi_reduction <maximumf>, %94, %cst_43 [1] : vector<5x5xf32> to vector<5xf32>
    %96 = vector.shape_cast %95 : vector<5xf32> to vector<5x1xf32>
    %97 = vector.broadcast %96 : vector<5x1xf32> to vector<5x5xf32>
    %98 = arith.subf %94, %97 : vector<5x5xf32>
    %99 = math.exp %98 : vector<5x5xf32>
    %cst_44 = arith.constant dense<0.000000e+00> : vector<5xf32>
    %100 = vector.multi_reduction <add>, %99, %cst_44 [1] : vector<5x5xf32> to vector<5xf32>
    %101 = vector.shape_cast %100 : vector<5xf32> to vector<5x1xf32>
    %102 = tpu.reciprocal %101 {approx = true} : vector<5x1xf32> -> vector<5x1xf32>
    %103 = vector.broadcast %102 : vector<5x1xf32> to vector<5x5xf32>
    %104 = arith.mulf %99, %103 : vector<5x5xf32>
    %105 = arith.truncf %104 : vector<5x5xf32> to vector<5x5xbf16>
    %106 = arith.truncf %89 : vector<5x8xf32> to vector<5x8xbf16>
    %cst_45 = arith.constant dense<0.000000e+00> : vector<5x8xf32>
    %107 = tpu.matmul %105, %106, %cst_45 {dimension_numbers = #tpu.dot_dimension_numbers<[1], [0], [0], [1], [0, 0, 1, 1], [], []>} : vector<5x5xbf16>, vector<5x8xbf16>, vector<5x8xf32> -> vector<5x8xf32>
    %108 = vector.extract_strided_slice %42 {offsets = [0, 24], sizes = [5, 8], strides = [1, 1]} : vector<5x32xf32> to vector<5x8xf32>
    %109 = vector.extract_strided_slice %43 {offsets = [0, 24], sizes = [5, 8], strides = [1, 1]} : vector<5x32xf32> to vector<5x8xf32>
    %110 = vector.extract_strided_slice %44 {offsets = [0, 24], sizes = [5, 8], strides = [1, 1]} : vector<5x32xf32> to vector<5x8xf32>
    %111 = arith.truncf %108 : vector<5x8xf32> to vector<5x8xbf16>
    %112 = arith.truncf %109 : vector<5x8xf32> to vector<5x8xbf16>
    %cst_46 = arith.constant dense<0.000000e+00> : vector<5x5xf32>
    %113 = tpu.matmul %111, %112, %cst_46 {dimension_numbers = #tpu.dot_dimension_numbers<[1], [1], [0], [0], [0, 0, 1, 0], [], []>} : vector<5x8xbf16>, vector<5x8xbf16>, vector<5x5xf32> -> vector<5x5xf32>
    %cst_47 = arith.constant 0.353553385 : f32
    %114 = vector.broadcast %cst_47 : f32 to vector<5x5xf32>
    %115 = arith.mulf %113, %114 : vector<5x5xf32>
    %cst_48 = arith.constant dense<0xFF800000> : vector<5xf32>
    %116 = vector.multi_reduction <maximumf>, %115, %cst_48 [1] : vector<5x5xf32> to vector<5xf32>
    %117 = vector.shape_cast %116 : vector<5xf32> to vector<5x1xf32>
    %118 = vector.broadcast %117 : vector<5x1xf32> to vector<5x5xf32>
    %119 = arith.subf %115, %118 : vector<5x5xf32>
    %120 = math.exp %119 : vector<5x5xf32>
    %cst_49 = arith.constant dense<0.000000e+00> : vector<5xf32>
    %121 = vector.multi_reduction <add>, %120, %cst_49 [1] : vector<5x5xf32> to vector<5xf32>
    %122 = vector.shape_cast %121 : vector<5xf32> to vector<5x1xf32>
    %123 = tpu.reciprocal %122 {approx = true} : vector<5x1xf32> -> vector<5x1xf32>
    %124 = vector.broadcast %123 : vector<5x1xf32> to vector<5x5xf32>
    %125 = arith.mulf %120, %124 : vector<5x5xf32>
    %126 = arith.truncf %125 : vector<5x5xf32> to vector<5x5xbf16>
    %127 = arith.truncf %110 : vector<5x8xf32> to vector<5x8xbf16>
    %cst_50 = arith.constant dense<0.000000e+00> : vector<5x8xf32>
    %128 = tpu.matmul %126, %127, %cst_50 {dimension_numbers = #tpu.dot_dimension_numbers<[1], [0], [0], [1], [0, 0, 1, 1], [], []>} : vector<5x5xbf16>, vector<5x8xbf16>, vector<5x8xf32> -> vector<5x8xf32>
    %129 = tpu.concatenate %65, %86, %107, %128 in 1 : vector<5x8xf32>, vector<5x8xf32>, vector<5x8xf32>, vector<5x8xf32> -> vector<5x32xf32>
    %130 = arith.truncf %129 : vector<5x32xf32> to vector<5x32xbf16>
    %131 = arith.truncf %7 : vector<32x32xf32> to vector<32x32xbf16>
    %cst_51 = arith.constant dense<0.000000e+00> : vector<5x32xf32>
    %132 = tpu.matmul %130, %131, %cst_51 {dimension_numbers = #tpu.dot_dimension_numbers<[1], [0], [0], [1], [0, 0, 1, 1], [], []>} : vector<5x32xbf16>, vector<32x32xbf16>, vector<5x32xf32> -> vector<5x32xf32>
    %133 = arith.addf %2, %132 : vector<5x32xf32>
    %134 = vector.broadcast %8 : vector<1x32xf32> to vector<5x32xf32>
    %135 = arith.addf %133, %134 : vector<5x32xf32>
    %cst_52 = arith.constant dense<0.000000e+00> : vector<5xf32>
    %136 = vector.multi_reduction <add>, %135, %cst_52 [1] : vector<5x32xf32> to vector<5xf32>
    %137 = vector.shape_cast %136 : vector<5xf32> to vector<5x1xf32>
    %cst_53 = arith.constant 3.200000e+01 : f32
    %138 = vector.broadcast %cst_53 : f32 to vector<5x1xf32>
    %139 = arith.divf %137, %138 : vector<5x1xf32>
    %140 = vector.broadcast %139 : vector<5x1xf32> to vector<5x32xf32>
    %141 = arith.subf %135, %140 : vector<5x32xf32>
    %142 = arith.mulf %141, %141 : vector<5x32xf32>
    %cst_54 = arith.constant dense<0.000000e+00> : vector<5xf32>
    %143 = vector.multi_reduction <add>, %142, %cst_54 [1] : vector<5x32xf32> to vector<5xf32>
    %144 = vector.shape_cast %143 : vector<5xf32> to vector<5x1xf32>
    %cst_55 = arith.constant 3.200000e+01 : f32
    %145 = vector.broadcast %cst_55 : f32 to vector<5x1xf32>
    %146 = arith.divf %144, %145 : vector<5x1xf32>
    %147 = vector.broadcast %139 : vector<5x1xf32> to vector<5x32xf32>
    %148 = arith.subf %135, %147 : vector<5x32xf32>
    %cst_56 = arith.constant 9.99999997E-7 : f32
    %149 = vector.broadcast %cst_56 : f32 to vector<5x1xf32>
    %150 = arith.addf %146, %149 : vector<5x1xf32>
    %151 = math.rsqrt %150 : vector<5x1xf32>
    %152 = vector.broadcast %151 : vector<5x1xf32> to vector<5x32xf32>
    %153 = arith.mulf %148, %152 : vector<5x32xf32>
    %154 = vector.broadcast %9 : vector<1x32xf32> to vector<5x32xf32>
    %155 = arith.mulf %153, %154 : vector<5x32xf32>
    %156 = vector.broadcast %10 : vector<1x32xf32> to vector<5x32xf32>
    %157 = arith.addf %155, %156 : vector<5x32xf32>
    %158 = arith.truncf %157 : vector<5x32xf32> to vector<5x32xbf16>
    %159 = arith.truncf %11 : vector<32x128xf32> to vector<32x128xbf16>
    %cst_57 = arith.constant dense<0.000000e+00> : vector<5x128xf32>
    %160 = tpu.matmul %158, %159, %cst_57 {dimension_numbers = #tpu.dot_dimension_numbers<[1], [0], [0], [1], [0, 0, 1, 1], [], []>} : vector<5x32xbf16>, vector<32x128xbf16>, vector<5x128xf32> -> vector<5x128xf32>
    %161 = vector.broadcast %12 : vector<1x128xf32> to vector<5x128xf32>
    %162 = arith.addf %160, %161 : vector<5x128xf32>
    %cst_58 = arith.constant 5.000000e-01 : f32
    %163 = vector.broadcast %cst_58 : f32 to vector<5x128xf32>
    %164 = arith.mulf %163, %162 : vector<5x128xf32>
    %cst_59 = arith.constant 4.471500e-02 : f32
    %165 = vector.broadcast %cst_59 : f32 to vector<5x128xf32>
    %166 = arith.mulf %165, %162 : vector<5x128xf32>
    %167 = arith.mulf %166, %162 : vector<5x128xf32>
    %168 = arith.mulf %167, %162 : vector<5x128xf32>
    %169 = arith.addf %162, %168 : vector<5x128xf32>
    %cst_60 = arith.constant 0.797884583 : f32
    %170 = vector.broadcast %cst_60 : f32 to vector<5x128xf32>
    %171 = arith.mulf %170, %169 : vector<5x128xf32>
    %172 = math.tanh %171 : vector<5x128xf32>
    %cst_61 = arith.constant 1.000000e+00 : f32
    %173 = vector.broadcast %cst_61 : f32 to vector<5x128xf32>
    %174 = arith.addf %173, %172 : vector<5x128xf32>
    %175 = arith.mulf %164, %174 : vector<5x128xf32>
    %176 = arith.truncf %175 : vector<5x128xf32> to vector<5x128xbf16>
    %177 = arith.truncf %13 : vector<128x32xf32> to vector<128x32xbf16>
    %cst_62 = arith.constant dense<0.000000e+00> : vector<5x32xf32>
    %178 = tpu.matmul %176, %177, %cst_62 {dimension_numbers = #tpu.dot_dimension_numbers<[1], [0], [0], [1], [0, 0, 1, 1], [], []>} : vector<5x128xbf16>, vector<128x32xbf16>, vector<5x32xf32> -> vector<5x32xf32>
    %179 = arith.addf %135, %178 : vector<5x32xf32>
    %180 = vector.broadcast %14 : vector<1x32xf32> to vector<5x32xf32>
    %181 = arith.addf %179, %180 : vector<5x32xf32>
    %182 = arith.truncf %181 : vector<5x32xf32> to vector<5x32xbf16>
    %c0_63 = arith.constant 0 : index
    %c0_64 = arith.constant 0 : index
    %c0_65 = arith.constant 0 : index
    %183 = vector.load %arg14[%c0_63, %c0_64, %c0_65] : memref<1x5x32xbf16, #tpu.memory_space<vmem>>, vector<1x5x32xbf16>
    %184 = vector.shape_cast %183 : vector<1x5x32xbf16> to vector<5x32xbf16>
    %185 = vector.shape_cast %182 : vector<5x32xbf16> to vector<1x5x32xbf16>
    tpu.vector_store %arg14[%c0_63, %c0_64, %c0_65], %185 {strides = array<i32>} : memref<1x5x32xbf16, #tpu.memory_space<vmem>>, vector<1x5x32xbf16>,
    return
  }
  func.func @transform_0(%arg0: i32) -> (i32, i32, i32) {
    %c0_i32 = arith.constant 0 : i32
    %c0_i32_0 = arith.constant 0 : i32
    %c0_i32_1 = arith.constant 0 : i32
    return %arg0, %c0_i32, %c0_i32_0 : i32, i32, i32
  }
  func.func @transform_1(%arg0: i32) -> (i32, i32) {
    %c0_i32 = arith.constant 0 : i32
    %c0_i32_0 = arith.constant 0 : i32
    %c0_i32_1 = arith.constant 0 : i32
    return %c0_i32, %c0_i32_0 : i32, i32
  }
  func.func @transform_2(%arg0: i32) -> (i32, i32) {
    %c0_i32 = arith.constant 0 : i32
    %c0_i32_0 = arith.constant 0 : i32
    %c0_i32_1 = arith.constant 0 : i32
    return %c0_i32, %c0_i32_0 : i32, i32
  }
  func.func @transform_3(%arg0: i32) -> (i32, i32) {
    %c0_i32 = arith.constant 0 : i32
    %c0_i32_0 = arith.constant 0 : i32
    %c0_i32_1 = arith.constant 0 : i32
    return %c0_i32, %c0_i32_0 : i32, i32
  }
  func.func @transform_4(%arg0: i32) -> (i32, i32) {
    %c0_i32 = arith.constant 0 : i32
    %c0_i32_0 = arith.constant 0 : i32
    %c0_i32_1 = arith.constant 0 : i32
    return %c0_i32, %c0_i32_0 : i32, i32
  }
  func.func @transform_5(%arg0: i32) -> (i32, i32) {
    %c0_i32 = arith.constant 0 : i32
    %c0_i32_0 = arith.constant 0 : i32
    %c0_i32_1 = arith.constant 0 : i32
    return %c0_i32, %c0_i32_0 : i32, i32
  }
  func.func @transform_6(%arg0: i32) -> (i32, i32) {
    %c0_i32 = arith.constant 0 : i32
    %c0_i32_0 = arith.constant 0 : i32
    %c0_i32_1 = arith.constant 0 : i32
    return %c0_i32, %c0_i32_0 : i32, i32
  }
  func.func @transform_7(%arg0: i32) -> (i32, i32) {
    %c0_i32 = arith.constant 0 : i32
    %c0_i32_0 = arith.constant 0 : i32
    %c0_i32_1 = arith.constant 0 : i32
    return %c0_i32, %c0_i32_0 : i32, i32
  }
  func.func @transform_8(%arg0: i32) -> (i32, i32) {
    %c0_i32 = arith.constant 0 : i32
    %c0_i32_0 = arith.constant 0 : i32
    %c0_i32_1 = arith.constant 0 : i32
    return %c0_i32, %c0_i32_0 : i32, i32
  }
  func.func @transform_9(%arg0: i32) -> (i32, i32) {
    %c0_i32 = arith.constant 0 : i32
    %c0_i32_0 = arith.constant 0 : i32
    %c0_i32_1 = arith.constant 0 : i32
    return %c0_i32, %c0_i32_0 : i32, i32
  }
  func.func @transform_10(%arg0: i32) -> (i32, i32) {
    %c0_i32 = arith.constant 0 : i32
    %c0_i32_0 = arith.constant 0 : i32
    %c0_i32_1 = arith.constant 0 : i32
    return %c0_i32, %c0_i32_0 : i32, i32
  }
  func.func @transform_11(%arg0: i32) -> (i32, i32) {
    %c0_i32 = arith.constant 0 : i32
    %c0_i32_0 = arith.constant 0 : i32
    %c0_i32_1 = arith.constant 0 : i32
    return %c0_i32, %c0_i32_0 : i32, i32
  }
  func.func @transform_12(%arg0: i32) -> (i32, i32) {
    %c0_i32 = arith.constant 0 : i32
    %c0_i32_0 = arith.constant 0 : i32
    %c0_i32_1 = arith.constant 0 : i32
    return %c0_i32, %c0_i32_0 : i32, i32
  }
  func.func @transform_13(%arg0: i32) -> (i32, i32, i32) {
    %c0_i32 = arith.constant 0 : i32
    %c0_i32_0 = arith.constant 0 : i32
    %c0_i32_1 = arith.constant 0 : i32
    return %arg0, %c0_i32, %c0_i32_0 : i32, i32, i32
  }
}

module attributes {stable_mosaic.version = 11 : i64} {
  func.func @_block_kernel(%arg0: i32, %arg1: memref<1x16x32xf32, #tpu.memory_space<vmem>>, %arg2: memref<1x1x16xf32, #tpu.memory_space<vmem>>, %arg3: memref<1x32xf32, #tpu.memory_space<vmem>>, %arg4: memref<1x32xf32, #tpu.memory_space<vmem>>, %arg5: memref<32x96xf32, #tpu.memory_space<vmem>>, %arg6: memref<1x96xf32, #tpu.memory_space<vmem>>, %arg7: memref<32x32xf32, #tpu.memory_space<vmem>>, %arg8: memref<1x32xf32, #tpu.memory_space<vmem>>, %arg9: memref<1x32xf32, #tpu.memory_space<vmem>>, %arg10: memref<1x32xf32, #tpu.memory_space<vmem>>, %arg11: memref<32x128xf32, #tpu.memory_space<vmem>>, %arg12: memref<1x128xf32, #tpu.memory_space<vmem>>, %arg13: memref<128x32xf32, #tpu.memory_space<vmem>>, %arg14: memref<1x32xf32, #tpu.memory_space<vmem>>, %arg15: memref<1x16x32xbf16, #tpu.memory_space<vmem>>) attributes {dimension_semantics = [#tpu.dimension_semantics<parallel>], iteration_bounds = array<i64: 2>, scalar_prefetch = 0 : i64, scratch_operands = 0 : i64, tpu.core_type = #tpu.core_type<tc>, window_params = [{transform_indices = @transform_0, window_bounds = array<i64: 1, 16, 32>}, {transform_indices = @transform_1, window_bounds = array<i64: 1, 1, 16>}, {pipeline_mode = #tpu.pipeline_mode<synchronous>, transform_indices = @transform_2, window_bounds = array<i64: 1, 32>}, {pipeline_mode = #tpu.pipeline_mode<synchronous>, transform_indices = @transform_3, window_bounds = array<i64: 1, 32>}, {pipeline_mode = #tpu.pipeline_mode<synchronous>, transform_indices = @transform_4, window_bounds = array<i64: 32, 96>}, {pipeline_mode = #tpu.pipeline_mode<synchronous>, transform_indices = @transform_5, window_bounds = array<i64: 1, 96>}, {pipeline_mode = #tpu.pipeline_mode<synchronous>, transform_indices = @transform_6, window_bounds = array<i64: 32, 32>}, {pipeline_mode = #tpu.pipeline_mode<synchronous>, transform_indices = @transform_7, window_bounds = array<i64: 1, 32>}, {pipeline_mode = #tpu.pipeline_mode<synchronous>, transform_indices = @transform_8, window_bounds = array<i64: 1, 32>}, {pipeline_mode = #tpu.pipeline_mode<synchronous>, transform_indices = @transform_9, window_bounds = array<i64: 1, 32>}, {pipeline_mode = #tpu.pipeline_mode<synchronous>, transform_indices = @transform_10, window_bounds = array<i64: 32, 128>}, {pipeline_mode = #tpu.pipeline_mode<synchronous>, transform_indices = @transform_11, window_bounds = array<i64: 1, 128>}, {pipeline_mode = #tpu.pipeline_mode<synchronous>, transform_indices = @transform_12, window_bounds = array<i64: 128, 32>}, {pipeline_mode = #tpu.pipeline_mode<synchronous>, transform_indices = @transform_13, window_bounds = array<i64: 1, 32>}, {transform_indices = @transform_14, window_bounds = array<i64: 1, 16, 32>}]} {
    %c0 = arith.constant 0 : index
    %c0_0 = arith.constant 0 : index
    %c0_1 = arith.constant 0 : index
    %0 = vector.load %arg1[%c0, %c0_0, %c0_1] : memref<1x16x32xf32, #tpu.memory_space<vmem>>, vector<1x16x32xf32>
    %1 = vector.shape_cast %0 : vector<1x16x32xf32> to vector<16x32xf32>
    %2 = tpu.iota {dimensions = array<i32: 0>} : vector<16x16xi32>
    %3 = tpu.iota {dimensions = array<i32: 1>} : vector<16x16xi32>
    %4 = arith.cmpi sle, %3, %2 : vector<16x16xi32>
    %c0_2 = arith.constant 0 : index
    %c0_3 = arith.constant 0 : index
    %c0_4 = arith.constant 0 : index
    %5 = vector.load %arg2[%c0_2, %c0_3, %c0_4] : memref<1x1x16xf32, #tpu.memory_space<vmem>>, vector<1x1x16xf32>
    %6 = vector.shape_cast %5 : vector<1x1x16xf32> to vector<1x16xf32>
    %cst = arith.constant 5.000000e-01 : f32
    %7 = vector.broadcast %cst : f32 to vector<1x16xf32>
    %8 = arith.cmpf ogt, %6, %7 : vector<1x16xf32>
    %9 = vector.broadcast %8 : vector<1x16xi1> to vector<16x16xi1>
    %10 = arith.andi %4, %9 : vector<16x16xi1>
    %cst_5 = arith.constant 0.000000e+00 : f32
    %cst_6 = arith.constant -1.000000e+09 : f32
    %11 = vector.broadcast %cst_5 : f32 to vector<16x16xf32>
    %12 = vector.broadcast %cst_6 : f32 to vector<16x16xf32>
    %13 = arith.select %10, %11, %12 : vector<16x16xi1>, vector<16x16xf32>
    %c0_7 = arith.constant 0 : index
    %c0_8 = arith.constant 0 : index
    %14 = vector.load %arg3[%c0_7, %c0_8] : memref<1x32xf32, #tpu.memory_space<vmem>>, vector<1x32xf32>
    %c0_9 = arith.constant 0 : index
    %c0_10 = arith.constant 0 : index
    %15 = vector.load %arg4[%c0_9, %c0_10] : memref<1x32xf32, #tpu.memory_space<vmem>>, vector<1x32xf32>
    %c0_11 = arith.constant 0 : index
    %c0_12 = arith.constant 0 : index
    %16 = vector.load %arg5[%c0_11, %c0_12] : memref<32x96xf32, #tpu.memory_space<vmem>>, vector<32x96xf32>
    %c0_13 = arith.constant 0 : index
    %c0_14 = arith.constant 0 : index
    %17 = vector.load %arg6[%c0_13, %c0_14] : memref<1x96xf32, #tpu.memory_space<vmem>>, vector<1x96xf32>
    %c0_15 = arith.constant 0 : index
    %c0_16 = arith.constant 0 : index
    %18 = vector.load %arg7[%c0_15, %c0_16] : memref<32x32xf32, #tpu.memory_space<vmem>>, vector<32x32xf32>
    %c0_17 = arith.constant 0 : index
    %c0_18 = arith.constant 0 : index
    %19 = vector.load %arg8[%c0_17, %c0_18] : memref<1x32xf32, #tpu.memory_space<vmem>>, vector<1x32xf32>
    %c0_19 = arith.constant 0 : index
    %c0_20 = arith.constant 0 : index
    %20 = vector.load %arg9[%c0_19, %c0_20] : memref<1x32xf32, #tpu.memory_space<vmem>>, vector<1x32xf32>
    %c0_21 = arith.constant 0 : index
    %c0_22 = arith.constant 0 : index
    %21 = vector.load %arg10[%c0_21, %c0_22] : memref<1x32xf32, #tpu.memory_space<vmem>>, vector<1x32xf32>
    %c0_23 = arith.constant 0 : index
    %c0_24 = arith.constant 0 : index
    %22 = vector.load %arg11[%c0_23, %c0_24] : memref<32x128xf32, #tpu.memory_space<vmem>>, vector<32x128xf32>
    %c0_25 = arith.constant 0 : index
    %c0_26 = arith.constant 0 : index
    %23 = vector.load %arg12[%c0_25, %c0_26] : memref<1x128xf32, #tpu.memory_space<vmem>>, vector<1x128xf32>
    %c0_27 = arith.constant 0 : index
    %c0_28 = arith.constant 0 : index
    %24 = vector.load %arg13[%c0_27, %c0_28] : memref<128x32xf32, #tpu.memory_space<vmem>>, vector<128x32xf32>
    %c0_29 = arith.constant 0 : index
    %c0_30 = arith.constant 0 : index
    %25 = vector.load %arg14[%c0_29, %c0_30] : memref<1x32xf32, #tpu.memory_space<vmem>>, vector<1x32xf32>
    %cst_31 = arith.constant dense<0.000000e+00> : vector<16xf32>
    %26 = vector.multi_reduction <add>, %1, %cst_31 [1] : vector<16x32xf32> to vector<16xf32>
    %27 = vector.shape_cast %26 : vector<16xf32> to vector<16x1xf32>
    %cst_32 = arith.constant 3.200000e+01 : f32
    %28 = vector.broadcast %cst_32 : f32 to vector<16x1xf32>
    %29 = arith.divf %27, %28 : vector<16x1xf32>
    %30 = vector.broadcast %29 : vector<16x1xf32> to vector<16x32xf32>
    %31 = arith.subf %1, %30 : vector<16x32xf32>
    %32 = arith.mulf %31, %31 : vector<16x32xf32>
    %cst_33 = arith.constant dense<0.000000e+00> : vector<16xf32>
    %33 = vector.multi_reduction <add>, %32, %cst_33 [1] : vector<16x32xf32> to vector<16xf32>
    %34 = vector.shape_cast %33 : vector<16xf32> to vector<16x1xf32>
    %cst_34 = arith.constant 3.200000e+01 : f32
    %35 = vector.broadcast %cst_34 : f32 to vector<16x1xf32>
    %36 = arith.divf %34, %35 : vector<16x1xf32>
    %37 = vector.broadcast %29 : vector<16x1xf32> to vector<16x32xf32>
    %38 = arith.subf %1, %37 : vector<16x32xf32>
    %cst_35 = arith.constant 9.99999974E-6 : f32
    %39 = vector.broadcast %cst_35 : f32 to vector<16x1xf32>
    %40 = arith.addf %36, %39 : vector<16x1xf32>
    %41 = math.rsqrt %40 : vector<16x1xf32>
    %42 = vector.broadcast %41 : vector<16x1xf32> to vector<16x32xf32>
    %43 = arith.mulf %38, %42 : vector<16x32xf32>
    %44 = vector.broadcast %14 : vector<1x32xf32> to vector<16x32xf32>
    %45 = arith.mulf %43, %44 : vector<16x32xf32>
    %46 = vector.broadcast %15 : vector<1x32xf32> to vector<16x32xf32>
    %47 = arith.addf %45, %46 : vector<16x32xf32>
    %48 = arith.truncf %47 : vector<16x32xf32> to vector<16x32xbf16>
    %49 = arith.truncf %16 : vector<32x96xf32> to vector<32x96xbf16>
    %cst_36 = arith.constant dense<0.000000e+00> : vector<16x96xf32>
    %50 = tpu.matmul %48, %49, %cst_36 {dimension_numbers = #tpu.dot_dimension_numbers<[1], [0], [0], [1], [0, 0, 1, 1], [], []>} : vector<16x32xbf16>, vector<32x96xbf16>, vector<16x96xf32> -> vector<16x96xf32>
    %51 = vector.broadcast %17 : vector<1x96xf32> to vector<16x96xf32>
    %52 = arith.addf %50, %51 : vector<16x96xf32>
    %53 = vector.extract_strided_slice %52 {offsets = [0, 0], sizes = [16, 32], strides = [1, 1]} : vector<16x96xf32> to vector<16x32xf32>
    %54 = vector.extract_strided_slice %52 {offsets = [0, 32], sizes = [16, 32], strides = [1, 1]} : vector<16x96xf32> to vector<16x32xf32>
    %55 = vector.extract_strided_slice %52 {offsets = [0, 64], sizes = [16, 32], strides = [1, 1]} : vector<16x96xf32> to vector<16x32xf32>
    %56 = vector.extract_strided_slice %53 {offsets = [0, 0], sizes = [16, 8], strides = [1, 1]} : vector<16x32xf32> to vector<16x8xf32>
    %57 = vector.extract_strided_slice %54 {offsets = [0, 0], sizes = [16, 8], strides = [1, 1]} : vector<16x32xf32> to vector<16x8xf32>
    %58 = vector.extract_strided_slice %55 {offsets = [0, 0], sizes = [16, 8], strides = [1, 1]} : vector<16x32xf32> to vector<16x8xf32>
    %59 = arith.truncf %56 : vector<16x8xf32> to vector<16x8xbf16>
    %60 = arith.truncf %57 : vector<16x8xf32> to vector<16x8xbf16>
    %cst_37 = arith.constant dense<0.000000e+00> : vector<16x16xf32>
    %61 = tpu.matmul %59, %60, %cst_37 {dimension_numbers = #tpu.dot_dimension_numbers<[1], [1], [0], [0], [0, 0, 1, 0], [], []>} : vector<16x8xbf16>, vector<16x8xbf16>, vector<16x16xf32> -> vector<16x16xf32>
    %cst_38 = arith.constant 0.353553385 : f32
    %62 = vector.broadcast %cst_38 : f32 to vector<16x16xf32>
    %63 = arith.mulf %61, %62 : vector<16x16xf32>
    %64 = arith.addf %63, %13 : vector<16x16xf32>
    %cst_39 = arith.constant dense<0xFF800000> : vector<16xf32>
    %65 = vector.multi_reduction <maximumf>, %64, %cst_39 [1] : vector<16x16xf32> to vector<16xf32>
    %66 = vector.shape_cast %65 : vector<16xf32> to vector<16x1xf32>
    %67 = vector.broadcast %66 : vector<16x1xf32> to vector<16x16xf32>
    %68 = arith.subf %64, %67 : vector<16x16xf32>
    %69 = math.exp %68 : vector<16x16xf32>
    %cst_40 = arith.constant dense<0.000000e+00> : vector<16xf32>
    %70 = vector.multi_reduction <add>, %69, %cst_40 [1] : vector<16x16xf32> to vector<16xf32>
    %71 = vector.shape_cast %70 : vector<16xf32> to vector<16x1xf32>
    %72 = tpu.reciprocal %71 {approx = true} : vector<16x1xf32> -> vector<16x1xf32>
    %73 = vector.broadcast %72 : vector<16x1xf32> to vector<16x16xf32>
    %74 = arith.mulf %69, %73 : vector<16x16xf32>
    %75 = arith.truncf %74 : vector<16x16xf32> to vector<16x16xbf16>
    %76 = arith.truncf %58 : vector<16x8xf32> to vector<16x8xbf16>
    %cst_41 = arith.constant dense<0.000000e+00> : vector<16x8xf32>
    %77 = tpu.matmul %75, %76, %cst_41 {dimension_numbers = #tpu.dot_dimension_numbers<[1], [0], [0], [1], [0, 0, 1, 1], [], []>} : vector<16x16xbf16>, vector<16x8xbf16>, vector<16x8xf32> -> vector<16x8xf32>
    %78 = vector.extract_strided_slice %53 {offsets = [0, 8], sizes = [16, 8], strides = [1, 1]} : vector<16x32xf32> to vector<16x8xf32>
    %79 = vector.extract_strided_slice %54 {offsets = [0, 8], sizes = [16, 8], strides = [1, 1]} : vector<16x32xf32> to vector<16x8xf32>
    %80 = vector.extract_strided_slice %55 {offsets = [0, 8], sizes = [16, 8], strides = [1, 1]} : vector<16x32xf32> to vector<16x8xf32>
    %81 = arith.truncf %78 : vector<16x8xf32> to vector<16x8xbf16>
    %82 = arith.truncf %79 : vector<16x8xf32> to vector<16x8xbf16>
    %cst_42 = arith.constant dense<0.000000e+00> : vector<16x16xf32>
    %83 = tpu.matmul %81, %82, %cst_42 {dimension_numbers = #tpu.dot_dimension_numbers<[1], [1], [0], [0], [0, 0, 1, 0], [], []>} : vector<16x8xbf16>, vector<16x8xbf16>, vector<16x16xf32> -> vector<16x16xf32>
    %cst_43 = arith.constant 0.353553385 : f32
    %84 = vector.broadcast %cst_43 : f32 to vector<16x16xf32>
    %85 = arith.mulf %83, %84 : vector<16x16xf32>
    %86 = arith.addf %85, %13 : vector<16x16xf32>
    %cst_44 = arith.constant dense<0xFF800000> : vector<16xf32>
    %87 = vector.multi_reduction <maximumf>, %86, %cst_44 [1] : vector<16x16xf32> to vector<16xf32>
    %88 = vector.shape_cast %87 : vector<16xf32> to vector<16x1xf32>
    %89 = vector.broadcast %88 : vector<16x1xf32> to vector<16x16xf32>
    %90 = arith.subf %86, %89 : vector<16x16xf32>
    %91 = math.exp %90 : vector<16x16xf32>
    %cst_45 = arith.constant dense<0.000000e+00> : vector<16xf32>
    %92 = vector.multi_reduction <add>, %91, %cst_45 [1] : vector<16x16xf32> to vector<16xf32>
    %93 = vector.shape_cast %92 : vector<16xf32> to vector<16x1xf32>
    %94 = tpu.reciprocal %93 {approx = true} : vector<16x1xf32> -> vector<16x1xf32>
    %95 = vector.broadcast %94 : vector<16x1xf32> to vector<16x16xf32>
    %96 = arith.mulf %91, %95 : vector<16x16xf32>
    %97 = arith.truncf %96 : vector<16x16xf32> to vector<16x16xbf16>
    %98 = arith.truncf %80 : vector<16x8xf32> to vector<16x8xbf16>
    %cst_46 = arith.constant dense<0.000000e+00> : vector<16x8xf32>
    %99 = tpu.matmul %97, %98, %cst_46 {dimension_numbers = #tpu.dot_dimension_numbers<[1], [0], [0], [1], [0, 0, 1, 1], [], []>} : vector<16x16xbf16>, vector<16x8xbf16>, vector<16x8xf32> -> vector<16x8xf32>
    %100 = vector.extract_strided_slice %53 {offsets = [0, 16], sizes = [16, 8], strides = [1, 1]} : vector<16x32xf32> to vector<16x8xf32>
    %101 = vector.extract_strided_slice %54 {offsets = [0, 16], sizes = [16, 8], strides = [1, 1]} : vector<16x32xf32> to vector<16x8xf32>
    %102 = vector.extract_strided_slice %55 {offsets = [0, 16], sizes = [16, 8], strides = [1, 1]} : vector<16x32xf32> to vector<16x8xf32>
    %103 = arith.truncf %100 : vector<16x8xf32> to vector<16x8xbf16>
    %104 = arith.truncf %101 : vector<16x8xf32> to vector<16x8xbf16>
    %cst_47 = arith.constant dense<0.000000e+00> : vector<16x16xf32>
    %105 = tpu.matmul %103, %104, %cst_47 {dimension_numbers = #tpu.dot_dimension_numbers<[1], [1], [0], [0], [0, 0, 1, 0], [], []>} : vector<16x8xbf16>, vector<16x8xbf16>, vector<16x16xf32> -> vector<16x16xf32>
    %cst_48 = arith.constant 0.353553385 : f32
    %106 = vector.broadcast %cst_48 : f32 to vector<16x16xf32>
    %107 = arith.mulf %105, %106 : vector<16x16xf32>
    %108 = arith.addf %107, %13 : vector<16x16xf32>
    %cst_49 = arith.constant dense<0xFF800000> : vector<16xf32>
    %109 = vector.multi_reduction <maximumf>, %108, %cst_49 [1] : vector<16x16xf32> to vector<16xf32>
    %110 = vector.shape_cast %109 : vector<16xf32> to vector<16x1xf32>
    %111 = vector.broadcast %110 : vector<16x1xf32> to vector<16x16xf32>
    %112 = arith.subf %108, %111 : vector<16x16xf32>
    %113 = math.exp %112 : vector<16x16xf32>
    %cst_50 = arith.constant dense<0.000000e+00> : vector<16xf32>
    %114 = vector.multi_reduction <add>, %113, %cst_50 [1] : vector<16x16xf32> to vector<16xf32>
    %115 = vector.shape_cast %114 : vector<16xf32> to vector<16x1xf32>
    %116 = tpu.reciprocal %115 {approx = true} : vector<16x1xf32> -> vector<16x1xf32>
    %117 = vector.broadcast %116 : vector<16x1xf32> to vector<16x16xf32>
    %118 = arith.mulf %113, %117 : vector<16x16xf32>
    %119 = arith.truncf %118 : vector<16x16xf32> to vector<16x16xbf16>
    %120 = arith.truncf %102 : vector<16x8xf32> to vector<16x8xbf16>
    %cst_51 = arith.constant dense<0.000000e+00> : vector<16x8xf32>
    %121 = tpu.matmul %119, %120, %cst_51 {dimension_numbers = #tpu.dot_dimension_numbers<[1], [0], [0], [1], [0, 0, 1, 1], [], []>} : vector<16x16xbf16>, vector<16x8xbf16>, vector<16x8xf32> -> vector<16x8xf32>
    %122 = vector.extract_strided_slice %53 {offsets = [0, 24], sizes = [16, 8], strides = [1, 1]} : vector<16x32xf32> to vector<16x8xf32>
    %123 = vector.extract_strided_slice %54 {offsets = [0, 24], sizes = [16, 8], strides = [1, 1]} : vector<16x32xf32> to vector<16x8xf32>
    %124 = vector.extract_strided_slice %55 {offsets = [0, 24], sizes = [16, 8], strides = [1, 1]} : vector<16x32xf32> to vector<16x8xf32>
    %125 = arith.truncf %122 : vector<16x8xf32> to vector<16x8xbf16>
    %126 = arith.truncf %123 : vector<16x8xf32> to vector<16x8xbf16>
    %cst_52 = arith.constant dense<0.000000e+00> : vector<16x16xf32>
    %127 = tpu.matmul %125, %126, %cst_52 {dimension_numbers = #tpu.dot_dimension_numbers<[1], [1], [0], [0], [0, 0, 1, 0], [], []>} : vector<16x8xbf16>, vector<16x8xbf16>, vector<16x16xf32> -> vector<16x16xf32>
    %cst_53 = arith.constant 0.353553385 : f32
    %128 = vector.broadcast %cst_53 : f32 to vector<16x16xf32>
    %129 = arith.mulf %127, %128 : vector<16x16xf32>
    %130 = arith.addf %129, %13 : vector<16x16xf32>
    %cst_54 = arith.constant dense<0xFF800000> : vector<16xf32>
    %131 = vector.multi_reduction <maximumf>, %130, %cst_54 [1] : vector<16x16xf32> to vector<16xf32>
    %132 = vector.shape_cast %131 : vector<16xf32> to vector<16x1xf32>
    %133 = vector.broadcast %132 : vector<16x1xf32> to vector<16x16xf32>
    %134 = arith.subf %130, %133 : vector<16x16xf32>
    %135 = math.exp %134 : vector<16x16xf32>
    %cst_55 = arith.constant dense<0.000000e+00> : vector<16xf32>
    %136 = vector.multi_reduction <add>, %135, %cst_55 [1] : vector<16x16xf32> to vector<16xf32>
    %137 = vector.shape_cast %136 : vector<16xf32> to vector<16x1xf32>
    %138 = tpu.reciprocal %137 {approx = true} : vector<16x1xf32> -> vector<16x1xf32>
    %139 = vector.broadcast %138 : vector<16x1xf32> to vector<16x16xf32>
    %140 = arith.mulf %135, %139 : vector<16x16xf32>
    %141 = arith.truncf %140 : vector<16x16xf32> to vector<16x16xbf16>
    %142 = arith.truncf %124 : vector<16x8xf32> to vector<16x8xbf16>
    %cst_56 = arith.constant dense<0.000000e+00> : vector<16x8xf32>
    %143 = tpu.matmul %141, %142, %cst_56 {dimension_numbers = #tpu.dot_dimension_numbers<[1], [0], [0], [1], [0, 0, 1, 1], [], []>} : vector<16x16xbf16>, vector<16x8xbf16>, vector<16x8xf32> -> vector<16x8xf32>
    %144 = tpu.concatenate %77, %99, %121, %143 in 1 : vector<16x8xf32>, vector<16x8xf32>, vector<16x8xf32>, vector<16x8xf32> -> vector<16x32xf32>
    %145 = arith.truncf %144 : vector<16x32xf32> to vector<16x32xbf16>
    %146 = arith.truncf %18 : vector<32x32xf32> to vector<32x32xbf16>
    %cst_57 = arith.constant dense<0.000000e+00> : vector<16x32xf32>
    %147 = tpu.matmul %145, %146, %cst_57 {dimension_numbers = #tpu.dot_dimension_numbers<[1], [0], [0], [1], [0, 0, 1, 1], [], []>} : vector<16x32xbf16>, vector<32x32xbf16>, vector<16x32xf32> -> vector<16x32xf32>
    %148 = arith.addf %1, %147 : vector<16x32xf32>
    %149 = vector.broadcast %19 : vector<1x32xf32> to vector<16x32xf32>
    %150 = arith.addf %148, %149 : vector<16x32xf32>
    %cst_58 = arith.constant dense<0.000000e+00> : vector<16xf32>
    %151 = vector.multi_reduction <add>, %150, %cst_58 [1] : vector<16x32xf32> to vector<16xf32>
    %152 = vector.shape_cast %151 : vector<16xf32> to vector<16x1xf32>
    %cst_59 = arith.constant 3.200000e+01 : f32
    %153 = vector.broadcast %cst_59 : f32 to vector<16x1xf32>
    %154 = arith.divf %152, %153 : vector<16x1xf32>
    %155 = vector.broadcast %154 : vector<16x1xf32> to vector<16x32xf32>
    %156 = arith.subf %150, %155 : vector<16x32xf32>
    %157 = arith.mulf %156, %156 : vector<16x32xf32>
    %cst_60 = arith.constant dense<0.000000e+00> : vector<16xf32>
    %158 = vector.multi_reduction <add>, %157, %cst_60 [1] : vector<16x32xf32> to vector<16xf32>
    %159 = vector.shape_cast %158 : vector<16xf32> to vector<16x1xf32>
    %cst_61 = arith.constant 3.200000e+01 : f32
    %160 = vector.broadcast %cst_61 : f32 to vector<16x1xf32>
    %161 = arith.divf %159, %160 : vector<16x1xf32>
    %162 = vector.broadcast %154 : vector<16x1xf32> to vector<16x32xf32>
    %163 = arith.subf %150, %162 : vector<16x32xf32>
    %cst_62 = arith.constant 9.99999974E-6 : f32
    %164 = vector.broadcast %cst_62 : f32 to vector<16x1xf32>
    %165 = arith.addf %161, %164 : vector<16x1xf32>
    %166 = math.rsqrt %165 : vector<16x1xf32>
    %167 = vector.broadcast %166 : vector<16x1xf32> to vector<16x32xf32>
    %168 = arith.mulf %163, %167 : vector<16x32xf32>
    %169 = vector.broadcast %20 : vector<1x32xf32> to vector<16x32xf32>
    %170 = arith.mulf %168, %169 : vector<16x32xf32>
    %171 = vector.broadcast %21 : vector<1x32xf32> to vector<16x32xf32>
    %172 = arith.addf %170, %171 : vector<16x32xf32>
    %173 = arith.truncf %172 : vector<16x32xf32> to vector<16x32xbf16>
    %174 = arith.truncf %22 : vector<32x128xf32> to vector<32x128xbf16>
    %cst_63 = arith.constant dense<0.000000e+00> : vector<16x128xf32>
    %175 = tpu.matmul %173, %174, %cst_63 {dimension_numbers = #tpu.dot_dimension_numbers<[1], [0], [0], [1], [0, 0, 1, 1], [], []>} : vector<16x32xbf16>, vector<32x128xbf16>, vector<16x128xf32> -> vector<16x128xf32>
    %176 = vector.broadcast %23 : vector<1x128xf32> to vector<16x128xf32>
    %177 = arith.addf %175, %176 : vector<16x128xf32>
    %cst_64 = arith.constant 5.000000e-01 : f32
    %178 = vector.broadcast %cst_64 : f32 to vector<16x128xf32>
    %179 = arith.mulf %178, %177 : vector<16x128xf32>
    %cst_65 = arith.constant 4.471500e-02 : f32
    %180 = vector.broadcast %cst_65 : f32 to vector<16x128xf32>
    %181 = arith.mulf %180, %177 : vector<16x128xf32>
    %182 = arith.mulf %181, %177 : vector<16x128xf32>
    %183 = arith.mulf %182, %177 : vector<16x128xf32>
    %184 = arith.addf %177, %183 : vector<16x128xf32>
    %cst_66 = arith.constant 0.797884583 : f32
    %185 = vector.broadcast %cst_66 : f32 to vector<16x128xf32>
    %186 = arith.mulf %185, %184 : vector<16x128xf32>
    %187 = math.tanh %186 : vector<16x128xf32>
    %cst_67 = arith.constant 1.000000e+00 : f32
    %188 = vector.broadcast %cst_67 : f32 to vector<16x128xf32>
    %189 = arith.addf %188, %187 : vector<16x128xf32>
    %190 = arith.mulf %179, %189 : vector<16x128xf32>
    %191 = arith.truncf %190 : vector<16x128xf32> to vector<16x128xbf16>
    %192 = arith.truncf %24 : vector<128x32xf32> to vector<128x32xbf16>
    %cst_68 = arith.constant dense<0.000000e+00> : vector<16x32xf32>
    %193 = tpu.matmul %191, %192, %cst_68 {dimension_numbers = #tpu.dot_dimension_numbers<[1], [0], [0], [1], [0, 0, 1, 1], [], []>} : vector<16x128xbf16>, vector<128x32xbf16>, vector<16x32xf32> -> vector<16x32xf32>
    %194 = arith.addf %150, %193 : vector<16x32xf32>
    %195 = vector.broadcast %25 : vector<1x32xf32> to vector<16x32xf32>
    %196 = arith.addf %194, %195 : vector<16x32xf32>
    %197 = arith.truncf %196 : vector<16x32xf32> to vector<16x32xbf16>
    %c0_69 = arith.constant 0 : index
    %c0_70 = arith.constant 0 : index
    %c0_71 = arith.constant 0 : index
    %198 = vector.load %arg15[%c0_69, %c0_70, %c0_71] : memref<1x16x32xbf16, #tpu.memory_space<vmem>>, vector<1x16x32xbf16>
    %199 = vector.shape_cast %198 : vector<1x16x32xbf16> to vector<16x32xbf16>
    %200 = vector.shape_cast %197 : vector<16x32xbf16> to vector<1x16x32xbf16>
    tpu.vector_store %arg15[%c0_69, %c0_70, %c0_71], %200 {strides = array<i32>} : memref<1x16x32xbf16, #tpu.memory_space<vmem>>, vector<1x16x32xbf16>,
    return
  }
  func.func @transform_0(%arg0: i32) -> (i32, i32, i32) {
    %c0_i32 = arith.constant 0 : i32
    %c0_i32_0 = arith.constant 0 : i32
    %c0_i32_1 = arith.constant 0 : i32
    return %arg0, %c0_i32, %c0_i32_0 : i32, i32, i32
  }
  func.func @transform_1(%arg0: i32) -> (i32, i32, i32) {
    %c0_i32 = arith.constant 0 : i32
    %c0_i32_0 = arith.constant 0 : i32
    %c0_i32_1 = arith.constant 0 : i32
    return %arg0, %c0_i32, %c0_i32_0 : i32, i32, i32
  }
  func.func @transform_2(%arg0: i32) -> (i32, i32) {
    %c0_i32 = arith.constant 0 : i32
    %c0_i32_0 = arith.constant 0 : i32
    %c0_i32_1 = arith.constant 0 : i32
    return %c0_i32, %c0_i32_0 : i32, i32
  }
  func.func @transform_3(%arg0: i32) -> (i32, i32) {
    %c0_i32 = arith.constant 0 : i32
    %c0_i32_0 = arith.constant 0 : i32
    %c0_i32_1 = arith.constant 0 : i32
    return %c0_i32, %c0_i32_0 : i32, i32
  }
  func.func @transform_4(%arg0: i32) -> (i32, i32) {
    %c0_i32 = arith.constant 0 : i32
    %c0_i32_0 = arith.constant 0 : i32
    %c0_i32_1 = arith.constant 0 : i32
    return %c0_i32, %c0_i32_0 : i32, i32
  }
  func.func @transform_5(%arg0: i32) -> (i32, i32) {
    %c0_i32 = arith.constant 0 : i32
    %c0_i32_0 = arith.constant 0 : i32
    %c0_i32_1 = arith.constant 0 : i32
    return %c0_i32, %c0_i32_0 : i32, i32
  }
  func.func @transform_6(%arg0: i32) -> (i32, i32) {
    %c0_i32 = arith.constant 0 : i32
    %c0_i32_0 = arith.constant 0 : i32
    %c0_i32_1 = arith.constant 0 : i32
    return %c0_i32, %c0_i32_0 : i32, i32
  }
  func.func @transform_7(%arg0: i32) -> (i32, i32) {
    %c0_i32 = arith.constant 0 : i32
    %c0_i32_0 = arith.constant 0 : i32
    %c0_i32_1 = arith.constant 0 : i32
    return %c0_i32, %c0_i32_0 : i32, i32
  }
  func.func @transform_8(%arg0: i32) -> (i32, i32) {
    %c0_i32 = arith.constant 0 : i32
    %c0_i32_0 = arith.constant 0 : i32
    %c0_i32_1 = arith.constant 0 : i32
    return %c0_i32, %c0_i32_0 : i32, i32
  }
  func.func @transform_9(%arg0: i32) -> (i32, i32) {
    %c0_i32 = arith.constant 0 : i32
    %c0_i32_0 = arith.constant 0 : i32
    %c0_i32_1 = arith.constant 0 : i32
    return %c0_i32, %c0_i32_0 : i32, i32
  }
  func.func @transform_10(%arg0: i32) -> (i32, i32) {
    %c0_i32 = arith.constant 0 : i32
    %c0_i32_0 = arith.constant 0 : i32
    %c0_i32_1 = arith.constant 0 : i32
    return %c0_i32, %c0_i32_0 : i32, i32
  }
  func.func @transform_11(%arg0: i32) -> (i32, i32) {
    %c0_i32 = arith.constant 0 : i32
    %c0_i32_0 = arith.constant 0 : i32
    %c0_i32_1 = arith.constant 0 : i32
    return %c0_i32, %c0_i32_0 : i32, i32
  }
  func.func @transform_12(%arg0: i32) -> (i32, i32) {
    %c0_i32 = arith.constant 0 : i32
    %c0_i32_0 = arith.constant 0 : i32
    %c0_i32_1 = arith.constant 0 : i32
    return %c0_i32, %c0_i32_0 : i32, i32
  }
  func.func @transform_13(%arg0: i32) -> (i32, i32) {
    %c0_i32 = arith.constant 0 : i32
    %c0_i32_0 = arith.constant 0 : i32
    %c0_i32_1 = arith.constant 0 : i32
    return %c0_i32, %c0_i32_0 : i32, i32
  }
  func.func @transform_14(%arg0: i32) -> (i32, i32, i32) {
    %c0_i32 = arith.constant 0 : i32
    %c0_i32_0 = arith.constant 0 : i32
    %c0_i32_1 = arith.constant 0 : i32
    return %arg0, %c0_i32, %c0_i32_0 : i32, i32, i32
  }
}

module attributes {stable_mosaic.version = 11 : i64} {
  func.func @_block_kernel(%arg0: i32, %arg1: memref<1x16x32xbf16, #tpu.memory_space<vmem>>, %arg2: memref<1x1x16xf32, #tpu.memory_space<vmem>>, %arg3: memref<1x32xf32, #tpu.memory_space<vmem>>, %arg4: memref<1x32xf32, #tpu.memory_space<vmem>>, %arg5: memref<32x96xf32, #tpu.memory_space<vmem>>, %arg6: memref<1x96xf32, #tpu.memory_space<vmem>>, %arg7: memref<32x32xf32, #tpu.memory_space<vmem>>, %arg8: memref<1x32xf32, #tpu.memory_space<vmem>>, %arg9: memref<1x32xf32, #tpu.memory_space<vmem>>, %arg10: memref<1x32xf32, #tpu.memory_space<vmem>>, %arg11: memref<32x128xf32, #tpu.memory_space<vmem>>, %arg12: memref<1x128xf32, #tpu.memory_space<vmem>>, %arg13: memref<128x32xf32, #tpu.memory_space<vmem>>, %arg14: memref<1x32xf32, #tpu.memory_space<vmem>>, %arg15: memref<1x16x32xbf16, #tpu.memory_space<vmem>>) attributes {dimension_semantics = [#tpu.dimension_semantics<parallel>], iteration_bounds = array<i64: 2>, scalar_prefetch = 0 : i64, scratch_operands = 0 : i64, tpu.core_type = #tpu.core_type<tc>, window_params = [{transform_indices = @transform_0, window_bounds = array<i64: 1, 16, 32>}, {transform_indices = @transform_1, window_bounds = array<i64: 1, 1, 16>}, {pipeline_mode = #tpu.pipeline_mode<synchronous>, transform_indices = @transform_2, window_bounds = array<i64: 1, 32>}, {pipeline_mode = #tpu.pipeline_mode<synchronous>, transform_indices = @transform_3, window_bounds = array<i64: 1, 32>}, {pipeline_mode = #tpu.pipeline_mode<synchronous>, transform_indices = @transform_4, window_bounds = array<i64: 32, 96>}, {pipeline_mode = #tpu.pipeline_mode<synchronous>, transform_indices = @transform_5, window_bounds = array<i64: 1, 96>}, {pipeline_mode = #tpu.pipeline_mode<synchronous>, transform_indices = @transform_6, window_bounds = array<i64: 32, 32>}, {pipeline_mode = #tpu.pipeline_mode<synchronous>, transform_indices = @transform_7, window_bounds = array<i64: 1, 32>}, {pipeline_mode = #tpu.pipeline_mode<synchronous>, transform_indices = @transform_8, window_bounds = array<i64: 1, 32>}, {pipeline_mode = #tpu.pipeline_mode<synchronous>, transform_indices = @transform_9, window_bounds = array<i64: 1, 32>}, {pipeline_mode = #tpu.pipeline_mode<synchronous>, transform_indices = @transform_10, window_bounds = array<i64: 32, 128>}, {pipeline_mode = #tpu.pipeline_mode<synchronous>, transform_indices = @transform_11, window_bounds = array<i64: 1, 128>}, {pipeline_mode = #tpu.pipeline_mode<synchronous>, transform_indices = @transform_12, window_bounds = array<i64: 128, 32>}, {pipeline_mode = #tpu.pipeline_mode<synchronous>, transform_indices = @transform_13, window_bounds = array<i64: 1, 32>}, {transform_indices = @transform_14, window_bounds = array<i64: 1, 16, 32>}]} {
    %c0 = arith.constant 0 : index
    %c0_0 = arith.constant 0 : index
    %c0_1 = arith.constant 0 : index
    %0 = vector.load %arg1[%c0, %c0_0, %c0_1] : memref<1x16x32xbf16, #tpu.memory_space<vmem>>, vector<1x16x32xbf16>
    %1 = vector.shape_cast %0 : vector<1x16x32xbf16> to vector<16x32xbf16>
    %2 = arith.extf %1 : vector<16x32xbf16> to vector<16x32xf32>
    %3 = tpu.iota {dimensions = array<i32: 0>} : vector<16x16xi32>
    %4 = tpu.iota {dimensions = array<i32: 1>} : vector<16x16xi32>
    %5 = arith.cmpi sle, %4, %3 : vector<16x16xi32>
    %c0_2 = arith.constant 0 : index
    %c0_3 = arith.constant 0 : index
    %c0_4 = arith.constant 0 : index
    %6 = vector.load %arg2[%c0_2, %c0_3, %c0_4] : memref<1x1x16xf32, #tpu.memory_space<vmem>>, vector<1x1x16xf32>
    %7 = vector.shape_cast %6 : vector<1x1x16xf32> to vector<1x16xf32>
    %cst = arith.constant 5.000000e-01 : f32
    %8 = vector.broadcast %cst : f32 to vector<1x16xf32>
    %9 = arith.cmpf ogt, %7, %8 : vector<1x16xf32>
    %10 = vector.broadcast %9 : vector<1x16xi1> to vector<16x16xi1>
    %11 = arith.andi %5, %10 : vector<16x16xi1>
    %cst_5 = arith.constant 0.000000e+00 : f32
    %cst_6 = arith.constant -1.000000e+09 : f32
    %12 = vector.broadcast %cst_5 : f32 to vector<16x16xf32>
    %13 = vector.broadcast %cst_6 : f32 to vector<16x16xf32>
    %14 = arith.select %11, %12, %13 : vector<16x16xi1>, vector<16x16xf32>
    %c0_7 = arith.constant 0 : index
    %c0_8 = arith.constant 0 : index
    %15 = vector.load %arg3[%c0_7, %c0_8] : memref<1x32xf32, #tpu.memory_space<vmem>>, vector<1x32xf32>
    %c0_9 = arith.constant 0 : index
    %c0_10 = arith.constant 0 : index
    %16 = vector.load %arg4[%c0_9, %c0_10] : memref<1x32xf32, #tpu.memory_space<vmem>>, vector<1x32xf32>
    %c0_11 = arith.constant 0 : index
    %c0_12 = arith.constant 0 : index
    %17 = vector.load %arg5[%c0_11, %c0_12] : memref<32x96xf32, #tpu.memory_space<vmem>>, vector<32x96xf32>
    %c0_13 = arith.constant 0 : index
    %c0_14 = arith.constant 0 : index
    %18 = vector.load %arg6[%c0_13, %c0_14] : memref<1x96xf32, #tpu.memory_space<vmem>>, vector<1x96xf32>
    %c0_15 = arith.constant 0 : index
    %c0_16 = arith.constant 0 : index
    %19 = vector.load %arg7[%c0_15, %c0_16] : memref<32x32xf32, #tpu.memory_space<vmem>>, vector<32x32xf32>
    %c0_17 = arith.constant 0 : index
    %c0_18 = arith.constant 0 : index
    %20 = vector.load %arg8[%c0_17, %c0_18] : memref<1x32xf32, #tpu.memory_space<vmem>>, vector<1x32xf32>
    %c0_19 = arith.constant 0 : index
    %c0_20 = arith.constant 0 : index
    %21 = vector.load %arg9[%c0_19, %c0_20] : memref<1x32xf32, #tpu.memory_space<vmem>>, vector<1x32xf32>
    %c0_21 = arith.constant 0 : index
    %c0_22 = arith.constant 0 : index
    %22 = vector.load %arg10[%c0_21, %c0_22] : memref<1x32xf32, #tpu.memory_space<vmem>>, vector<1x32xf32>
    %c0_23 = arith.constant 0 : index
    %c0_24 = arith.constant 0 : index
    %23 = vector.load %arg11[%c0_23, %c0_24] : memref<32x128xf32, #tpu.memory_space<vmem>>, vector<32x128xf32>
    %c0_25 = arith.constant 0 : index
    %c0_26 = arith.constant 0 : index
    %24 = vector.load %arg12[%c0_25, %c0_26] : memref<1x128xf32, #tpu.memory_space<vmem>>, vector<1x128xf32>
    %c0_27 = arith.constant 0 : index
    %c0_28 = arith.constant 0 : index
    %25 = vector.load %arg13[%c0_27, %c0_28] : memref<128x32xf32, #tpu.memory_space<vmem>>, vector<128x32xf32>
    %c0_29 = arith.constant 0 : index
    %c0_30 = arith.constant 0 : index
    %26 = vector.load %arg14[%c0_29, %c0_30] : memref<1x32xf32, #tpu.memory_space<vmem>>, vector<1x32xf32>
    %cst_31 = arith.constant dense<0.000000e+00> : vector<16xf32>
    %27 = vector.multi_reduction <add>, %2, %cst_31 [1] : vector<16x32xf32> to vector<16xf32>
    %28 = vector.shape_cast %27 : vector<16xf32> to vector<16x1xf32>
    %cst_32 = arith.constant 3.200000e+01 : f32
    %29 = vector.broadcast %cst_32 : f32 to vector<16x1xf32>
    %30 = arith.divf %28, %29 : vector<16x1xf32>
    %31 = vector.broadcast %30 : vector<16x1xf32> to vector<16x32xf32>
    %32 = arith.subf %2, %31 : vector<16x32xf32>
    %33 = arith.mulf %32, %32 : vector<16x32xf32>
    %cst_33 = arith.constant dense<0.000000e+00> : vector<16xf32>
    %34 = vector.multi_reduction <add>, %33, %cst_33 [1] : vector<16x32xf32> to vector<16xf32>
    %35 = vector.shape_cast %34 : vector<16xf32> to vector<16x1xf32>
    %cst_34 = arith.constant 3.200000e+01 : f32
    %36 = vector.broadcast %cst_34 : f32 to vector<16x1xf32>
    %37 = arith.divf %35, %36 : vector<16x1xf32>
    %38 = vector.broadcast %30 : vector<16x1xf32> to vector<16x32xf32>
    %39 = arith.subf %2, %38 : vector<16x32xf32>
    %cst_35 = arith.constant 9.99999974E-6 : f32
    %40 = vector.broadcast %cst_35 : f32 to vector<16x1xf32>
    %41 = arith.addf %37, %40 : vector<16x1xf32>
    %42 = math.rsqrt %41 : vector<16x1xf32>
    %43 = vector.broadcast %42 : vector<16x1xf32> to vector<16x32xf32>
    %44 = arith.mulf %39, %43 : vector<16x32xf32>
    %45 = vector.broadcast %15 : vector<1x32xf32> to vector<16x32xf32>
    %46 = arith.mulf %44, %45 : vector<16x32xf32>
    %47 = vector.broadcast %16 : vector<1x32xf32> to vector<16x32xf32>
    %48 = arith.addf %46, %47 : vector<16x32xf32>
    %49 = arith.truncf %48 : vector<16x32xf32> to vector<16x32xbf16>
    %50 = arith.truncf %17 : vector<32x96xf32> to vector<32x96xbf16>
    %cst_36 = arith.constant dense<0.000000e+00> : vector<16x96xf32>
    %51 = tpu.matmul %49, %50, %cst_36 {dimension_numbers = #tpu.dot_dimension_numbers<[1], [0], [0], [1], [0, 0, 1, 1], [], []>} : vector<16x32xbf16>, vector<32x96xbf16>, vector<16x96xf32> -> vector<16x96xf32>
    %52 = vector.broadcast %18 : vector<1x96xf32> to vector<16x96xf32>
    %53 = arith.addf %51, %52 : vector<16x96xf32>
    %54 = vector.extract_strided_slice %53 {offsets = [0, 0], sizes = [16, 32], strides = [1, 1]} : vector<16x96xf32> to vector<16x32xf32>
    %55 = vector.extract_strided_slice %53 {offsets = [0, 32], sizes = [16, 32], strides = [1, 1]} : vector<16x96xf32> to vector<16x32xf32>
    %56 = vector.extract_strided_slice %53 {offsets = [0, 64], sizes = [16, 32], strides = [1, 1]} : vector<16x96xf32> to vector<16x32xf32>
    %57 = vector.extract_strided_slice %54 {offsets = [0, 0], sizes = [16, 8], strides = [1, 1]} : vector<16x32xf32> to vector<16x8xf32>
    %58 = vector.extract_strided_slice %55 {offsets = [0, 0], sizes = [16, 8], strides = [1, 1]} : vector<16x32xf32> to vector<16x8xf32>
    %59 = vector.extract_strided_slice %56 {offsets = [0, 0], sizes = [16, 8], strides = [1, 1]} : vector<16x32xf32> to vector<16x8xf32>
    %60 = arith.truncf %57 : vector<16x8xf32> to vector<16x8xbf16>
    %61 = arith.truncf %58 : vector<16x8xf32> to vector<16x8xbf16>
    %cst_37 = arith.constant dense<0.000000e+00> : vector<16x16xf32>
    %62 = tpu.matmul %60, %61, %cst_37 {dimension_numbers = #tpu.dot_dimension_numbers<[1], [1], [0], [0], [0, 0, 1, 0], [], []>} : vector<16x8xbf16>, vector<16x8xbf16>, vector<16x16xf32> -> vector<16x16xf32>
    %cst_38 = arith.constant 0.353553385 : f32
    %63 = vector.broadcast %cst_38 : f32 to vector<16x16xf32>
    %64 = arith.mulf %62, %63 : vector<16x16xf32>
    %65 = arith.addf %64, %14 : vector<16x16xf32>
    %cst_39 = arith.constant dense<0xFF800000> : vector<16xf32>
    %66 = vector.multi_reduction <maximumf>, %65, %cst_39 [1] : vector<16x16xf32> to vector<16xf32>
    %67 = vector.shape_cast %66 : vector<16xf32> to vector<16x1xf32>
    %68 = vector.broadcast %67 : vector<16x1xf32> to vector<16x16xf32>
    %69 = arith.subf %65, %68 : vector<16x16xf32>
    %70 = math.exp %69 : vector<16x16xf32>
    %cst_40 = arith.constant dense<0.000000e+00> : vector<16xf32>
    %71 = vector.multi_reduction <add>, %70, %cst_40 [1] : vector<16x16xf32> to vector<16xf32>
    %72 = vector.shape_cast %71 : vector<16xf32> to vector<16x1xf32>
    %73 = tpu.reciprocal %72 {approx = true} : vector<16x1xf32> -> vector<16x1xf32>
    %74 = vector.broadcast %73 : vector<16x1xf32> to vector<16x16xf32>
    %75 = arith.mulf %70, %74 : vector<16x16xf32>
    %76 = arith.truncf %75 : vector<16x16xf32> to vector<16x16xbf16>
    %77 = arith.truncf %59 : vector<16x8xf32> to vector<16x8xbf16>
    %cst_41 = arith.constant dense<0.000000e+00> : vector<16x8xf32>
    %78 = tpu.matmul %76, %77, %cst_41 {dimension_numbers = #tpu.dot_dimension_numbers<[1], [0], [0], [1], [0, 0, 1, 1], [], []>} : vector<16x16xbf16>, vector<16x8xbf16>, vector<16x8xf32> -> vector<16x8xf32>
    %79 = vector.extract_strided_slice %54 {offsets = [0, 8], sizes = [16, 8], strides = [1, 1]} : vector<16x32xf32> to vector<16x8xf32>
    %80 = vector.extract_strided_slice %55 {offsets = [0, 8], sizes = [16, 8], strides = [1, 1]} : vector<16x32xf32> to vector<16x8xf32>
    %81 = vector.extract_strided_slice %56 {offsets = [0, 8], sizes = [16, 8], strides = [1, 1]} : vector<16x32xf32> to vector<16x8xf32>
    %82 = arith.truncf %79 : vector<16x8xf32> to vector<16x8xbf16>
    %83 = arith.truncf %80 : vector<16x8xf32> to vector<16x8xbf16>
    %cst_42 = arith.constant dense<0.000000e+00> : vector<16x16xf32>
    %84 = tpu.matmul %82, %83, %cst_42 {dimension_numbers = #tpu.dot_dimension_numbers<[1], [1], [0], [0], [0, 0, 1, 0], [], []>} : vector<16x8xbf16>, vector<16x8xbf16>, vector<16x16xf32> -> vector<16x16xf32>
    %cst_43 = arith.constant 0.353553385 : f32
    %85 = vector.broadcast %cst_43 : f32 to vector<16x16xf32>
    %86 = arith.mulf %84, %85 : vector<16x16xf32>
    %87 = arith.addf %86, %14 : vector<16x16xf32>
    %cst_44 = arith.constant dense<0xFF800000> : vector<16xf32>
    %88 = vector.multi_reduction <maximumf>, %87, %cst_44 [1] : vector<16x16xf32> to vector<16xf32>
    %89 = vector.shape_cast %88 : vector<16xf32> to vector<16x1xf32>
    %90 = vector.broadcast %89 : vector<16x1xf32> to vector<16x16xf32>
    %91 = arith.subf %87, %90 : vector<16x16xf32>
    %92 = math.exp %91 : vector<16x16xf32>
    %cst_45 = arith.constant dense<0.000000e+00> : vector<16xf32>
    %93 = vector.multi_reduction <add>, %92, %cst_45 [1] : vector<16x16xf32> to vector<16xf32>
    %94 = vector.shape_cast %93 : vector<16xf32> to vector<16x1xf32>
    %95 = tpu.reciprocal %94 {approx = true} : vector<16x1xf32> -> vector<16x1xf32>
    %96 = vector.broadcast %95 : vector<16x1xf32> to vector<16x16xf32>
    %97 = arith.mulf %92, %96 : vector<16x16xf32>
    %98 = arith.truncf %97 : vector<16x16xf32> to vector<16x16xbf16>
    %99 = arith.truncf %81 : vector<16x8xf32> to vector<16x8xbf16>
    %cst_46 = arith.constant dense<0.000000e+00> : vector<16x8xf32>
    %100 = tpu.matmul %98, %99, %cst_46 {dimension_numbers = #tpu.dot_dimension_numbers<[1], [0], [0], [1], [0, 0, 1, 1], [], []>} : vector<16x16xbf16>, vector<16x8xbf16>, vector<16x8xf32> -> vector<16x8xf32>
    %101 = vector.extract_strided_slice %54 {offsets = [0, 16], sizes = [16, 8], strides = [1, 1]} : vector<16x32xf32> to vector<16x8xf32>
    %102 = vector.extract_strided_slice %55 {offsets = [0, 16], sizes = [16, 8], strides = [1, 1]} : vector<16x32xf32> to vector<16x8xf32>
    %103 = vector.extract_strided_slice %56 {offsets = [0, 16], sizes = [16, 8], strides = [1, 1]} : vector<16x32xf32> to vector<16x8xf32>
    %104 = arith.truncf %101 : vector<16x8xf32> to vector<16x8xbf16>
    %105 = arith.truncf %102 : vector<16x8xf32> to vector<16x8xbf16>
    %cst_47 = arith.constant dense<0.000000e+00> : vector<16x16xf32>
    %106 = tpu.matmul %104, %105, %cst_47 {dimension_numbers = #tpu.dot_dimension_numbers<[1], [1], [0], [0], [0, 0, 1, 0], [], []>} : vector<16x8xbf16>, vector<16x8xbf16>, vector<16x16xf32> -> vector<16x16xf32>
    %cst_48 = arith.constant 0.353553385 : f32
    %107 = vector.broadcast %cst_48 : f32 to vector<16x16xf32>
    %108 = arith.mulf %106, %107 : vector<16x16xf32>
    %109 = arith.addf %108, %14 : vector<16x16xf32>
    %cst_49 = arith.constant dense<0xFF800000> : vector<16xf32>
    %110 = vector.multi_reduction <maximumf>, %109, %cst_49 [1] : vector<16x16xf32> to vector<16xf32>
    %111 = vector.shape_cast %110 : vector<16xf32> to vector<16x1xf32>
    %112 = vector.broadcast %111 : vector<16x1xf32> to vector<16x16xf32>
    %113 = arith.subf %109, %112 : vector<16x16xf32>
    %114 = math.exp %113 : vector<16x16xf32>
    %cst_50 = arith.constant dense<0.000000e+00> : vector<16xf32>
    %115 = vector.multi_reduction <add>, %114, %cst_50 [1] : vector<16x16xf32> to vector<16xf32>
    %116 = vector.shape_cast %115 : vector<16xf32> to vector<16x1xf32>
    %117 = tpu.reciprocal %116 {approx = true} : vector<16x1xf32> -> vector<16x1xf32>
    %118 = vector.broadcast %117 : vector<16x1xf32> to vector<16x16xf32>
    %119 = arith.mulf %114, %118 : vector<16x16xf32>
    %120 = arith.truncf %119 : vector<16x16xf32> to vector<16x16xbf16>
    %121 = arith.truncf %103 : vector<16x8xf32> to vector<16x8xbf16>
    %cst_51 = arith.constant dense<0.000000e+00> : vector<16x8xf32>
    %122 = tpu.matmul %120, %121, %cst_51 {dimension_numbers = #tpu.dot_dimension_numbers<[1], [0], [0], [1], [0, 0, 1, 1], [], []>} : vector<16x16xbf16>, vector<16x8xbf16>, vector<16x8xf32> -> vector<16x8xf32>
    %123 = vector.extract_strided_slice %54 {offsets = [0, 24], sizes = [16, 8], strides = [1, 1]} : vector<16x32xf32> to vector<16x8xf32>
    %124 = vector.extract_strided_slice %55 {offsets = [0, 24], sizes = [16, 8], strides = [1, 1]} : vector<16x32xf32> to vector<16x8xf32>
    %125 = vector.extract_strided_slice %56 {offsets = [0, 24], sizes = [16, 8], strides = [1, 1]} : vector<16x32xf32> to vector<16x8xf32>
    %126 = arith.truncf %123 : vector<16x8xf32> to vector<16x8xbf16>
    %127 = arith.truncf %124 : vector<16x8xf32> to vector<16x8xbf16>
    %cst_52 = arith.constant dense<0.000000e+00> : vector<16x16xf32>
    %128 = tpu.matmul %126, %127, %cst_52 {dimension_numbers = #tpu.dot_dimension_numbers<[1], [1], [0], [0], [0, 0, 1, 0], [], []>} : vector<16x8xbf16>, vector<16x8xbf16>, vector<16x16xf32> -> vector<16x16xf32>
    %cst_53 = arith.constant 0.353553385 : f32
    %129 = vector.broadcast %cst_53 : f32 to vector<16x16xf32>
    %130 = arith.mulf %128, %129 : vector<16x16xf32>
    %131 = arith.addf %130, %14 : vector<16x16xf32>
    %cst_54 = arith.constant dense<0xFF800000> : vector<16xf32>
    %132 = vector.multi_reduction <maximumf>, %131, %cst_54 [1] : vector<16x16xf32> to vector<16xf32>
    %133 = vector.shape_cast %132 : vector<16xf32> to vector<16x1xf32>
    %134 = vector.broadcast %133 : vector<16x1xf32> to vector<16x16xf32>
    %135 = arith.subf %131, %134 : vector<16x16xf32>
    %136 = math.exp %135 : vector<16x16xf32>
    %cst_55 = arith.constant dense<0.000000e+00> : vector<16xf32>
    %137 = vector.multi_reduction <add>, %136, %cst_55 [1] : vector<16x16xf32> to vector<16xf32>
    %138 = vector.shape_cast %137 : vector<16xf32> to vector<16x1xf32>
    %139 = tpu.reciprocal %138 {approx = true} : vector<16x1xf32> -> vector<16x1xf32>
    %140 = vector.broadcast %139 : vector<16x1xf32> to vector<16x16xf32>
    %141 = arith.mulf %136, %140 : vector<16x16xf32>
    %142 = arith.truncf %141 : vector<16x16xf32> to vector<16x16xbf16>
    %143 = arith.truncf %125 : vector<16x8xf32> to vector<16x8xbf16>
    %cst_56 = arith.constant dense<0.000000e+00> : vector<16x8xf32>
    %144 = tpu.matmul %142, %143, %cst_56 {dimension_numbers = #tpu.dot_dimension_numbers<[1], [0], [0], [1], [0, 0, 1, 1], [], []>} : vector<16x16xbf16>, vector<16x8xbf16>, vector<16x8xf32> -> vector<16x8xf32>
    %145 = tpu.concatenate %78, %100, %122, %144 in 1 : vector<16x8xf32>, vector<16x8xf32>, vector<16x8xf32>, vector<16x8xf32> -> vector<16x32xf32>
    %146 = arith.truncf %145 : vector<16x32xf32> to vector<16x32xbf16>
    %147 = arith.truncf %19 : vector<32x32xf32> to vector<32x32xbf16>
    %cst_57 = arith.constant dense<0.000000e+00> : vector<16x32xf32>
    %148 = tpu.matmul %146, %147, %cst_57 {dimension_numbers = #tpu.dot_dimension_numbers<[1], [0], [0], [1], [0, 0, 1, 1], [], []>} : vector<16x32xbf16>, vector<32x32xbf16>, vector<16x32xf32> -> vector<16x32xf32>
    %149 = arith.addf %2, %148 : vector<16x32xf32>
    %150 = vector.broadcast %20 : vector<1x32xf32> to vector<16x32xf32>
    %151 = arith.addf %149, %150 : vector<16x32xf32>
    %cst_58 = arith.constant dense<0.000000e+00> : vector<16xf32>
    %152 = vector.multi_reduction <add>, %151, %cst_58 [1] : vector<16x32xf32> to vector<16xf32>
    %153 = vector.shape_cast %152 : vector<16xf32> to vector<16x1xf32>
    %cst_59 = arith.constant 3.200000e+01 : f32
    %154 = vector.broadcast %cst_59 : f32 to vector<16x1xf32>
    %155 = arith.divf %153, %154 : vector<16x1xf32>
    %156 = vector.broadcast %155 : vector<16x1xf32> to vector<16x32xf32>
    %157 = arith.subf %151, %156 : vector<16x32xf32>
    %158 = arith.mulf %157, %157 : vector<16x32xf32>
    %cst_60 = arith.constant dense<0.000000e+00> : vector<16xf32>
    %159 = vector.multi_reduction <add>, %158, %cst_60 [1] : vector<16x32xf32> to vector<16xf32>
    %160 = vector.shape_cast %159 : vector<16xf32> to vector<16x1xf32>
    %cst_61 = arith.constant 3.200000e+01 : f32
    %161 = vector.broadcast %cst_61 : f32 to vector<16x1xf32>
    %162 = arith.divf %160, %161 : vector<16x1xf32>
    %163 = vector.broadcast %155 : vector<16x1xf32> to vector<16x32xf32>
    %164 = arith.subf %151, %163 : vector<16x32xf32>
    %cst_62 = arith.constant 9.99999974E-6 : f32
    %165 = vector.broadcast %cst_62 : f32 to vector<16x1xf32>
    %166 = arith.addf %162, %165 : vector<16x1xf32>
    %167 = math.rsqrt %166 : vector<16x1xf32>
    %168 = vector.broadcast %167 : vector<16x1xf32> to vector<16x32xf32>
    %169 = arith.mulf %164, %168 : vector<16x32xf32>
    %170 = vector.broadcast %21 : vector<1x32xf32> to vector<16x32xf32>
    %171 = arith.mulf %169, %170 : vector<16x32xf32>
    %172 = vector.broadcast %22 : vector<1x32xf32> to vector<16x32xf32>
    %173 = arith.addf %171, %172 : vector<16x32xf32>
    %174 = arith.truncf %173 : vector<16x32xf32> to vector<16x32xbf16>
    %175 = arith.truncf %23 : vector<32x128xf32> to vector<32x128xbf16>
    %cst_63 = arith.constant dense<0.000000e+00> : vector<16x128xf32>
    %176 = tpu.matmul %174, %175, %cst_63 {dimension_numbers = #tpu.dot_dimension_numbers<[1], [0], [0], [1], [0, 0, 1, 1], [], []>} : vector<16x32xbf16>, vector<32x128xbf16>, vector<16x128xf32> -> vector<16x128xf32>
    %177 = vector.broadcast %24 : vector<1x128xf32> to vector<16x128xf32>
    %178 = arith.addf %176, %177 : vector<16x128xf32>
    %cst_64 = arith.constant 5.000000e-01 : f32
    %179 = vector.broadcast %cst_64 : f32 to vector<16x128xf32>
    %180 = arith.mulf %179, %178 : vector<16x128xf32>
    %cst_65 = arith.constant 4.471500e-02 : f32
    %181 = vector.broadcast %cst_65 : f32 to vector<16x128xf32>
    %182 = arith.mulf %181, %178 : vector<16x128xf32>
    %183 = arith.mulf %182, %178 : vector<16x128xf32>
    %184 = arith.mulf %183, %178 : vector<16x128xf32>
    %185 = arith.addf %178, %184 : vector<16x128xf32>
    %cst_66 = arith.constant 0.797884583 : f32
    %186 = vector.broadcast %cst_66 : f32 to vector<16x128xf32>
    %187 = arith.mulf %186, %185 : vector<16x128xf32>
    %188 = math.tanh %187 : vector<16x128xf32>
    %cst_67 = arith.constant 1.000000e+00 : f32
    %189 = vector.broadcast %cst_67 : f32 to vector<16x128xf32>
    %190 = arith.addf %189, %188 : vector<16x128xf32>
    %191 = arith.mulf %180, %190 : vector<16x128xf32>
    %192 = arith.truncf %191 : vector<16x128xf32> to vector<16x128xbf16>
    %193 = arith.truncf %25 : vector<128x32xf32> to vector<128x32xbf16>
    %cst_68 = arith.constant dense<0.000000e+00> : vector<16x32xf32>
    %194 = tpu.matmul %192, %193, %cst_68 {dimension_numbers = #tpu.dot_dimension_numbers<[1], [0], [0], [1], [0, 0, 1, 1], [], []>} : vector<16x128xbf16>, vector<128x32xbf16>, vector<16x32xf32> -> vector<16x32xf32>
    %195 = arith.addf %151, %194 : vector<16x32xf32>
    %196 = vector.broadcast %26 : vector<1x32xf32> to vector<16x32xf32>
    %197 = arith.addf %195, %196 : vector<16x32xf32>
    %198 = arith.truncf %197 : vector<16x32xf32> to vector<16x32xbf16>
    %c0_69 = arith.constant 0 : index
    %c0_70 = arith.constant 0 : index
    %c0_71 = arith.constant 0 : index
    %199 = vector.load %arg15[%c0_69, %c0_70, %c0_71] : memref<1x16x32xbf16, #tpu.memory_space<vmem>>, vector<1x16x32xbf16>
    %200 = vector.shape_cast %199 : vector<1x16x32xbf16> to vector<16x32xbf16>
    %201 = vector.shape_cast %198 : vector<16x32xbf16> to vector<1x16x32xbf16>
    tpu.vector_store %arg15[%c0_69, %c0_70, %c0_71], %201 {strides = array<i32>} : memref<1x16x32xbf16, #tpu.memory_space<vmem>>, vector<1x16x32xbf16>,
    return
  }
  func.func @transform_0(%arg0: i32) -> (i32, i32, i32) {
    %c0_i32 = arith.constant 0 : i32
    %c0_i32_0 = arith.constant 0 : i32
    %c0_i32_1 = arith.constant 0 : i32
    return %arg0, %c0_i32, %c0_i32_0 : i32, i32, i32
  }
  func.func @transform_1(%arg0: i32) -> (i32, i32, i32) {
    %c0_i32 = arith.constant 0 : i32
    %c0_i32_0 = arith.constant 0 : i32
    %c0_i32_1 = arith.constant 0 : i32
    return %arg0, %c0_i32, %c0_i32_0 : i32, i32, i32
  }
  func.func @transform_2(%arg0: i32) -> (i32, i32) {
    %c0_i32 = arith.constant 0 : i32
    %c0_i32_0 = arith.constant 0 : i32
    %c0_i32_1 = arith.constant 0 : i32
    return %c0_i32, %c0_i32_0 : i32, i32
  }
  func.func @transform_3(%arg0: i32) -> (i32, i32) {
    %c0_i32 = arith.constant 0 : i32
    %c0_i32_0 = arith.constant 0 : i32
    %c0_i32_1 = arith.constant 0 : i32
    return %c0_i32, %c0_i32_0 : i32, i32
  }
  func.func @transform_4(%arg0: i32) -> (i32, i32) {
    %c0_i32 = arith.constant 0 : i32
    %c0_i32_0 = arith.constant 0 : i32
    %c0_i32_1 = arith.constant 0 : i32
    return %c0_i32, %c0_i32_0 : i32, i32
  }
  func.func @transform_5(%arg0: i32) -> (i32, i32) {
    %c0_i32 = arith.constant 0 : i32
    %c0_i32_0 = arith.constant 0 : i32
    %c0_i32_1 = arith.constant 0 : i32
    return %c0_i32, %c0_i32_0 : i32, i32
  }
  func.func @transform_6(%arg0: i32) -> (i32, i32) {
    %c0_i32 = arith.constant 0 : i32
    %c0_i32_0 = arith.constant 0 : i32
    %c0_i32_1 = arith.constant 0 : i32
    return %c0_i32, %c0_i32_0 : i32, i32
  }
  func.func @transform_7(%arg0: i32) -> (i32, i32) {
    %c0_i32 = arith.constant 0 : i32
    %c0_i32_0 = arith.constant 0 : i32
    %c0_i32_1 = arith.constant 0 : i32
    return %c0_i32, %c0_i32_0 : i32, i32
  }
  func.func @transform_8(%arg0: i32) -> (i32, i32) {
    %c0_i32 = arith.constant 0 : i32
    %c0_i32_0 = arith.constant 0 : i32
    %c0_i32_1 = arith.constant 0 : i32
    return %c0_i32, %c0_i32_0 : i32, i32
  }
  func.func @transform_9(%arg0: i32) -> (i32, i32) {
    %c0_i32 = arith.constant 0 : i32
    %c0_i32_0 = arith.constant 0 : i32
    %c0_i32_1 = arith.constant 0 : i32
    return %c0_i32, %c0_i32_0 : i32, i32
  }
  func.func @transform_10(%arg0: i32) -> (i32, i32) {
    %c0_i32 = arith.constant 0 : i32
    %c0_i32_0 = arith.constant 0 : i32
    %c0_i32_1 = arith.constant 0 : i32
    return %c0_i32, %c0_i32_0 : i32, i32
  }
  func.func @transform_11(%arg0: i32) -> (i32, i32) {
    %c0_i32 = arith.constant 0 : i32
    %c0_i32_0 = arith.constant 0 : i32
    %c0_i32_1 = arith.constant 0 : i32
    return %c0_i32, %c0_i32_0 : i32, i32
  }
  func.func @transform_12(%arg0: i32) -> (i32, i32) {
    %c0_i32 = arith.constant 0 : i32
    %c0_i32_0 = arith.constant 0 : i32
    %c0_i32_1 = arith.constant 0 : i32
    return %c0_i32, %c0_i32_0 : i32, i32
  }
  func.func @transform_13(%arg0: i32) -> (i32, i32) {
    %c0_i32 = arith.constant 0 : i32
    %c0_i32_0 = arith.constant 0 : i32
    %c0_i32_1 = arith.constant 0 : i32
    return %c0_i32, %c0_i32_0 : i32, i32
  }
  func.func @transform_14(%arg0: i32) -> (i32, i32, i32) {
    %c0_i32 = arith.constant 0 : i32
    %c0_i32_0 = arith.constant 0 : i32
    %c0_i32_1 = arith.constant 0 : i32
    return %arg0, %c0_i32, %c0_i32_0 : i32, i32, i32
  }
}

module attributes {stable_mosaic.version = 11 : i64} {
  func.func @_lmhead_ce_kernel(%arg0: i32, %arg1: memref<32x32xbf16, #tpu.memory_space<vmem>>, %arg2: memref<1x32xf32, #tpu.memory_space<vmem>>, %arg3: memref<1x32xf32, #tpu.memory_space<vmem>>, %arg4: memref<32x128xf32, #tpu.memory_space<vmem>>, %arg5: memref<1x128xf32, #tpu.memory_space<vmem>>, %arg6: memref<32x1xi32, #tpu.memory_space<vmem>>, %arg7: memref<1x1xf32, #tpu.memory_space<vmem>>) attributes {dimension_semantics = [#tpu.dimension_semantics<arbitrary>], iteration_bounds = array<i64: 1>, scalar_prefetch = 0 : i64, scratch_operands = 0 : i64, tpu.core_type = #tpu.core_type<tc>, window_params = [{pipeline_mode = #tpu.pipeline_mode<synchronous>, transform_indices = @transform_0, window_bounds = array<i64: 32, 32>}, {pipeline_mode = #tpu.pipeline_mode<synchronous>, transform_indices = @transform_1, window_bounds = array<i64: 1, 32>}, {pipeline_mode = #tpu.pipeline_mode<synchronous>, transform_indices = @transform_2, window_bounds = array<i64: 1, 32>}, {pipeline_mode = #tpu.pipeline_mode<synchronous>, transform_indices = @transform_3, window_bounds = array<i64: 32, 128>}, {pipeline_mode = #tpu.pipeline_mode<synchronous>, transform_indices = @transform_4, window_bounds = array<i64: 1, 128>}, {pipeline_mode = #tpu.pipeline_mode<synchronous>, transform_indices = @transform_5, window_bounds = array<i64: 32, 1>}, {pipeline_mode = #tpu.pipeline_mode<synchronous>, transform_indices = @transform_6, window_bounds = array<i64: 1, 1>}]} {
    %c0 = arith.constant 0 : index
    %c0_0 = arith.constant 0 : index
    %0 = vector.load %arg1[%c0, %c0_0] : memref<32x32xbf16, #tpu.memory_space<vmem>>, vector<32x32xbf16>
    %1 = arith.extf %0 : vector<32x32xbf16> to vector<32x32xf32>
    %c0_1 = arith.constant 0 : index
    %c0_2 = arith.constant 0 : index
    %2 = vector.load %arg2[%c0_1, %c0_2] : memref<1x32xf32, #tpu.memory_space<vmem>>, vector<1x32xf32>
    %c0_3 = arith.constant 0 : index
    %c0_4 = arith.constant 0 : index
    %3 = vector.load %arg3[%c0_3, %c0_4] : memref<1x32xf32, #tpu.memory_space<vmem>>, vector<1x32xf32>
    %cst = arith.constant dense<0.000000e+00> : vector<32xf32>
    %4 = vector.multi_reduction <add>, %1, %cst [1] : vector<32x32xf32> to vector<32xf32>
    %5 = vector.shape_cast %4 : vector<32xf32> to vector<32x1xf32>
    %cst_5 = arith.constant 3.200000e+01 : f32
    %6 = vector.broadcast %cst_5 : f32 to vector<32x1xf32>
    %7 = arith.divf %5, %6 : vector<32x1xf32>
    %8 = vector.broadcast %7 : vector<32x1xf32> to vector<32x32xf32>
    %9 = arith.subf %1, %8 : vector<32x32xf32>
    %10 = arith.mulf %9, %9 : vector<32x32xf32>
    %cst_6 = arith.constant dense<0.000000e+00> : vector<32xf32>
    %11 = vector.multi_reduction <add>, %10, %cst_6 [1] : vector<32x32xf32> to vector<32xf32>
    %12 = vector.shape_cast %11 : vector<32xf32> to vector<32x1xf32>
    %cst_7 = arith.constant 3.200000e+01 : f32
    %13 = vector.broadcast %cst_7 : f32 to vector<32x1xf32>
    %14 = arith.divf %12, %13 : vector<32x1xf32>
    %15 = vector.broadcast %7 : vector<32x1xf32> to vector<32x32xf32>
    %16 = arith.subf %1, %15 : vector<32x32xf32>
    %cst_8 = arith.constant 9.99999974E-6 : f32
    %17 = vector.broadcast %cst_8 : f32 to vector<32x1xf32>
    %18 = arith.addf %14, %17 : vector<32x1xf32>
    %19 = math.rsqrt %18 : vector<32x1xf32>
    %20 = vector.broadcast %19 : vector<32x1xf32> to vector<32x32xf32>
    %21 = arith.mulf %16, %20 : vector<32x32xf32>
    %22 = vector.broadcast %2 : vector<1x32xf32> to vector<32x32xf32>
    %23 = arith.mulf %21, %22 : vector<32x32xf32>
    %24 = vector.broadcast %3 : vector<1x32xf32> to vector<32x32xf32>
    %25 = arith.addf %23, %24 : vector<32x32xf32>
    %c0_9 = arith.constant 0 : index
    %c0_10 = arith.constant 0 : index
    %26 = vector.load %arg4[%c0_9, %c0_10] : memref<32x128xf32, #tpu.memory_space<vmem>>, vector<32x128xf32>
    %27 = arith.truncf %25 : vector<32x32xf32> to vector<32x32xbf16>
    %28 = arith.truncf %26 : vector<32x128xf32> to vector<32x128xbf16>
    %cst_11 = arith.constant dense<0.000000e+00> : vector<32x128xf32>
    %29 = tpu.matmul %27, %28, %cst_11 {dimension_numbers = #tpu.dot_dimension_numbers<[1], [0], [0], [1], [0, 0, 1, 1], [], []>} : vector<32x32xbf16>, vector<32x128xbf16>, vector<32x128xf32> -> vector<32x128xf32>
    %c0_12 = arith.constant 0 : index
    %c0_13 = arith.constant 0 : index
    %30 = vector.load %arg5[%c0_12, %c0_13] : memref<1x128xf32, #tpu.memory_space<vmem>>, vector<1x128xf32>
    %31 = vector.broadcast %30 : vector<1x128xf32> to vector<32x128xf32>
    %32 = arith.addf %29, %31 : vector<32x128xf32>
    %c0_14 = arith.constant 0 : index
    %c0_15 = arith.constant 0 : index
    %33 = vector.load %arg6[%c0_14, %c0_15] : memref<32x1xi32, #tpu.memory_space<vmem>>, vector<32x1xi32>
    %cst_16 = arith.constant dense<0xFF800000> : vector<32xf32>
    %34 = vector.multi_reduction <maximumf>, %32, %cst_16 [1] : vector<32x128xf32> to vector<32xf32>
    %35 = vector.shape_cast %34 : vector<32xf32> to vector<32x1xf32>
    %36 = vector.broadcast %35 : vector<32x1xf32> to vector<32x128xf32>
    %37 = arith.subf %32, %36 : vector<32x128xf32>
    %38 = math.exp %37 : vector<32x128xf32>
    %cst_17 = arith.constant dense<0.000000e+00> : vector<32xf32>
    %39 = vector.multi_reduction <add>, %38, %cst_17 [1] : vector<32x128xf32> to vector<32xf32>
    %40 = vector.shape_cast %39 : vector<32xf32> to vector<32x1xf32>
    %41 = math.log %40 : vector<32x1xf32>
    %42 = arith.addf %41, %35 : vector<32x1xf32>
    %43 = tpu.iota {dimensions = array<i32: 1>} : vector<32x128xi32>
    %44 = vector.broadcast %33 : vector<32x1xi32> to vector<32x128xi32>
    %45 = arith.cmpi eq, %43, %44 : vector<32x128xi32>
    %cst_18 = arith.constant 0.000000e+00 : f32
    %46 = vector.broadcast %cst_18 : f32 to vector<32x128xf32>
    %47 = arith.select %45, %32, %46 : vector<32x128xi1>, vector<32x128xf32>
    %cst_19 = arith.constant dense<0.000000e+00> : vector<32xf32>
    %48 = vector.multi_reduction <add>, %47, %cst_19 [1] : vector<32x128xf32> to vector<32xf32>
    %49 = vector.shape_cast %48 : vector<32xf32> to vector<32x1xf32>
    %c-100_i32 = arith.constant -100 : i32
    %50 = vector.broadcast %c-100_i32 : i32 to vector<32x1xi32>
    %51 = arith.cmpi ne, %33, %50 : vector<32x1xi32>
    %52 = arith.extui %51 : vector<32x1xi1> to vector<32x1xi32>
    %53 = arith.sitofp %52 : vector<32x1xi32> to vector<32x1xf32>
    %54 = arith.subf %42, %49 : vector<32x1xf32>
    %55 = arith.mulf %54, %53 : vector<32x1xf32>
    %cst_20 = arith.constant dense<0.000000e+00> : vector<1xf32>
    %56 = vector.multi_reduction <add>, %55, %cst_20 [0] : vector<32x1xf32> to vector<1xf32>
    %57 = vector.shape_cast %56 : vector<1xf32> to vector<1x1xf32>
    %cst_21 = arith.constant dense<0.000000e+00> : vector<1xf32>
    %58 = vector.multi_reduction <add>, %53, %cst_21 [0] : vector<32x1xf32> to vector<1xf32>
    %59 = vector.shape_cast %58 : vector<1xf32> to vector<1x1xf32>
    %cst_22 = arith.constant 1.000000e+00 : f32
    %60 = vector.broadcast %cst_22 : f32 to vector<1x1xf32>
    %61 = arith.maximumf %59, %60 : vector<1x1xf32>
    %62 = arith.divf %57, %61 : vector<1x1xf32>
    %c0_23 = arith.constant 0 : index
    %c0_24 = arith.constant 0 : index
    %63 = vector.load %arg7[%c0_23, %c0_24] : memref<1x1xf32, #tpu.memory_space<vmem>>, vector<1x1xf32>
    tpu.vector_store %arg7[%c0_23, %c0_24], %62 {strides = array<i32>} : memref<1x1xf32, #tpu.memory_space<vmem>>, vector<1x1xf32>,
    return
  }
  func.func @transform_0(%arg0: i32) -> (i32, i32) {
    %c0_i32 = arith.constant 0 : i32
    %c0_i32_0 = arith.constant 0 : i32
    %c0_i32_1 = arith.constant 0 : i32
    return %c0_i32, %c0_i32_0 : i32, i32
  }
  func.func @transform_1(%arg0: i32) -> (i32, i32) {
    %c0_i32 = arith.constant 0 : i32
    %c0_i32_0 = arith.constant 0 : i32
    %c0_i32_1 = arith.constant 0 : i32
    return %c0_i32, %c0_i32_0 : i32, i32
  }
  func.func @transform_2(%arg0: i32) -> (i32, i32) {
    %c0_i32 = arith.constant 0 : i32
    %c0_i32_0 = arith.constant 0 : i32
    %c0_i32_1 = arith.constant 0 : i32
    return %c0_i32, %c0_i32_0 : i32, i32
  }
  func.func @transform_3(%arg0: i32) -> (i32, i32) {
    %c0_i32 = arith.constant 0 : i32
    %c0_i32_0 = arith.constant 0 : i32
    %c0_i32_1 = arith.constant 0 : i32
    return %c0_i32, %c0_i32_0 : i32, i32
  }
  func.func @transform_4(%arg0: i32) -> (i32, i32) {
    %c0_i32 = arith.constant 0 : i32
    %c0_i32_0 = arith.constant 0 : i32
    %c0_i32_1 = arith.constant 0 : i32
    return %c0_i32, %c0_i32_0 : i32, i32
  }
  func.func @transform_5(%arg0: i32) -> (i32, i32) {
    %c0_i32 = arith.constant 0 : i32
    %c0_i32_0 = arith.constant 0 : i32
    %c0_i32_1 = arith.constant 0 : i32
    return %c0_i32, %c0_i32_0 : i32, i32
  }
  func.func @transform_6(%arg0: i32) -> (i32, i32) {
    %c0_i32 = arith.constant 0 : i32
    %c0_i32_0 = arith.constant 0 : i32
    %c0_i32_1 = arith.constant 0 : i32
    return %c0_i32, %c0_i32_0 : i32, i32
  }
}

</mosaic_0001>

<bundles_post_ra>
// kernel: gpt3_pretrain_forward.7
= control target key start
LH: loop header
LB: loop body
LE: loop exit
PB: predicated region body
PF: predicated region fallthrough
CT: control target
= control target key end

     0   :  { %s1130_s25 = smov 0   ;;  %s1329_s0 = inlined_call_operand.vmem [shape: bf16[2,5,32], index: 0, kind: input, shape index: {}]   ;;  %s1330_s1 = inlined_call_operand.vmem [shape: f32[1,32], index: 1, kind: input, shape index: {}]   ;;  %s1331_s2 = inlined_call_operand.vmem [shape: f32[1,32], index: 2, kind: input, shape index: {}]   ;;  %s1332_s3 = inlined_call_operand.vmem [shape: f32[32,96], index: 3, kind: input, shape index: {}]   ;;  %s1333_s4 = inlined_call_operand.vmem [shape: f32[1,96], index: 4, kind: input, shape index: {}]   ;;  %s1334_s5 = inlined_call_operand.vmem [shape: f32[32,32], index: 5, kind: input, shape index: {}]   ;;  %s1335_s6 = inlined_call_operand.vmem [shape: f32[1,32], index: 6, kind: input, shape index: {}]   ;;  %s1336_s7 = inlined_call_operand.vmem [shape: f32[1,32], index: 7, kind: input, shape index: {}]   ;;  %s1337_s8 = inlined_call_operand.vmem [shape: f32[1,32], index: 8, kind: input, shape index: {}]   ;;  %s1338_s9 = inlined_call_operand.vmem [shape: f32[32,128], index: 9, kind: input, shape index: {}]   ;;  %s1339_s10 = inlined_call_operand.vmem [shape: f32[1,128], index: 10, kind: input, shape index: {}]   ;;  %s1340_s11 = inlined_call_operand.vmem [shape: f32[128,32], index: 11, kind: input, shape index: {}]   ;;  %s1341_s12 = inlined_call_operand.vmem [shape: f32[1,32], index: 12, kind: input, shape index: {}]   ;;  %s1342_s13 = inlined_call_operand.vmem [shape: bf16[2,5,32], index: 13, kind: output, shape index: {}]  }
   0x1 LB: > { %s960_s26 = sadd.s32 4294967295, %s1042_s25   ;;  %p964_p0 = scmp.ge.s32.totalorder %s1042_s25, 1  ;;  %s1042_s25 = sphi %s1130_s25, %s23_s25  }
   0x2   : > { %p386_p1 = scmp.lt.s32.totalorder %s1042_s25, 3 }
   0x4   : > { %p387_p2 = pnand %p964_p0, %p386_p1 }
   0x5   : > { %p428_p3 = scmp.lt.s32.totalorder (!%p387_p2), %s960_s26, 1  ;;  %s1045_s14 = smov (!%p387_p2), 88  }
   0x6   : > { %390 = sbr.rel (%p387_p2) target bundleno = 2315 (0x90b), region = 72  ;;  %s1046_s15 = smov (!%p387_p2), 64  }
   0x7   : > { %s1047_s16 = smov (!%p387_p2), 96   ;;  %s1048_s17 = smov (!%p387_p2), 72  }
   0x8   : > { %s1049_s18 = smov (!%p387_p2), 80   ;;  %s1051_s19 = smov (!%p387_p2), 120  }
   0x9   : > { %s1052_s20 = smov (!%p387_p2), 104   ;;  %s1053_s21 = smov (!%p387_p2), 112  }
   0xa   : > { %s1054_s22 = smov (!%p387_p2), 40   ;;  %s1055_s23 = smov (!%p387_p2), 48  }
   0xb   : > { %s1344_s26 = smov (!%p428_p3, %s960_s26), 1  ;;  %vm475_vm0 = vcmask 258048   ;;  %v1044_v3 = vmov 32.0   ;;  %v443_v15 = vld [vmem:[%s1332_s3 + $0x10] sm:$0xff]  ;;  %v444_v16 = vld [vmem:[%s1332_s3 + $0x18] sm:$0xff]  ;;  %v441_v18 = vld [vmem:[%s1332_s3] sm:$0xff] }
   0xc   : > { %s965_s27 = sshll.u32 %s1344_s26, 2  ;;  %1012 = vrcp.f32 %v1044_v3  ;;  %v515_v17 = vpack.c.bf16 %v444_v16, %v443_v15  ;;  %v442_v19 = vld [vmem:[%s1332_s3 + $0x8] sm:$0xff]  ;;  %v1004_v30 = vld [vmem:[%s1330_s1] ss:$0 sm:$0xff]  ;;  %vm519_vm5 = vcmask 261120   ;;  %vm580_vm6 = vcmask 1041408  }
   0xd   : > { %s431_s30 = scalar_lea.vmem %s1329_s0, %s965_s27  ;;  %v514_v20 = vpack.c.bf16 %v442_v19, %v441_v18  ;;  %v1005_v33 = vld [vmem:[%s1331_s2] ss:$0 sm:$0xff]  ;;  %vm581_vm7 = vcmask 1042432   ;;  %v1050_v42 = vmov 65535   ;;  %vm540_vm8 = vcmask 64512   ;;  %s1056_s24 = smov 56  }
   0xe   : > { %v437_v0 = vld [vmem:[%s431_s30] sm:$0x7]  ;;  %529 = vmatpush.bf16.msra.mxu0 %v515_v17  ;;  %v582_v43 = vsel %vm580_vm6, 4294967295, %v1050_v42  ;;  %vm561_vm9 = vcmask 36864   ;;  %vm576_vm10 = vcmask 39936   ;;  %s1057_s28 = smov 16  }
   0xf   : > { %v1146_v1 = vunpack.c.l.bf16 %v437_v0  ;;  %v1006_v37 = vld [vmem:[%s1333_s4] ss:$0 sm:$0xff]  ;;  %v1185_v44 = vsel %vm581_vm7, %v582_v43, 0  ;;  %s1058_s29 = smov 8   ;;  %s1059_s30 = smov 24   ;;  %vm784_vm11 = vcmask 130048  }
  0x10   : > { %vm786_vm12 = vcmask 195584  }
  0x11   : > { %v476_v2 = vsel %vm475_vm0, %v1146_v1, 0.0 }
  0x12   : > { %477 = vadd.xlane.f32.xlu0 %v476_v2  ;;  %v1013_v4 = vpop.eup %1012  ;;  %530 = vmatpush.bf16.msra.mxu0 %v514_v20 }
  0x13   : > { %v480_v5 = vmul.f32 32.0, %v1013_v4  ;;  %vm484_vm1 = vweird.f32 %v1013_v4 }
  0x15   : > { %v481_v6 = vsub.f32 1.0, %v480_v5 }
  0x17   : > { %v482_v7 = vmul.f32 %v1013_v4, %v481_v6 }
  0x19   : > { %v483_v8 = vadd.f32 %v1013_v4, %v482_v7 }
  0x1b   : > { %v1150_v9 = vsel %vm484_vm1, %v1013_v4, %v483_v8  ;;  %vm902_vm1 = vsmask.f32 2304 }
  0x85   : > { %v478_v10 = vpop.xlane.xlu0 %477 }
  0x86   : > { %v486_v11 = vmul.f32 %v1150_v9, %v478_v10 }
  0x88   : > { %v487_v12 = vsub.f32 %v1146_v1, %v486_v11 }
  0x8a   : > { %v488_v13 = vmul.f32 %v487_v12, %v487_v12 }
  0x8c   : > { %v489_v14 = vsel %vm475_vm0, %v488_v13, 0.0 }
  0x8d   : > { %490 = vadd.xlane.f32.xlu0 %v489_v14 }
 0x100   : > { %v491_v21 = vpop.xlane.xlu0 %490 }
 0x101   : > { %v492_v22 = vmul.f32 %v491_v21, %v1150_v9 }
 0x103   : > { %v493_v23 = vadd.f32 1e-06, %v492_v22 }
 0x105   : > { %1014 = vrsqrt.f32 %v493_v23  ;;  %vm500_vm3 = vweird.f32 %v493_v23 }
 0x10b   : > { %v1015_v24 = vpop.eup %1014 }
 0x10c   : > { %v495_v25 = vmul.f32 %v1015_v24, %v493_v23  ;;  %vm501_vm2 = vweird.f32 %v1015_v24 }
 0x10d   : > { %vm502_vm4 = vmor %vm500_vm3, %vm501_vm2 }
 0x10e   : > { %v496_v26 = vmul.f32 %v1015_v24, %v495_v25 }
 0x110   : > { %v497_v27 = vmul.f32 0.5, %v496_v26 }
 0x112   : > { %v498_v28 = vsub.f32 1.5, %v497_v27 }
 0x114   : > { %v499_v29 = vmul.f32 %v1015_v24, %v498_v28 }
 0x116   : > { %v503_v31 = vsel %vm502_vm4, %v1015_v24, %v499_v29 }
 0x117   : > { %v504_v32 = vmul.f32 %v503_v31, %v487_v12 }
 0x119   : > { %v508_v34 = vmul.f32 %v1004_v30, %v504_v32 }
 0x11b   : > { %v512_v35 = vadd.f32 %v1005_v33, %v508_v34 }
 0x11d   : > { %v513_v36 = vpack.c.bf16 %v512_v35, %v512_v35 }
 0x11f   : > { %967 = vmatmul.msk.bf16.vlgmr.msra.gmra.mxu0 %vm519_vm5, %v513_v36 }
 0x19c   : > { %v532_v38 = vpop.f32.mrf.mxu0 }
 0x19d   : > { %v533_v39 = vadd.f32 %v1006_v37, %v532_v38 }
 0x19f   : > { %v1178_v40 = vpack.c.bf16 %v533_v39, %v533_v39 }
 0x1a1   : > { %602 = vrot.lane.b32.xlu0 %v1178_v40, %s1045_s14  ;;  %574 = vrot.lane.b32.xlu2 %v1178_v40, %s1046_s15 }
 0x1a2   : > { %538 = vrot.lane.b32.xlu1 %v1178_v40, %s1047_s16 }
 0x1a4   : > { %v534_v41 = vpop.f32.mrf.mxu0 }
 0x1a9   : > { %716 = vrot.lane.b32.xlu0 %v1178_v40, %s1048_s17 }
 0x1b1   : > { %659 = vrot.lane.b32.xlu0 %v1178_v40, %s1049_s18  ;;  %s435_s18 = scalar_lea.vmem %s1342_s13, %s965_s27 }
 0x1fb   : > { %v575_v45 = vpop.permute.xlu2 %574 }
 0x1fc   : > { %v585_v46 = vand.u32 %v1185_v44, %v575_v45 }
 0x1fe   : > { %594 = vmatpush.bf16.msra.mxu2 %v585_v46 }
 0x213   : > { %v603_v47 = vpop.permute.xlu0 %602 }
 0x214   : > { %v539_v48 = vpop.permute.xlu1 %538  ;;  %v608_v49 = vsel %vm540_vm8, %v603_v47, 0 }
 0x215   : > { %v545_v50 = vsel %vm540_vm8, %v539_v48, 0  ;;  %617 = vmatpush.bf16.xpose.msrb.mxu2 %v608_v49 }
 0x216   : > { %554 = vmatpush.bf16.xpose.msra.mxu1 %v545_v50 }
 0x21b   : > { %v717_v51 = vpop.permute.xlu0 %716 }
 0x21c   : > { %v722_v52 = vsel %vm540_vm8, %v717_v51, 0 }
 0x21d   : > { %968 = vmatmul.msk.bf16.vlgmr.msra.gmra.mxu1 %vm540_vm8, %v1178_v40  ;;  %731 = vmatpush.bf16.xpose.msra.mxu3 %v722_v52 }
 0x223   : > { %v660_v53 = vpop.permute.xlu0 %659 }
 0x224   : > { %v665_v54 = vsel %vm540_vm8, %v660_v53, 0 }
 0x225   : > { %674 = vmatpush.bf16.xpose.msrb.mxu0 %v665_v54 }
 0x29a   : > { %v556_v55 = vpop.f32.mrf.mxu1 }
 0x29b   : > { %v560_v56 = vmul.f32 0.35355338, %v556_v55 }
 0x29d   : > { %v562_v57 = vsel %vm561_vm9, %v560_v56, -inf }
 0x29e   : > { %563 = vmax.xlane.f32.xlu1 %v562_v57 }
 0x2a2   : > { %v558_v58 = vpop.f32.mrf.mxu1 }
 0x311   : > { %v564_v59 = vpop.xlane.xlu1 %563 }
 0x312   : > { %v565_v60 = vsub.f32 %v560_v56, %v564_v59 }
 0x314   : > { %v566_v61 = vmul.f32 1.442695, %v565_v60 }
 0x316   : > { %1016 = vpow2.f32 %v566_v61 }
 0x31c   : > { %v1017_v62 = vpop.eup %1016 }
 0x31d   : > { %v568_v63 = vsel %vm561_vm9, %v1017_v62, 0.0 }
 0x31e   : > { %569 = vadd.xlane.f32.xlu2 %v568_v63  ;;  %v449_v63 = vld [vmem:[%s1334_s5 + $0x18] sm:$0xff] }
 0x336   : > { %600 = vrot.lane.b32.xlu2 %v1178_v40, %s1051_s19 }
 0x33e   : > { %714 = vrot.lane.b32.xlu2 %v1178_v40, %s1052_s20 }
 0x346   : > { %657 = vrot.lane.b32.xlu2 %v1178_v40, %s1053_s21 }
 0x391   : > { %v570_v0 = vpop.xlane.xlu2 %569 }
 0x392   : > { %1018 = vrcp.f32 %v570_v0  ;;  %v446_v0 = vld [vmem:[%s1334_s5] sm:$0xff] }
 0x398   : > { %v1019_v2 = vpop.eup %1018 }
 0x399   : > { %v601_v3 = vpop.permute.xlu2 %600  ;;  %v572_v4 = vmul.f32 %v1019_v2, %v1017_v62  ;;  %v448_v62 = vld [vmem:[%s1334_s5 + $0x10] sm:$0xff] }
 0x39a   : > { %v790_v2 = vpack.c.bf16 %v449_v63, %v448_v62  ;;  %v460_v62 = vld [vmem:[%s1340_s11 + $0x10] sm:$0xff]  ;;  %v461_v63 = vld [vmem:[%s1340_s11 + $0x18] sm:$0xff] }
 0x39b   : > { %v573_v5 = vpack.c.bf16 %v572_v4, %v572_v4 }
 0x39c   : > { %800 = vmatpush.bf16.msra.mxu0 %v790_v2  ;;  %v458_v2 = vld [vmem:[%s1340_s11] sm:$0xff] }
 0x39d   : > { %969 = vmatmul.msk.bf16.vlgmr.msra.gmra.mxu2 %vm576_vm10, %v573_v5 }
 0x3a1   : > { %v715_v6 = vpop.permute.xlu2 %714 }
 0x3a2   : > { %974 = vmatmul.msk.bf16.vlgmr.msra.gmra.mxu3 %vm540_vm8, %v715_v6 }
 0x3a9   : > { %v658_v7 = vpop.permute.xlu2 %657 }
 0x3aa   : > { %972 = vmatmul.msk.bf16.vlgmr.msrb.gmra.mxu0 %vm540_vm8, %v658_v7 }
 0x3ad   : > { %970 = vmatmul.msk.bf16.vlgmr.msrb.gmra.mxu2 %vm540_vm8, %v601_v3  ;;  %v447_v3 = vld [vmem:[%s1334_s5 + $0x8] sm:$0xff] }
 0x3ae   : > { %v789_v4 = vpack.c.bf16 %v447_v3, %v446_v0  ;;  %v875_v0 = vpack.c.bf16 %v461_v63, %v460_v62  ;;  %v459_v3 = vld [vmem:[%s1340_s11 + $0x8] sm:$0xff] }
 0x3b0   : > { %801 = vmatpush.bf16.msra.mxu0 %v789_v4  ;;  %v874_v4 = vpack.c.bf16 %v459_v3, %v458_v2 }
 0x420   : > { %v1203_v8 = vpop.f32.mrf.mxu2 }
 0x425   : > { %v733_v10 = vpop.f32.mrf.mxu3 }
 0x426   : > { %v737_v11 = vmul.f32 0.35355338, %v733_v10 }
 0x427   : > { %v676_v12 = vpop.f32.mrf.mxu0 }
 0x428   : > { %v680_v13 = vmul.f32 0.35355338, %v676_v12  ;;  %v598_v14 = vpop.f32.mrf.mxu2  ;;  %v738_v15 = vsel %vm561_vm9, %v737_v11, -inf }
 0x429   : > { %739 = vmax.xlane.f32.xlu0 %v738_v15  ;;  %v1007_v14 = vld [vmem:[%s1335_s6] ss:$0 sm:$0xff] }
 0x42a   : > { %v681_v16 = vsel %vm561_vm9, %v680_v13, -inf }
 0x42b   : > { %682 = vmax.xlane.f32.xlu2 %v681_v16 }
 0x42d   : > { %v735_v17 = vpop.f32.mrf.mxu3 }
 0x42f   : > { %v678_v18 = vpop.f32.mrf.mxu0 }
 0x430   : > { %v619_v19 = vpop.f32.mrf.mxu2 }
 0x431   : > { %v623_v20 = vmul.f32 0.35355338, %v619_v19 }
 0x433   : > { %v624_v21 = vsel %vm561_vm9, %v623_v20, -inf }
 0x434   : > { %625 = vmax.xlane.f32.xlu1 %v624_v21 }
 0x438   : > { %v621_v22 = vpop.f32.mrf.mxu2 }
 0x443   : > { %750 = vrot.lane.b32.xlu2 %v1178_v40, %s1054_s22 }
 0x49c   : > { %v740_v33 = vpop.xlane.xlu0 %739 }
 0x49d   : > { %v741_v34 = vsub.f32 %v737_v11, %v740_v33 }
 0x49e   : > { %v683_v23 = vpop.xlane.xlu2 %682 }
 0x49f   : > { %v684_v24 = vsub.f32 %v680_v13, %v683_v23  ;;  %v742_v35 = vmul.f32 1.442695, %v741_v34  ;;  %v471_v34 = vld [vmem:[%s1340_s11 + $0x68] sm:$0xff] }
 0x4a1   : > { %v685_v25 = vmul.f32 1.442695, %v684_v24  ;;  %v456_v24 = vld [vmem:[%s1338_s9 + $0x18] sm:$0xff] }
 0x4a3   : > { %1020 = vpow2.f32 %v685_v25 }
 0x4a6   : > { %v751_v47 = vpop.permute.xlu2 %750 }
 0x4a7   : > { %v626_v26 = vpop.xlane.xlu1 %625  ;;  %v756_v51 = vand.u32 %v751_v47, %v1185_v44  ;;  %v1009_v47 = vld [vmem:[%s1337_s8] ss:$0 sm:$0xff] }
 0x4a8   : > { %v627_v27 = vsub.f32 %v623_v20, %v626_v26  ;;  %v453_v26 = vld [vmem:[%s1338_s9] sm:$0xff] }
 0x4a9   : > { %v1021_v28 = vpop.eup %1020 }
 0x4aa   : > { %v628_v29 = vmul.f32 1.442695, %v627_v27  ;;  %v687_v30 = vsel %vm561_vm9, %v1021_v28, 0.0  ;;  %v454_v27 = vld [vmem:[%s1338_s9 + $0x8] sm:$0xff] }
 0x4ab   : > { %688 = vadd.xlane.f32.xlu0 %v687_v30  ;;  %v473_v30 = vld [vmem:[%s1340_s11 + $0x78] sm:$0xff] }
 0x4ac   : > { %1022 = vpow2.f32 %v628_v29  ;;  %v472_v29 = vld [vmem:[%s1340_s11 + $0x70] sm:$0xff] }
 0x4ad   : > { %1024 = vpow2.f32 %v742_v35  ;;  %v881_v33 = vpack.c.bf16 %v473_v30, %v472_v29 }
 0x4af   : > { %882 = vmatpush.bf16.msrb.mxu3 %v881_v33 }
 0x4b2   : > { %v1023_v31 = vpop.eup %1022 }
 0x4b3   : > { %v630_v32 = vsel %vm561_vm9, %v1023_v31, 0.0  ;;  %v1025_v36 = vpop.eup %1024 }
 0x4b4   : > { %631 = vadd.xlane.f32.xlu1 %v630_v32  ;;  %v744_v37 = vsel %vm561_vm9, %v1025_v36, 0.0 }
 0x4bf   : > { %693 = vrot.lane.b32.xlu0 %v1178_v40, %s1055_s23 }
 0x4cd   : > { %636 = vrot.lane.b32.xlu1 %v1178_v40, %s1056_s24 }
 0x4f7   : > { %745 = vadd.xlane.f32.xlu1 %v744_v37 }
 0x51e   : > { %v689_v38 = vpop.xlane.xlu0 %688 }
 0x51f   : > { %1026 = vrcp.f32 %v689_v38 }
 0x525   : > { %v1027_v39 = vpop.eup %1026 }
 0x526   : > { %v691_v41 = vmul.f32 %v1027_v39, %v1021_v28  ;;  %v843_v28 = vpack.c.bf16 %v454_v27, %v453_v26 }
 0x527   : > { %v632_v45 = vpop.xlane.xlu1 %631 }
 0x528   : > { %v692_v46 = vpack.c.bf16 %v691_v41, %v691_v41  ;;  %1028 = vrcp.f32 %v632_v45 }
 0x52e   : > { %v1029_v40 = vpop.eup %1028 }
 0x52f   : > { %v634_v48 = vmul.f32 %v1029_v40, %v1023_v31  ;;  %v470_v31 = vld [vmem:[%s1340_s11 + $0x60] sm:$0xff] }
 0x531   : > { %v694_v42 = vpop.permute.xlu0 %693  ;;  %v635_v52 = vpack.c.bf16 %v634_v48, %v634_v48 }
 0x532   : > { %v699_v43 = vand.u32 %v694_v42, %v1185_v44 }
 0x534   : > { %708 = vmatpush.bf16.msrb.mxu1 %v699_v43 }
 0x537   : > { %973 = vmatmul.msk.bf16.vlgmr.msrb.gmra.mxu1 %vm576_vm10, %v692_v46  ;;  %v1008_v46 = vld [vmem:[%s1336_s7] ss:$0 sm:$0xff] }
 0x53f   : > { %v637_v49 = vpop.permute.xlu1 %636 }
 0x540   : > { %v642_v50 = vand.u32 %v637_v49, %v1185_v44 }
 0x542   : > { %651 = vmatpush.bf16.msra.mxu2 %v642_v50 }
 0x545   : > { %971 = vmatmul.msk.bf16.vlgmr.msra.gmra.mxu2 %vm576_vm10, %v635_v52  ;;  %v469_v52 = vld [vmem:[%s1340_s11 + $0x58] sm:$0xff] }
 0x546   : > { %765 = vmatpush.bf16.msrb.mxu2 %v756_v51  ;;  %v468_v51 = vld [vmem:[%s1340_s11 + $0x50] sm:$0xff] }
 0x56a   : > { %v746_v53 = vpop.xlane.xlu1 %745 }
 0x56b   : > { %1030 = vrcp.f32 %v746_v53  ;;  %v879_v53 = vpack.c.bf16 %v469_v52, %v468_v51 }
 0x571   : > { %v1031_v54 = vpop.eup %1030 }
 0x572   : > { %v748_v55 = vmul.f32 %v1031_v54, %v1025_v36  ;;  %v880_v36 = vpack.c.bf16 %v471_v34, %v470_v31  ;;  %v466_v54 = vld [vmem:[%s1340_s11 + $0x40] sm:$0xff] }
 0x574   : > { %v749_v56 = vpack.c.bf16 %v748_v55, %v748_v55  ;;  %883 = vmatpush.bf16.msrb.mxu3 %v880_v36  ;;  %v467_v55 = vld [vmem:[%s1340_s11 + $0x48] sm:$0xff] }
 0x576   : > { %975 = vmatmul.msk.bf16.vlgmr.msrb.gmra.mxu2 %vm576_vm10, %v749_v56  ;;  %v878_v56 = vpack.c.bf16 %v467_v55, %v466_v54 }
 0x578   : > { %884 = vmatpush.bf16.msrb.mxu3 %v879_v53 }
 0x57c   : > { %885 = vmatpush.bf16.msrb.mxu3 %v878_v56 }
 0x5b4   : > { %v710_v57 = vpop.f32.mrf.mxu1 }
 0x5b5   : > { %776 = vrot.lane.b32.xlu0 %v710_v57, %s1057_s28  ;;  %v464_v57 = vld [vmem:[%s1340_s11 + $0x30] sm:$0xff] }
 0x5bc   : > { %v712_v58 = vpop.f32.mrf.mxu1 }
 0x5bd   : > { %v465_v58 = vld [vmem:[%s1340_s11 + $0x38] sm:$0xff] }
 0x5c8   : > { %v653_v59 = vpop.f32.mrf.mxu2 }
 0x5c9   : > { %772 = vrot.lane.b32.xlu2 %v653_v59, %s1058_s29  ;;  %v462_v59 = vld [vmem:[%s1340_s11 + $0x20] sm:$0xff] }
 0x5d0   : > { %v655_v44 = vpop.f32.mrf.mxu2 }
 0x5d1   : > { %v877_v44 = vpack.c.bf16 %v465_v58, %v464_v57 }
 0x5d3   : > { %886 = vmatpush.bf16.msrb.mxu3 %v877_v44 }
 0x5f9   : > { %v767_v60 = vpop.f32.mrf.mxu2 }
 0x5fa   : > { %780 = vrot.lane.b32.xlu2 %v767_v60, %s1059_s30  ;;  %v463_v60 = vld [vmem:[%s1340_s11 + $0x28] sm:$0xff] }
 0x601   : > { %v769_v61 = vpop.f32.mrf.mxu2 }
 0x602   : > { %v876_v61 = vpack.c.bf16 %v463_v60, %v462_v59 }
 0x604   : > { %887 = vmatpush.bf16.msrb.mxu3 %v876_v61 }
 0x608   : > { %888 = vmatpush.bf16.msrb.mxu3 %v875_v0 }
 0x60c   : > { %889 = vmatpush.bf16.msrb.mxu3 %v874_v4 }
 0x623   : > { %v773_v5 = vpop.permute.xlu2 %772 }
 0x624   : > { %v783_v7 = vsel %vm540_vm8, %v1203_v8, %v773_v5  ;;  %v1010_v5 = vld [vmem:[%s1339_s10] ss:$0 sm:$0xff] }
 0x627   : > { %v777_v6 = vpop.permute.xlu0 %776 }
 0x628   : > { %v785_v10 = vsel %vm784_vm11, %v783_v7, %v777_v6 }
 0x654   : > { %v781_v11 = vpop.permute.xlu2 %780 }
 0x655   : > { %v787_v12 = vsel %vm786_vm12, %v785_v10, %v781_v11 }
 0x656   : > { %v788_v13 = vpack.c.bf16 %v787_v12, %v787_v12 }
 0x658   : > { %976 = vmatmul.msk.bf16.vlgmr.msra.gmra.mxu0 %vm519_vm5, %v788_v13 }
 0x6d5   : > { %v803_v15 = vpop.f32.mrf.mxu0 }
 0x6d6   : > { %v807_v16 = vadd.f32 %v803_v15, %v1146_v1  ;;  %v455_v1 = vld [vmem:[%s1338_s9 + $0x10] sm:$0xff] }
 0x6d7   : > { %v844_v25 = vpack.c.bf16 %v456_v24, %v455_v1  ;;  %v904_v24 = vld [vmem:[%s435_s18] sm:$0x7] }
 0x6d8   : > { %v1239_v17 = vadd.f32 %v1007_v14, %v807_v16 }
 0x6d9   : > { %857 = vmatpush.bf16.msra.mxu1 %v844_v25 }
 0x6da   : > { %v812_v18 = vsel %vm475_vm0, %v1239_v17, 0.0 }
 0x6db   : > { %813 = vadd.xlane.f32.xlu0 %v812_v18 }
 0x6dd   : > { %v805_v8 = vpop.f32.mrf.mxu0  ;;  %858 = vmatpush.bf16.msra.mxu1 %v843_v28 }
 0x74e   : > { %v814_v19 = vpop.xlane.xlu0 %813 }
 0x74f   : > { %v815_v20 = vmul.f32 %v814_v19, %v1150_v9 }
 0x751   : > { %v816_v21 = vsub.f32 %v1239_v17, %v815_v20 }
 0x753   : > { %v817_v22 = vmul.f32 %v816_v21, %v816_v21 }
 0x755   : > { %v818_v23 = vsel %vm475_vm0, %v817_v22, 0.0  ;;  %vm901_vm0 = vcmask 256000  }
 0x756   : > { %819 = vadd.xlane.f32.xlu1 %v818_v23  ;;  %vm903_vm2 = vmand %vm901_vm0, %vm902_vm1 }
 0x7c9   : > { %v820_v32 = vpop.xlane.xlu1 %819 }
 0x7ca   : > { %v821_v35 = vmul.f32 %v820_v32, %v1150_v9 }
 0x7cc   : > { %v822_v37 = vadd.f32 1e-06, %v821_v35 }
 0x7ce   : > { %1032 = vrsqrt.f32 %v822_v37  ;;  %vm829_vm14 = vweird.f32 %v822_v37 }
 0x7d4   : > { %v1033_v38 = vpop.eup %1032 }
 0x7d5   : > { %v824_v39 = vmul.f32 %v1033_v38, %v822_v37  ;;  %vm830_vm13 = vweird.f32 %v1033_v38 }
 0x7d6   : > { %vm831_vm15 = vmor %vm829_vm14, %vm830_vm13 }
 0x7d7   : > { %v825_v41 = vmul.f32 %v1033_v38, %v824_v39 }
 0x7d9   : > { %v826_v42 = vmul.f32 0.5, %v825_v41 }
 0x7db   : > { %v827_v43 = vsub.f32 1.5, %v826_v42 }
 0x7dd   : > { %v828_v45 = vmul.f32 %v1033_v38, %v827_v43 }
 0x7df   : > { %v832_v40 = vsel %vm831_vm15, %v1033_v38, %v828_v45 }
 0x7e0   : > { %v833_v9 = vmul.f32 %v832_v40, %v816_v21  ;;  %v1011_v21 = vld [vmem:[%s1341_s12] ss:$0 sm:$0xff] }
 0x7e2   : > { %v837_v48 = vmul.f32 %v1008_v46, %v833_v9 }
 0x7e4   : > { %v841_v49 = vadd.f32 %v1009_v47, %v837_v48 }
 0x7e6   : > { %v842_v50 = vpack.c.bf16 %v841_v49, %v841_v49 }
 0x7e8   : > { %977 = vmatmul.msk.bf16.vlgmr.msra.gmra.mxu1 %vm519_vm5, %v842_v50 }
 0x865   : > { %v860_v6 = vpop.f32.mrf.mxu1 }
 0x866   : > { %v861_v7 = vadd.f32 %v1010_v5, %v860_v6 }
 0x868   : > { %v865_v10 = vmul.f32 0.044715, %v861_v7  ;;  %v864_v18 = vmul.f32 0.5, %v861_v7 }
 0x86a   : > { %v866_v11 = vmul.f32 %v865_v10, %v861_v7 }
 0x86c   : > { %v867_v12 = vmul.f32 %v866_v11, %v861_v7 }
 0x86d   : > { %v862_v13 = vpop.f32.mrf.mxu1 }
 0x86e   : > { %v868_v14 = vadd.f32 %v867_v12, %v861_v7 }
 0x870   : > { %v869_v15 = vmul.f32 0.7978846, %v868_v14 }
 0x872   : > { %1034 = vtanh.f32 %v869_v15 }
 0x878   : > { %v1035_v16 = vpop.eup %1034 }
 0x879   : > { %v871_v8 = vadd.f32 1.0, %v1035_v16 }
 0x87b   : > { %v872_v19 = vmul.f32 %v871_v8, %v864_v18 }
 0x87d   : > { %v873_v20 = vpack.c.bf16 %v872_v19, %v872_v19 }
 0x87f   : > { %890 = vmatmul.bf16.vlgmr.msrb.gmra.mxu3 %v873_v20 }
 0x902   : > { %v891_v22 = vpop.f32.mrf.mxu3 }
 0x903   : > { %v895_v23 = vadd.f32 %v891_v22, %v1239_v17 }
 0x905   : > { %v899_v1 = vadd.f32 %v1011_v21, %v895_v23 }
 0x907   : > { %v900_v25 = vpack.c.bf16 %v899_v1, %v899_v1 }
 0x909   : > { %v905_v26 = vsel %vm903_vm2, %v900_v25, %v904_v24 }
 0x90a   : > { %906 = vst [vmem:[%s435_s18] sm:$0x7] %v905_v26  ;;  %v893_v27 = vpop.f32.mrf.mxu3 }
 0x90b PF: > { %s23_s25 = sadd.s32 1, %s1042_s25  }
 0x90c   : > { %p20_p4 = scmp.ge.s32.totalorder %s23_s25, 4  }
 0x90e   :  { %22 = sbr.rel (!%p20_p4) target bundleno = 1 (0x1), region = 102 }

// kernel: gpt3_pretrain_forward.6
= control target key start
LH: loop header
LB: loop body
LE: loop exit
PB: predicated region body
PF: predicated region fallthrough
CT: control target
= control target key end

     0   :  { %s1269_s18 = smov 0   ;;  %s1540_s0 = inlined_call_operand.vmem [shape: f32[2,5,192], index: 0, kind: input, shape index: {}]   ;;  %s1541_s1 = inlined_call_operand.vmem [shape: f32[192,32], index: 1, kind: input, shape index: {}]   ;;  %s1542_s2 = inlined_call_operand.vmem [shape: f32[1,5,32], index: 2, kind: input, shape index: {}]   ;;  %s1543_s3 = inlined_call_operand.vmem [shape: f32[1,32], index: 3, kind: input, shape index: {}]   ;;  %s1544_s4 = inlined_call_operand.vmem [shape: f32[1,32], index: 4, kind: input, shape index: {}]   ;;  %s1545_s5 = inlined_call_operand.vmem [shape: f32[32,96], index: 5, kind: input, shape index: {}]   ;;  %s1546_s6 = inlined_call_operand.vmem [shape: f32[1,96], index: 6, kind: input, shape index: {}]   ;;  %s1547_s7 = inlined_call_operand.vmem [shape: f32[32,32], index: 7, kind: input, shape index: {}]   ;;  %s1548_s8 = inlined_call_operand.vmem [shape: f32[1,32], index: 8, kind: input, shape index: {}]   ;;  %s1549_s9 = inlined_call_operand.vmem [shape: f32[1,32], index: 9, kind: input, shape index: {}]   ;;  %s1550_s10 = inlined_call_operand.vmem [shape: f32[1,32], index: 10, kind: input, shape index: {}]   ;;  %s1551_s11 = inlined_call_operand.vmem [shape: f32[32,128], index: 11, kind: input, shape index: {}]   ;;  %s1552_s12 = inlined_call_operand.vmem [shape: f32[1,128], index: 12, kind: input, shape index: {}]   ;;  %s1553_s13 = inlined_call_operand.vmem [shape: f32[128,32], index: 13, kind: input, shape index: {}]   ;;  %s1554_s14 = inlined_call_operand.vmem [shape: f32[1,32], index: 14, kind: input, shape index: {}]   ;;  %s1555_s15 = inlined_call_operand.vmem [shape: bf16[2,5,32], index: 15, kind: output, shape index: {}]  }
   0x1 LB: > { %s1086_s19 = sadd.s32 4294967295, %s1171_s18   ;;  %p1090_p0 = scmp.ge.s32.totalorder %s1171_s18, 1  ;;  %s1171_s18 = sphi %s1269_s18, %s25_s18  }
   0x2   : > { %p437_p1 = scmp.lt.s32.totalorder %s1171_s18, 3 }
   0x4   : > { %p438_p2 = pnand %p1090_p0, %p437_p1 }
   0x5   : > { %p484_p3 = scmp.lt.s32.totalorder (!%p438_p2), %s1086_s19, 1  ;;  %s1175_s24 = smov (!%p438_p2), 96  }
   0x6   : > { %441 = sbr.rel (%p438_p2) target bundleno = 2451 (0x993), region = 80  ;;  %s1176_s25 = smov (!%p438_p2), 88  }
   0x7   : > { %s1177_s26 = smov (!%p438_p2), 56   ;;  %s1178_s27 = smov (!%p438_p2), 112  }
   0x8   : > { %s1179_s28 = smov (!%p438_p2), 64   ;;  %s1180_s30 = smov (!%p438_p2), 72  }
   0x9   : > { %s1182_s16 = smov (!%p438_p2), 80   ;;  %s1183_s17 = smov (!%p438_p2), 104  }
   0xa   : > { %s1184_s20 = smov (!%p438_p2), 48   ;;  %s1185_s21 = smov (!%p438_p2), 40  }
   0xb   : > { %v510_v0 = vld [vmem:[%s1541_s1 + $0x70] sm:$0xff]  ;;  %v511_v1 = vld [vmem:[%s1541_s1 + $0x78] sm:$0xff]  ;;  %v508_v2 = vld [vmem:[%s1541_s1 + $0x60] sm:$0xff]  ;;  %s1557_s19 = smov (!%p484_p3, %s1086_s19), 1  ;;  %vm535_vm0 = vcmask 523264   ;;  %vm601_vm1 = vcmask 258048  }
   0xc   : > { %v529_v3 = vpack.c.bf16 %v511_v1, %v510_v0  ;;  %v509_v4 = vld [vmem:[%s1541_s1 + $0x68] sm:$0xff]  ;;  %v518_v5 = vld [vmem:[%s1541_s1 + $0xb0] sm:$0xff]  ;;  %v519_v6 = vld [vmem:[%s1541_s1 + $0xb8] sm:$0xff]  ;;  %s1108_s22 = sshll.u32 %s1557_s19, 4  ;;  %v1173_v48 = vmov 32.0   ;;  %vm645_vm6 = vcmask 261120  }
   0xd   : > { %v528_v7 = vpack.c.bf16 %v509_v4, %v508_v2  ;;  %v533_v8 = vpack.c.bf16 %v519_v6, %v518_v5  ;;  %v516_v9 = vld [vmem:[%s1541_s1 + $0xa0] sm:$0xff]  ;;  %v517_v10 = vld [vmem:[%s1541_s1 + $0xa8] sm:$0xff]  ;;  %v506_v11 = vld [vmem:[%s1541_s1 + $0x50] sm:$0xff]  ;;  %s488_s29 = scalar_lea.vmem %s1540_s0, %s1108_s22  ;;  %1141 = vrcp.f32 %v1173_v48  ;;  %s1174_s22 = smov 120   ;;  %vm666_vm7 = vcmask 64512  }
   0xe   : > { %539 = vmatpush.bf16.msra.mxu0 %v529_v3  ;;  %v507_v12 = vld [vmem:[%s1541_s1 + $0x58] sm:$0xff]  ;;  %v532_v13 = vpack.c.bf16 %v517_v10, %v516_v9  ;;  %v514_v14 = vld [vmem:[%s1541_s1 + $0x90] sm:$0xff]  ;;  %v504_v17 = vld [vmem:[%s1541_s1 + $0x40] sm:$0xff]  ;;  %vm687_vm8 = vcmask 36864   ;;  %vm706_vm9 = vcmask 1041408   ;;  %vm707_vm10 = vcmask 1042432  }
   0xf   : > { %556 = vmatpush.bf16.msra.mxu1 %v533_v8  ;;  %v515_v15 = vld [vmem:[%s1541_s1 + $0x98] sm:$0xff]  ;;  %v527_v16 = vpack.c.bf16 %v507_v12, %v506_v11  ;;  %v505_v18 = vld [vmem:[%s1541_s1 + $0x48] sm:$0xff]  ;;  %v512_v19 = vld [vmem:[%s1541_s1 + $0x80] sm:$0xff]  ;;  %vm702_vm11 = vcmask 39936   ;;  %s1186_s23 = smov 8   ;;  %vm910_vm12 = vcmask 130048  }
  0x10   : > { %v513_v20 = vld [vmem:[%s1541_s1 + $0x88] sm:$0xff]  ;;  %v531_v21 = vpack.c.bf16 %v515_v15, %v514_v14  ;;  %v526_v22 = vpack.c.bf16 %v505_v18, %v504_v17  ;;  %v502_v23 = vld [vmem:[%s1541_s1 + $0x30] sm:$0xff]  ;;  %v503_v24 = vld [vmem:[%s1541_s1 + $0x38] sm:$0xff]  ;;  %vm912_vm13 = vcmask 195584  }
  0x11   : > { %v530_v25 = vpack.c.bf16 %v513_v20, %v512_v19  ;;  %v495_v26 = vld [vmem:[%s488_s29 + $0x8] sm:$0x1f]  ;;  %v525_v27 = vpack.c.bf16 %v503_v24, %v502_v23  ;;  %v500_v28 = vld [vmem:[%s1541_s1 + $0x20] sm:$0xff]  ;;  %v498_v32 = vld [vmem:[%s1541_s1 + $0x10] sm:$0xff] }
  0x12   : > { %540 = vmatpush.bf16.msra.mxu0 %v528_v7  ;;  %v501_v29 = vld [vmem:[%s1541_s1 + $0x28] sm:$0xff]  ;;  %v521_v30 = vpack.c.bf16 %v495_v26, %v495_v26  ;;  %v499_v33 = vld [vmem:[%s1541_s1 + $0x18] sm:$0xff]  ;;  %v496_v35 = vld [vmem:[%s1541_s1] sm:$0xff] }
  0x13   : > { %557 = vmatpush.bf16.msra.mxu1 %v532_v13  ;;  %v524_v31 = vpack.c.bf16 %v501_v29, %v500_v28  ;;  %v523_v34 = vpack.c.bf16 %v499_v33, %v498_v32  ;;  %v497_v36 = vld [vmem:[%s1541_s1 + $0x8] sm:$0xff]  ;;  %v494_v38 = vld [vmem:[%s488_s29] sm:$0x1f]  ;;  %v1142_v49 = vpop.eup %1141  ;;  %v569_v60 = vld [vmem:[%s1545_s5 + $0x10] sm:$0xff]  ;;  %s1187_s29 = smov 24  }
  0x14   : > { %v522_v37 = vpack.c.bf16 %v497_v36, %v496_v35  ;;  %v520_v39 = vpack.c.bf16 %v494_v38, %v494_v38  ;;  %v534_v42 = vld [vmem:[%s1542_s2] sm:$0x1f]  ;;  %v606_v50 = vmul.f32 32.0, %v1142_v49  ;;  %vm610_vm2 = vweird.f32 %v1142_v49  ;;  %v570_v61 = vld [vmem:[%s1545_s5 + $0x18] sm:$0xff]  ;;  %v568_v0 = vld [vmem:[%s1545_s5 + $0x8] sm:$0xff] }
  0x15   : > { %v641_v62 = vpack.c.bf16 %v570_v61, %v569_v60  ;;  %v567_v63 = vld [vmem:[%s1545_s5] sm:$0xff] }
  0x16   : > { %541 = vmatpush.bf16.msra.mxu0 %v527_v16  ;;  %v607_v51 = vsub.f32 1.0, %v606_v50  ;;  %v640_v1 = vpack.c.bf16 %v568_v0, %v567_v63  ;;  %v1133_v11 = vld [vmem:[%s1543_s3] ss:$0 sm:$0xff] }
  0x17   : > { %558 = vmatpush.bf16.msra.mxu1 %v531_v21  ;;  %655 = vmatpush.bf16.msra.mxu2 %v641_v62  ;;  %v1134_v14 = vld [vmem:[%s1544_s4] ss:$0 sm:$0xff] }
  0x18   : > { %v608_v52 = vmul.f32 %v1142_v49, %v607_v51  ;;  %v1135_v18 = vld [vmem:[%s1546_s6] ss:$0 sm:$0xff] }
  0x1a   : > { %542 = vmatpush.bf16.msra.mxu0 %v526_v22  ;;  %v609_v53 = vadd.f32 %v1142_v49, %v608_v52 }
  0x1b   : > { %559 = vmatpush.bf16.msra.mxu1 %v530_v25  ;;  %656 = vmatpush.bf16.msra.mxu2 %v640_v1 }
  0x1c   : > { %v1362_v54 = vsel %vm610_vm2, %v1142_v49, %v609_v53  ;;  %vm1028_vm2 = vsmask.f32 2304 }
  0x1e   : > { %543 = vmatpush.bf16.msra.mxu0 %v525_v27  ;;  %1094 = vmatmul.msk.bf16.vlgmr.msra.gmra.mxu1 %vm535_vm0, %v521_v30 }
  0x22   : > { %544 = vmatpush.bf16.msra.mxu0 %v524_v31 }
  0x26   : > { %545 = vmatpush.bf16.msra.mxu0 %v523_v34 }
  0x2a   : > { %546 = vmatpush.bf16.msra.mxu0 %v522_v37 }
  0x2d   : > { %547 = vmatmul.bf16.vlgmr.msra.gmra.mxu0 %v520_v39  ;;  %v1181_v39 = vmov 65535  }
  0x9b   : > { %v561_v40 = vpop.f32.mrf.mxu1 }
  0xa3   : > { %v563_v41 = vpop.f32.mrf.mxu1 }
  0xaa   : > { %v548_v43 = vpop.f32.mrf.mxu0 }
  0xab   : > { %v549_v44 = vadd.f32 %v548_v43, %v534_v42 }
  0xad   : > { %v1358_v45 = vadd.f32 %v561_v40, %v549_v44  ;;  %v708_v40 = vsel %vm706_vm9, 4294967295, %v1181_v39 }
  0xae   : > { %v1406_v41 = vsel %vm707_vm10, %v708_v40, 0 }
  0xaf   : > { %v602_v46 = vsel %vm601_vm1, %v1358_v45, 0.0 }
  0xb0   : > { %603 = vadd.xlane.f32.xlu0 %v602_v46 }
  0xb2   : > { %v550_v47 = vpop.f32.mrf.mxu0 }
 0x123   : > { %v604_v55 = vpop.xlane.xlu0 %603 }
 0x124   : > { %v612_v56 = vmul.f32 %v1362_v54, %v604_v55 }
 0x126   : > { %v613_v57 = vsub.f32 %v1358_v45, %v612_v56 }
 0x128   : > { %v614_v58 = vmul.f32 %v613_v57, %v613_v57 }
 0x12a   : > { %v615_v59 = vsel %vm601_vm1, %v614_v58, 0.0 }
 0x12b   : > { %616 = vadd.xlane.f32.xlu0 %v615_v59 }
 0x19e   : > { %v617_v2 = vpop.xlane.xlu0 %616 }
 0x19f   : > { %v618_v3 = vmul.f32 %v617_v2, %v1362_v54 }
 0x1a1   : > { %v619_v4 = vadd.f32 1e-06, %v618_v3 }
 0x1a3   : > { %1143 = vrsqrt.f32 %v619_v4  ;;  %vm626_vm4 = vweird.f32 %v619_v4 }
 0x1a9   : > { %v1144_v5 = vpop.eup %1143 }
 0x1aa   : > { %v621_v6 = vmul.f32 %v1144_v5, %v619_v4  ;;  %vm627_vm3 = vweird.f32 %v1144_v5 }
 0x1ab   : > { %vm628_vm5 = vmor %vm626_vm4, %vm627_vm3 }
 0x1ac   : > { %v622_v7 = vmul.f32 %v1144_v5, %v621_v6 }
 0x1ae   : > { %v623_v8 = vmul.f32 0.5, %v622_v7 }
 0x1b0   : > { %v624_v9 = vsub.f32 1.5, %v623_v8 }
 0x1b2   : > { %v625_v10 = vmul.f32 %v1144_v5, %v624_v9 }
 0x1b4   : > { %v629_v12 = vsel %vm628_vm5, %v1144_v5, %v625_v10 }
 0x1b5   : > { %v630_v13 = vmul.f32 %v629_v12, %v613_v57 }
 0x1b7   : > { %v634_v15 = vmul.f32 %v1133_v11, %v630_v13 }
 0x1b9   : > { %v638_v16 = vadd.f32 %v1134_v14, %v634_v15 }
 0x1bb   : > { %v639_v17 = vpack.c.bf16 %v638_v16, %v638_v16 }
 0x1bd   : > { %1095 = vmatmul.msk.bf16.vlgmr.msra.gmra.mxu2 %vm645_vm6, %v639_v17 }
 0x240   : > { %v658_v19 = vpop.f32.mrf.mxu2 }
 0x241   : > { %v659_v20 = vadd.f32 %v1135_v18, %v658_v19 }
 0x243   : > { %v1390_v21 = vpack.c.bf16 %v659_v20, %v659_v20 }
 0x245   : > { %726 = vrot.lane.b32.xlu2 %v1390_v21, %s1174_s22  ;;  %664 = vrot.lane.b32.xlu1 %v1390_v21, %s1175_s24  ;;  %s1188_s22 = smov 16  }
 0x248   : > { %v660_v22 = vpop.f32.mrf.mxu2 }
 0x24d   : > { %728 = vrot.lane.b32.xlu1 %v1390_v21, %s1176_s25 }
 0x29f   : > { %v727_v27 = vpop.permute.xlu2 %726 }
 0x2b7   : > { %v665_v23 = vpop.permute.xlu1 %664 }
 0x2b8   : > { %v671_v24 = vsel %vm666_vm7, %v665_v23, 0 }
 0x2b9   : > { %680 = vmatpush.bf16.xpose.msra.mxu3 %v671_v24 }
 0x2bf   : > { %v729_v25 = vpop.permute.xlu1 %728 }
 0x2c0   : > { %1096 = vmatmul.msk.bf16.vlgmr.msra.gmra.mxu3 %vm666_vm7, %v1390_v21  ;;  %v734_v26 = vsel %vm666_vm7, %v729_v25, 0 }
 0x2c1   : > { %743 = vmatpush.bf16.xpose.msrb.mxu3 %v734_v26 }
 0x2d0   : > { %1098 = vmatmul.msk.bf16.vlgmr.msrb.gmra.mxu3 %vm666_vm7, %v727_v27 }
 0x343   : > { %v682_v28 = vpop.f32.mrf.mxu3 }
 0x344   : > { %v686_v29 = vmul.f32 0.35355338, %v682_v28 }
 0x346   : > { %v688_v30 = vsel %vm687_vm8, %v686_v29, -inf }
 0x347   : > { %689 = vmax.xlane.f32.xlu2 %v688_v30 }
 0x34b   : > { %v684_v31 = vpop.f32.mrf.mxu3 }
 0x353   : > { %v745_v32 = vpop.f32.mrf.mxu3 }
 0x354   : > { %v749_v33 = vmul.f32 0.35355338, %v745_v32 }
 0x356   : > { %v750_v34 = vsel %vm687_vm8, %v749_v33, -inf }
 0x357   : > { %751 = vmax.xlane.f32.xlu0 %v750_v34 }
 0x35b   : > { %v747_v35 = vpop.f32.mrf.mxu3 }
 0x35f   : > { %762 = vrot.lane.b32.xlu2 %v1390_v21, %s1177_s26 }
 0x367   : > { %783 = vrot.lane.b32.xlu2 %v1390_v21, %s1178_s27 }
 0x36b   : > { %700 = vrot.lane.b32.xlu0 %v1390_v21, %s1179_s28  ;;  %s1093_s28 = sshll.u32 %s1557_s19, 2 }
 0x36f   : > { %842 = vrot.lane.b32.xlu2 %v1390_v21, %s1180_s30 }
 0x3ba   : > { %v690_v36 = vpop.xlane.xlu2 %689 }
 0x3bb   : > { %v691_v37 = vsub.f32 %v686_v29, %v690_v36 }
 0x3bd   : > { %v692_v38 = vmul.f32 1.442695, %v691_v37 }
 0x3bf   : > { %1145 = vpow2.f32 %v692_v38 }
 0x3c2   : > { %v763_v42 = vpop.permute.xlu2 %762 }
 0x3c3   : > { %v768_v43 = vand.u32 %v763_v42, %v1406_v41 }
 0x3c5   : > { %v1146_v44 = vpop.eup %1145  ;;  %777 = vmatpush.bf16.msrb.mxu1 %v768_v43  ;;  %v574_v43 = vld [vmem:[%s1547_s7 + $0x10] sm:$0xff] }
 0x3c6   : > { %v694_v46 = vsel %vm687_vm8, %v1146_v44, 0.0 }
 0x3c7   : > { %695 = vadd.xlane.f32.xlu1 %v694_v46  ;;  %v572_v46 = vld [vmem:[%s1547_s7] sm:$0xff] }
 0x3ca   : > { %v784_v47 = vpop.permute.xlu2 %783  ;;  %v752_v48 = vpop.xlane.xlu0 %751 }
 0x3cb   : > { %v753_v49 = vsub.f32 %v749_v33, %v752_v48  ;;  %v573_v48 = vld [vmem:[%s1547_s7 + $0x8] sm:$0xff] }
 0x3cd   : > { %v754_v50 = vmul.f32 1.442695, %v753_v49  ;;  %v915_v49 = vpack.c.bf16 %v573_v48, %v572_v46  ;;  %v585_v48 = vld [vmem:[%s1553_s13 + $0x8] sm:$0xff] }
 0x3cf   : > { %1147 = vpow2.f32 %v754_v50 }
 0x3d2   : > { %v843_v51 = vpop.permute.xlu2 %842 }
 0x3d3   : > { %v848_v52 = vsel %vm666_vm7, %v843_v51, 0 }
 0x3d4   : > { %857 = vmatpush.bf16.xpose.msra.mxu1 %v848_v52 }
 0x3d5   : > { %v1148_v53 = vpop.eup %1147 }
 0x3d6   : > { %v756_v55 = vsel %vm687_vm8, %v1148_v53, 0.0 }
 0x3d7   : > { %757 = vadd.xlane.f32.xlu0 %v756_v55 }
 0x3dd   : > { %v701_v56 = vpop.permute.xlu0 %700 }
 0x3de   : > { %v711_v57 = vand.u32 %v1406_v41, %v701_v56 }
 0x3e0   : > { %785 = vrot.lane.b32.xlu1 %v1390_v21, %s1182_s16  ;;  %720 = vmatpush.bf16.msrb.mxu2 %v711_v57 }
 0x3e8   : > { %840 = vrot.lane.b32.xlu1 %v1390_v21, %s1183_s17 }
 0x43a   : > { %v696_v58 = vpop.xlane.xlu1 %695 }
 0x43b   : > { %1149 = vrcp.f32 %v696_v58  ;;  %v1136_v58 = vld [vmem:[%s1548_s8] ss:$0 sm:$0xff] }
 0x441   : > { %v1150_v59 = vpop.eup %1149 }
 0x442   : > { %v698_v60 = vmul.f32 %v1150_v59, %v1146_v44  ;;  %v575_v44 = vld [vmem:[%s1547_s7 + $0x18] sm:$0xff] }
 0x444   : > { %v699_v61 = vpack.c.bf16 %v698_v60, %v698_v60 }
 0x446   : > { %1097 = vmatmul.msk.bf16.vlgmr.msrb.gmra.mxu2 %vm702_vm11, %v699_v61 }
 0x44a   : > { %v758_v62 = vpop.xlane.xlu0 %757 }
 0x44b   : > { %1151 = vrcp.f32 %v758_v62 }
 0x451   : > { %v1152_v63 = vpop.eup %1151 }
 0x452   : > { %v760_v0 = vmul.f32 %v1152_v63, %v1148_v53  ;;  %v786_v1 = vpop.permute.xlu1 %785 }
 0x453   : > { %v791_v2 = vsel %vm666_vm7, %v786_v1, 0 }
 0x454   : > { %800 = vmatpush.bf16.xpose.msra.mxu2 %v791_v2  ;;  %v761_v3 = vpack.c.bf16 %v760_v0, %v760_v0 }
 0x456   : > { %1099 = vmatmul.msk.bf16.vlgmr.msrb.gmra.mxu1 %vm702_vm11, %v761_v3 }
 0x45a   : > { %v841_v4 = vpop.permute.xlu1 %840 }
 0x45b   : > { %1100 = vmatmul.msk.bf16.vlgmr.msra.gmra.mxu2 %vm666_vm7, %v784_v47  ;;  %v916_v47 = vpack.c.bf16 %v575_v44, %v574_v43  ;;  %v586_v43 = vld [vmem:[%s1553_s13 + $0x10] sm:$0xff]  ;;  %v587_v44 = vld [vmem:[%s1553_s13 + $0x18] sm:$0xff] }
 0x45c   : > { %v1001_v46 = vpack.c.bf16 %v587_v44, %v586_v43 }
 0x45d   : > { %926 = vmatpush.bf16.msrb.mxu2 %v916_v47  ;;  %v584_v47 = vld [vmem:[%s1553_s13] sm:$0xff] }
 0x461   : > { %927 = vmatpush.bf16.msrb.mxu2 %v915_v49  ;;  %v1000_v49 = vpack.c.bf16 %v585_v48, %v584_v47 }
 0x466   : > { %1102 = vmatmul.msk.bf16.vlgmr.msra.gmra.mxu1 %vm666_vm7, %v841_v4 }
 0x4c9   : > { %v1420_v5 = vpop.f32.mrf.mxu2 }
 0x4d1   : > { %v724_v6 = vpop.f32.mrf.mxu2 }
 0x4d3   : > { %v779_v7 = vpop.f32.mrf.mxu1 }
 0x4db   : > { %v781_v8 = vpop.f32.mrf.mxu1 }
 0x4dc   : > { %v580_v8 = vld [vmem:[%s1551_s11 + $0x8] sm:$0xff] }
 0x4de   : > { %v802_v9 = vpop.f32.mrf.mxu2 }
 0x4df   : > { %v806_v10 = vmul.f32 0.35355338, %v802_v9 }
 0x4e1   : > { %v807_v11 = vsel %vm687_vm8, %v806_v10, -inf }
 0x4e2   : > { %808 = vmax.xlane.f32.xlu0 %v807_v11  ;;  %v599_v11 = vld [vmem:[%s1553_s13 + $0x78] sm:$0xff] }
 0x4e3   : > { %v859_v12 = vpop.f32.mrf.mxu1 }
 0x4e4   : > { %v863_v13 = vmul.f32 0.35355338, %v859_v12  ;;  %v596_v12 = vld [vmem:[%s1553_s13 + $0x60] sm:$0xff] }
 0x4e6   : > { %v804_v14 = vpop.f32.mrf.mxu2  ;;  %v864_v15 = vsel %vm687_vm8, %v863_v13, -inf }
 0x4e7   : > { %865 = vmax.xlane.f32.xlu2 %v864_v15  ;;  %v597_v15 = vld [vmem:[%s1553_s13 + $0x68] sm:$0xff] }
 0x4eb   : > { %v861_v16 = vpop.f32.mrf.mxu1 }
 0x4f6   : > { %819 = vrot.lane.b32.xlu0 %v1390_v21, %s1184_s20 }
 0x4ff   : > { %876 = vrot.lane.b32.xlu2 %v1390_v21, %s1185_s21  ;;  %s492_s21 = scalar_lea.vmem %s1555_s15, %s1093_s28 }
 0x555   : > { %v809_v17 = vpop.xlane.xlu0 %808 }
 0x556   : > { %v810_v18 = vsub.f32 %v806_v10, %v809_v17  ;;  %v598_v10 = vld [vmem:[%s1553_s13 + $0x70] sm:$0xff]  ;;  %v1006_v17 = vpack.c.bf16 %v597_v15, %v596_v12 }
 0x557   : > { %v1007_v14 = vpack.c.bf16 %v599_v11, %v598_v10 }
 0x558   : > { %v811_v19 = vmul.f32 1.442695, %v810_v18 }
 0x559   : > { %1008 = vmatpush.bf16.msrb.mxu0 %v1007_v14 }
 0x55a   : > { %1153 = vpow2.f32 %v811_v19  ;;  %v866_v20 = vpop.xlane.xlu2 %865 }
 0x55b   : > { %v867_v22 = vsub.f32 %v863_v13, %v866_v20 }
 0x55d   : > { %v868_v23 = vmul.f32 1.442695, %v867_v22  ;;  %1009 = vmatpush.bf16.msrb.mxu0 %v1006_v17 }
 0x55f   : > { %1155 = vpow2.f32 %v868_v23 }
 0x560   : > { %v1154_v24 = vpop.eup %1153 }
 0x561   : > { %v813_v25 = vsel %vm687_vm8, %v1154_v24, 0.0 }
 0x562   : > { %814 = vadd.xlane.f32.xlu1 %v813_v25  ;;  %v877_v26 = vpop.permute.xlu2 %876 }
 0x563   : > { %v882_v27 = vand.u32 %v877_v26, %v1406_v41  ;;  %v1137_v26 = vld [vmem:[%s1549_s9] ss:$0 sm:$0xff] }
 0x565   : > { %v1156_v28 = vpop.eup %1155  ;;  %891 = vmatpush.bf16.msrb.mxu1 %v882_v27 }
 0x566   : > { %v870_v29 = vsel %vm687_vm8, %v1156_v28, 0.0 }
 0x567   : > { %871 = vadd.xlane.f32.xlu0 %v870_v29 }
 0x568   : > { %v820_v21 = vpop.permute.xlu0 %819 }
 0x569   : > { %v825_v30 = vand.u32 %v820_v21, %v1406_v41 }
 0x56b   : > { %834 = vmatpush.bf16.msra.mxu3 %v825_v30 }
 0x57b   : > { %898 = vrot.lane.b32.xlu1 %v779_v7, %s1186_s23  ;;  %v579_v7 = vld [vmem:[%s1551_s11] sm:$0xff] }
 0x57c   : > { %v969_v9 = vpack.c.bf16 %v580_v8, %v579_v7 }
 0x5d5   : > { %v815_v31 = vpop.xlane.xlu1 %814 }
 0x5d6   : > { %1157 = vrcp.f32 %v815_v31  ;;  %v594_v31 = vld [vmem:[%s1553_s13 + $0x50] sm:$0xff] }
 0x5da   : > { %v872_v32 = vpop.xlane.xlu0 %871 }
 0x5db   : > { %1159 = vrcp.f32 %v872_v32  ;;  %v595_v32 = vld [vmem:[%s1553_s13 + $0x58] sm:$0xff] }
 0x5dc   : > { %v1158_v33 = vpop.eup %1157 }
 0x5dd   : > { %v817_v34 = vmul.f32 %v1158_v33, %v1154_v24  ;;  %v1005_v33 = vpack.c.bf16 %v595_v32, %v594_v31 }
 0x5df   : > { %v818_v35 = vpack.c.bf16 %v817_v34, %v817_v34  ;;  %1010 = vmatpush.bf16.msrb.mxu0 %v1005_v33  ;;  %v592_v34 = vld [vmem:[%s1553_s13 + $0x40] sm:$0xff] }
 0x5e1   : > { %v1160_v36 = vpop.eup %1159  ;;  %1101 = vmatmul.msk.bf16.vlgmr.msra.gmra.mxu3 %vm702_vm11, %v818_v35  ;;  %v593_v35 = vld [vmem:[%s1553_s13 + $0x48] sm:$0xff] }
 0x5e2   : > { %v874_v37 = vmul.f32 %v1160_v36, %v1156_v28  ;;  %v1138_v28 = vld [vmem:[%s1550_s10] ss:$0 sm:$0xff]  ;;  %v1004_v36 = vpack.c.bf16 %v593_v35, %v592_v34 }
 0x5e4   : > { %v875_v38 = vpack.c.bf16 %v874_v37, %v874_v37  ;;  %1011 = vmatpush.bf16.msrb.mxu0 %v1004_v36  ;;  %v590_v37 = vld [vmem:[%s1553_s13 + $0x30] sm:$0xff] }
 0x5e6   : > { %1103 = vmatmul.msk.bf16.vlgmr.msrb.gmra.mxu1 %vm702_vm11, %v875_v38  ;;  %v591_v38 = vld [vmem:[%s1553_s13 + $0x38] sm:$0xff] }
 0x5ed   : > { %v899_v50 = vpop.permute.xlu1 %898 }
 0x5ee   : > { %v909_v52 = vsel %vm666_vm7, %v1420_v5, %v899_v50  ;;  %v582_v5 = vld [vmem:[%s1551_s11 + $0x18] sm:$0xff]  ;;  %v1139_v50 = vld [vmem:[%s1552_s12] ss:$0 sm:$0xff] }
 0x663   : > { %v893_v39 = vpop.f32.mrf.mxu1 }
 0x664   : > { %906 = vrot.lane.b32.xlu0 %v893_v39, %s1187_s29  ;;  %v836_v40 = vpop.f32.mrf.mxu3  ;;  %v588_v39 = vld [vmem:[%s1553_s13 + $0x20] sm:$0xff] }
 0x665   : > { %902 = vrot.lane.b32.xlu2 %v836_v40, %s1188_s22  ;;  %v1003_v40 = vpack.c.bf16 %v591_v38, %v590_v37 }
 0x667   : > { %1012 = vmatpush.bf16.msrb.mxu0 %v1003_v40 }
 0x66b   : > { %v895_v41 = vpop.f32.mrf.mxu1 }
 0x66c   : > { %v838_v42 = vpop.f32.mrf.mxu3  ;;  %v589_v41 = vld [vmem:[%s1553_s13 + $0x28] sm:$0xff] }
 0x66d   : > { %v1002_v42 = vpack.c.bf16 %v589_v41, %v588_v39 }
 0x66f   : > { %1013 = vmatpush.bf16.msrb.mxu0 %v1002_v42 }
 0x673   : > { %1014 = vmatpush.bf16.msrb.mxu0 %v1001_v46 }
 0x677   : > { %1015 = vmatpush.bf16.msrb.mxu0 %v1000_v49 }
 0x6bf   : > { %v903_v51 = vpop.permute.xlu2 %902 }
 0x6c0   : > { %v911_v53 = vsel %vm910_vm12, %v909_v52, %v903_v51 }
 0x6d6   : > { %v907_v55 = vpop.permute.xlu0 %906 }
 0x6d7   : > { %v913_v56 = vsel %vm912_vm13, %v911_v53, %v907_v55 }
 0x6d8   : > { %v914_v57 = vpack.c.bf16 %v913_v56, %v913_v56 }
 0x6da   : > { %1104 = vmatmul.msk.bf16.vlgmr.msrb.gmra.mxu2 %vm645_vm6, %v914_v57 }
 0x75d   : > { %v929_v59 = vpop.f32.mrf.mxu2 }
 0x75e   : > { %v933_v60 = vadd.f32 %v929_v59, %v1358_v45  ;;  %v581_v45 = vld [vmem:[%s1551_s11 + $0x10] sm:$0xff] }
 0x75f   : > { %v970_v6 = vpack.c.bf16 %v582_v5, %v581_v45  ;;  %v1030_v5 = vld [vmem:[%s492_s21] sm:$0x7] }
 0x760   : > { %v1451_v61 = vadd.f32 %v1136_v58, %v933_v60 }
 0x761   : > { %983 = vmatpush.bf16.msrb.mxu3 %v970_v6 }
 0x762   : > { %v938_v62 = vsel %vm601_vm1, %v1451_v61, 0.0 }
 0x763   : > { %939 = vadd.xlane.f32.xlu1 %v938_v62 }
 0x765   : > { %v931_v63 = vpop.f32.mrf.mxu2  ;;  %984 = vmatpush.bf16.msrb.mxu3 %v969_v9 }
 0x7d6   : > { %v940_v0 = vpop.xlane.xlu1 %939 }
 0x7d7   : > { %v941_v1 = vmul.f32 %v940_v0, %v1362_v54 }
 0x7d9   : > { %v942_v2 = vsub.f32 %v1451_v61, %v941_v1 }
 0x7db   : > { %v943_v3 = vmul.f32 %v942_v2, %v942_v2 }
 0x7dd   : > { %v944_v4 = vsel %vm601_vm1, %v943_v3, 0.0  ;;  %vm1027_vm1 = vcmask 256000  }
 0x7de   : > { %945 = vadd.xlane.f32.xlu2 %v944_v4  ;;  %vm1029_vm3 = vmand %vm1027_vm1, %vm1028_vm2 }
 0x851   : > { %v946_v13 = vpop.xlane.xlu2 %945 }
 0x852   : > { %v947_v16 = vmul.f32 %v946_v13, %v1362_v54 }
 0x854   : > { %v948_v18 = vadd.f32 1e-06, %v947_v16 }
 0x856   : > { %1161 = vrsqrt.f32 %v948_v18  ;;  %vm955_vm15 = vweird.f32 %v948_v18 }
 0x85c   : > { %v1162_v19 = vpop.eup %1161 }
 0x85d   : > { %v950_v20 = vmul.f32 %v1162_v19, %v948_v18  ;;  %vm956_vm14 = vweird.f32 %v1162_v19 }
 0x85e   : > { %vm957_vm0 = vmor %vm955_vm15, %vm956_vm14 }
 0x85f   : > { %v951_v22 = vmul.f32 %v1162_v19, %v950_v20 }
 0x861   : > { %v952_v23 = vmul.f32 0.5, %v951_v22 }
 0x863   : > { %v953_v24 = vsub.f32 1.5, %v952_v23 }
 0x865   : > { %v954_v25 = vmul.f32 %v1162_v19, %v953_v24 }
 0x867   : > { %v958_v27 = vsel %vm957_vm0, %v1162_v19, %v954_v25 }
 0x868   : > { %v959_v54 = vmul.f32 %v958_v27, %v942_v2  ;;  %v1140_v2 = vld [vmem:[%s1554_s14] ss:$0 sm:$0xff] }
 0x86a   : > { %v963_v29 = vmul.f32 %v1137_v26, %v959_v54 }
 0x86c   : > { %v967_v21 = vadd.f32 %v1138_v28, %v963_v29 }
 0x86e   : > { %v968_v30 = vpack.c.bf16 %v967_v21, %v967_v21 }
 0x870   : > { %1105 = vmatmul.msk.bf16.vlgmr.msrb.gmra.mxu3 %vm645_vm6, %v968_v30 }
 0x8f3   : > { %v986_v51 = vpop.f32.mrf.mxu3 }
 0x8f4   : > { %v987_v52 = vadd.f32 %v1139_v50, %v986_v51 }
 0x8f6   : > { %v991_v53 = vmul.f32 0.044715, %v987_v52  ;;  %v990_v62 = vmul.f32 0.5, %v987_v52 }
 0x8f8   : > { %v992_v55 = vmul.f32 %v991_v53, %v987_v52 }
 0x8fa   : > { %v993_v56 = vmul.f32 %v992_v55, %v987_v52 }
 0x8fb   : > { %v988_v57 = vpop.f32.mrf.mxu3 }
 0x8fc   : > { %v994_v58 = vadd.f32 %v993_v56, %v987_v52 }
 0x8fe   : > { %v995_v59 = vmul.f32 0.7978846, %v994_v58 }
 0x900   : > { %1163 = vtanh.f32 %v995_v59 }
 0x906   : > { %v1164_v60 = vpop.eup %1163 }
 0x907   : > { %v997_v63 = vadd.f32 1.0, %v1164_v60 }
 0x909   : > { %v998_v0 = vmul.f32 %v997_v63, %v990_v62 }
 0x90b   : > { %v999_v1 = vpack.c.bf16 %v998_v0, %v998_v0 }
 0x90d   : > { %1016 = vmatmul.bf16.vlgmr.msrb.gmra.mxu0 %v999_v1 }
 0x98a   : > { %v1017_v3 = vpop.f32.mrf.mxu0 }
 0x98b   : > { %v1021_v4 = vadd.f32 %v1017_v3, %v1451_v61 }
 0x98d   : > { %v1025_v45 = vadd.f32 %v1140_v2, %v1021_v4 }
 0x98f   : > { %v1026_v6 = vpack.c.bf16 %v1025_v45, %v1025_v45 }
 0x991   : > { %v1031_v7 = vsel %vm1029_vm3, %v1026_v6, %v1030_v5 }
 0x992   : > { %1032 = vst [vmem:[%s492_s21] sm:$0x7] %v1031_v7  ;;  %v1019_v8 = vpop.f32.mrf.mxu0 }
 0x993 PF: > { %s25_s18 = sadd.s32 1, %s1171_s18  }
 0x994   : > { %p22_p4 = scmp.ge.s32.totalorder %s25_s18, 4  }
 0x996   :  { %24 = sbr.rel (!%p22_p4) target bundleno = 1 (0x1), region = 110 }

// kernel: gpt3_pretrain_forward.9
= control target key start
LH: loop header
LB: loop body
LE: loop exit
PB: predicated region body
PF: predicated region fallthrough
CT: control target
= control target key end

     0   :  { %s1378_s29 = smov 0   ;;  %s1620_s0 = inlined_call_operand.vmem [shape: f32[2,16,32], index: 0, kind: input, shape index: {}]   ;;  %s1621_s1 = inlined_call_operand.vmem [shape: f32[2,1,16], index: 1, kind: input, shape index: {}]   ;;  %s1622_s2 = inlined_call_operand.vmem [shape: f32[1,32], index: 2, kind: input, shape index: {}]   ;;  %s1623_s3 = inlined_call_operand.vmem [shape: f32[1,32], index: 3, kind: input, shape index: {}]   ;;  %s1624_s4 = inlined_call_operand.vmem [shape: f32[32,96], index: 4, kind: input, shape index: {}]   ;;  %s1625_s5 = inlined_call_operand.vmem [shape: f32[1,96], index: 5, kind: input, shape index: {}]   ;;  %s1626_s6 = inlined_call_operand.vmem [shape: f32[32,32], index: 6, kind: input, shape index: {}]   ;;  %s1627_s7 = inlined_call_operand.vmem [shape: f32[1,32], index: 7, kind: input, shape index: {}]   ;;  %s1628_s8 = inlined_call_operand.vmem [shape: f32[1,32], index: 8, kind: input, shape index: {}]   ;;  %s1629_s9 = inlined_call_operand.vmem [shape: f32[1,32], index: 9, kind: input, shape index: {}]   ;;  %s1630_s10 = inlined_call_operand.vmem [shape: f32[32,128], index: 10, kind: input, shape index: {}]   ;;  %s1631_s11 = inlined_call_operand.vmem [shape: f32[1,128], index: 11, kind: input, shape index: {}]   ;;  %s1632_s12 = inlined_call_operand.vmem [shape: f32[128,32], index: 12, kind: input, shape index: {}]   ;;  %s1633_s13 = inlined_call_operand.vmem [shape: f32[1,32], index: 13, kind: input, shape index: {}]   ;;  %s1634_s14 = inlined_call_operand.vmem [shape: bf16[2,16,32], index: 14, kind: output, shape index: {}]  }
   0x1 LB: > { %s1160_s30 = sadd.s32 4294967295, %s1284_s29   ;;  %p1164_p0 = scmp.ge.s32.totalorder %s1284_s29, 1  ;;  %s1284_s29 = sphi %s1378_s29, %s24_s29  }
   0x2   : > { %p420_p1 = scmp.lt.s32.totalorder %s1284_s29, 3 }
   0x4   : > { %p421_p2 = pnand %p1164_p0, %p420_p1 }
   0x5   : > { %p469_p3 = scmp.lt.s32.totalorder (!%p421_p2), %s1160_s30, 1  ;;  %s1287_s19 = smov (!%p421_p2), 64  }
   0x6   : > { %424 = sbr.rel (%p421_p2) target bundleno = 2349 (0x92d), region = 76  ;;  %s1288_s20 = smov (!%p421_p2), 96  }
   0x7   : > { %s1291_s24 = smov (!%p421_p2), 72   ;;  %s1292_s25 = smov (!%p421_p2), 120  }
   0x8   : > { %s1293_s26 = smov (!%p421_p2), 88   ;;  %s1294_s27 = smov (!%p421_p2), 80  }
   0x9   : > { %s1295_s28 = smov (!%p421_p2), 104   ;;  %s1297_s16 = smov (!%p421_p2), 56  }
   0xa   : > { %s1298_s17 = smov (!%p421_p2), 48   ;;  %s1302_s21 = smov (!%p421_p2), 24  }
   0xb   : > { %s1636_s30 = smov (!%p469_p3, %s1160_s30), 1  ;;  %vm537_vm0 = vcmask 261120   ;;  %v1286_v4 = vmov 32.0   ;;  %v505_v21 = vld [vmem:[%s1624_s4 + $0x10] sm:$0xff]  ;;  %v506_v22 = vld [vmem:[%s1624_s4 + $0x18] sm:$0xff]  ;;  %v503_v24 = vld [vmem:[%s1624_s4] sm:$0xff] }
   0xc   : > { %s1182_s15 = sshll.u32 %s1636_s30, 4  ;;  %1232 = vrcp.f32 %v1286_v4  ;;  %v601_v23 = vpack.c.bf16 %v506_v22, %v505_v21  ;;  %v504_v25 = vld [vmem:[%s1624_s4 + $0x8] sm:$0xff]  ;;  %v1224_v46 = vld [vmem:[%s1622_s2] ss:$0 sm:$0xff]  ;;  %vm626_vm8 = vcmask 64512   ;;  %s476_s23 = scalar_lea.vmem %s1621_s1, %s1636_s30  ;;  %v485_v4 = vlaneseq }
   0xd   : > { %s473_s18 = scalar_lea.vmem %s1620_s0, %s1182_s15  ;;  %v600_v27 = vpack.c.bf16 %v504_v25, %v503_v24  ;;  %v1225_v51 = vld [vmem:[%s1623_s3] ss:$0 sm:$0xff]  ;;  %vm651_vm13 = vcmask 130048   ;;  %s1296_s15 = smov 112  }
   0xe   : > { %v1392_v0 = vld [vmem:[%s473_s18] sm:$0xff]  ;;  %v1396_v2 = vld [vmem:[%s473_s18 + $0x8] sm:$0xff]  ;;  %614 = vmatpush.bf16.msra.mxu0 %v601_v23  ;;  %s1299_s18 = smov 40  }
   0xf   : > { %v538_v1 = vsel %vm537_vm0, %v1392_v0, 0.0  ;;  %v541_v3 = vsel %vm537_vm0, %v1396_v2, 0.0  ;;  %v1226_v57 = vld [vmem:[%s1625_s5] ss:$0 sm:$0xff] }
  0x10   : > { %539 = vadd.xlane.f32.xlu0 %v538_v1 }
  0x12   : > { %v1233_v5 = vpop.eup %1232  ;;  %615 = vmatpush.bf16.msra.mxu0 %v600_v27 }
  0x13   : > { %v545_v6 = vmul.f32 32.0, %v1233_v5  ;;  %vm549_vm1 = vweird.f32 %v1233_v5 }
  0x15   : > { %v546_v7 = vsub.f32 1.0, %v545_v6 }
  0x17   : > { %v547_v8 = vmul.f32 %v1233_v5, %v546_v7  ;;  %v486_v7 = vshrl.u32 %v485_v4, 7 }
  0x18   : > { %542 = vadd.xlane.f32.xlu0 %v541_v3  ;;  %v492_v3 = vld [vmem:[%s476_s23] sm:$0x1] }
  0x19   : > { %v548_v9 = vadd.f32 %v1233_v5, %v547_v8  ;;  %vm493_vm9 = vcmp.gt.f32.partialorder %v492_v3, 0.5  ;;  %v489_v8 = vand.u32 127, %v485_v4 }
  0x1b   : > { %v1400_v10 = vsel %vm549_vm1, %v1233_v5, %v548_v9  ;;  %v1289_v5 = vmov 0   ;;  %vm490_vm10 = vcmp.le.s32.totalorder %v489_v8, %v486_v7  ;;  %vm936_vm1 = vcmask 195584  }
  0x1c   : > { %v494_v6 = vsel %vm493_vm9, 1, %v1289_v5 }
  0x1d   : > { %v495_v9 = vperm.slane %v494_v6, 0 }
  0x1f   : > { %vm496_vm11 = vcmp.eq.s32.totalorder %v495_v9, 1 }
  0x20   : > { %vm497_vm12 = vmand %vm490_vm10, %vm496_vm11 }
  0x83   : > { %v540_v11 = vpop.xlane.xlu0 %539 }
  0x84   : > { %v551_v12 = vmul.f32 %v1400_v10, %v540_v11  ;;  %v487_v11 = vadd.s32 8, %v486_v7 }
  0x86   : > { %v553_v13 = vsub.f32 %v1392_v0, %v551_v12  ;;  %vm491_vm14 = vcmp.le.s32.totalorder %v489_v8, %v487_v11 }
  0x87   : > { %vm498_vm15 = vmand %vm491_vm14, %vm496_vm11 }
  0x88   : > { %v555_v14 = vmul.f32 %v553_v13, %v553_v13 }
  0x8a   : > { %v557_v15 = vsel %vm537_vm0, %v555_v14, 0.0 }
  0x8b   : > { %558 = vadd.xlane.f32.xlu1 %v557_v15  ;;  %v543_v16 = vpop.xlane.xlu0 %542 }
  0x8c   : > { %v552_v17 = vmul.f32 %v1400_v10, %v543_v16 }
  0x8e   : > { %v554_v18 = vsub.f32 %v1396_v2, %v552_v17 }
  0x90   : > { %v556_v19 = vmul.f32 %v554_v18, %v554_v18 }
  0x92   : > { %v560_v20 = vsel %vm537_vm0, %v556_v19, 0.0 }
  0x93   : > { %561 = vadd.xlane.f32.xlu1 %v560_v20 }
  0xfe   : > { %v559_v26 = vpop.xlane.xlu1 %558 }
  0xff   : > { %v563_v28 = vmul.f32 %v559_v26, %v1400_v10 }
 0x101   : > { %v565_v29 = vadd.f32 1e-05, %v563_v28 }
 0x103   : > { %1234 = vrsqrt.f32 %v565_v29  ;;  %vm573_vm3 = vweird.f32 %v565_v29 }
 0x106   : > { %v562_v30 = vpop.xlane.xlu1 %561 }
 0x107   : > { %v564_v31 = vmul.f32 %v562_v30, %v1400_v10 }
 0x109   : > { %v1235_v32 = vpop.eup %1234  ;;  %v566_v33 = vadd.f32 1e-05, %v564_v31 }
 0x10a   : > { %v568_v34 = vmul.f32 %v1235_v32, %v565_v29  ;;  %vm574_vm2 = vweird.f32 %v1235_v32 }
 0x10b   : > { %1236 = vrsqrt.f32 %v566_v33  ;;  %vm575_vm4 = vmor %vm573_vm3, %vm574_vm2  ;;  %vm583_vm6 = vweird.f32 %v566_v33 }
 0x10c   : > { %v569_v35 = vmul.f32 %v1235_v32, %v568_v34 }
 0x10e   : > { %v570_v36 = vmul.f32 0.5, %v569_v35 }
 0x110   : > { %v571_v37 = vsub.f32 1.5, %v570_v36 }
 0x111   : > { %v1237_v38 = vpop.eup %1236 }
 0x112   : > { %v572_v39 = vmul.f32 %v1235_v32, %v571_v37  ;;  %v578_v40 = vmul.f32 %v1237_v38, %v566_v33  ;;  %vm584_vm5 = vweird.f32 %v1237_v38 }
 0x113   : > { %vm585_vm7 = vmor %vm583_vm6, %vm584_vm5 }
 0x114   : > { %v579_v41 = vmul.f32 %v1237_v38, %v578_v40  ;;  %v576_v42 = vsel %vm575_vm4, %v1235_v32, %v572_v39 }
 0x115   : > { %v587_v45 = vmul.f32 %v576_v42, %v553_v13  ;;  %v1290_v13 = vmov -1e+09  }
 0x116   : > { %v580_v43 = vmul.f32 0.5, %v579_v41  ;;  %v1443_v14 = vsel %vm497_vm12, 0.0, %v1290_v13  ;;  %v1447_v19 = vsel %vm498_vm15, 0.0, %v1290_v13 }
 0x117   : > { %v592_v50 = vmul.f32 %v1224_v46, %v587_v45 }
 0x118   : > { %v581_v44 = vsub.f32 1.5, %v580_v43 }
 0x119   : > { %v597_v53 = vadd.f32 %v1225_v51, %v592_v50 }
 0x11a   : > { %v582_v47 = vmul.f32 %v1237_v38, %v581_v44 }
 0x11c   : > { %v586_v48 = vsel %vm585_vm7, %v1237_v38, %v582_v47 }
 0x11d   : > { %v588_v49 = vmul.f32 %v586_v48, %v554_v18 }
 0x11f   : > { %v593_v52 = vmul.f32 %v1224_v46, %v588_v49 }
 0x121   : > { %v598_v54 = vadd.f32 %v1225_v51, %v593_v52 }
 0x123   : > { %v599_v55 = vpack.c.bf16 %v598_v54, %v597_v53 }
 0x125   : > { %1169 = vmatmul.msk.bf16.vlgmr.msra.gmra.mxu0 %vm537_vm0, %v599_v55 }
 0x1a2   : > { %v617_v56 = vpop.f32.mrf.mxu0 }
 0x1a3   : > { %v618_v59 = vadd.f32 %v1226_v57, %v617_v56 }
 0x1aa   : > { %v619_v58 = vpop.f32.mrf.mxu0 }
 0x1ab   : > { %v620_v60 = vadd.f32 %v1226_v57, %v619_v58 }
 0x1ad   : > { %v1432_v61 = vpack.c.bf16 %v620_v60, %v618_v59 }
 0x1af   : > { %675 = vrot.lane.b32.xlu1 %v1432_v61, %s1287_s19  ;;  %624 = vrot.lane.b32.xlu2 %v1432_v61, %s1288_s20  ;;  %s1300_s19 = smov 8   ;;  %s1301_s20 = smov 16  }
 0x209   : > { %v625_v62 = vpop.permute.xlu2 %624 }
 0x20a   : > { %v631_v63 = vsel %vm626_vm8, %v625_v62, 0 }
 0x20b   : > { %640 = vmatpush.bf16.xpose.msra.mxu1 %v631_v63 }
 0x212   : > { %1170 = vmatmul.msk.bf16.vlgmr.msra.gmra.mxu1 %vm626_vm8, %v1432_v61 }
 0x221   : > { %v676_v1 = vpop.permute.xlu1 %675 }
 0x222   : > { %688 = vmatpush.bf16.msra.mxu2 %v676_v1 }
 0x28f   : > { %v642_v12 = vpop.f32.mrf.mxu1 }
 0x290   : > { %v647_v15 = vmul.f32 0.35355338, %v642_v12 }
 0x292   : > { %v649_v16 = vadd.f32 %v647_v15, %v1443_v14 }
 0x294   : > { %v652_v17 = vsel %vm651_vm13, %v649_v16, -inf }
 0x295   : > { %653 = vmax.xlane.f32.xlu2 %v652_v17 }
 0x297   : > { %v644_v18 = vpop.f32.mrf.mxu1 }
 0x298   : > { %v648_v20 = vmul.f32 0.35355338, %v644_v18 }
 0x29a   : > { %v650_v21 = vadd.f32 %v648_v20, %v1447_v19 }
 0x29c   : > { %v655_v22 = vsel %vm651_vm13, %v650_v21, -inf }
 0x29d   : > { %656 = vmax.xlane.f32.xlu0 %v655_v22 }
 0x2ad   : > { %839 = vrot.lane.b32.xlu2 %v1432_v61, %s1291_s24  ;;  %s1183_s24 = sshll.u32 %s1636_s30, 3 }
 0x308   : > { %v654_v23 = vpop.xlane.xlu2 %653 }
 0x309   : > { %v658_v24 = vsub.f32 %v649_v16, %v654_v23 }
 0x30b   : > { %v660_v25 = vmul.f32 1.442695, %v658_v24 }
 0x30d   : > { %1238 = vpow2.f32 %v660_v25 }
 0x310   : > { %v840_v26 = vpop.permute.xlu2 %839  ;;  %v657_v27 = vpop.xlane.xlu0 %656 }
 0x311   : > { %v659_v28 = vsub.f32 %v650_v21, %v657_v27  ;;  %v845_v29 = vsel %vm626_vm8, %v840_v26, 0 }
 0x312   : > { %854 = vmatpush.bf16.xpose.msra.mxu3 %v845_v29 }
 0x313   : > { %v1239_v30 = vpop.eup %1238  ;;  %v662_v31 = vmul.f32 1.442695, %v659_v28 }
 0x314   : > { %v664_v32 = vsel %vm651_vm13, %v1239_v30, 0.0 }
 0x315   : > { %1240 = vpow2.f32 %v662_v31  ;;  %665 = vadd.xlane.f32.xlu1 %v664_v32 }
 0x31b   : > { %v1241_v33 = vpop.eup %1240 }
 0x31c   : > { %v667_v34 = vsel %vm651_vm13, %v1241_v33, 0.0 }
 0x31d   : > { %668 = vadd.xlane.f32.xlu0 %v667_v34 }
 0x32e   : > { %695 = vrot.lane.b32.xlu1 %v1432_v61, %s1292_s25 }
 0x331   : > { %697 = vrot.lane.b32.xlu0 %v1432_v61, %s1293_s26 }
 0x336   : > { %768 = vrot.lane.b32.xlu1 %v1432_v61, %s1294_s27  ;;  %s481_s27 = scalar_lea.vmem %s1634_s14, %s1183_s24 }
 0x339   : > { %837 = vrot.lane.b32.xlu0 %v1432_v61, %s1295_s28 }
 0x341   : > { %766 = vrot.lane.b32.xlu0 %v1432_v61, %s1296_s15 }
 0x388   : > { %v666_v35 = vpop.xlane.xlu1 %665 }
 0x389   : > { %1242 = vrcp.f32 %v666_v35 }
 0x38f   : > { %v1243_v37 = vpop.eup %1242 }
 0x390   : > { %v669_v36 = vpop.xlane.xlu0 %668  ;;  %v672_v39 = vmul.f32 %v1243_v37, %v1239_v30 }
 0x391   : > { %1244 = vrcp.f32 %v669_v36 }
 0x397   : > { %v1245_v38 = vpop.eup %1244 }
 0x398   : > { %v673_v40 = vmul.f32 %v1245_v38, %v1241_v33 }
 0x39a   : > { %v674_v41 = vpack.c.bf16 %v673_v40, %v672_v39 }
 0x39c   : > { %1171 = vmatmul.msk.bf16.vlgmr.msra.gmra.mxu2 %vm651_vm13, %v674_v41 }
 0x3a0   : > { %v696_v42 = vpop.permute.xlu1 %695 }
 0x3a3   : > { %v698_v43 = vpop.permute.xlu0 %697 }
 0x3a4   : > { %v703_v44 = vsel %vm626_vm8, %v698_v43, 0 }
 0x3a5   : > { %712 = vmatpush.bf16.xpose.msrb.mxu2 %v703_v44 }
 0x3a8   : > { %v769_v45 = vpop.permute.xlu1 %768 }
 0x3a9   : > { %v774_v46 = vsel %vm626_vm8, %v769_v45, 0 }
 0x3aa   : > { %783 = vmatpush.bf16.xpose.msrb.mxu0 %v774_v46 }
 0x3ab   : > { %v838_v47 = vpop.permute.xlu0 %837 }
 0x3ac   : > { %1172 = vmatmul.msk.bf16.vlgmr.msrb.gmra.mxu2 %vm626_vm8, %v696_v42  ;;  %1176 = vmatmul.msk.bf16.vlgmr.msra.gmra.mxu3 %vm626_vm8, %v838_v47 }
 0x3b3   : > { %v767_v48 = vpop.permute.xlu0 %766 }
 0x3b4   : > { %1174 = vmatmul.msk.bf16.vlgmr.msrb.gmra.mxu0 %vm626_vm8, %v767_v48 }
 0x41f   : > { %v1466_v49 = vpop.f32.mrf.mxu2 }
 0x427   : > { %v1468_v50 = vpop.f32.mrf.mxu2 }
 0x42f   : > { %v714_v51 = vpop.f32.mrf.mxu2  ;;  %v856_v52 = vpop.f32.mrf.mxu3 }
 0x430   : > { %v719_v53 = vmul.f32 0.35355338, %v714_v51  ;;  %v861_v54 = vmul.f32 0.35355338, %v856_v52 }
 0x431   : > { %v785_v55 = vpop.f32.mrf.mxu0 }
 0x432   : > { %v721_v56 = vadd.f32 %v719_v53, %v1443_v14  ;;  %v863_v57 = vadd.f32 %v861_v54, %v1443_v14  ;;  %v790_v7 = vmul.f32 0.35355338, %v785_v55 }
 0x434   : > { %v723_v58 = vsel %vm651_vm13, %v721_v56, -inf  ;;  %v865_v59 = vsel %vm651_vm13, %v863_v57, -inf  ;;  %v792_v13 = vadd.f32 %v790_v7, %v1443_v14 }
 0x435   : > { %724 = vmax.xlane.f32.xlu1 %v723_v58  ;;  %866 = vmax.xlane.f32.xlu2 %v865_v59 }
 0x436   : > { %v794_v15 = vsel %vm651_vm13, %v792_v13, -inf }
 0x437   : > { %v716_v60 = vpop.f32.mrf.mxu2  ;;  %v858_v62 = vpop.f32.mrf.mxu3 }
 0x438   : > { %v720_v63 = vmul.f32 0.35355338, %v716_v60  ;;  %v862_v1 = vmul.f32 0.35355338, %v858_v62 }
 0x439   : > { %v787_v3 = vpop.f32.mrf.mxu0 }
 0x43a   : > { %v791_v4 = vmul.f32 0.35355338, %v787_v3  ;;  %v722_v5 = vadd.f32 %v720_v63, %v1447_v19  ;;  %v864_v6 = vadd.f32 %v862_v1, %v1447_v19 }
 0x43c   : > { %v726_v8 = vsel %vm651_vm13, %v722_v5, -inf  ;;  %v868_v9 = vsel %vm651_vm13, %v864_v6, -inf  ;;  %v793_v11 = vadd.f32 %v791_v4, %v1447_v19 }
 0x43d   : > { %727 = vmax.xlane.f32.xlu0 %v726_v8  ;;  %869 = vmax.xlane.f32.xlu1 %v868_v9 }
 0x43e   : > { %v797_v12 = vsel %vm651_vm13, %v793_v11, -inf }
 0x43f   : > { %798 = vmax.xlane.f32.xlu2 %v797_v12 }
 0x445   : > { %795 = vmax.xlane.f32.xlu0 %v794_v15 }
 0x457   : > { %746 = vrot.lane.b32.xlu2 %v1432_v61, %s1297_s16 }
 0x4a8   : > { %v725_v16 = vpop.xlane.xlu1 %724  ;;  %v867_v17 = vpop.xlane.xlu2 %866 }
 0x4a9   : > { %v871_v18 = vsub.f32 %v863_v57, %v867_v17  ;;  %v729_v30 = vsub.f32 %v721_v56, %v725_v16 }
 0x4ab   : > { %v873_v20 = vmul.f32 1.442695, %v871_v18  ;;  %v731_v36 = vmul.f32 1.442695, %v729_v30 }
 0x4ad   : > { %1246 = vpow2.f32 %v873_v20 }
 0x4b0   : > { %v870_v21 = vpop.xlane.xlu1 %869  ;;  %v728_v19 = vpop.xlane.xlu0 %727 }
 0x4b1   : > { %v872_v22 = vsub.f32 %v864_v6, %v870_v21  ;;  %v730_v33 = vsub.f32 %v722_v5, %v728_v19  ;;  %v510_v21 = vld [vmem:[%s1626_s6 + $0x10] sm:$0xff]  ;;  %v511_v19 = vld [vmem:[%s1626_s6 + $0x18] sm:$0xff] }
 0x4b2   : > { %v799_v23 = vpop.xlane.xlu2 %798 }
 0x4b3   : > { %v875_v24 = vmul.f32 1.442695, %v872_v22  ;;  %v801_v25 = vsub.f32 %v793_v11, %v799_v23  ;;  %v1483_v26 = vpop.eup %1246  ;;  %v733_v37 = vmul.f32 1.442695, %v730_v33  ;;  %v941_v22 = vpack.c.bf16 %v511_v19, %v510_v21  ;;  %v508_v23 = vld [vmem:[%s1626_s6] sm:$0xff] }
 0x4b4   : > { %v877_v14 = vsel %vm651_vm13, %v1483_v26, 0.0 }
 0x4b5   : > { %1248 = vpow2.f32 %v875_v24  ;;  %878 = vadd.xlane.f32.xlu1 %v877_v14  ;;  %v804_v27 = vmul.f32 1.442695, %v801_v25  ;;  %951 = vmatpush.bf16.msra.mxu0 %v941_v22  ;;  %v509_v24 = vld [vmem:[%s1626_s6 + $0x8] sm:$0xff] }
 0x4b6   : > { %v940_v25 = vpack.c.bf16 %v509_v24, %v508_v23 }
 0x4b7   : > { %1250 = vpow2.f32 %v804_v27 }
 0x4b8   : > { %v796_v28 = vpop.xlane.xlu0 %795 }
 0x4b9   : > { %v800_v29 = vsub.f32 %v792_v13, %v796_v28  ;;  %952 = vmatpush.bf16.msra.mxu0 %v940_v25  ;;  %v1229_v25 = vld [vmem:[%s1629_s9] ss:$0 sm:$0xff] }
 0x4ba   : > { %v747_v31 = vpop.permute.xlu2 %746 }
 0x4bb   : > { %v1249_v32 = vpop.eup %1248  ;;  %v802_v34 = vmul.f32 1.442695, %v800_v29  ;;  %759 = vmatpush.bf16.msra.mxu2 %v747_v31 }
 0x4bc   : > { %v880_v35 = vsel %vm651_vm13, %v1249_v32, 0.0 }
 0x4bd   : > { %1252 = vpow2.f32 %v802_v34  ;;  %881 = vadd.xlane.f32.xlu0 %v880_v35  ;;  %v1251_v38 = vpop.eup %1250 }
 0x4be   : > { %1254 = vpow2.f32 %v731_v36  ;;  %v809_v40 = vsel %vm651_vm13, %v1251_v38, 0.0 }
 0x4bf   : > { %1256 = vpow2.f32 %v733_v37 }
 0x4c3   : > { %v1253_v39 = vpop.eup %1252 }
 0x4c4   : > { %v806_v41 = vsel %vm651_vm13, %v1253_v39, 0.0  ;;  %v1255_v42 = vpop.eup %1254 }
 0x4c5   : > { %810 = vadd.xlane.f32.xlu0 %v809_v40  ;;  %807 = vadd.xlane.f32.xlu1 %v806_v41  ;;  %v1257_v43 = vpop.eup %1256  ;;  %v735_v45 = vsel %vm651_vm13, %v1255_v42, 0.0  ;;  %v1227_v41 = vld [vmem:[%s1627_s7] ss:$0 sm:$0xff] }
 0x4c6   : > { %v738_v44 = vsel %vm651_vm13, %v1257_v43, 0.0 }
 0x4cd   : > { %739 = vadd.xlane.f32.xlu0 %v738_v44  ;;  %736 = vadd.xlane.f32.xlu1 %v735_v45 }
 0x4e1   : > { %817 = vrot.lane.b32.xlu0 %v1432_v61, %s1298_s17 }
 0x4e6   : > { %888 = vrot.lane.b32.xlu1 %v1432_v61, %s1299_s18 }
 0x528   : > { %v879_v46 = vpop.xlane.xlu1 %878 }
 0x530   : > { %v882_v47 = vpop.xlane.xlu0 %881 }
 0x538   : > { %v808_v48 = vpop.xlane.xlu1 %807  ;;  %v811_v51 = vpop.xlane.xlu0 %810 }
 0x540   : > { %v737_v52 = vpop.xlane.xlu1 %736  ;;  %v740_v53 = vpop.xlane.xlu0 %739 }
 0x541   : > { %1258 = vrcp.f32 %v737_v52 }
 0x542   : > { %1260 = vrcp.f32 %v740_v53 }
 0x543   : > { %1262 = vrcp.f32 %v808_v48 }
 0x544   : > { %1264 = vrcp.f32 %v811_v51 }
 0x545   : > { %1266 = vrcp.f32 %v882_v47 }
 0x546   : > { %1268 = vrcp.f32 %v879_v46 }
 0x547   : > { %v1259_v54 = vpop.eup %1258 }
 0x548   : > { %v1261_v55 = vpop.eup %1260  ;;  %v743_v56 = vmul.f32 %v1259_v54, %v1255_v42 }
 0x549   : > { %v744_v57 = vmul.f32 %v1261_v55, %v1257_v43  ;;  %v1263_v59 = vpop.eup %1262 }
 0x54a   : > { %v1265_v60 = vpop.eup %1264  ;;  %v814_v61 = vmul.f32 %v1263_v59, %v1253_v39  ;;  %v518_v59 = vld [vmem:[%s1630_s10 + $0x18] sm:$0xff] }
 0x54b   : > { %v745_v58 = vpack.c.bf16 %v744_v57, %v743_v56  ;;  %v815_v62 = vmul.f32 %v1265_v60, %v1251_v38  ;;  %v1267_v1 = vpop.eup %1266 }
 0x54c   : > { %v1269_v4 = vpop.eup %1268  ;;  %v886_v5 = vmul.f32 %v1267_v1, %v1249_v32  ;;  %v516_v1 = vld [vmem:[%s1630_s10 + $0x8] sm:$0xff] }
 0x54d   : > { %1173 = vmatmul.msk.bf16.vlgmr.msra.gmra.mxu2 %vm651_vm13, %v745_v58  ;;  %v816_v3 = vpack.c.bf16 %v815_v62, %v814_v61  ;;  %v885_v7 = vmul.f32 %v1269_v4, %v1483_v26  ;;  %v517_v58 = vld [vmem:[%s1630_s10 + $0x10] sm:$0xff] }
 0x54e   : > { %v1022_v60 = vpack.c.bf16 %v518_v59, %v517_v58 }
 0x54f   : > { %v887_v8 = vpack.c.bf16 %v886_v5, %v885_v7 }
 0x553   : > { %v818_v63 = vpop.permute.xlu0 %817 }
 0x554   : > { %830 = vmatpush.bf16.msrb.mxu1 %v818_v63  ;;  %v515_v63 = vld [vmem:[%s1630_s10] sm:$0xff] }
 0x557   : > { %1175 = vmatmul.msk.bf16.vlgmr.msrb.gmra.mxu1 %vm651_vm13, %v816_v3  ;;  %v1021_v3 = vpack.c.bf16 %v516_v1, %v515_v63 }
 0x558   : > { %v889_v6 = vpop.permute.xlu1 %888  ;;  %1035 = vmatpush.bf16.msra.mxu1 %v1022_v60 }
 0x559   : > { %901 = vmatpush.bf16.msrb.mxu2 %v889_v6 }
 0x55c   : > { %1036 = vmatpush.bf16.msra.mxu1 %v1021_v3 }
 0x55d   : > { %1177 = vmatmul.msk.bf16.vlgmr.msrb.gmra.mxu2 %vm651_vm13, %v887_v8 }
 0x5d0   : > { %v761_v9 = vpop.f32.mrf.mxu2 }
 0x5d4   : > { %v832_v11 = vpop.f32.mrf.mxu1 }
 0x5d8   : > { %v763_v12 = vpop.f32.mrf.mxu2 }
 0x5d9   : > { %v1209_v13 = vpack.i.bf16 %v763_v12, %v761_v9 }
 0x5db   : > { %1210 = vrot.lane.b32.xlu2 %v1209_v13, %s1300_s19 }
 0x5dc   : > { %v834_v15 = vpop.f32.mrf.mxu1 }
 0x5dd   : > { %v1214_v17 = vpack.i.bf16 %v834_v15, %v832_v11 }
 0x5e0   : > { %v903_v16 = vpop.f32.mrf.mxu2 }
 0x5e3   : > { %1215 = vrot.lane.b32.xlu2 %v1214_v17, %s1301_s20 }
 0x5e8   : > { %v905_v18 = vpop.f32.mrf.mxu2 }
 0x5e9   : > { %v1219_v20 = vpack.i.bf16 %v905_v18, %v903_v16 }
 0x5eb   : > { %1220 = vrot.lane.b32.xlu0 %v1219_v20, %s1302_s21 }
 0x635   : > { %v1211_v26 = vpop.permute.xlu2 %1210 }
 0x636   : > { %v1213_v27 = vunpack.i.h.bf16 %v1211_v26  ;;  %v1212_v28 = vunpack.i.l.bf16 %v1211_v26 }
 0x638   : > { %v933_v32 = vsel %vm626_vm8, %v1468_v50, %v1213_v27  ;;  %v932_v33 = vsel %vm626_vm8, %v1466_v49, %v1212_v28 }
 0x63d   : > { %v1216_v14 = vpop.permute.xlu2 %1215 }
 0x63e   : > { %v1218_v29 = vunpack.i.h.bf16 %v1216_v14  ;;  %v1217_v30 = vunpack.i.l.bf16 %v1216_v14 }
 0x640   : > { %v935_v36 = vsel %vm651_vm13, %v933_v32, %v1218_v29  ;;  %v934_v37 = vsel %vm651_vm13, %v932_v33, %v1217_v30  ;;  %v535_v32 = vld [vmem:[%s1632_s12 + $0x78] sm:$0xff] }
 0x65d   : > { %v1221_v31 = vpop.permute.xlu0 %1220 }
 0x65e   : > { %v1223_v34 = vunpack.i.h.bf16 %v1221_v31  ;;  %v1222_v35 = vunpack.i.l.bf16 %v1221_v31  ;;  %v534_v31 = vld [vmem:[%s1632_s12 + $0x70] sm:$0xff] }
 0x65f   : > { %v1069_v33 = vpack.c.bf16 %v535_v32, %v534_v31 }
 0x660   : > { %v938_v38 = vsel %vm936_vm1, %v935_v36, %v1223_v34  ;;  %v937_v39 = vsel %vm936_vm1, %v934_v37, %v1222_v35  ;;  %v532_v34 = vld [vmem:[%s1632_s12 + $0x60] sm:$0xff]  ;;  %v533_v35 = vld [vmem:[%s1632_s12 + $0x68] sm:$0xff]  ;;  %v530_v37 = vld [vmem:[%s1632_s12 + $0x50] sm:$0xff] }
 0x661   : > { %v939_v40 = vpack.c.bf16 %v938_v38, %v937_v39  ;;  %1070 = vmatpush.bf16.msrb.mxu3 %v1069_v33  ;;  %v1068_v36 = vpack.c.bf16 %v533_v35, %v532_v34  ;;  %v531_v38 = vld [vmem:[%s1632_s12 + $0x58] sm:$0xff] }
 0x662   : > { %v1067_v39 = vpack.c.bf16 %v531_v38, %v530_v37 }
 0x663   : > { %1178 = vmatmul.msk.bf16.vlgmr.msra.gmra.mxu0 %vm537_vm0, %v939_v40  ;;  %v528_v40 = vld [vmem:[%s1632_s12 + $0x40] sm:$0xff] }
 0x665   : > { %1071 = vmatpush.bf16.msrb.mxu3 %v1068_v36 }
 0x669   : > { %1072 = vmatpush.bf16.msrb.mxu3 %v1067_v39 }
 0x6e0   : > { %v954_v42 = vpop.f32.mrf.mxu0 }
 0x6e1   : > { %v959_v50 = vadd.f32 %v954_v42, %v1392_v0 }
 0x6e3   : > { %v1521_v43 = vadd.f32 %v1227_v41, %v959_v50  ;;  %v526_v50 = vld [vmem:[%s1632_s12 + $0x30] sm:$0xff] }
 0x6e5   : > { %v966_v49 = vsel %vm537_vm0, %v1521_v43, 0.0 }
 0x6e6   : > { %967 = vadd.xlane.f32.xlu2 %v966_v49  ;;  %v527_v49 = vld [vmem:[%s1632_s12 + $0x38] sm:$0xff] }
 0x6e8   : > { %v956_v44 = vpop.f32.mrf.mxu0 }
 0x6e9   : > { %v960_v45 = vadd.f32 %v956_v44, %v1396_v2  ;;  %v1065_v44 = vpack.c.bf16 %v527_v49, %v526_v50 }
 0x6eb   : > { %v1526_v46 = vadd.f32 %v1227_v41, %v960_v45  ;;  %v529_v41 = vld [vmem:[%s1632_s12 + $0x48] sm:$0xff]  ;;  %v524_v45 = vld [vmem:[%s1632_s12 + $0x20] sm:$0xff] }
 0x6ec   : > { %v1066_v42 = vpack.c.bf16 %v529_v41, %v528_v40 }
 0x6ed   : > { %v969_v47 = vsel %vm537_vm0, %v1526_v46, 0.0 }
 0x6ee   : > { %970 = vadd.xlane.f32.xlu1 %v969_v47  ;;  %1073 = vmatpush.bf16.msrb.mxu3 %v1066_v42  ;;  %v525_v47 = vld [vmem:[%s1632_s12 + $0x28] sm:$0xff] }
 0x6f2   : > { %1074 = vmatpush.bf16.msrb.mxu3 %v1065_v44 }
 0x759   : > { %v968_v48 = vpop.xlane.xlu2 %967 }
 0x75a   : > { %v972_v51 = vmul.f32 %v968_v48, %v1400_v10  ;;  %v1064_v48 = vpack.c.bf16 %v525_v47, %v524_v45 }
 0x75c   : > { %v974_v0 = vsub.f32 %v1521_v43, %v972_v51  ;;  %v522_v51 = vld [vmem:[%s1632_s12 + $0x10] sm:$0xff]  ;;  %1075 = vmatpush.bf16.msrb.mxu3 %v1064_v48 }
 0x75e   : > { %v976_v52 = vmul.f32 %v974_v0, %v974_v0 }
 0x760   : > { %v978_v53 = vsel %vm537_vm0, %v976_v52, 0.0 }
 0x761   : > { %979 = vadd.xlane.f32.xlu0 %v978_v53  ;;  %v971_v54 = vpop.xlane.xlu1 %970  ;;  %v520_v53 = vld [vmem:[%s1632_s12] sm:$0xff] }
 0x762   : > { %v973_v55 = vmul.f32 %v971_v54, %v1400_v10  ;;  %v521_v54 = vld [vmem:[%s1632_s12 + $0x8] sm:$0xff] }
 0x764   : > { %v975_v2 = vsub.f32 %v1526_v46, %v973_v55  ;;  %v1062_v55 = vpack.c.bf16 %v521_v54, %v520_v53 }
 0x766   : > { %v977_v56 = vmul.f32 %v975_v2, %v975_v2 }
 0x768   : > { %v981_v57 = vsel %vm537_vm0, %v977_v56, 0.0 }
 0x769   : > { %982 = vadd.xlane.f32.xlu2 %v981_v57 }
 0x7d4   : > { %v980_v61 = vpop.xlane.xlu0 %979 }
 0x7d5   : > { %v984_v62 = vmul.f32 %v980_v61, %v1400_v10 }
 0x7d7   : > { %v986_v4 = vadd.f32 1e-05, %v984_v62 }
 0x7d9   : > { %1270 = vrsqrt.f32 %v986_v4  ;;  %vm994_vm3 = vweird.f32 %v986_v4 }
 0x7dc   : > { %v983_v5 = vpop.xlane.xlu2 %982 }
 0x7dd   : > { %v985_v6 = vmul.f32 %v983_v5, %v1400_v10  ;;  %v1228_v10 = vld [vmem:[%s1628_s8] ss:$0 sm:$0xff] }
 0x7df   : > { %v1271_v7 = vpop.eup %1270  ;;  %v987_v8 = vadd.f32 1e-05, %v985_v6 }
 0x7e0   : > { %v989_v9 = vmul.f32 %v1271_v7, %v986_v4  ;;  %vm995_vm2 = vweird.f32 %v1271_v7 }
 0x7e1   : > { %1272 = vrsqrt.f32 %v987_v8  ;;  %vm996_vm4 = vmor %vm994_vm3, %vm995_vm2  ;;  %vm1004_vm6 = vweird.f32 %v987_v8 }
 0x7e2   : > { %v990_v11 = vmul.f32 %v1271_v7, %v989_v9 }
 0x7e4   : > { %v991_v12 = vmul.f32 0.5, %v990_v11 }
 0x7e6   : > { %v992_v13 = vsub.f32 1.5, %v991_v12 }
 0x7e7   : > { %v1273_v15 = vpop.eup %1272 }
 0x7e8   : > { %v993_v16 = vmul.f32 %v1271_v7, %v992_v13  ;;  %v999_v17 = vmul.f32 %v1273_v15, %v987_v8  ;;  %vm1005_vm5 = vweird.f32 %v1273_v15 }
 0x7e9   : > { %vm1006_vm7 = vmor %vm1004_vm6, %vm1005_vm5 }
 0x7ea   : > { %v1000_v18 = vmul.f32 %v1273_v15, %v999_v17  ;;  %v997_v20 = vsel %vm996_vm4, %v1271_v7, %v993_v16 }
 0x7eb   : > { %v1008_v22 = vmul.f32 %v997_v20, %v974_v0  ;;  %v523_v0 = vld [vmem:[%s1632_s12 + $0x18] sm:$0xff]  ;;  %v1231_v20 = vld [vmem:[%s1633_s13] ss:$0 sm:$0xff] }
 0x7ec   : > { %v1001_v21 = vmul.f32 0.5, %v1000_v18  ;;  %v1063_v52 = vpack.c.bf16 %v523_v0, %v522_v51 }
 0x7ed   : > { %v1013_v26 = vmul.f32 %v1228_v10, %v1008_v22 }
 0x7ee   : > { %v1002_v19 = vsub.f32 1.5, %v1001_v21  ;;  %1076 = vmatpush.bf16.msrb.mxu3 %v1063_v52 }
 0x7ef   : > { %v1018_v28 = vadd.f32 %v1229_v25, %v1013_v26 }
 0x7f0   : > { %v1003_v23 = vmul.f32 %v1273_v15, %v1002_v19 }
 0x7f2   : > { %v1007_v24 = vsel %vm1006_vm7, %v1273_v15, %v1003_v23  ;;  %1077 = vmatpush.bf16.msrb.mxu3 %v1062_v55 }
 0x7f3   : > { %v1009_v14 = vmul.f32 %v1007_v24, %v975_v2  ;;  %v1230_v2 = vld [vmem:[%s1631_s11] ss:$0 sm:$0xff] }
 0x7f5   : > { %v1014_v27 = vmul.f32 %v1228_v10, %v1009_v14 }
 0x7f7   : > { %v1019_v29 = vadd.f32 %v1229_v25, %v1014_v27 }
 0x7f9   : > { %v1020_v30 = vpack.c.bf16 %v1019_v29, %v1018_v28 }
 0x7fb   : > { %1179 = vmatmul.msk.bf16.vlgmr.msra.gmra.mxu1 %vm537_vm0, %v1020_v30  ;;  %vm1093_vm0 = vcmask 257024  }
 0x878   : > { %v1038_v56 = vpop.f32.mrf.mxu1 }
 0x879   : > { %v1039_v57 = vadd.f32 %v1230_v2, %v1038_v56 }
 0x87b   : > { %v1045_v58 = vmul.f32 0.044715, %v1039_v57  ;;  %v1043_v12 = vmul.f32 0.5, %v1039_v57 }
 0x87d   : > { %v1047_v59 = vmul.f32 %v1045_v58, %v1039_v57 }
 0x87f   : > { %v1049_v60 = vmul.f32 %v1047_v59, %v1039_v57 }
 0x880   : > { %v1040_v61 = vpop.f32.mrf.mxu1 }
 0x881   : > { %v1041_v62 = vadd.f32 %v1230_v2, %v1040_v61  ;;  %v1051_v63 = vadd.f32 %v1049_v60, %v1039_v57 }
 0x883   : > { %v1046_v1 = vmul.f32 0.044715, %v1041_v62  ;;  %v1053_v4 = vmul.f32 0.7978846, %v1051_v63  ;;  %v1044_v13 = vmul.f32 0.5, %v1041_v62 }
 0x885   : > { %v1048_v3 = vmul.f32 %v1046_v1, %v1041_v62  ;;  %1274 = vtanh.f32 %v1053_v4 }
 0x887   : > { %v1050_v5 = vmul.f32 %v1048_v3, %v1041_v62 }
 0x889   : > { %v1052_v6 = vadd.f32 %v1050_v5, %v1041_v62 }
 0x88b   : > { %v1054_v7 = vmul.f32 0.7978846, %v1052_v6  ;;  %v1275_v8 = vpop.eup %1274 }
 0x88c   : > { %v1057_v9 = vadd.f32 1.0, %v1275_v8 }
 0x88d   : > { %1276 = vtanh.f32 %v1054_v7 }
 0x88e   : > { %v1059_v16 = vmul.f32 %v1057_v9, %v1043_v12 }
 0x893   : > { %v1277_v11 = vpop.eup %1276 }
 0x894   : > { %v1058_v15 = vadd.f32 1.0, %v1277_v11 }
 0x896   : > { %v1060_v17 = vmul.f32 %v1058_v15, %v1044_v13 }
 0x898   : > { %v1061_v18 = vpack.c.bf16 %v1060_v17, %v1059_v16 }
 0x89a   : > { %1078 = vmatmul.bf16.vlgmr.msrb.gmra.mxu3 %v1061_v18 }
 0x91d   : > { %v1079_v21 = vpop.f32.mrf.mxu3 }
 0x91e   : > { %v1084_v19 = vadd.f32 %v1079_v21, %v1521_v43 }
 0x920   : > { %v1089_v10 = vadd.f32 %v1231_v20, %v1084_v19 }
 0x922   : > { %v1091_v22 = vpack.c.bf16 %v1089_v10, %v1089_v10 }
 0x924   : > { %1094 = vst.msk [vmem:[%s481_s27] sm:$0xf] %vm1093_vm0, %v1091_v22 }
 0x925   : > { %v1081_v23 = vpop.f32.mrf.mxu3 }
 0x926   : > { %v1085_v24 = vadd.f32 %v1081_v23, %v1526_v46 }
 0x928   : > { %v1090_v25 = vadd.f32 %v1231_v20, %v1085_v24 }
 0x92a   : > { %v1092_v26 = vpack.c.bf16 %v1090_v25, %v1090_v25 }
 0x92c   : > { %1095 = vst.msk [vmem:[%s481_s27 + $0x4] sm:$0xf] %vm1093_vm0, %v1092_v26 }
 0x92d PF: > { %s24_s29 = sadd.s32 1, %s1284_s29  }
 0x92e   : > { %p21_p4 = scmp.ge.s32.totalorder %s24_s29, 4  }
 0x930   :  { %23 = sbr.rel (!%p21_p4) target bundleno = 1 (0x1), region = 109 }

// kernel: gpt3_pretrain_forward.8
= control target key start
LH: loop header
LB: loop body
LE: loop exit
PB: predicated region body
PF: predicated region fallthrough
CT: control target
= control target key end

     0   :  { %s2648_s0 = inlined_call_operand.vmem [shape: f32[1,8,32], index: 0, kind: input, shape index: {}]   ;;  %s2649_s1 = inlined_call_operand.vmem [shape: bf16[2,5,32], index: 1, kind: input, shape index: {}]   ;;  %s2650_s2 = inlined_call_operand.vmem [shape: f32[1,32], index: 2, kind: input, shape index: {}]   ;;  %s2651_s3 = inlined_call_operand.vmem [shape: f32[1,32], index: 3, kind: input, shape index: {}]   ;;  %s2652_s4 = inlined_call_operand.vmem [shape: f32[1,32], index: 4, kind: input, shape index: {}]   ;;  %s2653_s5 = inlined_call_operand.vmem [shape: f32[1,32], index: 5, kind: input, shape index: {}]   ;;  %s2654_s6 = inlined_call_operand.vmem [shape: f32[1,32], index: 6, kind: input, shape index: {}]   ;;  %s2655_s7 = inlined_call_operand.hbm [shape: f32[1,32], index: 7, kind: input, shape index: {}]   ;;  %s2656_s8 = inlined_call_operand.vmem [shape: f32[32,32], index: 8, kind: input, shape index: {}]   ;;  %s2657_s9 = inlined_call_operand.hbm [shape: f32[1,32], index: 9, kind: input, shape index: {}]   ;;  %s2658_s10 = inlined_call_operand.vmem [shape: f32[32,32], index: 10, kind: input, shape index: {}]   ;;  %s2659_s11 = inlined_call_operand.hbm [shape: f32[1,32], index: 11, kind: input, shape index: {}]   ;;  %s2660_s12 = inlined_call_operand.vmem [shape: f32[32,32], index: 12, kind: input, shape index: {}]   ;;  %s2661_s13 = inlined_call_operand.hbm [shape: f32[1,32], index: 13, kind: input, shape index: {}]   ;;  %s2662_s14 = inlined_call_operand.vmem [shape: f32[32,32], index: 14, kind: input, shape index: {}]   ;;  %s2663_s15 = inlined_call_operand.hbm [shape: f32[1,32], index: 15, kind: input, shape index: {}]   ;;  %s2664_s16 = inlined_call_operand.hbm [shape: f32[1,32], index: 16, kind: input, shape index: {}]   ;;  %s2665_s17 = inlined_call_operand.hbm [shape: f32[1,32], index: 17, kind: input, shape index: {}]   ;;  %s2666_s18 = inlined_call_operand.vmem [shape: f32[32,128], index: 18, kind: input, shape index: {}]   ;;  %s2667_s19 = inlined_call_operand.hbm [shape: f32[1,128], index: 19, kind: input, shape index: {}]   ;;  %s2668_s20 = inlined_call_operand.vmem [shape: f32[128,32], index: 20, kind: input, shape index: {}]   ;;  %s2669_s21 = inlined_call_operand.hbm [shape: f32[1,32], index: 21, kind: input, shape index: {}]   ;;  %s2670_s22 = inlined_call_operand.vmem [shape: f32[32,32], index: 22, kind: input, shape index: {}]   ;;  %s2671_s23 = inlined_call_operand.hbm [shape: f32[1,32], index: 23, kind: input, shape index: {}]   ;;  %s2672_s24 = inlined_call_operand.vmem [shape: f32[2,8,32], index: 24, kind: output, shape index: {}]  }
   0x1   :  { %2675 = sst [smem:[#allocation25_spill]] %s2648_s0 }
   0x2   :  { %2676 = sst [smem:[#allocation26_spill]] %s2649_s1 }
   0x3   :  { %2677 = sst [smem:[#allocation27_spill]] %s2650_s2 }
   0x4   :  { %2678 = sst [smem:[#allocation28_spill]] %s2651_s3 }
   0x5   :  { %2679 = sst [smem:[#allocation29_spill]] %s2652_s4 }
   0x6   :  { %2680 = sst [smem:[#allocation30_spill]] %s2653_s5 }
   0x7   :  { %2681 = sst [smem:[#allocation31_spill]] %s2654_s6 }
   0x8   :  { %2682 = sst [smem:[#allocation32_spill]] %s2655_s7 }
   0x9   :  { %2683 = sst [smem:[#allocation33_spill]] %s2656_s8 }
   0xa   :  { %2684 = sst [smem:[#allocation34_spill]] %s2657_s9 }
   0xb   :  { %2685 = sst [smem:[#allocation35_spill]] %s2661_s13 }
   0xc   :  { %2686 = sst [smem:[#allocation36_spill]] %s2664_s16 }
   0xd   :  { %29 = vsyncpa [#allocation3], 0 }
   0xe   :  { %30 = vsyncpa [#allocation5], 0 }
   0xf   :  { %31 = vsyncpa [#allocation8], 0 }
  0x10   :  { %32 = vsyncpa [#allocation11], 0 }
  0x11   :  { %33 = vsyncpa [#allocation14], 0 }
  0x12   :  { %34 = vsyncpa [#allocation17], 0  ;;  %s2314_s5 = smov 0  }
  0x13 LB: > { %2687 = sst [smem:[#allocation24_spill]] %s2169_s5  ;;  %s2323_s6 = sadd.s32 4294967295, %s2169_s5   ;;  %s2169_s5 = sphi %s2314_s5, %s40_s5  }
  0x14   : > { %s2688_s9 = sld [smem:[#allocation34_spill]]  ;;  %p1638_p0 = scmp.ge.s32.totalorder %s2169_s5, 1 }
  0x15   : > { %p580_p1 = scmp.lt.s32.totalorder %s2169_s5, 3  ;;  %p1750_p2 = scmp.eq.s32.totalorder %s2323_s6, 0 }
  0x16   : > { %s2171_s29 = smov [#allocation4]   ;;  %s2690_s13 = sld [smem:[#allocation35_spill]] }
  0x17   : > { %p2328_p3 = pnand %p1638_p0, %p580_p1  ;;  %s627_s0 = sshll.u32 %s2171_s29, 4  ;;  %s628_s0 = int_to_ptr.vmem [resolvable:$true] %s627_s0 }
  0x18   : > { %s2691_s16 = sld [smem:[#allocation36_spill]]  ;;  %s2172_s26 = smov [#allocation7]  }
  0x19   : > { %p1719_p4 = pneg %p2328_p3  ;;  %s657_s27 = sshll.u32 %s2172_s26, 4  ;;  %s658_s27 = int_to_ptr.vmem [resolvable:$true] %s657_s27 }
  0x1a   : > { %s625_s28 = sshll.u32 %s2688_s9, 4  ;;  %s2173_s29 = smov [#allocation10]   ;;  %s626_s28 = int_to_ptr.hbm [resolvable:$true] %s625_s28 }
  0x1b   : > { %p2342_p5 = pnand %p1750_p2, %p1719_p4  ;;  %s684_s7 = sshll.u32 %s2173_s29, 4  ;;  %s685_s7 = int_to_ptr.vmem [resolvable:$true] %s684_s7 }
  0x1c   : > { %s655_s3 = sshll.u32 %s2690_s13, 4  ;;  %s709_s8 = sshll.u32 %s2667_s19, 4  ;;  %s656_s3 = int_to_ptr.hbm [resolvable:$true] %s655_s3  ;;  %s710_s8 = int_to_ptr.hbm [resolvable:$true] %s709_s8 }
  0x1d   : > { %1725 = dma.hbm_to_vmem [thread:$0]  (!%p2342_p5), %s626_s28, 16, %s628_s0, [#allocation5]  }
  0x1e   : > { %s682_s4 = sshll.u32 %s2691_s16, 4  ;;  %s2693_s13 = sld [smem:[#allocation32_spill]]  ;;  %s683_s4 = int_to_ptr.hbm [resolvable:$true] %s682_s4 }
  0x1f   : > { %1731 = dma.hbm_to_vmem [thread:$0]  (!%p2342_p5), %s656_s3, 16, %s658_s27, [#allocation8]  }
  0x20   : > { %1737 = dma.hbm_to_vmem [thread:$0]  (!%p2342_p5), %s683_s4, 16, %s685_s7, [#allocation11]  }
  0x21   : > { %s2174_s5 = smov [#allocation13]   ;;  %s2175_s0 = smov [#allocation2]  }
  0x22   : > { %s711_s28 = sshll.u32 %s2174_s5, 4  ;;  %s612_s3 = sshll.u32 %s2175_s0, 4  ;;  %s712_s28 = int_to_ptr.vmem [resolvable:$true] %s711_s28  ;;  %s613_s3 = int_to_ptr.vmem [resolvable:$true] %s612_s3 }
  0x23   : > { %1743 = dma.hbm_to_vmem [thread:$0]  (!%p2342_p5), %s710_s8, 16, %s712_s28, [#allocation14]  }
  0x24   : > { %s610_s16 = sshll.u32 %s2693_s13, 4  ;;  %s640_s30 = sshll.u32 %s2659_s11, 4  ;;  %s611_s16 = int_to_ptr.hbm [resolvable:$true] %s610_s16  ;;  %s641_s30 = int_to_ptr.hbm [resolvable:$true] %s640_s30 }
  0x25   : > { %1722 = dma.hbm_to_vmem [thread:$0]  (!%p2342_p5), %s611_s16, 16, %s613_s3, [#allocation3]  }
  0x26   : > { %s670_s4 = sshll.u32 %s2663_s15, 4  ;;  %s2176_s5 = smov [#allocation6]   ;;  %s671_s4 = int_to_ptr.hbm [resolvable:$true] %s670_s4 }
  0x27   : > { %s642_s7 = sshll.u32 %s2176_s5, 4  ;;  %s2177_s25 = smov [#allocation9]   ;;  %s643_s7 = int_to_ptr.vmem [resolvable:$true] %s642_s7 }
  0x28   : > { %1728 = dma.hbm_to_vmem [thread:$0]  (!%p2342_p5), %s641_s30, 16, %s643_s7, [#allocation5]  }
  0x29   : > { %s672_s8 = sshll.u32 %s2177_s25, 4  ;;  %s694_s0 = sshll.u32 %s2665_s17, 4  ;;  %s673_s8 = int_to_ptr.vmem [resolvable:$true] %s672_s8  ;;  %s695_s0 = int_to_ptr.hbm [resolvable:$true] %s694_s0 }
  0x2a   : > { %1734 = dma.hbm_to_vmem [thread:$0]  (!%p2342_p5), %s671_s4, 16, %s673_s8, [#allocation8]  }
  0x2b   : > { %s724_s27 = sshll.u32 %s2669_s21, 4  ;;  %s2178_s29 = smov [#allocation12]   ;;  %s725_s27 = int_to_ptr.hbm [resolvable:$true] %s724_s27 }
  0x2c   : > { %s696_s9 = sshll.u32 %s2178_s29, 4  ;;  %s2179_s30 = smov [#allocation15]   ;;  %s697_s9 = int_to_ptr.vmem [resolvable:$true] %s696_s9 }
  0x2d   : > { %1740 = dma.hbm_to_vmem [thread:$0]  (!%p2342_p5), %s695_s0, 16, %s697_s9, [#allocation11]  }
  0x2e   : > { %s726_s13 = sshll.u32 %s2179_s30, 4  ;;  %s739_s25 = sshll.u32 %s2671_s23, 4  ;;  %s727_s13 = int_to_ptr.vmem [resolvable:$true] %s726_s13  ;;  %s740_s25 = int_to_ptr.hbm [resolvable:$true] %s739_s25 }
  0x2f   : > { %1746 = dma.hbm_to_vmem [thread:$0]  (!%p2342_p5), %s725_s27, 16, %s727_s13, [#allocation14]  }
  0x30   : > { %s2180_s4 = smov [#allocation16]   ;;  %761 = sbr.rel (%p2328_p3) target bundleno = 2355 (0x933), region = 116 }
  0x31   : > { %s741_s8 = sshll.u32 %s2180_s4, 4  ;;  %s742_s8 = int_to_ptr.vmem [resolvable:$true] %s741_s8 }
  0x32   : > { %1749 = dma.hbm_to_vmem [thread:$0]  (!%p2342_p5), %s740_s25, 16, %s742_s8, [#allocation17]  }
  0x35   : > { %2144 = dma.done.wait (%p1750_p2), [#allocation3], 16  }
  0x36   : > { %2146 = vsyncadd (%p1750_p2), [#allocation3], 4294967280 }
  0x37   : > { %2148 = dma.done.wait (%p1750_p2), [#allocation5], 32  }
  0x38   : > { %2150 = vsyncadd (%p1750_p2), [#allocation5], 4294967264 }
  0x39   : > { %2152 = dma.done.wait (%p1750_p2), [#allocation8], 32  }
  0x3a   : > { %2154 = vsyncadd (%p1750_p2), [#allocation8], 4294967264 }
  0x3b   : > { %2156 = dma.done.wait (%p1750_p2), [#allocation11], 32  }
  0x3c   : > { %2158 = vsyncadd (%p1750_p2), [#allocation11], 4294967264 }
  0x3d   : > { %2160 = dma.done.wait (%p1750_p2), [#allocation14], 32  }
  0x3e   : > { %2162 = vsyncadd (%p1750_p2), [#allocation14], 4294967264 }
  0x3f   : > { %2164 = dma.done.wait (%p1750_p2), [#allocation17], 16  }
  0x40   : > { %2166 = vsyncadd (%p1750_p2), [#allocation17], 4294967280  ;;  %p871_p6 = scmp.lt.s32.totalorder %s2323_s6, 1  ;;  %s2694_s28 = sld [smem:[#allocation26_spill]]  ;;  %vm885_vm0 = vcmask 258048   ;;  %v2181_v3 = vmov 32.0  }
  0x41   : > { %1811 = vrcp.f32 %v2181_v3  ;;  %s2695_s27 = sld [smem:[#allocation27_spill]]  ;;  %vm925_vm5 = vcmask 261120   ;;  %v1017_v43 = vld [vmem:[%s2658_s10 + $0x10] sm:$0xff]  ;;  %v1018_v44 = vld [vmem:[%s2658_s10 + $0x18] sm:$0xff]  ;;  %v1015_v49 = vld [vmem:[%s2658_s10] sm:$0xff]  ;;  %vm1105_vm12 = vcmask 1041408  }
  0x42   : > { %s2704_s6 = smov (!%p871_p6, %s2323_s6), 1  ;;  %s2696_s30 = sld [smem:[#allocation28_spill]]  ;;  %v1044_v45 = vld [vmem:[%s2660_s12 + $0x10] sm:$0xff]  ;;  %v1021_v46 = vpack.c.bf16 %v1018_v44, %v1017_v43  ;;  %v1045_v47 = vld [vmem:[%s2660_s12 + $0x18] sm:$0xff]  ;;  %v1016_v50 = vld [vmem:[%s2658_s10 + $0x8] sm:$0xff]  ;;  %vm1106_vm13 = vcmask 1042432  }
  0x43   : > { %s1661_s2 = sshll.u32 %s2704_s6, 2  ;;  %s2697_s7 = sld [smem:[#allocation25_spill]]  ;;  %v1047_v48 = vpack.c.bf16 %v1045_v47, %v1044_v45  ;;  %v1042_v51 = vld [vmem:[%s2660_s12] sm:$0xff]  ;;  %v1020_v52 = vpack.c.bf16 %v1016_v50, %v1015_v49  ;;  %v1043_v53 = vld [vmem:[%s2660_s12 + $0x8] sm:$0xff]  ;;  %vm1067_vm14 = vcmask 64512   ;;  %vm1088_vm15 = vcmask 39936  }
  0x44   : > { %1035 = vmatpush.bf16.msra.mxu3 %v1021_v46  ;;  %v1046_v54 = vpack.c.bf16 %v1043_v53, %v1042_v51  ;;  %s2698_s4 = sld [smem:[#allocation33_spill]]  ;;  %s2183_s25 = smov 120  }
  0x45   : > { %1058 = vmatpush.bf16.msra.mxu2 %v1047_v48  ;;  %s2184_s8 = smov 112   ;;  %s2186_s1 = smov 8  }
  0x46   : > { %s874_s0 = scalar_lea.vmem %s2694_s28, %s1661_s2  ;;  %s2185_s2 = smov 104  }
  0x47   : > { %v881_v0 = vld [vmem:[%s874_s0] sm:$0x7]  ;;  %v1812_v4 = vpop.eup %1811  ;;  %s2187_s26 = smov 24   ;;  %s2188_s28 = smov 16  }
  0x48   : > { %v882_v1 = vunpack.c.l.bf16 %v881_v0  ;;  %v890_v5 = vmul.f32 32.0, %v1812_v4  ;;  %vm894_vm1 = vweird.f32 %v1812_v4  ;;  %v1796_v24 = vld [vmem:[%s2695_s27] ss:$0 sm:$0xff]  ;;  %1036 = vmatpush.bf16.msra.mxu3 %v1020_v52  ;;  %s2699_s27 = sld [smem:[#allocation31_spill]]  ;;  %s1662_s5 = sshll.u32 %s2704_s6, 3 }
  0x49   : > { %v1797_v27 = vld [vmem:[%s2696_s30] ss:$0 sm:$0xff]  ;;  %1059 = vmatpush.bf16.msra.mxu2 %v1046_v54  ;;  %s2700_s30 = sld [smem:[#allocation29_spill]] }
  0x4a   : > { %v886_v2 = vsel %vm885_vm0, %v882_v1, 0.0  ;;  %v891_v6 = vsub.f32 1.0, %v890_v5  ;;  %v2437_v31 = vld [vmem:[%s2697_s7] sm:$0xff]  ;;  %v990_v55 = vld [vmem:[%s2698_s4 + $0x10] sm:$0xff]  ;;  %v991_v56 = vld [vmem:[%s2698_s4 + $0x18] sm:$0xff]  ;;  %s2701_s7 = sld [smem:[#allocation30_spill]] }
  0x4b   : > { %887 = vadd.xlane.f32.xlu0 %v886_v2  ;;  %v926_v32 = vsel %vm925_vm5, %v2437_v31, 0.0  ;;  %v994_v57 = vpack.c.bf16 %v991_v56, %v990_v55  ;;  %v988_v58 = vld [vmem:[%s2698_s4] sm:$0xff]  ;;  %v989_v59 = vld [vmem:[%s2698_s4 + $0x8] sm:$0xff] }
  0x4c   : > { %v892_v7 = vmul.f32 %v1812_v4, %v891_v6  ;;  %v993_v61 = vpack.c.bf16 %v989_v59, %v988_v58 }
  0x4d   : > { %1008 = vmatpush.bf16.msra.mxu0 %v994_v57 }
  0x4e   : > { %v893_v8 = vadd.f32 %v1812_v4, %v892_v7 }
  0x50   : > { %v2422_v9 = vsel %vm894_vm1, %v1812_v4, %v893_v8  ;;  %vm1314_vm1 = vcmask 195584  }
  0x51   : > { %1009 = vmatpush.bf16.msra.mxu0 %v993_v61 }
  0xbe   : > { %v888_v10 = vpop.xlane.xlu0 %887 }
  0xbf   : > { %v896_v11 = vmul.f32 %v2422_v9, %v888_v10 }
  0xc1   : > { %v897_v12 = vsub.f32 %v882_v1, %v896_v11 }
  0xc3   : > { %v898_v13 = vmul.f32 %v897_v12, %v897_v12 }
  0xc5   : > { %v899_v14 = vsel %vm885_vm0, %v898_v13, 0.0 }
  0xc6   : > { %900 = vadd.xlane.f32.xlu0 %v899_v14 }
 0x139   : > { %v901_v15 = vpop.xlane.xlu0 %900 }
 0x13a   : > { %v902_v16 = vmul.f32 %v901_v15, %v2422_v9 }
 0x13c   : > { %v903_v17 = vadd.f32 1e-06, %v902_v16  ;;  %v1799_v16 = vld [vmem:[#allocation2] ss:$0 sm:$0xff] }
 0x13e   : > { %1813 = vrsqrt.f32 %v903_v17  ;;  %vm910_vm3 = vweird.f32 %v903_v17 }
 0x144   : > { %v1814_v18 = vpop.eup %1813 }
 0x145   : > { %v905_v19 = vmul.f32 %v1814_v18, %v903_v17  ;;  %vm911_vm2 = vweird.f32 %v1814_v18 }
 0x146   : > { %vm912_vm4 = vmor %vm910_vm3, %vm911_vm2 }
 0x147   : > { %v906_v20 = vmul.f32 %v1814_v18, %v905_v19 }
 0x149   : > { %v907_v21 = vmul.f32 0.5, %v906_v20 }
 0x14b   : > { %v908_v22 = vsub.f32 1.5, %v907_v21 }
 0x14d   : > { %v909_v23 = vmul.f32 %v1814_v18, %v908_v22 }
 0x14f   : > { %v913_v25 = vsel %vm912_vm4, %v1814_v18, %v909_v23  ;;  %v1800_v23 = vld [vmem:[%s2700_s30] ss:$0 sm:$0xff] }
 0x150   : > { %v914_v26 = vmul.f32 %v913_v25, %v897_v12  ;;  %v1798_v12 = vld [vmem:[%s2699_s27] ss:$0 sm:$0xff] }
 0x152   : > { %v918_v28 = vmul.f32 %v1796_v24, %v914_v26  ;;  %v1801_v26 = vld [vmem:[%s2701_s7] ss:$0 sm:$0xff] }
 0x154   : > { %v922_v29 = vadd.f32 %v1797_v27, %v918_v28 }
 0x156   : > { %v958_v30 = vsel %vm885_vm0, %v922_v29, 0.0 }
 0x157   : > { %959 = vadd.xlane.f32.xlu1 %v958_v30  ;;  %v1802_v30 = vld [vmem:[#allocation6] ss:$0 sm:$0xff] }
 0x15f   : > { %927 = vadd.xlane.f32.xlu1 %v926_v32  ;;  %v1803_v32 = vld [vmem:[#allocation7] ss:$0 sm:$0xff] }
 0x1ca   : > { %v960_v33 = vpop.xlane.xlu1 %959 }
 0x1cb   : > { %v961_v34 = vmul.f32 %v960_v33, %v2422_v9  ;;  %v1804_v33 = vld [vmem:[#allocation4] ss:$0 sm:$0xff] }
 0x1cd   : > { %v962_v35 = vsub.f32 %v922_v29, %v961_v34  ;;  %v2182_v34 = vmov 65535  }
 0x1cf   : > { %v963_v36 = vmul.f32 %v962_v35, %v962_v35 }
 0x1d1   : > { %v964_v37 = vsel %vm885_vm0, %v963_v36, 0.0  ;;  %vm1312_vm0 = vcmask 130048  }
 0x1d2   : > { %965 = vadd.xlane.f32.xlu2 %v964_v37  ;;  %v928_v38 = vpop.xlane.xlu1 %927 }
 0x1d3   : > { %v929_v39 = vmul.f32 %v928_v38, %v2422_v9 }
 0x1d5   : > { %v2445_v40 = vsub.f32 %v2437_v31, %v929_v39 }
 0x1d7   : > { %v931_v41 = vmul.f32 %v2445_v40, %v2445_v40 }
 0x1d9   : > { %v932_v42 = vsel %vm925_vm5, %v931_v41, 0.0 }
 0x1da   : > { %933 = vadd.xlane.f32.xlu2 %v932_v42 }
 0x245   : > { %v966_v60 = vpop.xlane.xlu2 %965 }
 0x246   : > { %v967_v62 = vmul.f32 %v966_v60, %v2422_v9 }
 0x248   : > { %v968_v63 = vadd.f32 1e-06, %v967_v62 }
 0x24a   : > { %1815 = vrsqrt.f32 %v968_v63  ;;  %vm975_vm7 = vweird.f32 %v968_v63 }
 0x24d   : > { %v934_v0 = vpop.xlane.xlu2 %933 }
 0x24e   : > { %v935_v1 = vmul.f32 %v934_v0, %v2422_v9 }
 0x250   : > { %v1816_v2 = vpop.eup %1815  ;;  %v936_v3 = vadd.f32 1e-06, %v935_v1 }
 0x251   : > { %v970_v4 = vmul.f32 %v1816_v2, %v968_v63  ;;  %vm976_vm6 = vweird.f32 %v1816_v2 }
 0x252   : > { %1817 = vrsqrt.f32 %v936_v3  ;;  %vm977_vm8 = vmor %vm975_vm7, %vm976_vm6  ;;  %vm943_vm9 = vweird.f32 %v936_v3 }
 0x253   : > { %v971_v5 = vmul.f32 %v1816_v2, %v970_v4 }
 0x255   : > { %v972_v6 = vmul.f32 0.5, %v971_v5 }
 0x257   : > { %v973_v7 = vsub.f32 1.5, %v972_v6 }
 0x258   : > { %v1818_v8 = vpop.eup %1817 }
 0x259   : > { %v974_v10 = vmul.f32 %v1816_v2, %v973_v7  ;;  %v938_v11 = vmul.f32 %v1818_v8, %v936_v3  ;;  %vm944_vm10 = vweird.f32 %v1818_v8 }
 0x25a   : > { %vm945_vm11 = vmor %vm943_vm9, %vm944_vm10 }
 0x25b   : > { %v978_v13 = vsel %vm977_vm8, %v1816_v2, %v974_v10  ;;  %v939_v14 = vmul.f32 %v1818_v8, %v938_v11 }
 0x25c   : > { %v979_v15 = vmul.f32 %v978_v13, %v962_v35  ;;  %v1107_v35 = vsel %vm1105_vm12, 4294967295, %v2182_v34 }
 0x25d   : > { %v940_v17 = vmul.f32 0.5, %v939_v14  ;;  %v2501_v41 = vsel %vm1106_vm13, %v1107_v35, 0 }
 0x25e   : > { %v983_v18 = vmul.f32 %v1798_v12, %v979_v15 }
 0x25f   : > { %v941_v19 = vsub.f32 1.5, %v940_v17 }
 0x260   : > { %v987_v20 = vadd.f32 %v1799_v16, %v983_v18 }
 0x261   : > { %v942_v21 = vmul.f32 %v1818_v8, %v941_v19 }
 0x262   : > { %v1019_v22 = vpack.c.bf16 %v987_v20, %v987_v20 }
 0x263   : > { %v946_v24 = vsel %vm945_vm11, %v1818_v8, %v942_v21 }
 0x264   : > { %1664 = vmatmul.msk.bf16.vlgmr.msra.gmra.mxu3 %vm925_vm5, %v1019_v22  ;;  %1665 = vmatmul.msk.bf16.vlgmr.msra.gmra.mxu2 %vm925_vm5, %v1019_v22  ;;  %v947_v25 = vmul.f32 %v946_v24, %v2445_v40 }
 0x266   : > { %v951_v27 = vmul.f32 %v1800_v23, %v947_v25 }
 0x268   : > { %v955_v28 = vadd.f32 %v1801_v26, %v951_v27 }
 0x26a   : > { %v992_v29 = vpack.c.bf16 %v955_v28, %v955_v28 }
 0x26c   : > { %1663 = vmatmul.msk.bf16.vlgmr.msra.gmra.mxu0 %vm925_vm5, %v992_v29 }
 0x2e7   : > { %v1038_v36 = vpop.f32.mrf.mxu3  ;;  %v1061_v37 = vpop.f32.mrf.mxu2 }
 0x2e8   : > { %v1039_v38 = vadd.f32 %v1802_v30, %v1038_v36  ;;  %v1062_v39 = vadd.f32 %v1803_v32, %v1061_v37 }
 0x2e9   : > { %v1011_v40 = vpop.f32.mrf.mxu0 }
 0x2ea   : > { %v1066_v42 = vpack.c.bf16 %v1039_v38, %v1039_v38  ;;  %v2503_v43 = vpack.c.bf16 %v1062_v39, %v1062_v39  ;;  %v1012_v44 = vadd.f32 %v1804_v33, %v1011_v40 }
 0x2ec   : > { %v1065_v45 = vpack.c.bf16 %v1012_v44, %v1012_v44  ;;  %1129 = vrot.lane.b32.xlu0 %v1066_v42, %s2183_s25  ;;  %1187 = vrot.lane.b32.xlu2 %v1066_v42, %s2184_s8  ;;  %v1072_v46 = vsel %vm1067_vm14, %v1066_v42, 0  ;;  %v1110_v47 = vand.u32 %v2501_v41, %v2503_v43 }
 0x2ed   : > { %1081 = vmatpush.bf16.xpose.msrb.mxu3 %v1072_v46 }
 0x2ee   : > { %1119 = vmatpush.bf16.msrb.mxu0 %v1110_v47  ;;  %1126 = vrot.lane.b32.xlu1 %v1065_v45, %s2183_s25 }
 0x2ef   : > { %v1040_v48 = vpop.f32.mrf.mxu3  ;;  %v1063_v49 = vpop.f32.mrf.mxu2 }
 0x2f1   : > { %v1013_v50 = vpop.f32.mrf.mxu0 }
 0x2f4   : > { %1244 = vrot.lane.b32.xlu0 %v1066_v42, %s2185_s2  ;;  %1185 = vrot.lane.b32.xlu2 %v1065_v45, %s2184_s8 }
 0x2f5   : > { %1666 = vmatmul.msk.bf16.vlgmr.msrb.gmra.mxu3 %vm1067_vm14, %v1065_v45 }
 0x2f6   : > { %1242 = vrot.lane.b32.xlu1 %v1065_v45, %s2185_s2 }
 0x346   : > { %v1188_v51 = vpop.permute.xlu2 %1187 }
 0x347   : > { %v1193_v52 = vsel %vm1067_vm14, %v1188_v51, 0 }
 0x348   : > { %1202 = vmatpush.bf16.xpose.msra.mxu3 %v1193_v52 }
 0x34e   : > { %v1186_v53 = vpop.permute.xlu2 %1185 }
 0x34f   : > { %1670 = vmatmul.msk.bf16.vlgmr.msra.gmra.mxu3 %vm1067_vm14, %v1186_v53 }
 0x35e   : > { %v1130_v54 = vpop.permute.xlu0 %1129 }
 0x35f   : > { %v1135_v55 = vsel %vm1067_vm14, %v1130_v54, 0 }
 0x360   : > { %1144 = vmatpush.bf16.xpose.msra.mxu1 %v1135_v55  ;;  %v1127_v56 = vpop.permute.xlu1 %1126 }
 0x366   : > { %v1245_v57 = vpop.permute.xlu0 %1244 }
 0x367   : > { %1668 = vmatmul.msk.bf16.vlgmr.msra.gmra.mxu1 %vm1067_vm14, %v1127_v56  ;;  %v1250_v58 = vsel %vm1067_vm14, %v1245_v57, 0 }
 0x368   : > { %1259 = vmatpush.bf16.xpose.msrb.mxu1 %v1250_v58  ;;  %v1243_v59 = vpop.permute.xlu1 %1242 }
 0x377   : > { %1672 = vmatmul.msk.bf16.vlgmr.msrb.gmra.mxu1 %vm1067_vm14, %v1243_v59 }
 0x378   : > { %v1083_v60 = vpop.f32.mrf.mxu3 }
 0x379   : > { %v1087_v61 = vmul.f32 0.35355338, %v1083_v60 }
 0x37b   : > { %v1089_v62 = vsel %vm1088_vm15, %v1087_v61, -inf }
 0x37c   : > { %1090 = vmax.xlane.f32.xlu2 %v1089_v62 }
 0x380   : > { %v1085_v63 = vpop.f32.mrf.mxu3 }
 0x3d2   : > { %v1204_v0 = vpop.f32.mrf.mxu3 }
 0x3d3   : > { %v1208_v5 = vmul.f32 0.35355338, %v1204_v0 }
 0x3d5   : > { %v1209_v8 = vsel %vm1088_vm15, %v1208_v5, -inf }
 0x3da   : > { %v1206_v1 = vpop.f32.mrf.mxu3 }
 0x3db   : > { %v1319_v1 = vld [vmem:[%s2662_s14 + $0x18] sm:$0xff] }
 0x3e4   : > { %v1146_v2 = vpop.f32.mrf.mxu1 }
 0x3e5   : > { %v1150_v3 = vmul.f32 0.35355338, %v1146_v2 }
 0x3e7   : > { %v1151_v4 = vsel %vm1088_vm15, %v1150_v3, -inf }
 0x3e8   : > { %1152 = vmax.xlane.f32.xlu0 %v1151_v4  ;;  %v1317_v4 = vld [vmem:[%s2662_s14 + $0x8] sm:$0xff] }
 0x3ec   : > { %v1148_v6 = vpop.f32.mrf.mxu1 }
 0x3ef   : > { %v1091_v7 = vpop.xlane.xlu2 %1090 }
 0x3f0   : > { %v1092_v10 = vsub.f32 %v1087_v61, %v1091_v7  ;;  %1210 = vmax.xlane.f32.xlu0 %v1209_v8 }
 0x3f2   : > { %v1093_v11 = vmul.f32 1.442695, %v1092_v10 }
 0x3f4   : > { %v1261_v12 = vpop.f32.mrf.mxu1  ;;  %1819 = vpow2.f32 %v1093_v11 }
 0x3f5   : > { %v1265_v13 = vmul.f32 0.35355338, %v1261_v12 }
 0x3f7   : > { %v1266_v14 = vsel %vm1088_vm15, %v1265_v13, -inf }
 0x3f8   : > { %1267 = vmax.xlane.f32.xlu1 %v1266_v14  ;;  %v1805_v14 = vld [vmem:[#allocation9] ss:$0 sm:$0xff] }
 0x3fa   : > { %v1820_v15 = vpop.eup %1819 }
 0x3fb   : > { %v1095_v17 = vsel %vm1088_vm15, %v1820_v15, 0.0 }
 0x3fc   : > { %v1263_v16 = vpop.f32.mrf.mxu1 }
 0x400   : > { %1096 = vadd.xlane.f32.xlu1 %v1095_v17 }
 0x404   : > { %1164 = vrot.lane.b32.xlu0 %v2503_v43, %s2183_s25 }
 0x45b   : > { %v1153_v18 = vpop.xlane.xlu0 %1152 }
 0x45c   : > { %v1154_v19 = vsub.f32 %v1150_v3, %v1153_v18  ;;  %v1316_v3 = vld [vmem:[%s2662_s14] sm:$0xff] }
 0x45e   : > { %v1155_v20 = vmul.f32 1.442695, %v1154_v19 }
 0x460   : > { %1821 = vpow2.f32 %v1155_v20 }
 0x463   : > { %v1211_v21 = vpop.xlane.xlu0 %1210 }
 0x464   : > { %v1212_v22 = vsub.f32 %v1208_v5, %v1211_v21  ;;  %v1321_v5 = vpack.c.bf16 %v1317_v4, %v1316_v3  ;;  %v1413_v3 = vld [vmem:[%s2668_s20] sm:$0xff]  ;;  %v1414_v4 = vld [vmem:[%s2668_s20 + $0x8] sm:$0xff] }
 0x466   : > { %v1822_v23 = vpop.eup %1821  ;;  %v1213_v24 = vmul.f32 1.442695, %v1212_v22 }
 0x467   : > { %v1157_v25 = vsel %vm1088_vm15, %v1822_v23, 0.0 }
 0x468   : > { %1823 = vpow2.f32 %v1213_v24  ;;  %1158 = vadd.xlane.f32.xlu2 %v1157_v25  ;;  %v1380_v25 = vld [vmem:[%s2666_s18 + $0x18] sm:$0xff] }
 0x46b   : > { %v1268_v26 = vpop.xlane.xlu1 %1267 }
 0x46c   : > { %v1269_v27 = vsub.f32 %v1265_v13, %v1268_v26 }
 0x46e   : > { %v1824_v28 = vpop.eup %1823  ;;  %v1270_v29 = vmul.f32 1.442695, %v1269_v27  ;;  %v1377_v27 = vld [vmem:[%s2666_s18] sm:$0xff] }
 0x46f   : > { %v1215_v30 = vsel %vm1088_vm15, %v1824_v28, 0.0 }
 0x470   : > { %1825 = vpow2.f32 %v1270_v29  ;;  %1216 = vadd.xlane.f32.xlu1 %v1215_v30  ;;  %v1427_v30 = vld [vmem:[%s2668_s20 + $0x70] sm:$0xff] }
 0x473   : > { %v1097_v32 = vpop.xlane.xlu1 %1096 }
 0x474   : > { %1827 = vrcp.f32 %v1097_v32  ;;  %v1428_v32 = vld [vmem:[%s2668_s20 + $0x78] sm:$0xff] }
 0x476   : > { %v1826_v33 = vpop.eup %1825  ;;  %v1165_v34 = vpop.permute.xlu0 %1164 }
 0x477   : > { %v1170_v35 = vand.u32 %v1165_v34, %v2501_v41  ;;  %v1272_v36 = vsel %vm1088_vm15, %v1826_v33, 0.0 }
 0x478   : > { %1273 = vadd.xlane.f32.xlu2 %v1272_v36  ;;  %v1426_v36 = vld [vmem:[%s2668_s20 + $0x68] sm:$0xff] }
 0x479   : > { %1179 = vmatpush.bf16.msrb.mxu2 %v1170_v35  ;;  %v1437_v35 = vpack.c.bf16 %v1428_v32, %v1427_v30 }
 0x47a   : > { %v1828_v37 = vpop.eup %1827 }
 0x47b   : > { %v1099_v38 = vmul.f32 %v1828_v37, %v1820_v15  ;;  %1438 = vmatpush.bf16.msra.mxu1 %v1437_v35 }
 0x47d   : > { %v1100_v39 = vpack.c.bf16 %v1099_v38, %v1099_v38 }
 0x47f   : > { %1667 = vmatmul.msk.bf16.vlgmr.msrb.gmra.mxu0 %vm1088_vm15, %v1100_v39 }
 0x489   : > { %1221 = vrot.lane.b32.xlu1 %v2503_v43, %s2184_s8  ;;  %s878_s8 = scalar_lea.vmem %s2672_s24, %s1662_s5 }
 0x490   : > { %1278 = vrot.lane.b32.xlu2 %v2503_v43, %s2185_s2 }
 0x4db   : > { %v1159_v40 = vpop.xlane.xlu2 %1158 }
 0x4dc   : > { %1829 = vrcp.f32 %v1159_v40 }
 0x4e2   : > { %v1830_v42 = vpop.eup %1829 }
 0x4e3   : > { %v1161_v44 = vmul.f32 %v1830_v42, %v1822_v23  ;;  %v1217_v47 = vpop.xlane.xlu1 %1216 }
 0x4e5   : > { %v1162_v45 = vpack.c.bf16 %v1161_v44, %v1161_v44 }
 0x4e7   : > { %1669 = vmatmul.msk.bf16.vlgmr.msrb.gmra.mxu2 %vm1088_vm15, %v1162_v45 }
 0x4eb   : > { %v1274_v46 = vpop.xlane.xlu2 %1273 }
 0x4ec   : > { %1831 = vrcp.f32 %v1274_v46 }
 0x4ed   : > { %1833 = vrcp.f32 %v1217_v47 }
 0x4f2   : > { %v1832_v48 = vpop.eup %1831 }
 0x4f3   : > { %v1276_v49 = vmul.f32 %v1832_v48, %v1826_v33  ;;  %v1279_v50 = vpop.permute.xlu2 %1278  ;;  %v1834_v53 = vpop.eup %1833  ;;  %v1425_v33 = vld [vmem:[%s2668_s20 + $0x60] sm:$0xff]  ;;  %v1806_v48 = vld [vmem:[#allocation10] ss:$0 sm:$0xff] }
 0x4f4   : > { %v1284_v51 = vand.u32 %v1279_v50, %v2501_v41  ;;  %v1219_v43 = vmul.f32 %v1834_v53, %v1824_v28  ;;  %v1378_v28 = vld [vmem:[%s2666_s18 + $0x8] sm:$0xff]  ;;  %v1436_v38 = vpack.c.bf16 %v1426_v36, %v1425_v33 }
 0x4f5   : > { %v1277_v52 = vpack.c.bf16 %v1276_v49, %v1276_v49  ;;  %v1382_v29 = vpack.c.bf16 %v1378_v28, %v1377_v27  ;;  %v1809_v27 = vld [vmem:[#allocation15] ss:$0 sm:$0xff] }
 0x4f6   : > { %1293 = vmatpush.bf16.msra.mxu2 %v1284_v51  ;;  %v1220_v57 = vpack.c.bf16 %v1219_v43, %v1219_v43  ;;  %1439 = vmatpush.bf16.msra.mxu1 %v1436_v38  ;;  %v1807_v51 = vld [vmem:[#allocation12] ss:$0 sm:$0xff]  ;;  %v1423_v43 = vld [vmem:[%s2668_s20 + $0x50] sm:$0xff] }
 0x4f9   : > { %1673 = vmatmul.msk.bf16.vlgmr.msra.gmra.mxu2 %vm1088_vm15, %v1277_v52 }
 0x4fb   : > { %v1222_v54 = vpop.permute.xlu1 %1221 }
 0x4fc   : > { %v1227_v55 = vand.u32 %v1222_v54, %v2501_v41  ;;  %v1121_v56 = vpop.f32.mrf.mxu0  ;;  %v1318_v41 = vld [vmem:[%s2662_s14 + $0x10] sm:$0xff]  ;;  %v1424_v54 = vld [vmem:[%s2668_s20 + $0x58] sm:$0xff] }
 0x4fd   : > { %v1322_v2 = vpack.c.bf16 %v1319_v1, %v1318_v41  ;;  %v1415_v41 = vld [vmem:[%s2668_s20 + $0x10] sm:$0xff]  ;;  %v1416_v1 = vld [vmem:[%s2668_s20 + $0x18] sm:$0xff] }
 0x4fe   : > { %1236 = vmatpush.bf16.msra.mxu0 %v1227_v55  ;;  %v1435_v55 = vpack.c.bf16 %v1424_v54, %v1423_v43 }
 0x4ff   : > { %1332 = vmatpush.bf16.msrb.mxu3 %v1322_v2  ;;  %v1431_v2 = vpack.c.bf16 %v1416_v1, %v1415_v41 }
 0x500   : > { %1440 = vmatpush.bf16.msra.mxu1 %v1435_v55 }
 0x501   : > { %1671 = vmatmul.msk.bf16.vlgmr.msra.gmra.mxu0 %vm1088_vm15, %v1220_v57  ;;  %v1422_v57 = vld [vmem:[%s2668_s20 + $0x48] sm:$0xff] }
 0x503   : > { %1333 = vmatpush.bf16.msrb.mxu3 %v1321_v5  ;;  %v1430_v5 = vpack.c.bf16 %v1414_v4, %v1413_v3 }
 0x504   : > { %v1123_v58 = vpop.f32.mrf.mxu0 }
 0x56a   : > { %v1181_v59 = vpop.f32.mrf.mxu2 }
 0x56b   : > { %1300 = vrot.lane.b32.xlu0 %v1181_v59, %s2186_s1  ;;  %v1419_v59 = vld [vmem:[%s2668_s20 + $0x30] sm:$0xff] }
 0x572   : > { %v1183_v60 = vpop.f32.mrf.mxu2 }
 0x573   : > { %v1420_v60 = vld [vmem:[%s2668_s20 + $0x38] sm:$0xff] }
 0x57c   : > { %v1295_v61 = vpop.f32.mrf.mxu2 }
 0x57d   : > { %1308 = vrot.lane.b32.xlu2 %v1295_v61, %s2187_s26  ;;  %v1433_v61 = vpack.c.bf16 %v1420_v60, %v1419_v59 }
 0x57e   : > { %v1238_v62 = vpop.f32.mrf.mxu0 }
 0x57f   : > { %1304 = vrot.lane.b32.xlu0 %v1238_v62, %s2188_s28  ;;  %v1417_v62 = vld [vmem:[%s2668_s20 + $0x20] sm:$0xff] }
 0x584   : > { %v1297_v63 = vpop.f32.mrf.mxu2 }
 0x585   : > { %v1418_v63 = vld [vmem:[%s2668_s20 + $0x28] sm:$0xff] }
 0x586   : > { %v1240_v0 = vpop.f32.mrf.mxu0 }
 0x587   : > { %v1432_v0 = vpack.c.bf16 %v1418_v63, %v1417_v62 }
 0x5d7   : > { %v1309_v10 = vpop.permute.xlu2 %1308 }
 0x5dd   : > { %v1301_v6 = vpop.permute.xlu0 %1300 }
 0x5de   : > { %v1311_v7 = vsel %vm1067_vm14, %v1121_v56, %v1301_v6  ;;  %v1421_v56 = vld [vmem:[%s2668_s20 + $0x40] sm:$0xff]  ;;  %v1808_v6 = vld [vmem:[#allocation13] ss:$0 sm:$0xff] }
 0x5df   : > { %v1434_v58 = vpack.c.bf16 %v1422_v57, %v1421_v56 }
 0x5e1   : > { %1441 = vmatpush.bf16.msra.mxu1 %v1434_v58 }
 0x5e5   : > { %1442 = vmatpush.bf16.msra.mxu1 %v1433_v61 }
 0x5e9   : > { %1443 = vmatpush.bf16.msra.mxu1 %v1432_v0 }
 0x5ed   : > { %1444 = vmatpush.bf16.msra.mxu1 %v1431_v2 }
 0x5f1   : > { %v1305_v8 = vpop.permute.xlu0 %1304  ;;  %1445 = vmatpush.bf16.msra.mxu1 %v1430_v5 }
 0x5f2   : > { %v1313_v11 = vsel %vm1312_vm0, %v1311_v7, %v1305_v8 }
 0x5f3   : > { %v1315_v12 = vsel %vm1314_vm1, %v1313_v11, %v1309_v10 }
 0x5f4   : > { %v1320_v13 = vpack.c.bf16 %v1315_v12, %v1315_v12 }
 0x5f6   : > { %1674 = vmatmul.msk.bf16.vlgmr.msrb.gmra.mxu3 %vm925_vm5, %v1320_v13 }
 0x679   : > { %v1335_v15 = vpop.f32.mrf.mxu3 }
 0x67a   : > { %v1339_v16 = vadd.f32 %v1335_v15, %v2437_v31  ;;  %v1379_v31 = vld [vmem:[%s2666_s18 + $0x10] sm:$0xff] }
 0x67b   : > { %v1383_v26 = vpack.c.bf16 %v1380_v25, %v1379_v31  ;;  %v1457_v31 = vld [vmem:[%s2670_s22] sm:$0xff]  ;;  %v1458_v25 = vld [vmem:[%s2670_s22 + $0x8] sm:$0xff] }
 0x67c   : > { %v2557_v17 = vadd.f32 %v1805_v14, %v1339_v16 }
 0x67d   : > { %1397 = vmatpush.bf16.msrb.mxu0 %v1383_v26  ;;  %v1462_v26 = vpack.c.bf16 %v1458_v25, %v1457_v31 }
 0x67e   : > { %v1347_v18 = vsel %vm925_vm5, %v2557_v17, 0.0 }
 0x67f   : > { %1348 = vadd.xlane.f32.xlu0 %v1347_v18 }
 0x681   : > { %v1337_v19 = vpop.f32.mrf.mxu3  ;;  %1398 = vmatpush.bf16.msrb.mxu0 %v1382_v29 }
 0x6f2   : > { %v1349_v20 = vpop.xlane.xlu0 %1348 }
 0x6f3   : > { %v1350_v21 = vmul.f32 %v1349_v20, %v2422_v9 }
 0x6f5   : > { %v1351_v22 = vsub.f32 %v2557_v17, %v1350_v21 }
 0x6f7   : > { %v1352_v23 = vmul.f32 %v1351_v22, %v1351_v22 }
 0x6f9   : > { %v1353_v24 = vsel %vm925_vm5, %v1352_v23, 0.0  ;;  %v1460_v23 = vld [vmem:[%s2670_s22 + $0x18] sm:$0xff] }
 0x6fa   : > { %1354 = vadd.xlane.f32.xlu1 %v1353_v24 }
 0x76d   : > { %v1355_v34 = vpop.xlane.xlu1 %1354 }
 0x76e   : > { %v1356_v37 = vmul.f32 %v1355_v34, %v2422_v9  ;;  %v1810_v34 = vld [vmem:[#allocation16] ss:$0 sm:$0xff] }
 0x770   : > { %v1357_v39 = vadd.f32 1e-06, %v1356_v37 }
 0x772   : > { %1835 = vrsqrt.f32 %v1357_v39  ;;  %vm1364_vm3 = vweird.f32 %v1357_v39 }
 0x778   : > { %v1836_v40 = vpop.eup %1835 }
 0x779   : > { %v1359_v42 = vmul.f32 %v1836_v40, %v1357_v39  ;;  %vm1365_vm2 = vweird.f32 %v1836_v40 }
 0x77a   : > { %vm1366_vm4 = vmor %vm1364_vm3, %vm1365_vm2 }
 0x77b   : > { %v1360_v44 = vmul.f32 %v1836_v40, %v1359_v42 }
 0x77d   : > { %v1361_v45 = vmul.f32 0.5, %v1360_v44 }
 0x77f   : > { %v1362_v46 = vsub.f32 1.5, %v1361_v45 }
 0x781   : > { %v1363_v47 = vmul.f32 %v1836_v40, %v1362_v46 }
 0x783   : > { %v1367_v49 = vsel %vm1366_vm4, %v1836_v40, %v1363_v47 }
 0x784   : > { %v1368_v50 = vmul.f32 %v1367_v49, %v1351_v22  ;;  %v1459_v22 = vld [vmem:[%s2670_s22 + $0x10] sm:$0xff] }
 0x785   : > { %v1463_v24 = vpack.c.bf16 %v1460_v23, %v1459_v22 }
 0x786   : > { %v1372_v52 = vmul.f32 %v1806_v48, %v1368_v50 }
 0x787   : > { %1477 = vmatpush.bf16.msrb.mxu2 %v1463_v24 }
 0x788   : > { %v1376_v9 = vadd.f32 %v1807_v51, %v1372_v52 }
 0x78a   : > { %v1381_v53 = vpack.c.bf16 %v1376_v9, %v1376_v9 }
 0x78b   : > { %1478 = vmatpush.bf16.msrb.mxu2 %v1462_v26 }
 0x78c   : > { %1675 = vmatmul.msk.bf16.vlgmr.msrb.gmra.mxu0 %vm925_vm5, %v1381_v53 }
 0x809   : > { %v1400_v7 = vpop.f32.mrf.mxu0 }
 0x80a   : > { %v1401_v8 = vadd.f32 %v1808_v6, %v1400_v7 }
 0x80c   : > { %v1405_v10 = vmul.f32 0.044715, %v1401_v8  ;;  %v1404_v18 = vmul.f32 0.5, %v1401_v8 }
 0x80e   : > { %v1406_v11 = vmul.f32 %v1405_v10, %v1401_v8 }
 0x810   : > { %v1407_v12 = vmul.f32 %v1406_v11, %v1401_v8 }
 0x811   : > { %v1402_v13 = vpop.f32.mrf.mxu0 }
 0x812   : > { %v1408_v14 = vadd.f32 %v1407_v12, %v1401_v8 }
 0x814   : > { %v1409_v15 = vmul.f32 0.7978846, %v1408_v14 }
 0x816   : > { %1837 = vtanh.f32 %v1409_v15 }
 0x81c   : > { %v1838_v16 = vpop.eup %1837 }
 0x81d   : > { %v1411_v19 = vadd.f32 1.0, %v1838_v16 }
 0x81f   : > { %v1412_v20 = vmul.f32 %v1411_v19, %v1404_v18 }
 0x821   : > { %v1429_v21 = vpack.c.bf16 %v1412_v20, %v1412_v20 }
 0x823   : > { %1446 = vmatmul.bf16.vlgmr.msra.gmra.mxu1 %v1429_v21 }
 0x8a0   : > { %v1447_v28 = vpop.f32.mrf.mxu1 }
 0x8a1   : > { %v1451_v29 = vadd.f32 %v1447_v28, %v2557_v17 }
 0x8a3   : > { %v1456_v30 = vadd.f32 %v1809_v27, %v1451_v29 }
 0x8a5   : > { %v1461_v32 = vpack.c.bf16 %v1456_v30, %v1456_v30 }
 0x8a7   : > { %1676 = vmatmul.msk.bf16.vlgmr.msrb.gmra.mxu2 %vm925_vm5, %v1461_v32 }
 0x8a8   : > { %v1449_v33 = vpop.f32.mrf.mxu1 }
 0x92a   : > { %v1480_v35 = vpop.f32.mrf.mxu2 }
 0x92b   : > { %v1481_v36 = vadd.f32 %v1810_v34, %v1480_v35 }
 0x92d   : > { %1484 = vst.msk [vmem:[%s878_s8] sm:$0xff] %vm925_vm5, %v1481_v36 }
 0x932   : > { %v1482_v37 = vpop.f32.mrf.mxu2 }
 0x933 PF: > { %s2702_s2 = sld [smem:[#allocation24_spill]] }
 0x939   : > { %s40_s5 = sadd.s32 1, %s2702_s2  }
 0x93a   : > { %p37_p7 = scmp.ge.s32.totalorder %s40_s5, 4  }
 0x93c   :  { %39 = sbr.rel (!%p37_p7) target bundleno = 19 (0x13), region = 187 }
 0x941   :  { %1504 = vsyncpa [#allocation3], 1 }
 0x942   :  { %1506 = vsyncpa [#allocation3 + $0x1], 1 }
 0x943   :  { %1507 = vsyncpa [#allocation5], 1 }
 0x944   :  { %1508 = vsyncpa [#allocation8], 1 }
 0x945   :  { %1509 = vsyncpa [#allocation11], 1 }
 0x946   :  { %1510 = vsyncpa [#allocation14], 1 }
 0x947   :  { %1511 = vsyncpa [#allocation17], 1 }

// kernel: gpt3_pretrain_forward.11
= control target key start
LH: loop header
LB: loop body
LE: loop exit
PB: predicated region body
PF: predicated region fallthrough
CT: control target
= control target key end

     0   :  { %vm35_vm0 = vcmask 261120   ;;  %s561_s0 = inlined_call_operand.vmem [shape: bf16[32,32], index: 0, kind: input, shape index: {}]   ;;  %s562_s1 = inlined_call_operand.vmem [shape: f32[1,32], index: 1, kind: input, shape index: {}]   ;;  %s563_s2 = inlined_call_operand.vmem [shape: f32[1,32], index: 2, kind: input, shape index: {}]   ;;  %s564_s3 = inlined_call_operand.vmem [shape: f32[32,128], index: 3, kind: input, shape index: {}]   ;;  %s565_s4 = inlined_call_operand.vmem [shape: f32[1,128], index: 4, kind: input, shape index: {}]   ;;  %s566_s5 = inlined_call_operand.vmem [shape: s32[32,1], index: 5, kind: input, shape index: {}]   ;;  %s567_s6 = inlined_call_operand.hbm [shape: f32[1,1], index: 6, kind: output, shape index: {}]  }
   0x1   :  { %v351_v0 = vld [vmem:[%s561_s0 + $0x8] sm:$0xff]   ;;  %v344_v1 = vld [vmem:[%s561_s0] sm:$0xff]  }
   0x2   :  { %v349_v2 = vunpack.c.l.bf16 %v351_v0  ;;  %v345_v3 = vunpack.c.l.bf16 %v344_v1 }
   0x3   :  { %11 = vsyncpa [#allocation3], 0  ;;  %v350_v6 = vunpack.c.h.bf16 %v351_v0  ;;  %v346_v7 = vunpack.c.h.bf16 %v344_v1  ;;  %v418_v10 = vmov 32.0   ;;  %v147_v37 = vld [vmem:[%s564_s3 + $0x10] sm:$0xff]  ;;  %v148_v38 = vld [vmem:[%s564_s3 + $0x18] sm:$0xff]  ;;  %s328_s21 = sshll.u32 %s567_s6, 4  ;;  %s329_s21 = int_to_ptr.hbm [resolvable:$true] %s328_s21 }
   0x4   :  { %v42_v4 = vsel %vm35_vm0, %v349_v2, 0.0  ;;  %v36_v5 = vsel %vm35_vm0, %v345_v3, 0.0  ;;  %364 = vrcp.f32 %v418_v10  ;;  %v152_v39 = vpack.c.bf16 %v148_v38, %v147_v37  ;;  %v145_v42 = vld [vmem:[%s564_s3] sm:$0xff]  ;;  %v146_v43 = vld [vmem:[%s564_s3 + $0x8] sm:$0xff] }
   0x5   :  { %43 = vadd.xlane.f32.xlu1 %v42_v4  ;;  %37 = vadd.xlane.f32.xlu0 %v36_v5  ;;  %v45_v8 = vsel %vm35_vm0, %v350_v6, 0.0  ;;  %v39_v9 = vsel %vm35_vm0, %v346_v7, 0.0  ;;  %v151_v46 = vpack.c.bf16 %v146_v43, %v145_v42  ;;  %v517_v43 = vld [vmem:[%s566_s5 + $0x10] sm:$0xff] }
   0x6   :  { %169 = vmatpush.bf16.msra.mxu0 %v152_v39  ;;  %352 = vmatpush.bf16.msra.mxu1 %v152_v39 }
   0xa   :  { %v365_v11 = vpop.eup %364  ;;  %170 = vmatpush.bf16.msra.mxu0 %v151_v46  ;;  %353 = vmatpush.bf16.msra.mxu1 %v151_v46 }
   0xb   :  { %v49_v12 = vmul.f32 32.0, %v365_v11  ;;  %vm53_vm1 = vweird.f32 %v365_v11 }
   0xd   :  { %46 = vadd.xlane.f32.xlu1 %v45_v8  ;;  %40 = vadd.xlane.f32.xlu0 %v39_v9  ;;  %v50_v13 = vsub.f32 1.0, %v49_v12 }
   0xf   :  { %v51_v14 = vmul.f32 %v365_v11, %v50_v13 }
  0x11   :  { %v52_v15 = vadd.f32 %v365_v11, %v51_v14 }
  0x13   :  { %v54_v16 = vsel %vm53_vm1, %v365_v11, %v52_v15 }
  0x78   :  { %v44_v17 = vpop.xlane.xlu1 %43  ;;  %v38_v18 = vpop.xlane.xlu0 %37 }
  0x79   :  { %v57_v19 = vmul.f32 %v54_v16, %v44_v17  ;;  %v55_v20 = vmul.f32 %v54_v16, %v38_v18 }
  0x7b   :  { %v467_v21 = vsub.f32 %v349_v2, %v57_v19  ;;  %v469_v22 = vsub.f32 %v345_v3, %v55_v20 }
  0x7d   :  { %v65_v23 = vmul.f32 %v467_v21, %v467_v21  ;;  %v63_v24 = vmul.f32 %v469_v22, %v469_v22 }
  0x7f   :  { %v73_v25 = vsel %vm35_vm0, %v65_v23, 0.0  ;;  %v67_v26 = vsel %vm35_vm0, %v63_v24, 0.0 }
  0x80   :  { %v47_v27 = vpop.xlane.xlu1 %46  ;;  %74 = vadd.xlane.f32.xlu0 %v73_v25  ;;  %68 = vadd.xlane.f32.xlu2 %v67_v26  ;;  %v41_v28 = vpop.xlane.xlu0 %40 }
  0x81   :  { %v58_v29 = vmul.f32 %v54_v16, %v47_v27  ;;  %v56_v30 = vmul.f32 %v54_v16, %v41_v28 }
  0x83   :  { %v477_v31 = vsub.f32 %v350_v6, %v58_v29  ;;  %v479_v32 = vsub.f32 %v346_v7, %v56_v30 }
  0x85   :  { %v66_v33 = vmul.f32 %v477_v31, %v477_v31  ;;  %v64_v34 = vmul.f32 %v479_v32, %v479_v32 }
  0x87   :  { %v76_v35 = vsel %vm35_vm0, %v66_v33, 0.0  ;;  %v70_v36 = vsel %vm35_vm0, %v64_v34, 0.0 }
  0x88   :  { %77 = vadd.xlane.f32.xlu1 %v76_v35  ;;  %71 = vadd.xlane.f32.xlu2 %v70_v36 }
  0xf3   :  { %v69_v40 = vpop.xlane.xlu2 %68  ;;  %v75_v41 = vpop.xlane.xlu0 %74 }
  0xf4   :  { %v79_v44 = vmul.f32 %v69_v40, %v54_v16  ;;  %v81_v45 = vmul.f32 %v75_v41, %v54_v16 }
  0xf6   :  { %v83_v47 = vadd.f32 1e-05, %v79_v44  ;;  %v85_v48 = vadd.f32 1e-05, %v81_v45  ;;  %v522_v44 = vld [vmem:[%s566_s5 + $0x8] sm:$0xff]  ;;  %v182_v45 = vld [vmem:[%s566_s5] sm:$0xff] }
  0xf8   :  { %366 = vrsqrt.f32 %v83_v47  ;;  %vm113_vm2 = vweird.f32 %v85_v48  ;;  %vm93_vm6 = vweird.f32 %v83_v47 }
  0xf9   :  { %368 = vrsqrt.f32 %v85_v48 }
  0xfb   :  { %v78_v49 = vpop.xlane.xlu1 %77  ;;  %v72_v50 = vpop.xlane.xlu2 %71 }
  0xfc   :  { %v82_v51 = vmul.f32 %v78_v49, %v54_v16  ;;  %v80_v52 = vmul.f32 %v72_v50, %v54_v16  ;;  %v361_v16 = vld [vmem:[%s562_s1] ss:$0 sm:$0xff] }
  0xfe   :  { %v367_v53 = vpop.eup %366  ;;  %v86_v54 = vadd.f32 1e-05, %v82_v51  ;;  %v84_v55 = vadd.f32 1e-05, %v80_v52 }
  0xff   :  { %v369_v56 = vpop.eup %368  ;;  %v88_v57 = vmul.f32 %v367_v53, %v83_v47  ;;  %vm94_vm4 = vweird.f32 %v367_v53 }
 0x100   :  { %v108_v58 = vmul.f32 %v369_v56, %v85_v48  ;;  %370 = vrsqrt.f32 %v86_v54  ;;  %vm114_vm3 = vweird.f32 %v369_v56  ;;  %vm95_vm7 = vmor %vm93_vm6, %vm94_vm4  ;;  %vm123_vm8 = vweird.f32 %v86_v54  ;;  %v185_v48 = vld [vmem:[%s566_s5 + $0x18] sm:$0xff]  ;;  %s421_s5 = smov [#allocation2]  }
 0x101   :  { %v89_v59 = vmul.f32 %v367_v53, %v88_v57  ;;  %372 = vrsqrt.f32 %v84_v55  ;;  %vm115_vm5 = vmor %vm113_vm2, %vm114_vm3  ;;  %vm103_vm12 = vweird.f32 %v84_v55  ;;  %vm256_vm2 = vcmp.ne.s32.totalorder %v182_v45, 4294967196  ;;  %s326_s18 = sshll.u32 %s421_s5, 4  ;;  %s327_s18 = int_to_ptr.vmem [resolvable:$true] %s326_s18 }
 0x102   :  { %v109_v60 = vmul.f32 %v369_v56, %v108_v58  ;;  %vm258_vm3 = vcmp.ne.s32.totalorder %v517_v43, 4294967196  ;;  %vm257_vm4 = vcmp.ne.s32.totalorder %v522_v44, 4294967196  ;;  %vm276_vm6 = vcmask 7168  }
 0x103   :  { %v90_v61 = vmul.f32 0.5, %v89_v59 }
 0x104   :  { %v110_v62 = vmul.f32 0.5, %v109_v60 }
 0x105   :  { %v91_v63 = vsub.f32 1.5, %v90_v61  ;;  %v226_v61 = vlaneseq }
 0x106   :  { %v371_v0 = vpop.eup %370  ;;  %v111_v1 = vsub.f32 1.5, %v110_v62 }
 0x107   :  { %v373_v2 = vpop.eup %372  ;;  %v118_v3 = vmul.f32 %v371_v0, %v86_v54  ;;  %v92_v4 = vmul.f32 %v367_v53, %v91_v63  ;;  %vm124_vm9 = vweird.f32 %v371_v0  ;;  %v227_v62 = vand.u32 127, %v226_v61 }
 0x108   :  { %v112_v5 = vmul.f32 %v369_v56, %v111_v1  ;;  %v98_v6 = vmul.f32 %v373_v2, %v84_v55  ;;  %vm125_vm10 = vmor %vm123_vm8, %vm124_vm9  ;;  %vm104_vm11 = vweird.f32 %v373_v2 }
 0x109   :  { %v119_v7 = vmul.f32 %v371_v0, %v118_v3  ;;  %v96_v11 = vsel %vm95_vm7, %v367_v53, %v92_v4  ;;  %vm105_vm13 = vmor %vm103_vm12, %vm104_vm11  ;;  %vm319_vm11 = vcmask 0  }
 0x10a   :  { %v99_v8 = vmul.f32 %v373_v2, %v98_v6  ;;  %v116_v9 = vsel %vm115_vm5, %v369_v56, %v112_v5  ;;  %v127_v17 = vmul.f32 %v96_v11, %v469_v22  ;;  %vm259_vm5 = vcmp.ne.s32.totalorder %v185_v48, 4294967196 }
 0x10b   :  { %v120_v10 = vmul.f32 0.5, %v119_v7  ;;  %v129_v14 = vmul.f32 %v116_v9, %v467_v21  ;;  %v362_v21 = vld [vmem:[%s563_s2] ss:$0 sm:$0xff]  ;;  %v420_v11 = vmov 0.0  }
 0x10c   :  { %v100_v12 = vmul.f32 0.5, %v99_v8  ;;  %v134_v27 = vmul.f32 %v361_v16, %v127_v17 }
 0x10d   :  { %v121_v13 = vsub.f32 1.5, %v120_v10  ;;  %v136_v25 = vmul.f32 %v361_v16, %v129_v14  ;;  %v342_v14 = vsel %vm259_vm5, 1.0, %v420_v11 }
 0x10e   :  { %v101_v15 = vsub.f32 1.5, %v100_v12  ;;  %v141_v33 = vadd.f32 %v362_v21, %v134_v27  ;;  %v339_v12 = vsel %vm256_vm2, 1.0, %v420_v11 }
 0x10f   :  { %v122_v18 = vmul.f32 %v371_v0, %v121_v13  ;;  %v143_v30 = vadd.f32 %v362_v21, %v136_v25  ;;  %v290_v13 = vsel %vm276_vm6, %v339_v12, 0.0 }
 0x110   :  { %v102_v19 = vmul.f32 %v373_v2, %v101_v15  ;;  %v341_v15 = vsel %vm258_vm3, 1.0, %v420_v11 }
 0x111   :  { %v126_v20 = vsel %vm125_vm10, %v371_v0, %v122_v18  ;;  %v293_v17 = vsel %vm276_vm6, %v341_v15, 0.0 }
 0x112   :  { %v130_v23 = vmul.f32 %v126_v20, %v477_v31  ;;  %v106_v24 = vsel %vm105_vm13, %v373_v2, %v102_v19  ;;  %v419_v31 = vmov 0   ;;  %v295_v20 = vsel %vm276_vm6, %v342_v14, 0.0 }
 0x113   :  { %v128_v26 = vmul.f32 %v106_v24, %v479_v32  ;;  %360 = vset.pattern.permute.xlu2 %v419_v31  ;;  %359 = vset.pattern.permute.xlu1 %v419_v31  ;;  %v363_v32 = vld [vmem:[%s565_s4] ss:$0 sm:$0xff] }
 0x114   :  { %v137_v28 = vmul.f32 %v361_v16, %v130_v23  ;;  %358 = vset.pattern.permute.xlu0 %v419_v31 }
 0x115   :  { %v135_v29 = vmul.f32 %v361_v16, %v128_v26  ;;  %v340_v16 = vsel %vm257_vm4, 1.0, %v420_v11 }
 0x116   :  { %v144_v22 = vadd.f32 %v362_v21, %v137_v28  ;;  %v291_v18 = vsel %vm276_vm6, %v340_v16, 0.0 }
 0x117   :  { %v142_v34 = vadd.f32 %v362_v21, %v135_v29  ;;  %v292_v19 = vadd.f32 %v291_v18, %v290_v13 }
 0x118   :  { %v150_v35 = vpack.c.bf16 %v144_v22, %v143_v30 }
 0x119   :  { %v149_v36 = vpack.c.bf16 %v142_v34, %v141_v33  ;;  %v294_v23 = vadd.f32 %v293_v17, %v292_v19 }
 0x11a   :  { %338 = vmatmul.msk.bf16.vlgmr.msra.gmra.mxu1 %vm35_vm0, %v150_v35 }
 0x11b   :  { %337 = vmatmul.msk.bf16.vlgmr.msra.gmra.mxu0 %vm35_vm0, %v149_v36  ;;  %v296_v24 = vadd.f32 %v295_v20, %v294_v23 }
 0x11d   :  { %v297_v21 = vrot.slane %v296_v24, 4 }
 0x11f   :  { %v298_v25 = vadd.f32 %v297_v21, %v296_v24 }
 0x121   :  { %v299_v26 = vrot.slane %v298_v25, 2 }
 0x123   :  { %v300_v27 = vadd.f32 %v299_v26, %v298_v25 }
 0x125   :  { %v301_v30 = vrot.slane %v300_v27, 1 }
 0x127   :  { %v302_v33 = vadd.f32 %v301_v30, %v300_v27 }
 0x129   :  { %v303_v36 = vmax.f32 %v302_v33, 1.0 }
 0x12b   :  { %vm309_vm7 = vweird.f32 %v303_v36 }
 0x197   :  { %v177_v37 = vpop.f32.mrf.mxu1 }
 0x198   :  { %v172_v38 = vpop.f32.mrf.mxu0  ;;  %v178_v39 = vadd.f32 %v363_v32, %v177_v37 }
 0x199   :  { %v173_v40 = vadd.f32 %v363_v32, %v172_v38 }
 0x19a   :  { %190 = vmax.xlane.f32.xlu1 %v178_v39 }
 0x19b   :  { %186 = vmax.xlane.f32.xlu2 %v173_v40 }
 0x19f   :  { %v179_v46 = vpop.f32.mrf.mxu1 }
 0x1a0   :  { %v174_v41 = vpop.f32.mrf.mxu0  ;;  %v180_v47 = vadd.f32 %v363_v32, %v179_v46 }
 0x1a1   :  { %v175_v42 = vadd.f32 %v363_v32, %v174_v41 }
 0x1a3   :  { %188 = vmax.xlane.f32.xlu0 %v175_v42 }
 0x1b3   :  { %235 = vperm.xlu2 %360, %v517_v43   ;;  %232 = vperm.xlu1 %359, %v522_v44  }
 0x1b7   :  { %229 = vperm.xlu0 %358, %v182_v45  }
 0x1dc   :  { %192 = vmax.xlane.f32.xlu2 %v180_v47 }
 0x1f4   :  { %238 = vperm.xlu2 %360, %v185_v48  }
 0x20d   :  { %v532_v49 = vpop.xlane.xlu1 %190 }
 0x20e   :  { %v534_v50 = vpop.xlane.xlu2 %186  ;;  %v196_v51 = vsub.f32 %v178_v39, %v532_v49 }
 0x20f   :  { %v194_v52 = vsub.f32 %v173_v40, %v534_v50 }
 0x210   :  { %v202_v53 = vmul.f32 1.442695, %v196_v51 }
 0x211   :  { %v198_v54 = vmul.f32 1.442695, %v194_v52 }
 0x212   :  { %374 = vpow2.f32 %v202_v53 }
 0x213   :  { %376 = vpow2.f32 %v198_v54 }
 0x216   :  { %v538_v55 = vpop.xlane.xlu0 %188  ;;  %v236_v1 = vpop.permute.xlu2 %235 }
 0x217   :  { %v195_v56 = vsub.f32 %v175_v42, %v538_v55  ;;  %vm242_vm15 = vcmp.eq.s32.totalorder %v227_v62, %v236_v1 }
 0x218   :  { %v375_v57 = vpop.eup %374  ;;  %v246_v2 = vsel %vm242_vm15, %v178_v39, 0.0 }
 0x219   :  { %v377_v58 = vpop.eup %376  ;;  %v200_v59 = vmul.f32 1.442695, %v195_v56  ;;  %210 = vadd.xlane.f32.xlu0 %v375_v57 }
 0x21a   :  { %206 = vadd.xlane.f32.xlu1 %v377_v58 }
 0x21b   :  { %378 = vpow2.f32 %v200_v59 }
 0x221   :  { %v379_v60 = vpop.eup %378 }
 0x222   :  { %208 = vadd.xlane.f32.xlu2 %v379_v60 }
 0x225   :  { %v233_v9 = vpop.permute.xlu1 %232 }
 0x226   :  { %vm241_vm1 = vcmp.eq.s32.totalorder %v227_v62, %v233_v9  ;;  %v313_v9 = vand.u32 2147483647, %v303_v36 }
 0x227   :  { %v245_v10 = vsel %vm241_vm1, %v175_v42, 0.0 }
 0x228   :  { %vm314_vm10 = vcmp.eq.f32.partialorder %v313_v9, 8.507059e+37 }
 0x229   :  { %v230_v63 = vpop.permute.xlu0 %229 }
 0x22a   :  { %vm240_vm14 = vcmp.eq.s32.totalorder %v227_v62, %v230_v63 }
 0x22b   :  { %v244_v0 = vsel %vm240_vm14, %v173_v40, 0.0 }
 0x22c   :  { %248 = vadd.xlane.f32.xlu2 %v244_v0 }
 0x234   :  { %252 = vadd.xlane.f32.xlu2 %v246_v2 }
 0x24f   :  { %v541_v3 = vpop.xlane.xlu2 %192 }
 0x250   :  { %v197_v4 = vsub.f32 %v180_v47, %v541_v3 }
 0x252   :  { %v204_v5 = vmul.f32 1.442695, %v197_v4 }
 0x254   :  { %380 = vpow2.f32 %v204_v5 }
 0x257   :  { %v239_v6 = vpop.permute.xlu2 %238 }
 0x258   :  { %vm243_vm0 = vcmp.eq.s32.totalorder %v227_v62, %v239_v6  ;;  %v315_v6 = vand.u32 2147483648, %v303_v36 }
 0x259   :  { %v247_v7 = vsel %vm243_vm0, %v180_v47, 0.0 }
 0x25a   :  { %v381_v8 = vpop.eup %380  ;;  %254 = vadd.xlane.f32.xlu0 %v247_v7  ;;  %v316_v11 = vor.u32 1.1754944e-38, %v315_v6 }
 0x25b   :  { %212 = vadd.xlane.f32.xlu1 %v381_v8 }
 0x263   :  { %250 = vadd.xlane.f32.xlu1 %v245_v10 }
 0x28c   :  { %v211_v22 = vpop.xlane.xlu0 %210 }
 0x28d   :  { %v207_v29 = vpop.xlane.xlu1 %206 }
 0x28e   :  { %382 = vlog2.f32 %v207_v29 }
 0x28f   :  { %384 = vlog2.f32 %v211_v22 }
 0x294   :  { %v383_v35 = vpop.eup %382 }
 0x295   :  { %v209_v28 = vpop.xlane.xlu2 %208  ;;  %v385_v31 = vpop.eup %384  ;;  %v215_v32 = vmul.f32 0.6931472, %v383_v35 }
 0x296   :  { %386 = vlog2.f32 %v209_v28  ;;  %v219_v39 = vmul.f32 0.6931472, %v385_v31 }
 0x297   :  { %388 = vrcp.f32 %v303_v36  ;;  %v222_v41 = vadd.f32 %v215_v32, %v534_v50 }
 0x298   :  { %v224_v44 = vadd.f32 %v219_v39, %v532_v49 }
 0x29c   :  { %v387_v37 = vpop.eup %386 }
 0x29d   :  { %v217_v40 = vmul.f32 0.6931472, %v387_v37  ;;  %v389_v45 = vpop.eup %388 }
 0x29e   :  { %v305_v57 = vmul.f32 %v389_v45, %v303_v36  ;;  %vm310_vm8 = vweird.f32 %v389_v45 }
 0x29f   :  { %v249_v34 = vpop.xlane.xlu2 %248  ;;  %v223_v48 = vadd.f32 %v217_v40, %v538_v55  ;;  %vm311_vm9 = vmor %vm309_vm7, %vm310_vm8 }
 0x2a0   :  { %v268_v43 = vsub.f32 %v222_v41, %v249_v34  ;;  %v306_v0 = vsub.f32 1.0, %v305_v57 }
 0x2a2   :  { %v272_v53 = vmul.f32 %v339_v12, %v268_v43  ;;  %v307_v5 = vmul.f32 %v389_v45, %v306_v0 }
 0x2a4   :  { %v277_v61 = vsel %vm276_vm6, %v272_v53, 0.0  ;;  %v308_v8 = vadd.f32 %v389_v45, %v307_v5 }
 0x2a6   :  { %v312_v13 = vsel %vm311_vm9, %v389_v45, %v308_v8 }
 0x2a7   :  { %v253_v42 = vpop.xlane.xlu2 %252 }
 0x2a8   :  { %v270_v47 = vsub.f32 %v224_v44, %v253_v42 }
 0x2aa   :  { %v274_v58 = vmul.f32 %v341_v15, %v270_v47  ;;  %v317_v15 = vsel %vm314_vm10, %v316_v11, %v312_v13 }
 0x2ac   :  { %v280_v55 = vsel %vm276_vm6, %v274_v58, 0.0 }
 0x2cd   :  { %v255_v59 = vpop.xlane.xlu0 %254 }
 0x2ce   :  { %v213_v38 = vpop.xlane.xlu1 %212 }
 0x2cf   :  { %390 = vlog2.f32 %v213_v38 }
 0x2d5   :  { %v391_v46 = vpop.eup %390 }
 0x2d6   :  { %v221_v51 = vmul.f32 0.6931472, %v391_v46  ;;  %v251_v52 = vpop.xlane.xlu1 %250 }
 0x2d7   :  { %v269_v54 = vsub.f32 %v223_v48, %v251_v52 }
 0x2d8   :  { %v225_v56 = vadd.f32 %v221_v51, %v541_v3 }
 0x2d9   :  { %v273_v60 = vmul.f32 %v340_v16, %v269_v54 }
 0x2da   :  { %v271_v50 = vsub.f32 %v225_v56, %v255_v59 }
 0x2db   :  { %v278_v49 = vsel %vm276_vm6, %v273_v60, 0.0 }
 0x2dc   :  { %v275_v62 = vmul.f32 %v342_v14, %v271_v50  ;;  %v279_v63 = vadd.f32 %v278_v49, %v277_v61 }
 0x2de   :  { %v282_v1 = vsel %vm276_vm6, %v275_v62, 0.0  ;;  %v281_v2 = vadd.f32 %v280_v55, %v279_v63 }
 0x2e0   :  { %v283_v4 = vadd.f32 %v282_v1, %v281_v2 }
 0x2e2   :  { %v284_v3 = vrot.slane %v283_v4, 4 }
 0x2e4   :  { %v285_v7 = vadd.f32 %v284_v3, %v283_v4 }
 0x2e6   :  { %v286_v10 = vrot.slane %v285_v7, 2 }
 0x2e8   :  { %v287_v12 = vadd.f32 %v286_v10, %v285_v7 }
 0x2ea   :  { %v288_v14 = vrot.slane %v287_v12, 1 }
 0x2ec   :  { %v289_v16 = vadd.f32 %v288_v14, %v287_v12 }
 0x2ee   :  { %v318_v17 = vmul.f32 %v317_v15, %v289_v16 }
 0x2f0   :  { %320 = vst.msk [vmem:[#allocation2] sm:$0x1] %vm319_vm11, %v318_v17 }
 0x2f1   :  { %331 = dma.vmem_to_hbm [thread:$0]  %s327_s18, 16, %s329_s21, [#allocation3]  }
 0x2f2   :  { %416 = dma.done.wait [#allocation3], 16  }
 0x2f3   :  { %417 = vsyncadd [#allocation3], 4294967280 }
 0x2f4   :  { %336 = vsyncpa [#allocation3], 1 }

// kernel: gpt3_pretrain_forward.10
= control target key start
LH: loop header
LB: loop body
LE: loop exit
PB: predicated region body
PF: predicated region fallthrough
CT: control target
= control target key end

     0   :  { %s1384_s29 = smov 0   ;;  %s1629_s0 = inlined_call_operand.vmem [shape: bf16[2,16,32], index: 0, kind: input, shape index: {}]   ;;  %s1630_s1 = inlined_call_operand.vmem [shape: f32[2,1,16], index: 1, kind: input, shape index: {}]   ;;  %s1631_s2 = inlined_call_operand.vmem [shape: f32[1,32], index: 2, kind: input, shape index: {}]   ;;  %s1632_s3 = inlined_call_operand.vmem [shape: f32[1,32], index: 3, kind: input, shape index: {}]   ;;  %s1633_s4 = inlined_call_operand.vmem [shape: f32[32,96], index: 4, kind: input, shape index: {}]   ;;  %s1634_s5 = inlined_call_operand.vmem [shape: f32[1,96], index: 5, kind: input, shape index: {}]   ;;  %s1635_s6 = inlined_call_operand.vmem [shape: f32[32,32], index: 6, kind: input, shape index: {}]   ;;  %s1636_s7 = inlined_call_operand.vmem [shape: f32[1,32], index: 7, kind: input, shape index: {}]   ;;  %s1637_s8 = inlined_call_operand.vmem [shape: f32[1,32], index: 8, kind: input, shape index: {}]   ;;  %s1638_s9 = inlined_call_operand.vmem [shape: f32[1,32], index: 9, kind: input, shape index: {}]   ;;  %s1639_s10 = inlined_call_operand.vmem [shape: f32[32,128], index: 10, kind: input, shape index: {}]   ;;  %s1640_s11 = inlined_call_operand.vmem [shape: f32[1,128], index: 11, kind: input, shape index: {}]   ;;  %s1641_s12 = inlined_call_operand.vmem [shape: f32[128,32], index: 12, kind: input, shape index: {}]   ;;  %s1642_s13 = inlined_call_operand.vmem [shape: f32[1,32], index: 13, kind: input, shape index: {}]   ;;  %s1643_s14 = inlined_call_operand.vmem [shape: bf16[2,16,32], index: 14, kind: output, shape index: {}]  }
   0x1 LB: > { %s1162_s30 = sadd.s32 4294967295, %s1290_s29   ;;  %p1166_p0 = scmp.ge.s32.totalorder %s1290_s29, 1  ;;  %s1290_s29 = sphi %s1384_s29, %s24_s29  }
   0x2   : > { %p420_p1 = scmp.lt.s32.totalorder %s1290_s29, 3 }
   0x4   : > { %p421_p2 = pnand %p1166_p0, %p420_p1 }
   0x5   : > { %p469_p3 = scmp.lt.s32.totalorder (!%p421_p2), %s1162_s30, 1  ;;  %s1293_s20 = smov (!%p421_p2), 64  }
   0x6   : > { %424 = sbr.rel (%p421_p2) target bundleno = 2351 (0x92f), region = 76  ;;  %s1294_s21 = smov (!%p421_p2), 96  }
   0x7   : > { %s1297_s25 = smov (!%p421_p2), 72   ;;  %s1298_s26 = smov (!%p421_p2), 120  }
   0x8   : > { %s1299_s27 = smov (!%p421_p2), 88   ;;  %s1300_s28 = smov (!%p421_p2), 80  }
   0x9   : > { %s1301_s16 = smov (!%p421_p2), 104   ;;  %s1302_s17 = smov (!%p421_p2), 112  }
   0xa   : > { %s1304_s19 = smov (!%p421_p2), 48   ;;  %s1307_s22 = smov (!%p421_p2), 16  }
   0xb   : > { %s1645_s30 = smov (!%p469_p3, %s1162_s30), 1  ;;  %vm539_vm0 = vcmask 261120   ;;  %v1292_v5 = vmov 32.0   ;;  %v507_v22 = vld [vmem:[%s1633_s4 + $0x10] sm:$0xff]  ;;  %v508_v23 = vld [vmem:[%s1633_s4 + $0x18] sm:$0xff]  ;;  %v505_v25 = vld [vmem:[%s1633_s4] sm:$0xff] }
   0xc   : > { %s1184_s15 = sshll.u32 %s1645_s30, 3  ;;  %1238 = vrcp.f32 %v1292_v5  ;;  %v603_v24 = vpack.c.bf16 %v508_v23, %v507_v22  ;;  %v506_v26 = vld [vmem:[%s1633_s4 + $0x8] sm:$0xff]  ;;  %v1230_v47 = vld [vmem:[%s1631_s2] ss:$0 sm:$0xff]  ;;  %vm628_vm8 = vcmask 64512   ;;  %s476_s24 = scalar_lea.vmem %s1630_s1, %s1645_s30  ;;  %v487_v5 = vlaneseq }
   0xd   : > { %s473_s18 = scalar_lea.vmem %s1629_s0, %s1184_s15  ;;  %v602_v28 = vpack.c.bf16 %v506_v26, %v505_v25  ;;  %v1231_v52 = vld [vmem:[%s1632_s3] ss:$0 sm:$0xff]  ;;  %vm653_vm13 = vcmask 130048   ;;  %s1308_s23 = smov 24  }
   0xe   : > { %v1187_v0 = vld [vmem:[%s473_s18] sm:$0xff]   ;;  %616 = vmatpush.bf16.msra.mxu0 %v603_v24  ;;  %s1303_s18 = smov 56  }
   0xf   : > { %v1400_v1 = vunpack.c.l.bf16 %v1187_v0  ;;  %v1404_v3 = vunpack.c.h.bf16 %v1187_v0  ;;  %v1232_v58 = vld [vmem:[%s1634_s5] ss:$0 sm:$0xff] }
  0x11   : > { %v540_v2 = vsel %vm539_vm0, %v1400_v1, 0.0  ;;  %v543_v4 = vsel %vm539_vm0, %v1404_v3, 0.0 }
  0x12   : > { %541 = vadd.xlane.f32.xlu0 %v540_v2  ;;  %v1239_v6 = vpop.eup %1238  ;;  %617 = vmatpush.bf16.msra.mxu0 %v602_v28 }
  0x13   : > { %v547_v7 = vmul.f32 32.0, %v1239_v6  ;;  %vm551_vm1 = vweird.f32 %v1239_v6 }
  0x15   : > { %v548_v8 = vsub.f32 1.0, %v547_v7 }
  0x17   : > { %v549_v9 = vmul.f32 %v1239_v6, %v548_v8  ;;  %v488_v8 = vshrl.u32 %v487_v5, 7 }
  0x19   : > { %v550_v10 = vadd.f32 %v1239_v6, %v549_v9  ;;  %v491_v9 = vand.u32 127, %v487_v5 }
  0x1a   : > { %544 = vadd.xlane.f32.xlu0 %v543_v4  ;;  %v494_v4 = vld [vmem:[%s476_s24] sm:$0x1] }
  0x1b   : > { %v1408_v11 = vsel %vm551_vm1, %v1239_v6, %v550_v10  ;;  %vm495_vm9 = vcmp.gt.f32.partialorder %v494_v4, 0.5  ;;  %v1295_v6 = vmov 0   ;;  %vm492_vm10 = vcmp.le.s32.totalorder %v491_v9, %v488_v8 }
  0x1c   : > { %v496_v7 = vsel %vm495_vm9, 1, %v1295_v6  ;;  %vm938_vm1 = vcmask 195584  }
  0x1d   : > { %v497_v10 = vperm.slane %v496_v7, 0 }
  0x1f   : > { %vm498_vm11 = vcmp.eq.s32.totalorder %v497_v10, 1 }
  0x20   : > { %vm499_vm12 = vmand %vm492_vm10, %vm498_vm11 }
  0x85   : > { %v542_v12 = vpop.xlane.xlu0 %541 }
  0x86   : > { %v553_v13 = vmul.f32 %v1408_v11, %v542_v12  ;;  %v489_v12 = vadd.s32 8, %v488_v8 }
  0x88   : > { %v555_v14 = vsub.f32 %v1400_v1, %v553_v13  ;;  %vm493_vm14 = vcmp.le.s32.totalorder %v491_v9, %v489_v12 }
  0x89   : > { %vm500_vm15 = vmand %vm493_vm14, %vm498_vm11 }
  0x8a   : > { %v557_v15 = vmul.f32 %v555_v14, %v555_v14 }
  0x8c   : > { %v559_v16 = vsel %vm539_vm0, %v557_v15, 0.0 }
  0x8d   : > { %560 = vadd.xlane.f32.xlu1 %v559_v16  ;;  %v545_v17 = vpop.xlane.xlu0 %544 }
  0x8e   : > { %v554_v18 = vmul.f32 %v1408_v11, %v545_v17 }
  0x90   : > { %v556_v19 = vsub.f32 %v1404_v3, %v554_v18 }
  0x92   : > { %v558_v20 = vmul.f32 %v556_v19, %v556_v19 }
  0x94   : > { %v562_v21 = vsel %vm539_vm0, %v558_v20, 0.0 }
  0x95   : > { %563 = vadd.xlane.f32.xlu1 %v562_v21 }
 0x100   : > { %v561_v27 = vpop.xlane.xlu1 %560 }
 0x101   : > { %v565_v29 = vmul.f32 %v561_v27, %v1408_v11 }
 0x103   : > { %v567_v30 = vadd.f32 1e-05, %v565_v29 }
 0x105   : > { %1240 = vrsqrt.f32 %v567_v30  ;;  %vm575_vm3 = vweird.f32 %v567_v30 }
 0x108   : > { %v564_v31 = vpop.xlane.xlu1 %563 }
 0x109   : > { %v566_v32 = vmul.f32 %v564_v31, %v1408_v11 }
 0x10b   : > { %v1241_v33 = vpop.eup %1240  ;;  %v568_v34 = vadd.f32 1e-05, %v566_v32 }
 0x10c   : > { %v570_v35 = vmul.f32 %v1241_v33, %v567_v30  ;;  %vm576_vm2 = vweird.f32 %v1241_v33 }
 0x10d   : > { %1242 = vrsqrt.f32 %v568_v34  ;;  %vm577_vm4 = vmor %vm575_vm3, %vm576_vm2  ;;  %vm585_vm6 = vweird.f32 %v568_v34 }
 0x10e   : > { %v571_v36 = vmul.f32 %v1241_v33, %v570_v35 }
 0x110   : > { %v572_v37 = vmul.f32 0.5, %v571_v36 }
 0x112   : > { %v573_v38 = vsub.f32 1.5, %v572_v37 }
 0x113   : > { %v1243_v39 = vpop.eup %1242 }
 0x114   : > { %v574_v40 = vmul.f32 %v1241_v33, %v573_v38  ;;  %v580_v41 = vmul.f32 %v1243_v39, %v568_v34  ;;  %vm586_vm5 = vweird.f32 %v1243_v39 }
 0x115   : > { %vm587_vm7 = vmor %vm585_vm6, %vm586_vm5 }
 0x116   : > { %v581_v42 = vmul.f32 %v1243_v39, %v580_v41  ;;  %v578_v43 = vsel %vm577_vm4, %v1241_v33, %v574_v40 }
 0x117   : > { %v589_v46 = vmul.f32 %v578_v43, %v555_v14  ;;  %v1296_v14 = vmov -1e+09  }
 0x118   : > { %v582_v44 = vmul.f32 0.5, %v581_v42  ;;  %v1451_v15 = vsel %vm499_vm12, 0.0, %v1296_v14  ;;  %v1455_v20 = vsel %vm500_vm15, 0.0, %v1296_v14 }
 0x119   : > { %v594_v51 = vmul.f32 %v1230_v47, %v589_v46 }
 0x11a   : > { %v583_v45 = vsub.f32 1.5, %v582_v44 }
 0x11b   : > { %v599_v54 = vadd.f32 %v1231_v52, %v594_v51 }
 0x11c   : > { %v584_v48 = vmul.f32 %v1243_v39, %v583_v45 }
 0x11e   : > { %v588_v49 = vsel %vm587_vm7, %v1243_v39, %v584_v48 }
 0x11f   : > { %v590_v50 = vmul.f32 %v588_v49, %v556_v19 }
 0x121   : > { %v595_v53 = vmul.f32 %v1230_v47, %v590_v50 }
 0x123   : > { %v600_v55 = vadd.f32 %v1231_v52, %v595_v53 }
 0x125   : > { %v601_v56 = vpack.c.bf16 %v600_v55, %v599_v54 }
 0x127   : > { %1171 = vmatmul.msk.bf16.vlgmr.msra.gmra.mxu0 %vm539_vm0, %v601_v56 }
 0x1a4   : > { %v619_v57 = vpop.f32.mrf.mxu0 }
 0x1a5   : > { %v620_v60 = vadd.f32 %v1232_v58, %v619_v57 }
 0x1ac   : > { %v621_v59 = vpop.f32.mrf.mxu0 }
 0x1ad   : > { %v622_v61 = vadd.f32 %v1232_v58, %v621_v59 }
 0x1af   : > { %v1440_v62 = vpack.c.bf16 %v622_v61, %v620_v60 }
 0x1b1   : > { %677 = vrot.lane.b32.xlu1 %v1440_v62, %s1293_s20  ;;  %626 = vrot.lane.b32.xlu2 %v1440_v62, %s1294_s21  ;;  %s1305_s20 = smov 40   ;;  %s1306_s21 = smov 8  }
 0x20b   : > { %v627_v63 = vpop.permute.xlu2 %626 }
 0x20c   : > { %v633_v0 = vsel %vm628_vm8, %v627_v63, 0 }
 0x20d   : > { %642 = vmatpush.bf16.xpose.msra.mxu1 %v633_v0 }
 0x214   : > { %1172 = vmatmul.msk.bf16.vlgmr.msra.gmra.mxu1 %vm628_vm8, %v1440_v62 }
 0x223   : > { %v678_v2 = vpop.permute.xlu1 %677 }
 0x224   : > { %690 = vmatpush.bf16.msra.mxu2 %v678_v2 }
 0x291   : > { %v644_v13 = vpop.f32.mrf.mxu1 }
 0x292   : > { %v649_v16 = vmul.f32 0.35355338, %v644_v13 }
 0x294   : > { %v651_v17 = vadd.f32 %v649_v16, %v1451_v15 }
 0x296   : > { %v654_v18 = vsel %vm653_vm13, %v651_v17, -inf }
 0x297   : > { %655 = vmax.xlane.f32.xlu2 %v654_v18 }
 0x299   : > { %v646_v19 = vpop.f32.mrf.mxu1 }
 0x29a   : > { %v650_v21 = vmul.f32 0.35355338, %v646_v19 }
 0x29c   : > { %v652_v22 = vadd.f32 %v650_v21, %v1455_v20 }
 0x29e   : > { %v657_v23 = vsel %vm653_vm13, %v652_v22, -inf }
 0x29f   : > { %658 = vmax.xlane.f32.xlu0 %v657_v23 }
 0x2af   : > { %841 = vrot.lane.b32.xlu2 %v1440_v62, %s1297_s25 }
 0x30a   : > { %v656_v24 = vpop.xlane.xlu2 %655 }
 0x30b   : > { %v660_v25 = vsub.f32 %v651_v17, %v656_v24 }
 0x30d   : > { %v662_v26 = vmul.f32 1.442695, %v660_v25 }
 0x30f   : > { %1244 = vpow2.f32 %v662_v26 }
 0x312   : > { %v842_v27 = vpop.permute.xlu2 %841  ;;  %v659_v28 = vpop.xlane.xlu0 %658 }
 0x313   : > { %v661_v29 = vsub.f32 %v652_v22, %v659_v28  ;;  %v847_v30 = vsel %vm628_vm8, %v842_v27, 0 }
 0x314   : > { %856 = vmatpush.bf16.xpose.msra.mxu3 %v847_v30 }
 0x315   : > { %v1245_v31 = vpop.eup %1244  ;;  %v664_v32 = vmul.f32 1.442695, %v661_v29 }
 0x316   : > { %v666_v33 = vsel %vm653_vm13, %v1245_v31, 0.0 }
 0x317   : > { %1246 = vpow2.f32 %v664_v32  ;;  %667 = vadd.xlane.f32.xlu1 %v666_v33 }
 0x31d   : > { %v1247_v34 = vpop.eup %1246 }
 0x31e   : > { %v669_v35 = vsel %vm653_vm13, %v1247_v34, 0.0 }
 0x31f   : > { %670 = vadd.xlane.f32.xlu0 %v669_v35 }
 0x330   : > { %697 = vrot.lane.b32.xlu1 %v1440_v62, %s1298_s26 }
 0x333   : > { %699 = vrot.lane.b32.xlu0 %v1440_v62, %s1299_s27 }
 0x338   : > { %770 = vrot.lane.b32.xlu1 %v1440_v62, %s1300_s28 }
 0x33b   : > { %839 = vrot.lane.b32.xlu0 %v1440_v62, %s1301_s16 }
 0x343   : > { %768 = vrot.lane.b32.xlu0 %v1440_v62, %s1302_s17 }
 0x38a   : > { %v668_v36 = vpop.xlane.xlu1 %667 }
 0x38b   : > { %1248 = vrcp.f32 %v668_v36 }
 0x391   : > { %v1249_v38 = vpop.eup %1248 }
 0x392   : > { %v671_v37 = vpop.xlane.xlu0 %670  ;;  %v674_v40 = vmul.f32 %v1249_v38, %v1245_v31 }
 0x393   : > { %1250 = vrcp.f32 %v671_v37 }
 0x399   : > { %v1251_v39 = vpop.eup %1250 }
 0x39a   : > { %v675_v41 = vmul.f32 %v1251_v39, %v1247_v34 }
 0x39c   : > { %v676_v42 = vpack.c.bf16 %v675_v41, %v674_v40 }
 0x39e   : > { %1173 = vmatmul.msk.bf16.vlgmr.msra.gmra.mxu2 %vm653_vm13, %v676_v42 }
 0x3a2   : > { %v698_v43 = vpop.permute.xlu1 %697 }
 0x3a5   : > { %v700_v44 = vpop.permute.xlu0 %699 }
 0x3a6   : > { %v705_v45 = vsel %vm628_vm8, %v700_v44, 0 }
 0x3a7   : > { %714 = vmatpush.bf16.xpose.msrb.mxu2 %v705_v45 }
 0x3aa   : > { %v771_v46 = vpop.permute.xlu1 %770 }
 0x3ab   : > { %v776_v47 = vsel %vm628_vm8, %v771_v46, 0 }
 0x3ac   : > { %785 = vmatpush.bf16.xpose.msrb.mxu0 %v776_v47 }
 0x3ad   : > { %v840_v48 = vpop.permute.xlu0 %839 }
 0x3ae   : > { %1174 = vmatmul.msk.bf16.vlgmr.msrb.gmra.mxu2 %vm628_vm8, %v698_v43  ;;  %1178 = vmatmul.msk.bf16.vlgmr.msra.gmra.mxu3 %vm628_vm8, %v840_v48 }
 0x3b5   : > { %v769_v49 = vpop.permute.xlu0 %768 }
 0x3b6   : > { %1176 = vmatmul.msk.bf16.vlgmr.msrb.gmra.mxu0 %vm628_vm8, %v769_v49 }
 0x421   : > { %v1474_v50 = vpop.f32.mrf.mxu2 }
 0x429   : > { %v1476_v51 = vpop.f32.mrf.mxu2 }
 0x431   : > { %v716_v52 = vpop.f32.mrf.mxu2  ;;  %v858_v53 = vpop.f32.mrf.mxu3 }
 0x432   : > { %v721_v54 = vmul.f32 0.35355338, %v716_v52  ;;  %v863_v55 = vmul.f32 0.35355338, %v858_v53 }
 0x433   : > { %v787_v56 = vpop.f32.mrf.mxu0 }
 0x434   : > { %v723_v57 = vadd.f32 %v721_v54, %v1451_v15  ;;  %v865_v58 = vadd.f32 %v863_v55, %v1451_v15  ;;  %v792_v8 = vmul.f32 0.35355338, %v787_v56 }
 0x436   : > { %v725_v59 = vsel %vm653_vm13, %v723_v57, -inf  ;;  %v867_v60 = vsel %vm653_vm13, %v865_v58, -inf  ;;  %v794_v14 = vadd.f32 %v792_v8, %v1451_v15 }
 0x437   : > { %726 = vmax.xlane.f32.xlu1 %v725_v59  ;;  %868 = vmax.xlane.f32.xlu2 %v867_v60 }
 0x438   : > { %v796_v16 = vsel %vm653_vm13, %v794_v14, -inf }
 0x439   : > { %v718_v61 = vpop.f32.mrf.mxu2  ;;  %v860_v63 = vpop.f32.mrf.mxu3 }
 0x43a   : > { %v722_v0 = vmul.f32 0.35355338, %v718_v61  ;;  %v864_v2 = vmul.f32 0.35355338, %v860_v63 }
 0x43b   : > { %v789_v4 = vpop.f32.mrf.mxu0 }
 0x43c   : > { %v793_v5 = vmul.f32 0.35355338, %v789_v4  ;;  %v724_v6 = vadd.f32 %v722_v0, %v1455_v20  ;;  %v866_v7 = vadd.f32 %v864_v2, %v1455_v20 }
 0x43e   : > { %v728_v9 = vsel %vm653_vm13, %v724_v6, -inf  ;;  %v870_v10 = vsel %vm653_vm13, %v866_v7, -inf  ;;  %v795_v12 = vadd.f32 %v793_v5, %v1455_v20 }
 0x43f   : > { %729 = vmax.xlane.f32.xlu0 %v728_v9  ;;  %871 = vmax.xlane.f32.xlu1 %v870_v10 }
 0x440   : > { %v799_v13 = vsel %vm653_vm13, %v795_v12, -inf }
 0x441   : > { %800 = vmax.xlane.f32.xlu2 %v799_v13 }
 0x447   : > { %797 = vmax.xlane.f32.xlu0 %v796_v16 }
 0x459   : > { %748 = vrot.lane.b32.xlu2 %v1440_v62, %s1303_s18 }
 0x4aa   : > { %v727_v17 = vpop.xlane.xlu1 %726  ;;  %v869_v18 = vpop.xlane.xlu2 %868 }
 0x4ab   : > { %v873_v19 = vsub.f32 %v865_v58, %v869_v18  ;;  %v731_v31 = vsub.f32 %v723_v57, %v727_v17 }
 0x4ad   : > { %v875_v21 = vmul.f32 1.442695, %v873_v19  ;;  %v733_v37 = vmul.f32 1.442695, %v731_v31 }
 0x4af   : > { %1252 = vpow2.f32 %v875_v21 }
 0x4b2   : > { %v872_v22 = vpop.xlane.xlu1 %871  ;;  %v730_v20 = vpop.xlane.xlu0 %729 }
 0x4b3   : > { %v874_v23 = vsub.f32 %v866_v7, %v872_v22  ;;  %v732_v34 = vsub.f32 %v724_v6, %v730_v20  ;;  %v512_v22 = vld [vmem:[%s1635_s6 + $0x10] sm:$0xff]  ;;  %v513_v20 = vld [vmem:[%s1635_s6 + $0x18] sm:$0xff] }
 0x4b4   : > { %v801_v24 = vpop.xlane.xlu2 %800 }
 0x4b5   : > { %v877_v25 = vmul.f32 1.442695, %v874_v23  ;;  %v803_v26 = vsub.f32 %v795_v12, %v801_v24  ;;  %v1491_v27 = vpop.eup %1252  ;;  %v735_v38 = vmul.f32 1.442695, %v732_v34  ;;  %v943_v23 = vpack.c.bf16 %v513_v20, %v512_v22  ;;  %v510_v24 = vld [vmem:[%s1635_s6] sm:$0xff] }
 0x4b6   : > { %v879_v15 = vsel %vm653_vm13, %v1491_v27, 0.0 }
 0x4b7   : > { %1254 = vpow2.f32 %v877_v25  ;;  %880 = vadd.xlane.f32.xlu1 %v879_v15  ;;  %v806_v28 = vmul.f32 1.442695, %v803_v26  ;;  %953 = vmatpush.bf16.msra.mxu0 %v943_v23  ;;  %v511_v25 = vld [vmem:[%s1635_s6 + $0x8] sm:$0xff] }
 0x4b8   : > { %v942_v26 = vpack.c.bf16 %v511_v25, %v510_v24 }
 0x4b9   : > { %1256 = vpow2.f32 %v806_v28 }
 0x4ba   : > { %v798_v29 = vpop.xlane.xlu0 %797 }
 0x4bb   : > { %v802_v30 = vsub.f32 %v794_v14, %v798_v29  ;;  %954 = vmatpush.bf16.msra.mxu0 %v942_v26  ;;  %v1235_v26 = vld [vmem:[%s1638_s9] ss:$0 sm:$0xff] }
 0x4bc   : > { %v749_v32 = vpop.permute.xlu2 %748 }
 0x4bd   : > { %v1255_v33 = vpop.eup %1254  ;;  %v804_v35 = vmul.f32 1.442695, %v802_v30  ;;  %761 = vmatpush.bf16.msra.mxu2 %v749_v32 }
 0x4be   : > { %v882_v36 = vsel %vm653_vm13, %v1255_v33, 0.0 }
 0x4bf   : > { %1258 = vpow2.f32 %v804_v35  ;;  %883 = vadd.xlane.f32.xlu0 %v882_v36  ;;  %v1257_v39 = vpop.eup %1256 }
 0x4c0   : > { %1260 = vpow2.f32 %v733_v37  ;;  %v811_v41 = vsel %vm653_vm13, %v1257_v39, 0.0 }
 0x4c1   : > { %1262 = vpow2.f32 %v735_v38 }
 0x4c5   : > { %v1259_v40 = vpop.eup %1258 }
 0x4c6   : > { %v808_v42 = vsel %vm653_vm13, %v1259_v40, 0.0  ;;  %v1261_v43 = vpop.eup %1260 }
 0x4c7   : > { %812 = vadd.xlane.f32.xlu0 %v811_v41  ;;  %809 = vadd.xlane.f32.xlu1 %v808_v42  ;;  %v1263_v44 = vpop.eup %1262  ;;  %v737_v46 = vsel %vm653_vm13, %v1261_v43, 0.0  ;;  %v1233_v42 = vld [vmem:[%s1636_s7] ss:$0 sm:$0xff] }
 0x4c8   : > { %v740_v45 = vsel %vm653_vm13, %v1263_v44, 0.0 }
 0x4cf   : > { %741 = vadd.xlane.f32.xlu0 %v740_v45  ;;  %738 = vadd.xlane.f32.xlu1 %v737_v46 }
 0x4e3   : > { %819 = vrot.lane.b32.xlu0 %v1440_v62, %s1304_s19  ;;  %s481_s19 = scalar_lea.vmem %s1643_s14, %s1184_s15 }
 0x4e8   : > { %890 = vrot.lane.b32.xlu1 %v1440_v62, %s1305_s20 }
 0x52a   : > { %v881_v47 = vpop.xlane.xlu1 %880 }
 0x532   : > { %v884_v48 = vpop.xlane.xlu0 %883 }
 0x53a   : > { %v810_v49 = vpop.xlane.xlu1 %809  ;;  %v813_v52 = vpop.xlane.xlu0 %812 }
 0x542   : > { %v739_v53 = vpop.xlane.xlu1 %738  ;;  %v742_v54 = vpop.xlane.xlu0 %741 }
 0x543   : > { %1264 = vrcp.f32 %v739_v53 }
 0x544   : > { %1266 = vrcp.f32 %v742_v54 }
 0x545   : > { %1268 = vrcp.f32 %v810_v49 }
 0x546   : > { %1270 = vrcp.f32 %v813_v52 }
 0x547   : > { %1272 = vrcp.f32 %v884_v48 }
 0x548   : > { %1274 = vrcp.f32 %v881_v47 }
 0x549   : > { %v1265_v55 = vpop.eup %1264 }
 0x54a   : > { %v1267_v56 = vpop.eup %1266  ;;  %v745_v57 = vmul.f32 %v1265_v55, %v1261_v43 }
 0x54b   : > { %v746_v58 = vmul.f32 %v1267_v56, %v1263_v44  ;;  %v1269_v60 = vpop.eup %1268 }
 0x54c   : > { %v1271_v61 = vpop.eup %1270  ;;  %v816_v62 = vmul.f32 %v1269_v60, %v1259_v40  ;;  %v520_v60 = vld [vmem:[%s1639_s10 + $0x18] sm:$0xff] }
 0x54d   : > { %v747_v59 = vpack.c.bf16 %v746_v58, %v745_v57  ;;  %v817_v63 = vmul.f32 %v1271_v61, %v1257_v39  ;;  %v1273_v2 = vpop.eup %1272 }
 0x54e   : > { %v1275_v5 = vpop.eup %1274  ;;  %v888_v6 = vmul.f32 %v1273_v2, %v1255_v33  ;;  %v518_v2 = vld [vmem:[%s1639_s10 + $0x8] sm:$0xff] }
 0x54f   : > { %1175 = vmatmul.msk.bf16.vlgmr.msra.gmra.mxu2 %vm653_vm13, %v747_v59  ;;  %v818_v4 = vpack.c.bf16 %v817_v63, %v816_v62  ;;  %v887_v8 = vmul.f32 %v1275_v5, %v1491_v27  ;;  %v519_v59 = vld [vmem:[%s1639_s10 + $0x10] sm:$0xff] }
 0x550   : > { %v1024_v61 = vpack.c.bf16 %v520_v60, %v519_v59 }
 0x551   : > { %v889_v9 = vpack.c.bf16 %v888_v6, %v887_v8 }
 0x555   : > { %v820_v0 = vpop.permute.xlu0 %819 }
 0x556   : > { %832 = vmatpush.bf16.msrb.mxu1 %v820_v0  ;;  %v517_v0 = vld [vmem:[%s1639_s10] sm:$0xff] }
 0x559   : > { %1177 = vmatmul.msk.bf16.vlgmr.msrb.gmra.mxu1 %vm653_vm13, %v818_v4  ;;  %v1023_v4 = vpack.c.bf16 %v518_v2, %v517_v0 }
 0x55a   : > { %v891_v7 = vpop.permute.xlu1 %890  ;;  %1037 = vmatpush.bf16.msra.mxu1 %v1024_v61 }
 0x55b   : > { %903 = vmatpush.bf16.msrb.mxu2 %v891_v7 }
 0x55e   : > { %1038 = vmatpush.bf16.msra.mxu1 %v1023_v4 }
 0x55f   : > { %1179 = vmatmul.msk.bf16.vlgmr.msrb.gmra.mxu2 %vm653_vm13, %v889_v9 }
 0x5d2   : > { %v763_v10 = vpop.f32.mrf.mxu2 }
 0x5d6   : > { %v834_v12 = vpop.f32.mrf.mxu1 }
 0x5da   : > { %v765_v13 = vpop.f32.mrf.mxu2 }
 0x5db   : > { %v1215_v14 = vpack.i.bf16 %v765_v13, %v763_v10 }
 0x5dd   : > { %1216 = vrot.lane.b32.xlu2 %v1215_v14, %s1306_s21 }
 0x5de   : > { %v836_v16 = vpop.f32.mrf.mxu1 }
 0x5df   : > { %v1220_v18 = vpack.i.bf16 %v836_v16, %v834_v12 }
 0x5e2   : > { %v905_v17 = vpop.f32.mrf.mxu2 }
 0x5e5   : > { %1221 = vrot.lane.b32.xlu2 %v1220_v18, %s1307_s22 }
 0x5ea   : > { %v907_v19 = vpop.f32.mrf.mxu2 }
 0x5eb   : > { %v1225_v21 = vpack.i.bf16 %v907_v19, %v905_v17 }
 0x5ed   : > { %1226 = vrot.lane.b32.xlu0 %v1225_v21, %s1308_s23 }
 0x637   : > { %v1217_v27 = vpop.permute.xlu2 %1216 }
 0x638   : > { %v1219_v28 = vunpack.i.h.bf16 %v1217_v27  ;;  %v1218_v29 = vunpack.i.l.bf16 %v1217_v27 }
 0x63a   : > { %v935_v33 = vsel %vm628_vm8, %v1476_v51, %v1219_v28  ;;  %v934_v34 = vsel %vm628_vm8, %v1474_v50, %v1218_v29 }
 0x63f   : > { %v1222_v15 = vpop.permute.xlu2 %1221 }
 0x640   : > { %v1224_v30 = vunpack.i.h.bf16 %v1222_v15  ;;  %v1223_v31 = vunpack.i.l.bf16 %v1222_v15 }
 0x642   : > { %v937_v37 = vsel %vm653_vm13, %v935_v33, %v1224_v30  ;;  %v936_v38 = vsel %vm653_vm13, %v934_v34, %v1223_v31  ;;  %v537_v33 = vld [vmem:[%s1641_s12 + $0x78] sm:$0xff] }
 0x65f   : > { %v1227_v32 = vpop.permute.xlu0 %1226 }
 0x660   : > { %v1229_v35 = vunpack.i.h.bf16 %v1227_v32  ;;  %v1228_v36 = vunpack.i.l.bf16 %v1227_v32  ;;  %v536_v32 = vld [vmem:[%s1641_s12 + $0x70] sm:$0xff] }
 0x661   : > { %v1071_v34 = vpack.c.bf16 %v537_v33, %v536_v32 }
 0x662   : > { %v940_v39 = vsel %vm938_vm1, %v937_v37, %v1229_v35  ;;  %v939_v40 = vsel %vm938_vm1, %v936_v38, %v1228_v36  ;;  %v534_v35 = vld [vmem:[%s1641_s12 + $0x60] sm:$0xff]  ;;  %v535_v36 = vld [vmem:[%s1641_s12 + $0x68] sm:$0xff]  ;;  %v532_v38 = vld [vmem:[%s1641_s12 + $0x50] sm:$0xff] }
 0x663   : > { %v941_v41 = vpack.c.bf16 %v940_v39, %v939_v40  ;;  %1072 = vmatpush.bf16.msrb.mxu3 %v1071_v34  ;;  %v1070_v37 = vpack.c.bf16 %v535_v36, %v534_v35  ;;  %v533_v39 = vld [vmem:[%s1641_s12 + $0x58] sm:$0xff] }
 0x664   : > { %v1069_v40 = vpack.c.bf16 %v533_v39, %v532_v38 }
 0x665   : > { %1180 = vmatmul.msk.bf16.vlgmr.msra.gmra.mxu0 %vm539_vm0, %v941_v41  ;;  %v530_v41 = vld [vmem:[%s1641_s12 + $0x40] sm:$0xff] }
 0x667   : > { %1073 = vmatpush.bf16.msrb.mxu3 %v1070_v37 }
 0x66b   : > { %1074 = vmatpush.bf16.msrb.mxu3 %v1069_v40 }
 0x6e2   : > { %v956_v43 = vpop.f32.mrf.mxu0 }
 0x6e3   : > { %v961_v51 = vadd.f32 %v1400_v1, %v956_v43 }
 0x6e5   : > { %v1529_v44 = vadd.f32 %v1233_v42, %v961_v51  ;;  %v528_v51 = vld [vmem:[%s1641_s12 + $0x30] sm:$0xff] }
 0x6e7   : > { %v968_v50 = vsel %vm539_vm0, %v1529_v44, 0.0 }
 0x6e8   : > { %969 = vadd.xlane.f32.xlu2 %v968_v50  ;;  %v529_v50 = vld [vmem:[%s1641_s12 + $0x38] sm:$0xff] }
 0x6ea   : > { %v958_v45 = vpop.f32.mrf.mxu0 }
 0x6eb   : > { %v962_v46 = vadd.f32 %v1404_v3, %v958_v45  ;;  %v1067_v45 = vpack.c.bf16 %v529_v50, %v528_v51 }
 0x6ed   : > { %v1534_v47 = vadd.f32 %v1233_v42, %v962_v46  ;;  %v531_v42 = vld [vmem:[%s1641_s12 + $0x48] sm:$0xff]  ;;  %v526_v46 = vld [vmem:[%s1641_s12 + $0x20] sm:$0xff] }
 0x6ee   : > { %v1068_v43 = vpack.c.bf16 %v531_v42, %v530_v41 }
 0x6ef   : > { %v971_v48 = vsel %vm539_vm0, %v1534_v47, 0.0 }
 0x6f0   : > { %972 = vadd.xlane.f32.xlu1 %v971_v48  ;;  %1075 = vmatpush.bf16.msrb.mxu3 %v1068_v43  ;;  %v527_v48 = vld [vmem:[%s1641_s12 + $0x28] sm:$0xff] }
 0x6f4   : > { %1076 = vmatpush.bf16.msrb.mxu3 %v1067_v45 }
 0x75b   : > { %v970_v49 = vpop.xlane.xlu2 %969 }
 0x75c   : > { %v974_v52 = vmul.f32 %v970_v49, %v1408_v11  ;;  %v1066_v49 = vpack.c.bf16 %v527_v48, %v526_v46 }
 0x75e   : > { %v976_v1 = vsub.f32 %v1529_v44, %v974_v52  ;;  %v524_v52 = vld [vmem:[%s1641_s12 + $0x10] sm:$0xff]  ;;  %1077 = vmatpush.bf16.msrb.mxu3 %v1066_v49 }
 0x760   : > { %v978_v53 = vmul.f32 %v976_v1, %v976_v1 }
 0x762   : > { %v980_v54 = vsel %vm539_vm0, %v978_v53, 0.0 }
 0x763   : > { %981 = vadd.xlane.f32.xlu0 %v980_v54  ;;  %v973_v55 = vpop.xlane.xlu1 %972  ;;  %v522_v54 = vld [vmem:[%s1641_s12] sm:$0xff] }
 0x764   : > { %v975_v56 = vmul.f32 %v973_v55, %v1408_v11  ;;  %v523_v55 = vld [vmem:[%s1641_s12 + $0x8] sm:$0xff] }
 0x766   : > { %v977_v3 = vsub.f32 %v1534_v47, %v975_v56  ;;  %v1064_v56 = vpack.c.bf16 %v523_v55, %v522_v54 }
 0x768   : > { %v979_v57 = vmul.f32 %v977_v3, %v977_v3 }
 0x76a   : > { %v983_v58 = vsel %vm539_vm0, %v979_v57, 0.0 }
 0x76b   : > { %984 = vadd.xlane.f32.xlu2 %v983_v58 }
 0x7d6   : > { %v982_v62 = vpop.xlane.xlu0 %981 }
 0x7d7   : > { %v986_v63 = vmul.f32 %v982_v62, %v1408_v11 }
 0x7d9   : > { %v988_v5 = vadd.f32 1e-05, %v986_v63 }
 0x7db   : > { %1276 = vrsqrt.f32 %v988_v5  ;;  %vm996_vm3 = vweird.f32 %v988_v5 }
 0x7de   : > { %v985_v6 = vpop.xlane.xlu2 %984 }
 0x7df   : > { %v987_v7 = vmul.f32 %v985_v6, %v1408_v11  ;;  %v1234_v11 = vld [vmem:[%s1637_s8] ss:$0 sm:$0xff] }
 0x7e1   : > { %v1277_v8 = vpop.eup %1276  ;;  %v989_v9 = vadd.f32 1e-05, %v987_v7 }
 0x7e2   : > { %v991_v10 = vmul.f32 %v1277_v8, %v988_v5  ;;  %vm997_vm2 = vweird.f32 %v1277_v8 }
 0x7e3   : > { %1278 = vrsqrt.f32 %v989_v9  ;;  %vm998_vm4 = vmor %vm996_vm3, %vm997_vm2  ;;  %vm1006_vm6 = vweird.f32 %v989_v9 }
 0x7e4   : > { %v992_v12 = vmul.f32 %v1277_v8, %v991_v10 }
 0x7e6   : > { %v993_v13 = vmul.f32 0.5, %v992_v12 }
 0x7e8   : > { %v994_v14 = vsub.f32 1.5, %v993_v13 }
 0x7e9   : > { %v1279_v16 = vpop.eup %1278 }
 0x7ea   : > { %v995_v17 = vmul.f32 %v1277_v8, %v994_v14  ;;  %v1001_v18 = vmul.f32 %v1279_v16, %v989_v9  ;;  %vm1007_vm5 = vweird.f32 %v1279_v16 }
 0x7eb   : > { %vm1008_vm7 = vmor %vm1006_vm6, %vm1007_vm5 }
 0x7ec   : > { %v1002_v19 = vmul.f32 %v1279_v16, %v1001_v18  ;;  %v999_v21 = vsel %vm998_vm4, %v1277_v8, %v995_v17 }
 0x7ed   : > { %v1010_v23 = vmul.f32 %v999_v21, %v976_v1  ;;  %v525_v1 = vld [vmem:[%s1641_s12 + $0x18] sm:$0xff]  ;;  %v1237_v21 = vld [vmem:[%s1642_s13] ss:$0 sm:$0xff] }
 0x7ee   : > { %v1003_v22 = vmul.f32 0.5, %v1002_v19  ;;  %v1065_v53 = vpack.c.bf16 %v525_v1, %v524_v52 }
 0x7ef   : > { %v1015_v27 = vmul.f32 %v1234_v11, %v1010_v23 }
 0x7f0   : > { %v1004_v20 = vsub.f32 1.5, %v1003_v22  ;;  %1078 = vmatpush.bf16.msrb.mxu3 %v1065_v53 }
 0x7f1   : > { %v1020_v29 = vadd.f32 %v1235_v26, %v1015_v27 }
 0x7f2   : > { %v1005_v24 = vmul.f32 %v1279_v16, %v1004_v20 }
 0x7f4   : > { %v1009_v25 = vsel %vm1008_vm7, %v1279_v16, %v1005_v24  ;;  %1079 = vmatpush.bf16.msrb.mxu3 %v1064_v56 }
 0x7f5   : > { %v1011_v15 = vmul.f32 %v1009_v25, %v977_v3  ;;  %v1236_v3 = vld [vmem:[%s1640_s11] ss:$0 sm:$0xff] }
 0x7f7   : > { %v1016_v28 = vmul.f32 %v1234_v11, %v1011_v15 }
 0x7f9   : > { %v1021_v30 = vadd.f32 %v1235_v26, %v1016_v28 }
 0x7fb   : > { %v1022_v31 = vpack.c.bf16 %v1021_v30, %v1020_v29 }
 0x7fd   : > { %1181 = vmatmul.msk.bf16.vlgmr.msra.gmra.mxu1 %vm539_vm0, %v1022_v31  ;;  %vm1095_vm0 = vcmask 257024  }
 0x87a   : > { %v1040_v57 = vpop.f32.mrf.mxu1 }
 0x87b   : > { %v1041_v58 = vadd.f32 %v1236_v3, %v1040_v57 }
 0x87d   : > { %v1047_v59 = vmul.f32 0.044715, %v1041_v58  ;;  %v1045_v13 = vmul.f32 0.5, %v1041_v58 }
 0x87f   : > { %v1049_v60 = vmul.f32 %v1047_v59, %v1041_v58 }
 0x881   : > { %v1051_v61 = vmul.f32 %v1049_v60, %v1041_v58 }
 0x882   : > { %v1042_v62 = vpop.f32.mrf.mxu1 }
 0x883   : > { %v1043_v63 = vadd.f32 %v1236_v3, %v1042_v62  ;;  %v1053_v0 = vadd.f32 %v1051_v61, %v1041_v58 }
 0x885   : > { %v1048_v2 = vmul.f32 0.044715, %v1043_v63  ;;  %v1055_v5 = vmul.f32 0.7978846, %v1053_v0  ;;  %v1046_v14 = vmul.f32 0.5, %v1043_v63 }
 0x887   : > { %v1050_v4 = vmul.f32 %v1048_v2, %v1043_v63  ;;  %1280 = vtanh.f32 %v1055_v5 }
 0x889   : > { %v1052_v6 = vmul.f32 %v1050_v4, %v1043_v63 }
 0x88b   : > { %v1054_v7 = vadd.f32 %v1052_v6, %v1043_v63 }
 0x88d   : > { %v1056_v8 = vmul.f32 0.7978846, %v1054_v7  ;;  %v1281_v9 = vpop.eup %1280 }
 0x88e   : > { %v1059_v10 = vadd.f32 1.0, %v1281_v9 }
 0x88f   : > { %1282 = vtanh.f32 %v1056_v8 }
 0x890   : > { %v1061_v17 = vmul.f32 %v1059_v10, %v1045_v13 }
 0x895   : > { %v1283_v12 = vpop.eup %1282 }
 0x896   : > { %v1060_v16 = vadd.f32 1.0, %v1283_v12 }
 0x898   : > { %v1062_v18 = vmul.f32 %v1060_v16, %v1046_v14 }
 0x89a   : > { %v1063_v19 = vpack.c.bf16 %v1062_v18, %v1061_v17 }
 0x89c   : > { %1080 = vmatmul.bf16.vlgmr.msrb.gmra.mxu3 %v1063_v19 }
 0x91f   : > { %v1081_v22 = vpop.f32.mrf.mxu3 }
 0x920   : > { %v1086_v20 = vadd.f32 %v1081_v22, %v1529_v44 }
 0x922   : > { %v1091_v11 = vadd.f32 %v1237_v21, %v1086_v20 }
 0x924   : > { %v1093_v23 = vpack.c.bf16 %v1091_v11, %v1091_v11 }
 0x926   : > { %1096 = vst.msk [vmem:[%s481_s19] sm:$0xf] %vm1095_vm0, %v1093_v23 }
 0x927   : > { %v1083_v24 = vpop.f32.mrf.mxu3 }
 0x928   : > { %v1087_v25 = vadd.f32 %v1083_v24, %v1534_v47 }
 0x92a   : > { %v1092_v26 = vadd.f32 %v1237_v21, %v1087_v25 }
 0x92c   : > { %v1094_v27 = vpack.c.bf16 %v1092_v26, %v1092_v26 }
 0x92e   : > { %1097 = vst.msk [vmem:[%s481_s19 + $0x4] sm:$0xf] %vm1095_vm0, %v1094_v27 }
 0x92f PF: > { %s24_s29 = sadd.s32 1, %s1290_s29  }
 0x930   : > { %p21_p4 = scmp.ge.s32.totalorder %s24_s29, 4  }
 0x932   :  { %23 = sbr.rel (!%p21_p4) target bundleno = 1 (0x1), region = 109 }

</bundles_post_ra>
